<compile_context>
chip_gen: v7x
topology: tpu7x:2x2x1
jax: 0.10.0
libtpu: 0.0.40
codegen_flags: <defaults>
</compile_context>

<pallas_src>
import functools

import jax
import jax.numpy as jnp
from jax import lax
from jax.experimental import pallas as pl
from jax.experimental.pallas import tpu as pltpu


def _round_up(x, m):
    return (x + m - 1) // m * m


def _resblock_kernel(x_ref, w1_ref, b1_ref, w2_ref, b2_ref, out_ref,
                     xpad_ref, midpad_ref, *, C, H, W, Bt, KH, KW, ph, pw, Rt):
    """ResBlock on one batch tile, batch-in-lanes layout.

    x_ref     : (C, H, W, Bt)          VMEM input block (batch tile in lanes)
    w*_ref    : (C*C*KH*KW,)           SMEM flat conv weights (OIHW row-major)
    b*_ref    : (C,)                   SMEM biases
    out_ref   : (C, H, W, Bt)          VMEM output block
    xpad_ref, midpad_ref : (C, H+2ph, W+2pw, Bt) VMEM padded scratch
    """
    f32 = jnp.float32
    Hp = H + 2 * ph
    Wp = W + 2 * pw
    taps = C * KH * KW
    nrt = H // Rt

    def zero_halo(ref):
        # Zero only the halo frame; the interior is always overwritten below.
        # Done every grid step so per-core scratch is correct under megacore.
        if ph > 0:
            ref[:, 0:ph, :, :] = jnp.zeros((C, ph, Wp, Bt), f32)
            ref[:, ph + H:Hp, :, :] = jnp.zeros((C, ph, Wp, Bt), f32)
        if pw > 0:
            ref[:, :, 0:pw, :] = jnp.zeros((C, Hp, pw, Bt), f32)
            ref[:, :, pw + W:Wp, :] = jnp.zeros((C, Hp, pw, Bt), f32)

    zero_halo(xpad_ref)
    zero_halo(midpad_ref)

    # Stage the lane-dense input into the padded scratch interior.
    xpad_ref[:, ph:ph + H, pw:pw + W, :] = x_ref[...]

    def conv_relu(src_ref, w_ref, b_ref, store_fn):
        """'same' conv + bias + ReLU, row-tiled; taps outer / channels inner."""

        def row_tile(r, carry):
            h0 = pl.multiple_of(r * Rt, Rt)
            # Bias folded into the accumulator init; only C accumulators and
            # one shifted plane slab are live at a time (no vreg spills).
            accs = [jnp.full((Rt, W, Bt), b_ref[co], f32) for co in range(C)]
            for ci in range(C):
                for di in range(KH):
                    for dj in range(KW):
                        plane = src_ref[ci, pl.ds(h0 + di, Rt), pl.ds(dj, W), :]
                        t = (ci * KH + di) * KW + dj
                        for co in range(C):
                            accs[co] = accs[co] + w_ref[co * taps + t] * plane
            for co in range(C):
                store_fn(co, h0, jnp.maximum(accs[co], 0.0))
            return carry

        lax.fori_loop(0, nrt, row_tile, 0)

    # conv1 + ReLU -> interior of the second padded scratch.
    def store_mid(co, h0, y):
        midpad_ref[co, pl.ds(ph + h0, Rt), pl.ds(pw, W), :] = y

    conv_relu(xpad_ref, w1_ref, b1_ref, store_mid)

    # conv2 + ReLU + residual (x re-read here to keep its live range short).
    def store_out(co, h0, y):
        out_ref[co, pl.ds(h0, Rt), :, :] = y + x_ref[co, pl.ds(h0, Rt), :, :]

    conv_relu(midpad_ref, w2_ref, b2_ref, store_out)


def resblock_forward(x_nchw, w1, b1, w2, b2):
    """x_nchw: (N, C, H, W); w*: (Cout, Cin, KH, KW) torch layout; b*: (Cout,)."""
    N, C, H, W = x_nchw.shape
    Cout, Cin, KH, KW = w1.shape
    assert Cout == C and Cin == C, "ResBlock keeps the channel count"
    assert KH % 2 == 1 and KW % 2 == 1, "'same' halo handling assumes odd kernels"
    ph, pw = (KH - 1) // 2, (KW - 1) // 2

    LANE = 128
    if N >= LANE:
        Bt = LANE                       # lane-dense batch tile
        Nb = _round_up(N, LANE)
    else:
        Bt = Nb = N                     # full-dim block (small batches)

    # Row tile keeps C accumulators + one plane slab comfortably in vregs.
    Rt = 2 if H % 2 == 0 else 1

    x32 = x_nchw.astype(jnp.float32)
    if Nb != N:
        x32 = jnp.pad(x32, ((0, Nb - N), (0, 0), (0, 0), (0, 0)))
    # Lane-dense repack: batch goes to the minor (lane) dimension.
    x_t = jnp.transpose(x32, (1, 2, 3, 0))            # (C, H, W, Nb)

    w1f = w1.astype(jnp.float32).reshape(-1)          # (Cout*Cin*KH*KW,)
    w2f = w2.astype(jnp.float32).reshape(-1)
    b1f = b1.astype(jnp.float32)
    b2f = b2.astype(jnp.float32)

    kernel = functools.partial(_resblock_kernel, C=C, H=H, W=W, Bt=Bt,
                               KH=KH, KW=KW, ph=ph, pw=pw, Rt=Rt)

    blk = pl.BlockSpec((C, H, W, Bt), lambda n: (0, 0, 0, n))
    smem = pl.BlockSpec(memory_space=pltpu.MemorySpace.SMEM)

    # 2 convs, each MAC = 2 flops; I/O ~= read x + write out + weights/biases.
    flops = 2 * 2 * KH * KW * C * C * N * H * W
    bytes_accessed = 4 * (2 * N * C * H * W + 2 * C * C * KH * KW + 2 * C)

    y_t = pl.pallas_call(
        kernel,
        out_shape=jax.ShapeDtypeStruct((C, H, W, Nb), jnp.float32),
        grid=(Nb // Bt,),
        in_specs=[blk, smem, smem, smem, smem],
        out_specs=blk,
        scratch_shapes=[
            pltpu.VMEM((C, H + 2 * ph, W + 2 * pw, Bt), jnp.float32),  # padded x
            pltpu.VMEM((C, H + 2 * ph, W + 2 * pw, Bt), jnp.float32),  # padded mid
        ],
        compiler_params=pltpu.CompilerParams(
            dimension_semantics=("parallel",),
            vmem_limit_bytes=32 * 1024 * 1024,
        ),
        cost_estimate=pl.CostEstimate(
            flops=flops, transcendentals=0, bytes_accessed=bytes_accessed),
    )(x_t, w1f, b1f, w2f, b2f)

    out = jnp.transpose(y_t, (3, 0, 1, 2))            # (Nb, C, H, W)
    return out[:N] if Nb != N else out


def _reference(x_nchw, w1, b1, w2, b2):
    """Pure-JAX reference of the PyTorch forward pass (NCHW convs)."""
    dn = jax.lax.conv_dimension_numbers(x_nchw.shape, w1.shape,
                                        ("NCHW", "OIHW", "NCHW"))

    def conv(x, w, b):
        y = jax.lax.conv_general_dilated(x, w, (1, 1), "SAME",
                                         dimension_numbers=dn)
        return y + b.reshape(1, -1, 1, 1)

    y = jnp.maximum(conv(x_nchw, w1, b1), 0.0)
    y = jnp.maximum(conv(y, w2, b2), 0.0)
    return y + x_nchw


if __name__ == "__main__":
    # Small shapes consistent with ResBlock(inputChannels=4, kernel=3).
    N, C, H, W = 2, 4, 16, 16
    KH = KW = 3

    key = jax.random.PRNGKey(0)
    kx, k1, k2, k3, k4 = jax.random.split(key, 5)
    x = jax.random.normal(kx, (N, C, H, W), dtype=jnp.float32)

    # Deterministic Conv2d-style init (uniform, fan_in based bound).
    fan_in = C * KH * KW
    bound = 1.0 / float(fan_in) ** 0.5
    w1 = jax.random.uniform(k1, (C, C, KH, KW), jnp.float32, -bound, bound)
    b1 = jax.random.uniform(k2, (C,), jnp.float32, -bound, bound)
    w2 = jax.random.uniform(k3, (C, C, KH, KW), jnp.float32, -bound, bound)
    b2 = jax.random.uniform(k4, (C,), jnp.float32, -bound, bound)

    out = jax.block_until_ready(resblock_forward(x, w1, b1, w2, b2))
    ref = jax.block_until_ready(_reference(x, w1, b1, w2, b2))

    assert out.shape == (N, C, H, W)
    assert jnp.allclose(out, ref, rtol=1e-4, atol=1e-4), "mismatch vs reference"
    print("KERNEL_OK")
</pallas_src>

<mosaic_0001>
module attributes {stable_mosaic.version = 11 : i64} {
  func.func @_resblock_kernel(%arg0: i32, %arg1: memref<4x16x16x2xf32, #tpu.memory_space<vmem>>, %arg2: memref<144xf32, #tpu.memory_space<smem>>, %arg3: memref<4xf32, #tpu.memory_space<smem>>, %arg4: memref<144xf32, #tpu.memory_space<smem>>, %arg5: memref<4xf32, #tpu.memory_space<smem>>, %arg6: memref<4x16x16x2xf32, #tpu.memory_space<vmem>>, %arg7: memref<4x18x18x2xf32, #tpu.memory_space<vmem>>, %arg8: memref<4x18x18x2xf32, #tpu.memory_space<vmem>>) attributes {dimension_semantics = [#tpu.dimension_semantics<parallel>], iteration_bounds = array<i64: 1>, scalar_prefetch = 0 : i64, scratch_operands = 2 : i64, tpu.core_type = #tpu.core_type<tc>, window_params = [{transform_indices = @transform_0, window_bounds = array<i64: 4, 16, 16, 2>}, {transform_indices = @transform_1, window_bounds = array<i64: 144>}, {transform_indices = @transform_2, window_bounds = array<i64: 4>}, {transform_indices = @transform_3, window_bounds = array<i64: 144>}, {transform_indices = @transform_4, window_bounds = array<i64: 4>}, {transform_indices = @transform_5, window_bounds = array<i64: 4, 16, 16, 2>}]} {
    %cst = arith.constant 0.000000e+00 : f32
    %0 = vector.broadcast %cst : f32 to vector<4x1x18x2xf32>
    %c0 = arith.constant 0 : index
    %c0_0 = arith.constant 0 : index
    %c0_1 = arith.constant 0 : index
    %c0_2 = arith.constant 0 : index
    %1 = vector.load %arg7[%c0, %c0_0, %c0_1, %c0_2] : memref<4x18x18x2xf32, #tpu.memory_space<vmem>>, vector<4x1x18x2xf32>
    tpu.vector_store %arg7[%c0, %c0_0, %c0_1, %c0_2], %0 {strides = array<i32>} : memref<4x18x18x2xf32, #tpu.memory_space<vmem>>, vector<4x1x18x2xf32>,
    %cst_3 = arith.constant 0.000000e+00 : f32
    %2 = vector.broadcast %cst_3 : f32 to vector<4x1x18x2xf32>
    %c0_4 = arith.constant 0 : index
    %c17 = arith.constant 17 : index
    %c0_5 = arith.constant 0 : index
    %c0_6 = arith.constant 0 : index
    %3 = vector.load %arg7[%c0_4, %c17, %c0_5, %c0_6] : memref<4x18x18x2xf32, #tpu.memory_space<vmem>>, vector<4x1x18x2xf32>
    tpu.vector_store %arg7[%c0_4, %c17, %c0_5, %c0_6], %2 {strides = array<i32>} : memref<4x18x18x2xf32, #tpu.memory_space<vmem>>, vector<4x1x18x2xf32>,
    %cst_7 = arith.constant 0.000000e+00 : f32
    %4 = vector.broadcast %cst_7 : f32 to vector<4x18x1x2xf32>
    %c0_8 = arith.constant 0 : index
    %c0_9 = arith.constant 0 : index
    %c0_10 = arith.constant 0 : index
    %c0_11 = arith.constant 0 : index
    %5 = vector.load %arg7[%c0_8, %c0_9, %c0_10, %c0_11] : memref<4x18x18x2xf32, #tpu.memory_space<vmem>>, vector<4x18x1x2xf32>
    tpu.vector_store %arg7[%c0_8, %c0_9, %c0_10, %c0_11], %4 {strides = array<i32>} : memref<4x18x18x2xf32, #tpu.memory_space<vmem>>, vector<4x18x1x2xf32>,
    %cst_12 = arith.constant 0.000000e+00 : f32
    %6 = vector.broadcast %cst_12 : f32 to vector<4x18x1x2xf32>
    %c0_13 = arith.constant 0 : index
    %c0_14 = arith.constant 0 : index
    %c17_15 = arith.constant 17 : index
    %c0_16 = arith.constant 0 : index
    %7 = vector.load %arg7[%c0_13, %c0_14, %c17_15, %c0_16] : memref<4x18x18x2xf32, #tpu.memory_space<vmem>>, vector<4x18x1x2xf32>
    tpu.vector_store %arg7[%c0_13, %c0_14, %c17_15, %c0_16], %6 {strides = array<i32>} : memref<4x18x18x2xf32, #tpu.memory_space<vmem>>, vector<4x18x1x2xf32>,
    %cst_17 = arith.constant 0.000000e+00 : f32
    %8 = vector.broadcast %cst_17 : f32 to vector<4x1x18x2xf32>
    %c0_18 = arith.constant 0 : index
    %c0_19 = arith.constant 0 : index
    %c0_20 = arith.constant 0 : index
    %c0_21 = arith.constant 0 : index
    %9 = vector.load %arg8[%c0_18, %c0_19, %c0_20, %c0_21] : memref<4x18x18x2xf32, #tpu.memory_space<vmem>>, vector<4x1x18x2xf32>
    tpu.vector_store %arg8[%c0_18, %c0_19, %c0_20, %c0_21], %8 {strides = array<i32>} : memref<4x18x18x2xf32, #tpu.memory_space<vmem>>, vector<4x1x18x2xf32>,
    %cst_22 = arith.constant 0.000000e+00 : f32
    %10 = vector.broadcast %cst_22 : f32 to vector<4x1x18x2xf32>
    %c0_23 = arith.constant 0 : index
    %c17_24 = arith.constant 17 : index
    %c0_25 = arith.constant 0 : index
    %c0_26 = arith.constant 0 : index
    %11 = vector.load %arg8[%c0_23, %c17_24, %c0_25, %c0_26] : memref<4x18x18x2xf32, #tpu.memory_space<vmem>>, vector<4x1x18x2xf32>
    tpu.vector_store %arg8[%c0_23, %c17_24, %c0_25, %c0_26], %10 {strides = array<i32>} : memref<4x18x18x2xf32, #tpu.memory_space<vmem>>, vector<4x1x18x2xf32>,
    %cst_27 = arith.constant 0.000000e+00 : f32
    %12 = vector.broadcast %cst_27 : f32 to vector<4x18x1x2xf32>
    %c0_28 = arith.constant 0 : index
    %c0_29 = arith.constant 0 : index
    %c0_30 = arith.constant 0 : index
    %c0_31 = arith.constant 0 : index
    %13 = vector.load %arg8[%c0_28, %c0_29, %c0_30, %c0_31] : memref<4x18x18x2xf32, #tpu.memory_space<vmem>>, vector<4x18x1x2xf32>
    tpu.vector_store %arg8[%c0_28, %c0_29, %c0_30, %c0_31], %12 {strides = array<i32>} : memref<4x18x18x2xf32, #tpu.memory_space<vmem>>, vector<4x18x1x2xf32>,
    %cst_32 = arith.constant 0.000000e+00 : f32
    %14 = vector.broadcast %cst_32 : f32 to vector<4x18x1x2xf32>
    %c0_33 = arith.constant 0 : index
    %c0_34 = arith.constant 0 : index
    %c17_35 = arith.constant 17 : index
    %c0_36 = arith.constant 0 : index
    %15 = vector.load %arg8[%c0_33, %c0_34, %c17_35, %c0_36] : memref<4x18x18x2xf32, #tpu.memory_space<vmem>>, vector<4x18x1x2xf32>
    tpu.vector_store %arg8[%c0_33, %c0_34, %c17_35, %c0_36], %14 {strides = array<i32>} : memref<4x18x18x2xf32, #tpu.memory_space<vmem>>, vector<4x18x1x2xf32>,
    %c0_37 = arith.constant 0 : index
    %c0_38 = arith.constant 0 : index
    %c0_39 = arith.constant 0 : index
    %c0_40 = arith.constant 0 : index
    %16 = vector.load %arg1[%c0_37, %c0_38, %c0_39, %c0_40] : memref<4x16x16x2xf32, #tpu.memory_space<vmem>>, vector<4x16x16x2xf32>
    %c0_41 = arith.constant 0 : index
    %c1 = arith.constant 1 : index
    %c1_42 = arith.constant 1 : index
    %c0_43 = arith.constant 0 : index
    %17 = vector.load %arg7[%c0_41, %c1, %c1_42, %c0_43] : memref<4x18x18x2xf32, #tpu.memory_space<vmem>>, vector<4x16x16x2xf32>
    tpu.vector_store %arg7[%c0_41, %c1, %c1_42, %c0_43], %16 {strides = array<i32>} : memref<4x18x18x2xf32, #tpu.memory_space<vmem>>, vector<4x16x16x2xf32>,
    %c0_i32 = arith.constant 0 : i32
    %c8_i32 = arith.constant 8 : i32
    %18 = arith.addi %c0_i32, %c8_i32 : i32
    %c1_i32 = arith.constant 1 : i32
    scf.for %arg9 = %c0_i32 to %18 step %c1_i32  : i32 {
      %c2_i32 = arith.constant 2 : i32
      %20 = arith.muli %arg9, %c2_i32 : i32
      %21 = tpu.assume_multiple %20, 2 : i32
      %c0_49 = arith.constant 0 : index
      %22 = memref.load %arg3[%c0_49] : memref<4xf32, #tpu.memory_space<smem>>
      %23 = vector.broadcast %22 : f32 to vector<2x16x2xf32>
      %c1_50 = arith.constant 1 : index
      %24 = memref.load %arg3[%c1_50] : memref<4xf32, #tpu.memory_space<smem>>
      %25 = vector.broadcast %24 : f32 to vector<2x16x2xf32>
      %c2 = arith.constant 2 : index
      %26 = memref.load %arg3[%c2] : memref<4xf32, #tpu.memory_space<smem>>
      %27 = vector.broadcast %26 : f32 to vector<2x16x2xf32>
      %c3 = arith.constant 3 : index
      %28 = memref.load %arg3[%c3] : memref<4xf32, #tpu.memory_space<smem>>
      %29 = vector.broadcast %28 : f32 to vector<2x16x2xf32>
      %c0_i32_51 = arith.constant 0 : i32
      %30 = arith.addi %21, %c0_i32_51 : i32
      %c0_52 = arith.constant 0 : index
      %31 = arith.index_cast %30 : i32 to index
      %c0_53 = arith.constant 0 : index
      %c0_54 = arith.constant 0 : index
      %32 = vector.load %arg7[%c0_52, %31, %c0_53, %c0_54] : memref<4x18x18x2xf32, #tpu.memory_space<vmem>>, vector<1x2x16x2xf32>
      %33 = vector.shape_cast %32 : vector<1x2x16x2xf32> to vector<2x16x2xf32>
      %c0_55 = arith.constant 0 : index
      %34 = memref.load %arg2[%c0_55] : memref<144xf32, #tpu.memory_space<smem>>
      %35 = vector.broadcast %34 : f32 to vector<2x16x2xf32>
      %36 = arith.mulf %35, %33 : vector<2x16x2xf32>
      %37 = arith.addf %23, %36 : vector<2x16x2xf32>
      %c36 = arith.constant 36 : index
      %38 = memref.load %arg2[%c36] : memref<144xf32, #tpu.memory_space<smem>>
      %39 = vector.broadcast %38 : f32 to vector<2x16x2xf32>
      %40 = arith.mulf %39, %33 : vector<2x16x2xf32>
      %41 = arith.addf %25, %40 : vector<2x16x2xf32>
      %c72 = arith.constant 72 : index
      %42 = memref.load %arg2[%c72] : memref<144xf32, #tpu.memory_space<smem>>
      %43 = vector.broadcast %42 : f32 to vector<2x16x2xf32>
      %44 = arith.mulf %43, %33 : vector<2x16x2xf32>
      %45 = arith.addf %27, %44 : vector<2x16x2xf32>
      %c108 = arith.constant 108 : index
      %46 = memref.load %arg2[%c108] : memref<144xf32, #tpu.memory_space<smem>>
      %47 = vector.broadcast %46 : f32 to vector<2x16x2xf32>
      %48 = arith.mulf %47, %33 : vector<2x16x2xf32>
      %49 = arith.addf %29, %48 : vector<2x16x2xf32>
      %c0_i32_56 = arith.constant 0 : i32
      %50 = arith.addi %21, %c0_i32_56 : i32
      %c0_57 = arith.constant 0 : index
      %51 = arith.index_cast %50 : i32 to index
      %c1_58 = arith.constant 1 : index
      %c0_59 = arith.constant 0 : index
      %52 = vector.load %arg7[%c0_57, %51, %c1_58, %c0_59] : memref<4x18x18x2xf32, #tpu.memory_space<vmem>>, vector<1x2x16x2xf32>
      %53 = vector.shape_cast %52 : vector<1x2x16x2xf32> to vector<2x16x2xf32>
      %c1_60 = arith.constant 1 : index
      %54 = memref.load %arg2[%c1_60] : memref<144xf32, #tpu.memory_space<smem>>
      %55 = vector.broadcast %54 : f32 to vector<2x16x2xf32>
      %56 = arith.mulf %55, %53 : vector<2x16x2xf32>
      %57 = arith.addf %37, %56 : vector<2x16x2xf32>
      %c37 = arith.constant 37 : index
      %58 = memref.load %arg2[%c37] : memref<144xf32, #tpu.memory_space<smem>>
      %59 = vector.broadcast %58 : f32 to vector<2x16x2xf32>
      %60 = arith.mulf %59, %53 : vector<2x16x2xf32>
      %61 = arith.addf %41, %60 : vector<2x16x2xf32>
      %c73 = arith.constant 73 : index
      %62 = memref.load %arg2[%c73] : memref<144xf32, #tpu.memory_space<smem>>
      %63 = vector.broadcast %62 : f32 to vector<2x16x2xf32>
      %64 = arith.mulf %63, %53 : vector<2x16x2xf32>
      %65 = arith.addf %45, %64 : vector<2x16x2xf32>
      %c109 = arith.constant 109 : index
      %66 = memref.load %arg2[%c109] : memref<144xf32, #tpu.memory_space<smem>>
      %67 = vector.broadcast %66 : f32 to vector<2x16x2xf32>
      %68 = arith.mulf %67, %53 : vector<2x16x2xf32>
      %69 = arith.addf %49, %68 : vector<2x16x2xf32>
      %c0_i32_61 = arith.constant 0 : i32
      %70 = arith.addi %21, %c0_i32_61 : i32
      %c0_62 = arith.constant 0 : index
      %71 = arith.index_cast %70 : i32 to index
      %c2_63 = arith.constant 2 : index
      %c0_64 = arith.constant 0 : index
      %72 = vector.load %arg7[%c0_62, %71, %c2_63, %c0_64] : memref<4x18x18x2xf32, #tpu.memory_space<vmem>>, vector<1x2x16x2xf32>
      %73 = vector.shape_cast %72 : vector<1x2x16x2xf32> to vector<2x16x2xf32>
      %c2_65 = arith.constant 2 : index
      %74 = memref.load %arg2[%c2_65] : memref<144xf32, #tpu.memory_space<smem>>
      %75 = vector.broadcast %74 : f32 to vector<2x16x2xf32>
      %76 = arith.mulf %75, %73 : vector<2x16x2xf32>
      %77 = arith.addf %57, %76 : vector<2x16x2xf32>
      %c38 = arith.constant 38 : index
      %78 = memref.load %arg2[%c38] : memref<144xf32, #tpu.memory_space<smem>>
      %79 = vector.broadcast %78 : f32 to vector<2x16x2xf32>
      %80 = arith.mulf %79, %73 : vector<2x16x2xf32>
      %81 = arith.addf %61, %80 : vector<2x16x2xf32>
      %c74 = arith.constant 74 : index
      %82 = memref.load %arg2[%c74] : memref<144xf32, #tpu.memory_space<smem>>
      %83 = vector.broadcast %82 : f32 to vector<2x16x2xf32>
      %84 = arith.mulf %83, %73 : vector<2x16x2xf32>
      %85 = arith.addf %65, %84 : vector<2x16x2xf32>
      %c110 = arith.constant 110 : index
      %86 = memref.load %arg2[%c110] : memref<144xf32, #tpu.memory_space<smem>>
      %87 = vector.broadcast %86 : f32 to vector<2x16x2xf32>
      %88 = arith.mulf %87, %73 : vector<2x16x2xf32>
      %89 = arith.addf %69, %88 : vector<2x16x2xf32>
      %c1_i32_66 = arith.constant 1 : i32
      %90 = arith.addi %21, %c1_i32_66 : i32
      %c0_67 = arith.constant 0 : index
      %91 = arith.index_cast %90 : i32 to index
      %c0_68 = arith.constant 0 : index
      %c0_69 = arith.constant 0 : index
      %92 = vector.load %arg7[%c0_67, %91, %c0_68, %c0_69] : memref<4x18x18x2xf32, #tpu.memory_space<vmem>>, vector<1x2x16x2xf32>
      %93 = vector.shape_cast %92 : vector<1x2x16x2xf32> to vector<2x16x2xf32>
      %c3_70 = arith.constant 3 : index
      %94 = memref.load %arg2[%c3_70] : memref<144xf32, #tpu.memory_space<smem>>
      %95 = vector.broadcast %94 : f32 to vector<2x16x2xf32>
      %96 = arith.mulf %95, %93 : vector<2x16x2xf32>
      %97 = arith.addf %77, %96 : vector<2x16x2xf32>
      %c39 = arith.constant 39 : index
      %98 = memref.load %arg2[%c39] : memref<144xf32, #tpu.memory_space<smem>>
      %99 = vector.broadcast %98 : f32 to vector<2x16x2xf32>
      %100 = arith.mulf %99, %93 : vector<2x16x2xf32>
      %101 = arith.addf %81, %100 : vector<2x16x2xf32>
      %c75 = arith.constant 75 : index
      %102 = memref.load %arg2[%c75] : memref<144xf32, #tpu.memory_space<smem>>
      %103 = vector.broadcast %102 : f32 to vector<2x16x2xf32>
      %104 = arith.mulf %103, %93 : vector<2x16x2xf32>
      %105 = arith.addf %85, %104 : vector<2x16x2xf32>
      %c111 = arith.constant 111 : index
      %106 = memref.load %arg2[%c111] : memref<144xf32, #tpu.memory_space<smem>>
      %107 = vector.broadcast %106 : f32 to vector<2x16x2xf32>
      %108 = arith.mulf %107, %93 : vector<2x16x2xf32>
      %109 = arith.addf %89, %108 : vector<2x16x2xf32>
      %c1_i32_71 = arith.constant 1 : i32
      %110 = arith.addi %21, %c1_i32_71 : i32
      %c0_72 = arith.constant 0 : index
      %111 = arith.index_cast %110 : i32 to index
      %c1_73 = arith.constant 1 : index
      %c0_74 = arith.constant 0 : index
      %112 = vector.load %arg7[%c0_72, %111, %c1_73, %c0_74] : memref<4x18x18x2xf32, #tpu.memory_space<vmem>>, vector<1x2x16x2xf32>
      %113 = vector.shape_cast %112 : vector<1x2x16x2xf32> to vector<2x16x2xf32>
      %c4 = arith.constant 4 : index
      %114 = memref.load %arg2[%c4] : memref<144xf32, #tpu.memory_space<smem>>
      %115 = vector.broadcast %114 : f32 to vector<2x16x2xf32>
      %116 = arith.mulf %115, %113 : vector<2x16x2xf32>
      %117 = arith.addf %97, %116 : vector<2x16x2xf32>
      %c40 = arith.constant 40 : index
      %118 = memref.load %arg2[%c40] : memref<144xf32, #tpu.memory_space<smem>>
      %119 = vector.broadcast %118 : f32 to vector<2x16x2xf32>
      %120 = arith.mulf %119, %113 : vector<2x16x2xf32>
      %121 = arith.addf %101, %120 : vector<2x16x2xf32>
      %c76 = arith.constant 76 : index
      %122 = memref.load %arg2[%c76] : memref<144xf32, #tpu.memory_space<smem>>
      %123 = vector.broadcast %122 : f32 to vector<2x16x2xf32>
      %124 = arith.mulf %123, %113 : vector<2x16x2xf32>
      %125 = arith.addf %105, %124 : vector<2x16x2xf32>
      %c112 = arith.constant 112 : index
      %126 = memref.load %arg2[%c112] : memref<144xf32, #tpu.memory_space<smem>>
      %127 = vector.broadcast %126 : f32 to vector<2x16x2xf32>
      %128 = arith.mulf %127, %113 : vector<2x16x2xf32>
      %129 = arith.addf %109, %128 : vector<2x16x2xf32>
      %c1_i32_75 = arith.constant 1 : i32
      %130 = arith.addi %21, %c1_i32_75 : i32
      %c0_76 = arith.constant 0 : index
      %131 = arith.index_cast %130 : i32 to index
      %c2_77 = arith.constant 2 : index
      %c0_78 = arith.constant 0 : index
      %132 = vector.load %arg7[%c0_76, %131, %c2_77, %c0_78] : memref<4x18x18x2xf32, #tpu.memory_space<vmem>>, vector<1x2x16x2xf32>
      %133 = vector.shape_cast %132 : vector<1x2x16x2xf32> to vector<2x16x2xf32>
      %c5 = arith.constant 5 : index
      %134 = memref.load %arg2[%c5] : memref<144xf32, #tpu.memory_space<smem>>
      %135 = vector.broadcast %134 : f32 to vector<2x16x2xf32>
      %136 = arith.mulf %135, %133 : vector<2x16x2xf32>
      %137 = arith.addf %117, %136 : vector<2x16x2xf32>
      %c41 = arith.constant 41 : index
      %138 = memref.load %arg2[%c41] : memref<144xf32, #tpu.memory_space<smem>>
      %139 = vector.broadcast %138 : f32 to vector<2x16x2xf32>
      %140 = arith.mulf %139, %133 : vector<2x16x2xf32>
      %141 = arith.addf %121, %140 : vector<2x16x2xf32>
      %c77 = arith.constant 77 : index
      %142 = memref.load %arg2[%c77] : memref<144xf32, #tpu.memory_space<smem>>
      %143 = vector.broadcast %142 : f32 to vector<2x16x2xf32>
      %144 = arith.mulf %143, %133 : vector<2x16x2xf32>
      %145 = arith.addf %125, %144 : vector<2x16x2xf32>
      %c113 = arith.constant 113 : index
      %146 = memref.load %arg2[%c113] : memref<144xf32, #tpu.memory_space<smem>>
      %147 = vector.broadcast %146 : f32 to vector<2x16x2xf32>
      %148 = arith.mulf %147, %133 : vector<2x16x2xf32>
      %149 = arith.addf %129, %148 : vector<2x16x2xf32>
      %c2_i32_79 = arith.constant 2 : i32
      %150 = arith.addi %21, %c2_i32_79 : i32
      %c0_80 = arith.constant 0 : index
      %151 = arith.index_cast %150 : i32 to index
      %c0_81 = arith.constant 0 : index
      %c0_82 = arith.constant 0 : index
      %152 = vector.load %arg7[%c0_80, %151, %c0_81, %c0_82] : memref<4x18x18x2xf32, #tpu.memory_space<vmem>>, vector<1x2x16x2xf32>
      %153 = vector.shape_cast %152 : vector<1x2x16x2xf32> to vector<2x16x2xf32>
      %c6 = arith.constant 6 : index
      %154 = memref.load %arg2[%c6] : memref<144xf32, #tpu.memory_space<smem>>
      %155 = vector.broadcast %154 : f32 to vector<2x16x2xf32>
      %156 = arith.mulf %155, %153 : vector<2x16x2xf32>
      %157 = arith.addf %137, %156 : vector<2x16x2xf32>
      %c42 = arith.constant 42 : index
      %158 = memref.load %arg2[%c42] : memref<144xf32, #tpu.memory_space<smem>>
      %159 = vector.broadcast %158 : f32 to vector<2x16x2xf32>
      %160 = arith.mulf %159, %153 : vector<2x16x2xf32>
      %161 = arith.addf %141, %160 : vector<2x16x2xf32>
      %c78 = arith.constant 78 : index
      %162 = memref.load %arg2[%c78] : memref<144xf32, #tpu.memory_space<smem>>
      %163 = vector.broadcast %162 : f32 to vector<2x16x2xf32>
      %164 = arith.mulf %163, %153 : vector<2x16x2xf32>
      %165 = arith.addf %145, %164 : vector<2x16x2xf32>
      %c114 = arith.constant 114 : index
      %166 = memref.load %arg2[%c114] : memref<144xf32, #tpu.memory_space<smem>>
      %167 = vector.broadcast %166 : f32 to vector<2x16x2xf32>
      %168 = arith.mulf %167, %153 : vector<2x16x2xf32>
      %169 = arith.addf %149, %168 : vector<2x16x2xf32>
      %c2_i32_83 = arith.constant 2 : i32
      %170 = arith.addi %21, %c2_i32_83 : i32
      %c0_84 = arith.constant 0 : index
      %171 = arith.index_cast %170 : i32 to index
      %c1_85 = arith.constant 1 : index
      %c0_86 = arith.constant 0 : index
      %172 = vector.load %arg7[%c0_84, %171, %c1_85, %c0_86] : memref<4x18x18x2xf32, #tpu.memory_space<vmem>>, vector<1x2x16x2xf32>
      %173 = vector.shape_cast %172 : vector<1x2x16x2xf32> to vector<2x16x2xf32>
      %c7 = arith.constant 7 : index
      %174 = memref.load %arg2[%c7] : memref<144xf32, #tpu.memory_space<smem>>
      %175 = vector.broadcast %174 : f32 to vector<2x16x2xf32>
      %176 = arith.mulf %175, %173 : vector<2x16x2xf32>
      %177 = arith.addf %157, %176 : vector<2x16x2xf32>
      %c43 = arith.constant 43 : index
      %178 = memref.load %arg2[%c43] : memref<144xf32, #tpu.memory_space<smem>>
      %179 = vector.broadcast %178 : f32 to vector<2x16x2xf32>
      %180 = arith.mulf %179, %173 : vector<2x16x2xf32>
      %181 = arith.addf %161, %180 : vector<2x16x2xf32>
      %c79 = arith.constant 79 : index
      %182 = memref.load %arg2[%c79] : memref<144xf32, #tpu.memory_space<smem>>
      %183 = vector.broadcast %182 : f32 to vector<2x16x2xf32>
      %184 = arith.mulf %183, %173 : vector<2x16x2xf32>
      %185 = arith.addf %165, %184 : vector<2x16x2xf32>
      %c115 = arith.constant 115 : index
      %186 = memref.load %arg2[%c115] : memref<144xf32, #tpu.memory_space<smem>>
      %187 = vector.broadcast %186 : f32 to vector<2x16x2xf32>
      %188 = arith.mulf %187, %173 : vector<2x16x2xf32>
      %189 = arith.addf %169, %188 : vector<2x16x2xf32>
      %c2_i32_87 = arith.constant 2 : i32
      %190 = arith.addi %21, %c2_i32_87 : i32
      %c0_88 = arith.constant 0 : index
      %191 = arith.index_cast %190 : i32 to index
      %c2_89 = arith.constant 2 : index
      %c0_90 = arith.constant 0 : index
      %192 = vector.load %arg7[%c0_88, %191, %c2_89, %c0_90] : memref<4x18x18x2xf32, #tpu.memory_space<vmem>>, vector<1x2x16x2xf32>
      %193 = vector.shape_cast %192 : vector<1x2x16x2xf32> to vector<2x16x2xf32>
      %c8 = arith.constant 8 : index
      %194 = memref.load %arg2[%c8] : memref<144xf32, #tpu.memory_space<smem>>
      %195 = vector.broadcast %194 : f32 to vector<2x16x2xf32>
      %196 = arith.mulf %195, %193 : vector<2x16x2xf32>
      %197 = arith.addf %177, %196 : vector<2x16x2xf32>
      %c44 = arith.constant 44 : index
      %198 = memref.load %arg2[%c44] : memref<144xf32, #tpu.memory_space<smem>>
      %199 = vector.broadcast %198 : f32 to vector<2x16x2xf32>
      %200 = arith.mulf %199, %193 : vector<2x16x2xf32>
      %201 = arith.addf %181, %200 : vector<2x16x2xf32>
      %c80 = arith.constant 80 : index
      %202 = memref.load %arg2[%c80] : memref<144xf32, #tpu.memory_space<smem>>
      %203 = vector.broadcast %202 : f32 to vector<2x16x2xf32>
      %204 = arith.mulf %203, %193 : vector<2x16x2xf32>
      %205 = arith.addf %185, %204 : vector<2x16x2xf32>
      %c116 = arith.constant 116 : index
      %206 = memref.load %arg2[%c116] : memref<144xf32, #tpu.memory_space<smem>>
      %207 = vector.broadcast %206 : f32 to vector<2x16x2xf32>
      %208 = arith.mulf %207, %193 : vector<2x16x2xf32>
      %209 = arith.addf %189, %208 : vector<2x16x2xf32>
      %c0_i32_91 = arith.constant 0 : i32
      %210 = arith.addi %21, %c0_i32_91 : i32
      %c1_92 = arith.constant 1 : index
      %211 = arith.index_cast %210 : i32 to index
      %c0_93 = arith.constant 0 : index
      %c0_94 = arith.constant 0 : index
      %212 = vector.load %arg7[%c1_92, %211, %c0_93, %c0_94] : memref<4x18x18x2xf32, #tpu.memory_space<vmem>>, vector<1x2x16x2xf32>
      %213 = vector.shape_cast %212 : vector<1x2x16x2xf32> to vector<2x16x2xf32>
      %c9 = arith.constant 9 : index
      %214 = memref.load %arg2[%c9] : memref<144xf32, #tpu.memory_space<smem>>
      %215 = vector.broadcast %214 : f32 to vector<2x16x2xf32>
      %216 = arith.mulf %215, %213 : vector<2x16x2xf32>
      %217 = arith.addf %197, %216 : vector<2x16x2xf32>
      %c45 = arith.constant 45 : index
      %218 = memref.load %arg2[%c45] : memref<144xf32, #tpu.memory_space<smem>>
      %219 = vector.broadcast %218 : f32 to vector<2x16x2xf32>
      %220 = arith.mulf %219, %213 : vector<2x16x2xf32>
      %221 = arith.addf %201, %220 : vector<2x16x2xf32>
      %c81 = arith.constant 81 : index
      %222 = memref.load %arg2[%c81] : memref<144xf32, #tpu.memory_space<smem>>
      %223 = vector.broadcast %222 : f32 to vector<2x16x2xf32>
      %224 = arith.mulf %223, %213 : vector<2x16x2xf32>
      %225 = arith.addf %205, %224 : vector<2x16x2xf32>
      %c117 = arith.constant 117 : index
      %226 = memref.load %arg2[%c117] : memref<144xf32, #tpu.memory_space<smem>>
      %227 = vector.broadcast %226 : f32 to vector<2x16x2xf32>
      %228 = arith.mulf %227, %213 : vector<2x16x2xf32>
      %229 = arith.addf %209, %228 : vector<2x16x2xf32>
      %c0_i32_95 = arith.constant 0 : i32
      %230 = arith.addi %21, %c0_i32_95 : i32
      %c1_96 = arith.constant 1 : index
      %231 = arith.index_cast %230 : i32 to index
      %c1_97 = arith.constant 1 : index
      %c0_98 = arith.constant 0 : index
      %232 = vector.load %arg7[%c1_96, %231, %c1_97, %c0_98] : memref<4x18x18x2xf32, #tpu.memory_space<vmem>>, vector<1x2x16x2xf32>
      %233 = vector.shape_cast %232 : vector<1x2x16x2xf32> to vector<2x16x2xf32>
      %c10 = arith.constant 10 : index
      %234 = memref.load %arg2[%c10] : memref<144xf32, #tpu.memory_space<smem>>
      %235 = vector.broadcast %234 : f32 to vector<2x16x2xf32>
      %236 = arith.mulf %235, %233 : vector<2x16x2xf32>
      %237 = arith.addf %217, %236 : vector<2x16x2xf32>
      %c46 = arith.constant 46 : index
      %238 = memref.load %arg2[%c46] : memref<144xf32, #tpu.memory_space<smem>>
      %239 = vector.broadcast %238 : f32 to vector<2x16x2xf32>
      %240 = arith.mulf %239, %233 : vector<2x16x2xf32>
      %241 = arith.addf %221, %240 : vector<2x16x2xf32>
      %c82 = arith.constant 82 : index
      %242 = memref.load %arg2[%c82] : memref<144xf32, #tpu.memory_space<smem>>
      %243 = vector.broadcast %242 : f32 to vector<2x16x2xf32>
      %244 = arith.mulf %243, %233 : vector<2x16x2xf32>
      %245 = arith.addf %225, %244 : vector<2x16x2xf32>
      %c118 = arith.constant 118 : index
      %246 = memref.load %arg2[%c118] : memref<144xf32, #tpu.memory_space<smem>>
      %247 = vector.broadcast %246 : f32 to vector<2x16x2xf32>
      %248 = arith.mulf %247, %233 : vector<2x16x2xf32>
      %249 = arith.addf %229, %248 : vector<2x16x2xf32>
      %c0_i32_99 = arith.constant 0 : i32
      %250 = arith.addi %21, %c0_i32_99 : i32
      %c1_100 = arith.constant 1 : index
      %251 = arith.index_cast %250 : i32 to index
      %c2_101 = arith.constant 2 : index
      %c0_102 = arith.constant 0 : index
      %252 = vector.load %arg7[%c1_100, %251, %c2_101, %c0_102] : memref<4x18x18x2xf32, #tpu.memory_space<vmem>>, vector<1x2x16x2xf32>
      %253 = vector.shape_cast %252 : vector<1x2x16x2xf32> to vector<2x16x2xf32>
      %c11 = arith.constant 11 : index
      %254 = memref.load %arg2[%c11] : memref<144xf32, #tpu.memory_space<smem>>
      %255 = vector.broadcast %254 : f32 to vector<2x16x2xf32>
      %256 = arith.mulf %255, %253 : vector<2x16x2xf32>
      %257 = arith.addf %237, %256 : vector<2x16x2xf32>
      %c47 = arith.constant 47 : index
      %258 = memref.load %arg2[%c47] : memref<144xf32, #tpu.memory_space<smem>>
      %259 = vector.broadcast %258 : f32 to vector<2x16x2xf32>
      %260 = arith.mulf %259, %253 : vector<2x16x2xf32>
      %261 = arith.addf %241, %260 : vector<2x16x2xf32>
      %c83 = arith.constant 83 : index
      %262 = memref.load %arg2[%c83] : memref<144xf32, #tpu.memory_space<smem>>
      %263 = vector.broadcast %262 : f32 to vector<2x16x2xf32>
      %264 = arith.mulf %263, %253 : vector<2x16x2xf32>
      %265 = arith.addf %245, %264 : vector<2x16x2xf32>
      %c119 = arith.constant 119 : index
      %266 = memref.load %arg2[%c119] : memref<144xf32, #tpu.memory_space<smem>>
      %267 = vector.broadcast %266 : f32 to vector<2x16x2xf32>
      %268 = arith.mulf %267, %253 : vector<2x16x2xf32>
      %269 = arith.addf %249, %268 : vector<2x16x2xf32>
      %c1_i32_103 = arith.constant 1 : i32
      %270 = arith.addi %21, %c1_i32_103 : i32
      %c1_104 = arith.constant 1 : index
      %271 = arith.index_cast %270 : i32 to index
      %c0_105 = arith.constant 0 : index
      %c0_106 = arith.constant 0 : index
      %272 = vector.load %arg7[%c1_104, %271, %c0_105, %c0_106] : memref<4x18x18x2xf32, #tpu.memory_space<vmem>>, vector<1x2x16x2xf32>
      %273 = vector.shape_cast %272 : vector<1x2x16x2xf32> to vector<2x16x2xf32>
      %c12 = arith.constant 12 : index
      %274 = memref.load %arg2[%c12] : memref<144xf32, #tpu.memory_space<smem>>
      %275 = vector.broadcast %274 : f32 to vector<2x16x2xf32>
      %276 = arith.mulf %275, %273 : vector<2x16x2xf32>
      %277 = arith.addf %257, %276 : vector<2x16x2xf32>
      %c48 = arith.constant 48 : index
      %278 = memref.load %arg2[%c48] : memref<144xf32, #tpu.memory_space<smem>>
      %279 = vector.broadcast %278 : f32 to vector<2x16x2xf32>
      %280 = arith.mulf %279, %273 : vector<2x16x2xf32>
      %281 = arith.addf %261, %280 : vector<2x16x2xf32>
      %c84 = arith.constant 84 : index
      %282 = memref.load %arg2[%c84] : memref<144xf32, #tpu.memory_space<smem>>
      %283 = vector.broadcast %282 : f32 to vector<2x16x2xf32>
      %284 = arith.mulf %283, %273 : vector<2x16x2xf32>
      %285 = arith.addf %265, %284 : vector<2x16x2xf32>
      %c120 = arith.constant 120 : index
      %286 = memref.load %arg2[%c120] : memref<144xf32, #tpu.memory_space<smem>>
      %287 = vector.broadcast %286 : f32 to vector<2x16x2xf32>
      %288 = arith.mulf %287, %273 : vector<2x16x2xf32>
      %289 = arith.addf %269, %288 : vector<2x16x2xf32>
      %c1_i32_107 = arith.constant 1 : i32
      %290 = arith.addi %21, %c1_i32_107 : i32
      %c1_108 = arith.constant 1 : index
      %291 = arith.index_cast %290 : i32 to index
      %c1_109 = arith.constant 1 : index
      %c0_110 = arith.constant 0 : index
      %292 = vector.load %arg7[%c1_108, %291, %c1_109, %c0_110] : memref<4x18x18x2xf32, #tpu.memory_space<vmem>>, vector<1x2x16x2xf32>
      %293 = vector.shape_cast %292 : vector<1x2x16x2xf32> to vector<2x16x2xf32>
      %c13 = arith.constant 13 : index
      %294 = memref.load %arg2[%c13] : memref<144xf32, #tpu.memory_space<smem>>
      %295 = vector.broadcast %294 : f32 to vector<2x16x2xf32>
      %296 = arith.mulf %295, %293 : vector<2x16x2xf32>
      %297 = arith.addf %277, %296 : vector<2x16x2xf32>
      %c49 = arith.constant 49 : index
      %298 = memref.load %arg2[%c49] : memref<144xf32, #tpu.memory_space<smem>>
      %299 = vector.broadcast %298 : f32 to vector<2x16x2xf32>
      %300 = arith.mulf %299, %293 : vector<2x16x2xf32>
      %301 = arith.addf %281, %300 : vector<2x16x2xf32>
      %c85 = arith.constant 85 : index
      %302 = memref.load %arg2[%c85] : memref<144xf32, #tpu.memory_space<smem>>
      %303 = vector.broadcast %302 : f32 to vector<2x16x2xf32>
      %304 = arith.mulf %303, %293 : vector<2x16x2xf32>
      %305 = arith.addf %285, %304 : vector<2x16x2xf32>
      %c121 = arith.constant 121 : index
      %306 = memref.load %arg2[%c121] : memref<144xf32, #tpu.memory_space<smem>>
      %307 = vector.broadcast %306 : f32 to vector<2x16x2xf32>
      %308 = arith.mulf %307, %293 : vector<2x16x2xf32>
      %309 = arith.addf %289, %308 : vector<2x16x2xf32>
      %c1_i32_111 = arith.constant 1 : i32
      %310 = arith.addi %21, %c1_i32_111 : i32
      %c1_112 = arith.constant 1 : index
      %311 = arith.index_cast %310 : i32 to index
      %c2_113 = arith.constant 2 : index
      %c0_114 = arith.constant 0 : index
      %312 = vector.load %arg7[%c1_112, %311, %c2_113, %c0_114] : memref<4x18x18x2xf32, #tpu.memory_space<vmem>>, vector<1x2x16x2xf32>
      %313 = vector.shape_cast %312 : vector<1x2x16x2xf32> to vector<2x16x2xf32>
      %c14 = arith.constant 14 : index
      %314 = memref.load %arg2[%c14] : memref<144xf32, #tpu.memory_space<smem>>
      %315 = vector.broadcast %314 : f32 to vector<2x16x2xf32>
      %316 = arith.mulf %315, %313 : vector<2x16x2xf32>
      %317 = arith.addf %297, %316 : vector<2x16x2xf32>
      %c50 = arith.constant 50 : index
      %318 = memref.load %arg2[%c50] : memref<144xf32, #tpu.memory_space<smem>>
      %319 = vector.broadcast %318 : f32 to vector<2x16x2xf32>
      %320 = arith.mulf %319, %313 : vector<2x16x2xf32>
      %321 = arith.addf %301, %320 : vector<2x16x2xf32>
      %c86 = arith.constant 86 : index
      %322 = memref.load %arg2[%c86] : memref<144xf32, #tpu.memory_space<smem>>
      %323 = vector.broadcast %322 : f32 to vector<2x16x2xf32>
      %324 = arith.mulf %323, %313 : vector<2x16x2xf32>
      %325 = arith.addf %305, %324 : vector<2x16x2xf32>
      %c122 = arith.constant 122 : index
      %326 = memref.load %arg2[%c122] : memref<144xf32, #tpu.memory_space<smem>>
      %327 = vector.broadcast %326 : f32 to vector<2x16x2xf32>
      %328 = arith.mulf %327, %313 : vector<2x16x2xf32>
      %329 = arith.addf %309, %328 : vector<2x16x2xf32>
      %c2_i32_115 = arith.constant 2 : i32
      %330 = arith.addi %21, %c2_i32_115 : i32
      %c1_116 = arith.constant 1 : index
      %331 = arith.index_cast %330 : i32 to index
      %c0_117 = arith.constant 0 : index
      %c0_118 = arith.constant 0 : index
      %332 = vector.load %arg7[%c1_116, %331, %c0_117, %c0_118] : memref<4x18x18x2xf32, #tpu.memory_space<vmem>>, vector<1x2x16x2xf32>
      %333 = vector.shape_cast %332 : vector<1x2x16x2xf32> to vector<2x16x2xf32>
      %c15 = arith.constant 15 : index
      %334 = memref.load %arg2[%c15] : memref<144xf32, #tpu.memory_space<smem>>
      %335 = vector.broadcast %334 : f32 to vector<2x16x2xf32>
      %336 = arith.mulf %335, %333 : vector<2x16x2xf32>
      %337 = arith.addf %317, %336 : vector<2x16x2xf32>
      %c51 = arith.constant 51 : index
      %338 = memref.load %arg2[%c51] : memref<144xf32, #tpu.memory_space<smem>>
      %339 = vector.broadcast %338 : f32 to vector<2x16x2xf32>
      %340 = arith.mulf %339, %333 : vector<2x16x2xf32>
      %341 = arith.addf %321, %340 : vector<2x16x2xf32>
      %c87 = arith.constant 87 : index
      %342 = memref.load %arg2[%c87] : memref<144xf32, #tpu.memory_space<smem>>
      %343 = vector.broadcast %342 : f32 to vector<2x16x2xf32>
      %344 = arith.mulf %343, %333 : vector<2x16x2xf32>
      %345 = arith.addf %325, %344 : vector<2x16x2xf32>
      %c123 = arith.constant 123 : index
      %346 = memref.load %arg2[%c123] : memref<144xf32, #tpu.memory_space<smem>>
      %347 = vector.broadcast %346 : f32 to vector<2x16x2xf32>
      %348 = arith.mulf %347, %333 : vector<2x16x2xf32>
      %349 = arith.addf %329, %348 : vector<2x16x2xf32>
      %c2_i32_119 = arith.constant 2 : i32
      %350 = arith.addi %21, %c2_i32_119 : i32
      %c1_120 = arith.constant 1 : index
      %351 = arith.index_cast %350 : i32 to index
      %c1_121 = arith.constant 1 : index
      %c0_122 = arith.constant 0 : index
      %352 = vector.load %arg7[%c1_120, %351, %c1_121, %c0_122] : memref<4x18x18x2xf32, #tpu.memory_space<vmem>>, vector<1x2x16x2xf32>
      %353 = vector.shape_cast %352 : vector<1x2x16x2xf32> to vector<2x16x2xf32>
      %c16 = arith.constant 16 : index
      %354 = memref.load %arg2[%c16] : memref<144xf32, #tpu.memory_space<smem>>
      %355 = vector.broadcast %354 : f32 to vector<2x16x2xf32>
      %356 = arith.mulf %355, %353 : vector<2x16x2xf32>
      %357 = arith.addf %337, %356 : vector<2x16x2xf32>
      %c52 = arith.constant 52 : index
      %358 = memref.load %arg2[%c52] : memref<144xf32, #tpu.memory_space<smem>>
      %359 = vector.broadcast %358 : f32 to vector<2x16x2xf32>
      %360 = arith.mulf %359, %353 : vector<2x16x2xf32>
      %361 = arith.addf %341, %360 : vector<2x16x2xf32>
      %c88 = arith.constant 88 : index
      %362 = memref.load %arg2[%c88] : memref<144xf32, #tpu.memory_space<smem>>
      %363 = vector.broadcast %362 : f32 to vector<2x16x2xf32>
      %364 = arith.mulf %363, %353 : vector<2x16x2xf32>
      %365 = arith.addf %345, %364 : vector<2x16x2xf32>
      %c124 = arith.constant 124 : index
      %366 = memref.load %arg2[%c124] : memref<144xf32, #tpu.memory_space<smem>>
      %367 = vector.broadcast %366 : f32 to vector<2x16x2xf32>
      %368 = arith.mulf %367, %353 : vector<2x16x2xf32>
      %369 = arith.addf %349, %368 : vector<2x16x2xf32>
      %c2_i32_123 = arith.constant 2 : i32
      %370 = arith.addi %21, %c2_i32_123 : i32
      %c1_124 = arith.constant 1 : index
      %371 = arith.index_cast %370 : i32 to index
      %c2_125 = arith.constant 2 : index
      %c0_126 = arith.constant 0 : index
      %372 = vector.load %arg7[%c1_124, %371, %c2_125, %c0_126] : memref<4x18x18x2xf32, #tpu.memory_space<vmem>>, vector<1x2x16x2xf32>
      %373 = vector.shape_cast %372 : vector<1x2x16x2xf32> to vector<2x16x2xf32>
      %c17_127 = arith.constant 17 : index
      %374 = memref.load %arg2[%c17_127] : memref<144xf32, #tpu.memory_space<smem>>
      %375 = vector.broadcast %374 : f32 to vector<2x16x2xf32>
      %376 = arith.mulf %375, %373 : vector<2x16x2xf32>
      %377 = arith.addf %357, %376 : vector<2x16x2xf32>
      %c53 = arith.constant 53 : index
      %378 = memref.load %arg2[%c53] : memref<144xf32, #tpu.memory_space<smem>>
      %379 = vector.broadcast %378 : f32 to vector<2x16x2xf32>
      %380 = arith.mulf %379, %373 : vector<2x16x2xf32>
      %381 = arith.addf %361, %380 : vector<2x16x2xf32>
      %c89 = arith.constant 89 : index
      %382 = memref.load %arg2[%c89] : memref<144xf32, #tpu.memory_space<smem>>
      %383 = vector.broadcast %382 : f32 to vector<2x16x2xf32>
      %384 = arith.mulf %383, %373 : vector<2x16x2xf32>
      %385 = arith.addf %365, %384 : vector<2x16x2xf32>
      %c125 = arith.constant 125 : index
      %386 = memref.load %arg2[%c125] : memref<144xf32, #tpu.memory_space<smem>>
      %387 = vector.broadcast %386 : f32 to vector<2x16x2xf32>
      %388 = arith.mulf %387, %373 : vector<2x16x2xf32>
      %389 = arith.addf %369, %388 : vector<2x16x2xf32>
      %c0_i32_128 = arith.constant 0 : i32
      %390 = arith.addi %21, %c0_i32_128 : i32
      %c2_129 = arith.constant 2 : index
      %391 = arith.index_cast %390 : i32 to index
      %c0_130 = arith.constant 0 : index
      %c0_131 = arith.constant 0 : index
      %392 = vector.load %arg7[%c2_129, %391, %c0_130, %c0_131] : memref<4x18x18x2xf32, #tpu.memory_space<vmem>>, vector<1x2x16x2xf32>
      %393 = vector.shape_cast %392 : vector<1x2x16x2xf32> to vector<2x16x2xf32>
      %c18 = arith.constant 18 : index
      %394 = memref.load %arg2[%c18] : memref<144xf32, #tpu.memory_space<smem>>
      %395 = vector.broadcast %394 : f32 to vector<2x16x2xf32>
      %396 = arith.mulf %395, %393 : vector<2x16x2xf32>
      %397 = arith.addf %377, %396 : vector<2x16x2xf32>
      %c54 = arith.constant 54 : index
      %398 = memref.load %arg2[%c54] : memref<144xf32, #tpu.memory_space<smem>>
      %399 = vector.broadcast %398 : f32 to vector<2x16x2xf32>
      %400 = arith.mulf %399, %393 : vector<2x16x2xf32>
      %401 = arith.addf %381, %400 : vector<2x16x2xf32>
      %c90 = arith.constant 90 : index
      %402 = memref.load %arg2[%c90] : memref<144xf32, #tpu.memory_space<smem>>
      %403 = vector.broadcast %402 : f32 to vector<2x16x2xf32>
      %404 = arith.mulf %403, %393 : vector<2x16x2xf32>
      %405 = arith.addf %385, %404 : vector<2x16x2xf32>
      %c126 = arith.constant 126 : index
      %406 = memref.load %arg2[%c126] : memref<144xf32, #tpu.memory_space<smem>>
      %407 = vector.broadcast %406 : f32 to vector<2x16x2xf32>
      %408 = arith.mulf %407, %393 : vector<2x16x2xf32>
      %409 = arith.addf %389, %408 : vector<2x16x2xf32>
      %c0_i32_132 = arith.constant 0 : i32
      %410 = arith.addi %21, %c0_i32_132 : i32
      %c2_133 = arith.constant 2 : index
      %411 = arith.index_cast %410 : i32 to index
      %c1_134 = arith.constant 1 : index
      %c0_135 = arith.constant 0 : index
      %412 = vector.load %arg7[%c2_133, %411, %c1_134, %c0_135] : memref<4x18x18x2xf32, #tpu.memory_space<vmem>>, vector<1x2x16x2xf32>
      %413 = vector.shape_cast %412 : vector<1x2x16x2xf32> to vector<2x16x2xf32>
      %c19 = arith.constant 19 : index
      %414 = memref.load %arg2[%c19] : memref<144xf32, #tpu.memory_space<smem>>
      %415 = vector.broadcast %414 : f32 to vector<2x16x2xf32>
      %416 = arith.mulf %415, %413 : vector<2x16x2xf32>
      %417 = arith.addf %397, %416 : vector<2x16x2xf32>
      %c55 = arith.constant 55 : index
      %418 = memref.load %arg2[%c55] : memref<144xf32, #tpu.memory_space<smem>>
      %419 = vector.broadcast %418 : f32 to vector<2x16x2xf32>
      %420 = arith.mulf %419, %413 : vector<2x16x2xf32>
      %421 = arith.addf %401, %420 : vector<2x16x2xf32>
      %c91 = arith.constant 91 : index
      %422 = memref.load %arg2[%c91] : memref<144xf32, #tpu.memory_space<smem>>
      %423 = vector.broadcast %422 : f32 to vector<2x16x2xf32>
      %424 = arith.mulf %423, %413 : vector<2x16x2xf32>
      %425 = arith.addf %405, %424 : vector<2x16x2xf32>
      %c127 = arith.constant 127 : index
      %426 = memref.load %arg2[%c127] : memref<144xf32, #tpu.memory_space<smem>>
      %427 = vector.broadcast %426 : f32 to vector<2x16x2xf32>
      %428 = arith.mulf %427, %413 : vector<2x16x2xf32>
      %429 = arith.addf %409, %428 : vector<2x16x2xf32>
      %c0_i32_136 = arith.constant 0 : i32
      %430 = arith.addi %21, %c0_i32_136 : i32
      %c2_137 = arith.constant 2 : index
      %431 = arith.index_cast %430 : i32 to index
      %c2_138 = arith.constant 2 : index
      %c0_139 = arith.constant 0 : index
      %432 = vector.load %arg7[%c2_137, %431, %c2_138, %c0_139] : memref<4x18x18x2xf32, #tpu.memory_space<vmem>>, vector<1x2x16x2xf32>
      %433 = vector.shape_cast %432 : vector<1x2x16x2xf32> to vector<2x16x2xf32>
      %c20 = arith.constant 20 : index
      %434 = memref.load %arg2[%c20] : memref<144xf32, #tpu.memory_space<smem>>
      %435 = vector.broadcast %434 : f32 to vector<2x16x2xf32>
      %436 = arith.mulf %435, %433 : vector<2x16x2xf32>
      %437 = arith.addf %417, %436 : vector<2x16x2xf32>
      %c56 = arith.constant 56 : index
      %438 = memref.load %arg2[%c56] : memref<144xf32, #tpu.memory_space<smem>>
      %439 = vector.broadcast %438 : f32 to vector<2x16x2xf32>
      %440 = arith.mulf %439, %433 : vector<2x16x2xf32>
      %441 = arith.addf %421, %440 : vector<2x16x2xf32>
      %c92 = arith.constant 92 : index
      %442 = memref.load %arg2[%c92] : memref<144xf32, #tpu.memory_space<smem>>
      %443 = vector.broadcast %442 : f32 to vector<2x16x2xf32>
      %444 = arith.mulf %443, %433 : vector<2x16x2xf32>
      %445 = arith.addf %425, %444 : vector<2x16x2xf32>
      %c128 = arith.constant 128 : index
      %446 = memref.load %arg2[%c128] : memref<144xf32, #tpu.memory_space<smem>>
      %447 = vector.broadcast %446 : f32 to vector<2x16x2xf32>
      %448 = arith.mulf %447, %433 : vector<2x16x2xf32>
      %449 = arith.addf %429, %448 : vector<2x16x2xf32>
      %c1_i32_140 = arith.constant 1 : i32
      %450 = arith.addi %21, %c1_i32_140 : i32
      %c2_141 = arith.constant 2 : index
      %451 = arith.index_cast %450 : i32 to index
      %c0_142 = arith.constant 0 : index
      %c0_143 = arith.constant 0 : index
      %452 = vector.load %arg7[%c2_141, %451, %c0_142, %c0_143] : memref<4x18x18x2xf32, #tpu.memory_space<vmem>>, vector<1x2x16x2xf32>
      %453 = vector.shape_cast %452 : vector<1x2x16x2xf32> to vector<2x16x2xf32>
      %c21 = arith.constant 21 : index
      %454 = memref.load %arg2[%c21] : memref<144xf32, #tpu.memory_space<smem>>
      %455 = vector.broadcast %454 : f32 to vector<2x16x2xf32>
      %456 = arith.mulf %455, %453 : vector<2x16x2xf32>
      %457 = arith.addf %437, %456 : vector<2x16x2xf32>
      %c57 = arith.constant 57 : index
      %458 = memref.load %arg2[%c57] : memref<144xf32, #tpu.memory_space<smem>>
      %459 = vector.broadcast %458 : f32 to vector<2x16x2xf32>
      %460 = arith.mulf %459, %453 : vector<2x16x2xf32>
      %461 = arith.addf %441, %460 : vector<2x16x2xf32>
      %c93 = arith.constant 93 : index
      %462 = memref.load %arg2[%c93] : memref<144xf32, #tpu.memory_space<smem>>
      %463 = vector.broadcast %462 : f32 to vector<2x16x2xf32>
      %464 = arith.mulf %463, %453 : vector<2x16x2xf32>
      %465 = arith.addf %445, %464 : vector<2x16x2xf32>
      %c129 = arith.constant 129 : index
      %466 = memref.load %arg2[%c129] : memref<144xf32, #tpu.memory_space<smem>>
      %467 = vector.broadcast %466 : f32 to vector<2x16x2xf32>
      %468 = arith.mulf %467, %453 : vector<2x16x2xf32>
      %469 = arith.addf %449, %468 : vector<2x16x2xf32>
      %c1_i32_144 = arith.constant 1 : i32
      %470 = arith.addi %21, %c1_i32_144 : i32
      %c2_145 = arith.constant 2 : index
      %471 = arith.index_cast %470 : i32 to index
      %c1_146 = arith.constant 1 : index
      %c0_147 = arith.constant 0 : index
      %472 = vector.load %arg7[%c2_145, %471, %c1_146, %c0_147] : memref<4x18x18x2xf32, #tpu.memory_space<vmem>>, vector<1x2x16x2xf32>
      %473 = vector.shape_cast %472 : vector<1x2x16x2xf32> to vector<2x16x2xf32>
      %c22 = arith.constant 22 : index
      %474 = memref.load %arg2[%c22] : memref<144xf32, #tpu.memory_space<smem>>
      %475 = vector.broadcast %474 : f32 to vector<2x16x2xf32>
      %476 = arith.mulf %475, %473 : vector<2x16x2xf32>
      %477 = arith.addf %457, %476 : vector<2x16x2xf32>
      %c58 = arith.constant 58 : index
      %478 = memref.load %arg2[%c58] : memref<144xf32, #tpu.memory_space<smem>>
      %479 = vector.broadcast %478 : f32 to vector<2x16x2xf32>
      %480 = arith.mulf %479, %473 : vector<2x16x2xf32>
      %481 = arith.addf %461, %480 : vector<2x16x2xf32>
      %c94 = arith.constant 94 : index
      %482 = memref.load %arg2[%c94] : memref<144xf32, #tpu.memory_space<smem>>
      %483 = vector.broadcast %482 : f32 to vector<2x16x2xf32>
      %484 = arith.mulf %483, %473 : vector<2x16x2xf32>
      %485 = arith.addf %465, %484 : vector<2x16x2xf32>
      %c130 = arith.constant 130 : index
      %486 = memref.load %arg2[%c130] : memref<144xf32, #tpu.memory_space<smem>>
      %487 = vector.broadcast %486 : f32 to vector<2x16x2xf32>
      %488 = arith.mulf %487, %473 : vector<2x16x2xf32>
      %489 = arith.addf %469, %488 : vector<2x16x2xf32>
      %c1_i32_148 = arith.constant 1 : i32
      %490 = arith.addi %21, %c1_i32_148 : i32
      %c2_149 = arith.constant 2 : index
      %491 = arith.index_cast %490 : i32 to index
      %c2_150 = arith.constant 2 : index
      %c0_151 = arith.constant 0 : index
      %492 = vector.load %arg7[%c2_149, %491, %c2_150, %c0_151] : memref<4x18x18x2xf32, #tpu.memory_space<vmem>>, vector<1x2x16x2xf32>
      %493 = vector.shape_cast %492 : vector<1x2x16x2xf32> to vector<2x16x2xf32>
      %c23 = arith.constant 23 : index
      %494 = memref.load %arg2[%c23] : memref<144xf32, #tpu.memory_space<smem>>
      %495 = vector.broadcast %494 : f32 to vector<2x16x2xf32>
      %496 = arith.mulf %495, %493 : vector<2x16x2xf32>
      %497 = arith.addf %477, %496 : vector<2x16x2xf32>
      %c59 = arith.constant 59 : index
      %498 = memref.load %arg2[%c59] : memref<144xf32, #tpu.memory_space<smem>>
      %499 = vector.broadcast %498 : f32 to vector<2x16x2xf32>
      %500 = arith.mulf %499, %493 : vector<2x16x2xf32>
      %501 = arith.addf %481, %500 : vector<2x16x2xf32>
      %c95 = arith.constant 95 : index
      %502 = memref.load %arg2[%c95] : memref<144xf32, #tpu.memory_space<smem>>
      %503 = vector.broadcast %502 : f32 to vector<2x16x2xf32>
      %504 = arith.mulf %503, %493 : vector<2x16x2xf32>
      %505 = arith.addf %485, %504 : vector<2x16x2xf32>
      %c131 = arith.constant 131 : index
      %506 = memref.load %arg2[%c131] : memref<144xf32, #tpu.memory_space<smem>>
      %507 = vector.broadcast %506 : f32 to vector<2x16x2xf32>
      %508 = arith.mulf %507, %493 : vector<2x16x2xf32>
      %509 = arith.addf %489, %508 : vector<2x16x2xf32>
      %c2_i32_152 = arith.constant 2 : i32
      %510 = arith.addi %21, %c2_i32_152 : i32
      %c2_153 = arith.constant 2 : index
      %511 = arith.index_cast %510 : i32 to index
      %c0_154 = arith.constant 0 : index
      %c0_155 = arith.constant 0 : index
      %512 = vector.load %arg7[%c2_153, %511, %c0_154, %c0_155] : memref<4x18x18x2xf32, #tpu.memory_space<vmem>>, vector<1x2x16x2xf32>
      %513 = vector.shape_cast %512 : vector<1x2x16x2xf32> to vector<2x16x2xf32>
      %c24 = arith.constant 24 : index
      %514 = memref.load %arg2[%c24] : memref<144xf32, #tpu.memory_space<smem>>
      %515 = vector.broadcast %514 : f32 to vector<2x16x2xf32>
      %516 = arith.mulf %515, %513 : vector<2x16x2xf32>
      %517 = arith.addf %497, %516 : vector<2x16x2xf32>
      %c60 = arith.constant 60 : index
      %518 = memref.load %arg2[%c60] : memref<144xf32, #tpu.memory_space<smem>>
      %519 = vector.broadcast %518 : f32 to vector<2x16x2xf32>
      %520 = arith.mulf %519, %513 : vector<2x16x2xf32>
      %521 = arith.addf %501, %520 : vector<2x16x2xf32>
      %c96 = arith.constant 96 : index
      %522 = memref.load %arg2[%c96] : memref<144xf32, #tpu.memory_space<smem>>
      %523 = vector.broadcast %522 : f32 to vector<2x16x2xf32>
      %524 = arith.mulf %523, %513 : vector<2x16x2xf32>
      %525 = arith.addf %505, %524 : vector<2x16x2xf32>
      %c132 = arith.constant 132 : index
      %526 = memref.load %arg2[%c132] : memref<144xf32, #tpu.memory_space<smem>>
      %527 = vector.broadcast %526 : f32 to vector<2x16x2xf32>
      %528 = arith.mulf %527, %513 : vector<2x16x2xf32>
      %529 = arith.addf %509, %528 : vector<2x16x2xf32>
      %c2_i32_156 = arith.constant 2 : i32
      %530 = arith.addi %21, %c2_i32_156 : i32
      %c2_157 = arith.constant 2 : index
      %531 = arith.index_cast %530 : i32 to index
      %c1_158 = arith.constant 1 : index
      %c0_159 = arith.constant 0 : index
      %532 = vector.load %arg7[%c2_157, %531, %c1_158, %c0_159] : memref<4x18x18x2xf32, #tpu.memory_space<vmem>>, vector<1x2x16x2xf32>
      %533 = vector.shape_cast %532 : vector<1x2x16x2xf32> to vector<2x16x2xf32>
      %c25 = arith.constant 25 : index
      %534 = memref.load %arg2[%c25] : memref<144xf32, #tpu.memory_space<smem>>
      %535 = vector.broadcast %534 : f32 to vector<2x16x2xf32>
      %536 = arith.mulf %535, %533 : vector<2x16x2xf32>
      %537 = arith.addf %517, %536 : vector<2x16x2xf32>
      %c61 = arith.constant 61 : index
      %538 = memref.load %arg2[%c61] : memref<144xf32, #tpu.memory_space<smem>>
      %539 = vector.broadcast %538 : f32 to vector<2x16x2xf32>
      %540 = arith.mulf %539, %533 : vector<2x16x2xf32>
      %541 = arith.addf %521, %540 : vector<2x16x2xf32>
      %c97 = arith.constant 97 : index
      %542 = memref.load %arg2[%c97] : memref<144xf32, #tpu.memory_space<smem>>
      %543 = vector.broadcast %542 : f32 to vector<2x16x2xf32>
      %544 = arith.mulf %543, %533 : vector<2x16x2xf32>
      %545 = arith.addf %525, %544 : vector<2x16x2xf32>
      %c133 = arith.constant 133 : index
      %546 = memref.load %arg2[%c133] : memref<144xf32, #tpu.memory_space<smem>>
      %547 = vector.broadcast %546 : f32 to vector<2x16x2xf32>
      %548 = arith.mulf %547, %533 : vector<2x16x2xf32>
      %549 = arith.addf %529, %548 : vector<2x16x2xf32>
      %c2_i32_160 = arith.constant 2 : i32
      %550 = arith.addi %21, %c2_i32_160 : i32
      %c2_161 = arith.constant 2 : index
      %551 = arith.index_cast %550 : i32 to index
      %c2_162 = arith.constant 2 : index
      %c0_163 = arith.constant 0 : index
      %552 = vector.load %arg7[%c2_161, %551, %c2_162, %c0_163] : memref<4x18x18x2xf32, #tpu.memory_space<vmem>>, vector<1x2x16x2xf32>
      %553 = vector.shape_cast %552 : vector<1x2x16x2xf32> to vector<2x16x2xf32>
      %c26 = arith.constant 26 : index
      %554 = memref.load %arg2[%c26] : memref<144xf32, #tpu.memory_space<smem>>
      %555 = vector.broadcast %554 : f32 to vector<2x16x2xf32>
      %556 = arith.mulf %555, %553 : vector<2x16x2xf32>
      %557 = arith.addf %537, %556 : vector<2x16x2xf32>
      %c62 = arith.constant 62 : index
      %558 = memref.load %arg2[%c62] : memref<144xf32, #tpu.memory_space<smem>>
      %559 = vector.broadcast %558 : f32 to vector<2x16x2xf32>
      %560 = arith.mulf %559, %553 : vector<2x16x2xf32>
      %561 = arith.addf %541, %560 : vector<2x16x2xf32>
      %c98 = arith.constant 98 : index
      %562 = memref.load %arg2[%c98] : memref<144xf32, #tpu.memory_space<smem>>
      %563 = vector.broadcast %562 : f32 to vector<2x16x2xf32>
      %564 = arith.mulf %563, %553 : vector<2x16x2xf32>
      %565 = arith.addf %545, %564 : vector<2x16x2xf32>
      %c134 = arith.constant 134 : index
      %566 = memref.load %arg2[%c134] : memref<144xf32, #tpu.memory_space<smem>>
      %567 = vector.broadcast %566 : f32 to vector<2x16x2xf32>
      %568 = arith.mulf %567, %553 : vector<2x16x2xf32>
      %569 = arith.addf %549, %568 : vector<2x16x2xf32>
      %c0_i32_164 = arith.constant 0 : i32
      %570 = arith.addi %21, %c0_i32_164 : i32
      %c3_165 = arith.constant 3 : index
      %571 = arith.index_cast %570 : i32 to index
      %c0_166 = arith.constant 0 : index
      %c0_167 = arith.constant 0 : index
      %572 = vector.load %arg7[%c3_165, %571, %c0_166, %c0_167] : memref<4x18x18x2xf32, #tpu.memory_space<vmem>>, vector<1x2x16x2xf32>
      %573 = vector.shape_cast %572 : vector<1x2x16x2xf32> to vector<2x16x2xf32>
      %c27 = arith.constant 27 : index
      %574 = memref.load %arg2[%c27] : memref<144xf32, #tpu.memory_space<smem>>
      %575 = vector.broadcast %574 : f32 to vector<2x16x2xf32>
      %576 = arith.mulf %575, %573 : vector<2x16x2xf32>
      %577 = arith.addf %557, %576 : vector<2x16x2xf32>
      %c63 = arith.constant 63 : index
      %578 = memref.load %arg2[%c63] : memref<144xf32, #tpu.memory_space<smem>>
      %579 = vector.broadcast %578 : f32 to vector<2x16x2xf32>
      %580 = arith.mulf %579, %573 : vector<2x16x2xf32>
      %581 = arith.addf %561, %580 : vector<2x16x2xf32>
      %c99 = arith.constant 99 : index
      %582 = memref.load %arg2[%c99] : memref<144xf32, #tpu.memory_space<smem>>
      %583 = vector.broadcast %582 : f32 to vector<2x16x2xf32>
      %584 = arith.mulf %583, %573 : vector<2x16x2xf32>
      %585 = arith.addf %565, %584 : vector<2x16x2xf32>
      %c135 = arith.constant 135 : index
      %586 = memref.load %arg2[%c135] : memref<144xf32, #tpu.memory_space<smem>>
      %587 = vector.broadcast %586 : f32 to vector<2x16x2xf32>
      %588 = arith.mulf %587, %573 : vector<2x16x2xf32>
      %589 = arith.addf %569, %588 : vector<2x16x2xf32>
      %c0_i32_168 = arith.constant 0 : i32
      %590 = arith.addi %21, %c0_i32_168 : i32
      %c3_169 = arith.constant 3 : index
      %591 = arith.index_cast %590 : i32 to index
      %c1_170 = arith.constant 1 : index
      %c0_171 = arith.constant 0 : index
      %592 = vector.load %arg7[%c3_169, %591, %c1_170, %c0_171] : memref<4x18x18x2xf32, #tpu.memory_space<vmem>>, vector<1x2x16x2xf32>
      %593 = vector.shape_cast %592 : vector<1x2x16x2xf32> to vector<2x16x2xf32>
      %c28 = arith.constant 28 : index
      %594 = memref.load %arg2[%c28] : memref<144xf32, #tpu.memory_space<smem>>
      %595 = vector.broadcast %594 : f32 to vector<2x16x2xf32>
      %596 = arith.mulf %595, %593 : vector<2x16x2xf32>
      %597 = arith.addf %577, %596 : vector<2x16x2xf32>
      %c64 = arith.constant 64 : index
      %598 = memref.load %arg2[%c64] : memref<144xf32, #tpu.memory_space<smem>>
      %599 = vector.broadcast %598 : f32 to vector<2x16x2xf32>
      %600 = arith.mulf %599, %593 : vector<2x16x2xf32>
      %601 = arith.addf %581, %600 : vector<2x16x2xf32>
      %c100 = arith.constant 100 : index
      %602 = memref.load %arg2[%c100] : memref<144xf32, #tpu.memory_space<smem>>
      %603 = vector.broadcast %602 : f32 to vector<2x16x2xf32>
      %604 = arith.mulf %603, %593 : vector<2x16x2xf32>
      %605 = arith.addf %585, %604 : vector<2x16x2xf32>
      %c136 = arith.constant 136 : index
      %606 = memref.load %arg2[%c136] : memref<144xf32, #tpu.memory_space<smem>>
      %607 = vector.broadcast %606 : f32 to vector<2x16x2xf32>
      %608 = arith.mulf %607, %593 : vector<2x16x2xf32>
      %609 = arith.addf %589, %608 : vector<2x16x2xf32>
      %c0_i32_172 = arith.constant 0 : i32
      %610 = arith.addi %21, %c0_i32_172 : i32
      %c3_173 = arith.constant 3 : index
      %611 = arith.index_cast %610 : i32 to index
      %c2_174 = arith.constant 2 : index
      %c0_175 = arith.constant 0 : index
      %612 = vector.load %arg7[%c3_173, %611, %c2_174, %c0_175] : memref<4x18x18x2xf32, #tpu.memory_space<vmem>>, vector<1x2x16x2xf32>
      %613 = vector.shape_cast %612 : vector<1x2x16x2xf32> to vector<2x16x2xf32>
      %c29 = arith.constant 29 : index
      %614 = memref.load %arg2[%c29] : memref<144xf32, #tpu.memory_space<smem>>
      %615 = vector.broadcast %614 : f32 to vector<2x16x2xf32>
      %616 = arith.mulf %615, %613 : vector<2x16x2xf32>
      %617 = arith.addf %597, %616 : vector<2x16x2xf32>
      %c65 = arith.constant 65 : index
      %618 = memref.load %arg2[%c65] : memref<144xf32, #tpu.memory_space<smem>>
      %619 = vector.broadcast %618 : f32 to vector<2x16x2xf32>
      %620 = arith.mulf %619, %613 : vector<2x16x2xf32>
      %621 = arith.addf %601, %620 : vector<2x16x2xf32>
      %c101 = arith.constant 101 : index
      %622 = memref.load %arg2[%c101] : memref<144xf32, #tpu.memory_space<smem>>
      %623 = vector.broadcast %622 : f32 to vector<2x16x2xf32>
      %624 = arith.mulf %623, %613 : vector<2x16x2xf32>
      %625 = arith.addf %605, %624 : vector<2x16x2xf32>
      %c137 = arith.constant 137 : index
      %626 = memref.load %arg2[%c137] : memref<144xf32, #tpu.memory_space<smem>>
      %627 = vector.broadcast %626 : f32 to vector<2x16x2xf32>
      %628 = arith.mulf %627, %613 : vector<2x16x2xf32>
      %629 = arith.addf %609, %628 : vector<2x16x2xf32>
      %c1_i32_176 = arith.constant 1 : i32
      %630 = arith.addi %21, %c1_i32_176 : i32
      %c3_177 = arith.constant 3 : index
      %631 = arith.index_cast %630 : i32 to index
      %c0_178 = arith.constant 0 : index
      %c0_179 = arith.constant 0 : index
      %632 = vector.load %arg7[%c3_177, %631, %c0_178, %c0_179] : memref<4x18x18x2xf32, #tpu.memory_space<vmem>>, vector<1x2x16x2xf32>
      %633 = vector.shape_cast %632 : vector<1x2x16x2xf32> to vector<2x16x2xf32>
      %c30 = arith.constant 30 : index
      %634 = memref.load %arg2[%c30] : memref<144xf32, #tpu.memory_space<smem>>
      %635 = vector.broadcast %634 : f32 to vector<2x16x2xf32>
      %636 = arith.mulf %635, %633 : vector<2x16x2xf32>
      %637 = arith.addf %617, %636 : vector<2x16x2xf32>
      %c66 = arith.constant 66 : index
      %638 = memref.load %arg2[%c66] : memref<144xf32, #tpu.memory_space<smem>>
      %639 = vector.broadcast %638 : f32 to vector<2x16x2xf32>
      %640 = arith.mulf %639, %633 : vector<2x16x2xf32>
      %641 = arith.addf %621, %640 : vector<2x16x2xf32>
      %c102 = arith.constant 102 : index
      %642 = memref.load %arg2[%c102] : memref<144xf32, #tpu.memory_space<smem>>
      %643 = vector.broadcast %642 : f32 to vector<2x16x2xf32>
      %644 = arith.mulf %643, %633 : vector<2x16x2xf32>
      %645 = arith.addf %625, %644 : vector<2x16x2xf32>
      %c138 = arith.constant 138 : index
      %646 = memref.load %arg2[%c138] : memref<144xf32, #tpu.memory_space<smem>>
      %647 = vector.broadcast %646 : f32 to vector<2x16x2xf32>
      %648 = arith.mulf %647, %633 : vector<2x16x2xf32>
      %649 = arith.addf %629, %648 : vector<2x16x2xf32>
      %c1_i32_180 = arith.constant 1 : i32
      %650 = arith.addi %21, %c1_i32_180 : i32
      %c3_181 = arith.constant 3 : index
      %651 = arith.index_cast %650 : i32 to index
      %c1_182 = arith.constant 1 : index
      %c0_183 = arith.constant 0 : index
      %652 = vector.load %arg7[%c3_181, %651, %c1_182, %c0_183] : memref<4x18x18x2xf32, #tpu.memory_space<vmem>>, vector<1x2x16x2xf32>
      %653 = vector.shape_cast %652 : vector<1x2x16x2xf32> to vector<2x16x2xf32>
      %c31 = arith.constant 31 : index
      %654 = memref.load %arg2[%c31] : memref<144xf32, #tpu.memory_space<smem>>
      %655 = vector.broadcast %654 : f32 to vector<2x16x2xf32>
      %656 = arith.mulf %655, %653 : vector<2x16x2xf32>
      %657 = arith.addf %637, %656 : vector<2x16x2xf32>
      %c67 = arith.constant 67 : index
      %658 = memref.load %arg2[%c67] : memref<144xf32, #tpu.memory_space<smem>>
      %659 = vector.broadcast %658 : f32 to vector<2x16x2xf32>
      %660 = arith.mulf %659, %653 : vector<2x16x2xf32>
      %661 = arith.addf %641, %660 : vector<2x16x2xf32>
      %c103 = arith.constant 103 : index
      %662 = memref.load %arg2[%c103] : memref<144xf32, #tpu.memory_space<smem>>
      %663 = vector.broadcast %662 : f32 to vector<2x16x2xf32>
      %664 = arith.mulf %663, %653 : vector<2x16x2xf32>
      %665 = arith.addf %645, %664 : vector<2x16x2xf32>
      %c139 = arith.constant 139 : index
      %666 = memref.load %arg2[%c139] : memref<144xf32, #tpu.memory_space<smem>>
      %667 = vector.broadcast %666 : f32 to vector<2x16x2xf32>
      %668 = arith.mulf %667, %653 : vector<2x16x2xf32>
      %669 = arith.addf %649, %668 : vector<2x16x2xf32>
      %c1_i32_184 = arith.constant 1 : i32
      %670 = arith.addi %21, %c1_i32_184 : i32
      %c3_185 = arith.constant 3 : index
      %671 = arith.index_cast %670 : i32 to index
      %c2_186 = arith.constant 2 : index
      %c0_187 = arith.constant 0 : index
      %672 = vector.load %arg7[%c3_185, %671, %c2_186, %c0_187] : memref<4x18x18x2xf32, #tpu.memory_space<vmem>>, vector<1x2x16x2xf32>
      %673 = vector.shape_cast %672 : vector<1x2x16x2xf32> to vector<2x16x2xf32>
      %c32 = arith.constant 32 : index
      %674 = memref.load %arg2[%c32] : memref<144xf32, #tpu.memory_space<smem>>
      %675 = vector.broadcast %674 : f32 to vector<2x16x2xf32>
      %676 = arith.mulf %675, %673 : vector<2x16x2xf32>
      %677 = arith.addf %657, %676 : vector<2x16x2xf32>
      %c68 = arith.constant 68 : index
      %678 = memref.load %arg2[%c68] : memref<144xf32, #tpu.memory_space<smem>>
      %679 = vector.broadcast %678 : f32 to vector<2x16x2xf32>
      %680 = arith.mulf %679, %673 : vector<2x16x2xf32>
      %681 = arith.addf %661, %680 : vector<2x16x2xf32>
      %c104 = arith.constant 104 : index
      %682 = memref.load %arg2[%c104] : memref<144xf32, #tpu.memory_space<smem>>
      %683 = vector.broadcast %682 : f32 to vector<2x16x2xf32>
      %684 = arith.mulf %683, %673 : vector<2x16x2xf32>
      %685 = arith.addf %665, %684 : vector<2x16x2xf32>
      %c140 = arith.constant 140 : index
      %686 = memref.load %arg2[%c140] : memref<144xf32, #tpu.memory_space<smem>>
      %687 = vector.broadcast %686 : f32 to vector<2x16x2xf32>
      %688 = arith.mulf %687, %673 : vector<2x16x2xf32>
      %689 = arith.addf %669, %688 : vector<2x16x2xf32>
      %c2_i32_188 = arith.constant 2 : i32
      %690 = arith.addi %21, %c2_i32_188 : i32
      %c3_189 = arith.constant 3 : index
      %691 = arith.index_cast %690 : i32 to index
      %c0_190 = arith.constant 0 : index
      %c0_191 = arith.constant 0 : index
      %692 = vector.load %arg7[%c3_189, %691, %c0_190, %c0_191] : memref<4x18x18x2xf32, #tpu.memory_space<vmem>>, vector<1x2x16x2xf32>
      %693 = vector.shape_cast %692 : vector<1x2x16x2xf32> to vector<2x16x2xf32>
      %c33 = arith.constant 33 : index
      %694 = memref.load %arg2[%c33] : memref<144xf32, #tpu.memory_space<smem>>
      %695 = vector.broadcast %694 : f32 to vector<2x16x2xf32>
      %696 = arith.mulf %695, %693 : vector<2x16x2xf32>
      %697 = arith.addf %677, %696 : vector<2x16x2xf32>
      %c69 = arith.constant 69 : index
      %698 = memref.load %arg2[%c69] : memref<144xf32, #tpu.memory_space<smem>>
      %699 = vector.broadcast %698 : f32 to vector<2x16x2xf32>
      %700 = arith.mulf %699, %693 : vector<2x16x2xf32>
      %701 = arith.addf %681, %700 : vector<2x16x2xf32>
      %c105 = arith.constant 105 : index
      %702 = memref.load %arg2[%c105] : memref<144xf32, #tpu.memory_space<smem>>
      %703 = vector.broadcast %702 : f32 to vector<2x16x2xf32>
      %704 = arith.mulf %703, %693 : vector<2x16x2xf32>
      %705 = arith.addf %685, %704 : vector<2x16x2xf32>
      %c141 = arith.constant 141 : index
      %706 = memref.load %arg2[%c141] : memref<144xf32, #tpu.memory_space<smem>>
      %707 = vector.broadcast %706 : f32 to vector<2x16x2xf32>
      %708 = arith.mulf %707, %693 : vector<2x16x2xf32>
      %709 = arith.addf %689, %708 : vector<2x16x2xf32>
      %c2_i32_192 = arith.constant 2 : i32
      %710 = arith.addi %21, %c2_i32_192 : i32
      %c3_193 = arith.constant 3 : index
      %711 = arith.index_cast %710 : i32 to index
      %c1_194 = arith.constant 1 : index
      %c0_195 = arith.constant 0 : index
      %712 = vector.load %arg7[%c3_193, %711, %c1_194, %c0_195] : memref<4x18x18x2xf32, #tpu.memory_space<vmem>>, vector<1x2x16x2xf32>
      %713 = vector.shape_cast %712 : vector<1x2x16x2xf32> to vector<2x16x2xf32>
      %c34 = arith.constant 34 : index
      %714 = memref.load %arg2[%c34] : memref<144xf32, #tpu.memory_space<smem>>
      %715 = vector.broadcast %714 : f32 to vector<2x16x2xf32>
      %716 = arith.mulf %715, %713 : vector<2x16x2xf32>
      %717 = arith.addf %697, %716 : vector<2x16x2xf32>
      %c70 = arith.constant 70 : index
      %718 = memref.load %arg2[%c70] : memref<144xf32, #tpu.memory_space<smem>>
      %719 = vector.broadcast %718 : f32 to vector<2x16x2xf32>
      %720 = arith.mulf %719, %713 : vector<2x16x2xf32>
      %721 = arith.addf %701, %720 : vector<2x16x2xf32>
      %c106 = arith.constant 106 : index
      %722 = memref.load %arg2[%c106] : memref<144xf32, #tpu.memory_space<smem>>
      %723 = vector.broadcast %722 : f32 to vector<2x16x2xf32>
      %724 = arith.mulf %723, %713 : vector<2x16x2xf32>
      %725 = arith.addf %705, %724 : vector<2x16x2xf32>
      %c142 = arith.constant 142 : index
      %726 = memref.load %arg2[%c142] : memref<144xf32, #tpu.memory_space<smem>>
      %727 = vector.broadcast %726 : f32 to vector<2x16x2xf32>
      %728 = arith.mulf %727, %713 : vector<2x16x2xf32>
      %729 = arith.addf %709, %728 : vector<2x16x2xf32>
      %c2_i32_196 = arith.constant 2 : i32
      %730 = arith.addi %21, %c2_i32_196 : i32
      %c3_197 = arith.constant 3 : index
      %731 = arith.index_cast %730 : i32 to index
      %c2_198 = arith.constant 2 : index
      %c0_199 = arith.constant 0 : index
      %732 = vector.load %arg7[%c3_197, %731, %c2_198, %c0_199] : memref<4x18x18x2xf32, #tpu.memory_space<vmem>>, vector<1x2x16x2xf32>
      %733 = vector.shape_cast %732 : vector<1x2x16x2xf32> to vector<2x16x2xf32>
      %c35 = arith.constant 35 : index
      %734 = memref.load %arg2[%c35] : memref<144xf32, #tpu.memory_space<smem>>
      %735 = vector.broadcast %734 : f32 to vector<2x16x2xf32>
      %736 = arith.mulf %735, %733 : vector<2x16x2xf32>
      %737 = arith.addf %717, %736 : vector<2x16x2xf32>
      %c71 = arith.constant 71 : index
      %738 = memref.load %arg2[%c71] : memref<144xf32, #tpu.memory_space<smem>>
      %739 = vector.broadcast %738 : f32 to vector<2x16x2xf32>
      %740 = arith.mulf %739, %733 : vector<2x16x2xf32>
      %741 = arith.addf %721, %740 : vector<2x16x2xf32>
      %c107 = arith.constant 107 : index
      %742 = memref.load %arg2[%c107] : memref<144xf32, #tpu.memory_space<smem>>
      %743 = vector.broadcast %742 : f32 to vector<2x16x2xf32>
      %744 = arith.mulf %743, %733 : vector<2x16x2xf32>
      %745 = arith.addf %725, %744 : vector<2x16x2xf32>
      %c143 = arith.constant 143 : index
      %746 = memref.load %arg2[%c143] : memref<144xf32, #tpu.memory_space<smem>>
      %747 = vector.broadcast %746 : f32 to vector<2x16x2xf32>
      %748 = arith.mulf %747, %733 : vector<2x16x2xf32>
      %749 = arith.addf %729, %748 : vector<2x16x2xf32>
      %cst_200 = arith.constant 0.000000e+00 : f32
      %750 = vector.broadcast %cst_200 : f32 to vector<2x16x2xf32>
      %751 = arith.maximumf %737, %750 : vector<2x16x2xf32>
      %c1_i32_201 = arith.constant 1 : i32
      %752 = arith.addi %c1_i32_201, %21 : i32
      %c0_202 = arith.constant 0 : index
      %753 = arith.index_cast %752 : i32 to index
      %c1_203 = arith.constant 1 : index
      %c0_204 = arith.constant 0 : index
      %754 = vector.load %arg8[%c0_202, %753, %c1_203, %c0_204] : memref<4x18x18x2xf32, #tpu.memory_space<vmem>>, vector<1x2x16x2xf32>
      %755 = vector.shape_cast %754 : vector<1x2x16x2xf32> to vector<2x16x2xf32>
      %756 = vector.shape_cast %751 : vector<2x16x2xf32> to vector<1x2x16x2xf32>
      tpu.vector_store %arg8[%c0_202, %753, %c1_203, %c0_204], %756 {strides = array<i32>} : memref<4x18x18x2xf32, #tpu.memory_space<vmem>>, vector<1x2x16x2xf32>,
      %cst_205 = arith.constant 0.000000e+00 : f32
      %757 = vector.broadcast %cst_205 : f32 to vector<2x16x2xf32>
      %758 = arith.maximumf %741, %757 : vector<2x16x2xf32>
      %c1_i32_206 = arith.constant 1 : i32
      %759 = arith.addi %c1_i32_206, %21 : i32
      %c1_207 = arith.constant 1 : index
      %760 = arith.index_cast %759 : i32 to index
      %c1_208 = arith.constant 1 : index
      %c0_209 = arith.constant 0 : index
      %761 = vector.load %arg8[%c1_207, %760, %c1_208, %c0_209] : memref<4x18x18x2xf32, #tpu.memory_space<vmem>>, vector<1x2x16x2xf32>
      %762 = vector.shape_cast %761 : vector<1x2x16x2xf32> to vector<2x16x2xf32>
      %763 = vector.shape_cast %758 : vector<2x16x2xf32> to vector<1x2x16x2xf32>
      tpu.vector_store %arg8[%c1_207, %760, %c1_208, %c0_209], %763 {strides = array<i32>} : memref<4x18x18x2xf32, #tpu.memory_space<vmem>>, vector<1x2x16x2xf32>,
      %cst_210 = arith.constant 0.000000e+00 : f32
      %764 = vector.broadcast %cst_210 : f32 to vector<2x16x2xf32>
      %765 = arith.maximumf %745, %764 : vector<2x16x2xf32>
      %c1_i32_211 = arith.constant 1 : i32
      %766 = arith.addi %c1_i32_211, %21 : i32
      %c2_212 = arith.constant 2 : index
      %767 = arith.index_cast %766 : i32 to index
      %c1_213 = arith.constant 1 : index
      %c0_214 = arith.constant 0 : index
      %768 = vector.load %arg8[%c2_212, %767, %c1_213, %c0_214] : memref<4x18x18x2xf32, #tpu.memory_space<vmem>>, vector<1x2x16x2xf32>
      %769 = vector.shape_cast %768 : vector<1x2x16x2xf32> to vector<2x16x2xf32>
      %770 = vector.shape_cast %765 : vector<2x16x2xf32> to vector<1x2x16x2xf32>
      tpu.vector_store %arg8[%c2_212, %767, %c1_213, %c0_214], %770 {strides = array<i32>} : memref<4x18x18x2xf32, #tpu.memory_space<vmem>>, vector<1x2x16x2xf32>,
      %cst_215 = arith.constant 0.000000e+00 : f32
      %771 = vector.broadcast %cst_215 : f32 to vector<2x16x2xf32>
      %772 = arith.maximumf %749, %771 : vector<2x16x2xf32>
      %c1_i32_216 = arith.constant 1 : i32
      %773 = arith.addi %c1_i32_216, %21 : i32
      %c3_217 = arith.constant 3 : index
      %774 = arith.index_cast %773 : i32 to index
      %c1_218 = arith.constant 1 : index
      %c0_219 = arith.constant 0 : index
      %775 = vector.load %arg8[%c3_217, %774, %c1_218, %c0_219] : memref<4x18x18x2xf32, #tpu.memory_space<vmem>>, vector<1x2x16x2xf32>
      %776 = vector.shape_cast %775 : vector<1x2x16x2xf32> to vector<2x16x2xf32>
      %777 = vector.shape_cast %772 : vector<2x16x2xf32> to vector<1x2x16x2xf32>
      tpu.vector_store %arg8[%c3_217, %774, %c1_218, %c0_219], %777 {strides = array<i32>} : memref<4x18x18x2xf32, #tpu.memory_space<vmem>>, vector<1x2x16x2xf32>,
    }
    %c8_i32_44 = arith.constant 8 : i32
    %c0_i32_45 = arith.constant 0 : i32
    %c8_i32_46 = arith.constant 8 : i32
    %19 = arith.addi %c0_i32_45, %c8_i32_46 : i32
    %c1_i32_47 = arith.constant 1 : i32
    scf.for %arg9 = %c0_i32_45 to %19 step %c1_i32_47  : i32 {
      %c2_i32 = arith.constant 2 : i32
      %20 = arith.muli %arg9, %c2_i32 : i32
      %21 = tpu.assume_multiple %20, 2 : i32
      %c0_49 = arith.constant 0 : index
      %22 = memref.load %arg5[%c0_49] : memref<4xf32, #tpu.memory_space<smem>>
      %23 = vector.broadcast %22 : f32 to vector<2x16x2xf32>
      %c1_50 = arith.constant 1 : index
      %24 = memref.load %arg5[%c1_50] : memref<4xf32, #tpu.memory_space<smem>>
      %25 = vector.broadcast %24 : f32 to vector<2x16x2xf32>
      %c2 = arith.constant 2 : index
      %26 = memref.load %arg5[%c2] : memref<4xf32, #tpu.memory_space<smem>>
      %27 = vector.broadcast %26 : f32 to vector<2x16x2xf32>
      %c3 = arith.constant 3 : index
      %28 = memref.load %arg5[%c3] : memref<4xf32, #tpu.memory_space<smem>>
      %29 = vector.broadcast %28 : f32 to vector<2x16x2xf32>
      %c0_i32_51 = arith.constant 0 : i32
      %30 = arith.addi %21, %c0_i32_51 : i32
      %c0_52 = arith.constant 0 : index
      %31 = arith.index_cast %30 : i32 to index
      %c0_53 = arith.constant 0 : index
      %c0_54 = arith.constant 0 : index
      %32 = vector.load %arg8[%c0_52, %31, %c0_53, %c0_54] : memref<4x18x18x2xf32, #tpu.memory_space<vmem>>, vector<1x2x16x2xf32>
      %33 = vector.shape_cast %32 : vector<1x2x16x2xf32> to vector<2x16x2xf32>
      %c0_55 = arith.constant 0 : index
      %34 = memref.load %arg4[%c0_55] : memref<144xf32, #tpu.memory_space<smem>>
      %35 = vector.broadcast %34 : f32 to vector<2x16x2xf32>
      %36 = arith.mulf %35, %33 : vector<2x16x2xf32>
      %37 = arith.addf %23, %36 : vector<2x16x2xf32>
      %c36 = arith.constant 36 : index
      %38 = memref.load %arg4[%c36] : memref<144xf32, #tpu.memory_space<smem>>
      %39 = vector.broadcast %38 : f32 to vector<2x16x2xf32>
      %40 = arith.mulf %39, %33 : vector<2x16x2xf32>
      %41 = arith.addf %25, %40 : vector<2x16x2xf32>
      %c72 = arith.constant 72 : index
      %42 = memref.load %arg4[%c72] : memref<144xf32, #tpu.memory_space<smem>>
      %43 = vector.broadcast %42 : f32 to vector<2x16x2xf32>
      %44 = arith.mulf %43, %33 : vector<2x16x2xf32>
      %45 = arith.addf %27, %44 : vector<2x16x2xf32>
      %c108 = arith.constant 108 : index
      %46 = memref.load %arg4[%c108] : memref<144xf32, #tpu.memory_space<smem>>
      %47 = vector.broadcast %46 : f32 to vector<2x16x2xf32>
      %48 = arith.mulf %47, %33 : vector<2x16x2xf32>
      %49 = arith.addf %29, %48 : vector<2x16x2xf32>
      %c0_i32_56 = arith.constant 0 : i32
      %50 = arith.addi %21, %c0_i32_56 : i32
      %c0_57 = arith.constant 0 : index
      %51 = arith.index_cast %50 : i32 to index
      %c1_58 = arith.constant 1 : index
      %c0_59 = arith.constant 0 : index
      %52 = vector.load %arg8[%c0_57, %51, %c1_58, %c0_59] : memref<4x18x18x2xf32, #tpu.memory_space<vmem>>, vector<1x2x16x2xf32>
      %53 = vector.shape_cast %52 : vector<1x2x16x2xf32> to vector<2x16x2xf32>
      %c1_60 = arith.constant 1 : index
      %54 = memref.load %arg4[%c1_60] : memref<144xf32, #tpu.memory_space<smem>>
      %55 = vector.broadcast %54 : f32 to vector<2x16x2xf32>
      %56 = arith.mulf %55, %53 : vector<2x16x2xf32>
      %57 = arith.addf %37, %56 : vector<2x16x2xf32>
      %c37 = arith.constant 37 : index
      %58 = memref.load %arg4[%c37] : memref<144xf32, #tpu.memory_space<smem>>
      %59 = vector.broadcast %58 : f32 to vector<2x16x2xf32>
      %60 = arith.mulf %59, %53 : vector<2x16x2xf32>
      %61 = arith.addf %41, %60 : vector<2x16x2xf32>
      %c73 = arith.constant 73 : index
      %62 = memref.load %arg4[%c73] : memref<144xf32, #tpu.memory_space<smem>>
      %63 = vector.broadcast %62 : f32 to vector<2x16x2xf32>
      %64 = arith.mulf %63, %53 : vector<2x16x2xf32>
      %65 = arith.addf %45, %64 : vector<2x16x2xf32>
      %c109 = arith.constant 109 : index
      %66 = memref.load %arg4[%c109] : memref<144xf32, #tpu.memory_space<smem>>
      %67 = vector.broadcast %66 : f32 to vector<2x16x2xf32>
      %68 = arith.mulf %67, %53 : vector<2x16x2xf32>
      %69 = arith.addf %49, %68 : vector<2x16x2xf32>
      %c0_i32_61 = arith.constant 0 : i32
      %70 = arith.addi %21, %c0_i32_61 : i32
      %c0_62 = arith.constant 0 : index
      %71 = arith.index_cast %70 : i32 to index
      %c2_63 = arith.constant 2 : index
      %c0_64 = arith.constant 0 : index
      %72 = vector.load %arg8[%c0_62, %71, %c2_63, %c0_64] : memref<4x18x18x2xf32, #tpu.memory_space<vmem>>, vector<1x2x16x2xf32>
      %73 = vector.shape_cast %72 : vector<1x2x16x2xf32> to vector<2x16x2xf32>
      %c2_65 = arith.constant 2 : index
      %74 = memref.load %arg4[%c2_65] : memref<144xf32, #tpu.memory_space<smem>>
      %75 = vector.broadcast %74 : f32 to vector<2x16x2xf32>
      %76 = arith.mulf %75, %73 : vector<2x16x2xf32>
      %77 = arith.addf %57, %76 : vector<2x16x2xf32>
      %c38 = arith.constant 38 : index
      %78 = memref.load %arg4[%c38] : memref<144xf32, #tpu.memory_space<smem>>
      %79 = vector.broadcast %78 : f32 to vector<2x16x2xf32>
      %80 = arith.mulf %79, %73 : vector<2x16x2xf32>
      %81 = arith.addf %61, %80 : vector<2x16x2xf32>
      %c74 = arith.constant 74 : index
      %82 = memref.load %arg4[%c74] : memref<144xf32, #tpu.memory_space<smem>>
      %83 = vector.broadcast %82 : f32 to vector<2x16x2xf32>
      %84 = arith.mulf %83, %73 : vector<2x16x2xf32>
      %85 = arith.addf %65, %84 : vector<2x16x2xf32>
      %c110 = arith.constant 110 : index
      %86 = memref.load %arg4[%c110] : memref<144xf32, #tpu.memory_space<smem>>
      %87 = vector.broadcast %86 : f32 to vector<2x16x2xf32>
      %88 = arith.mulf %87, %73 : vector<2x16x2xf32>
      %89 = arith.addf %69, %88 : vector<2x16x2xf32>
      %c1_i32_66 = arith.constant 1 : i32
      %90 = arith.addi %21, %c1_i32_66 : i32
      %c0_67 = arith.constant 0 : index
      %91 = arith.index_cast %90 : i32 to index
      %c0_68 = arith.constant 0 : index
      %c0_69 = arith.constant 0 : index
      %92 = vector.load %arg8[%c0_67, %91, %c0_68, %c0_69] : memref<4x18x18x2xf32, #tpu.memory_space<vmem>>, vector<1x2x16x2xf32>
      %93 = vector.shape_cast %92 : vector<1x2x16x2xf32> to vector<2x16x2xf32>
      %c3_70 = arith.constant 3 : index
      %94 = memref.load %arg4[%c3_70] : memref<144xf32, #tpu.memory_space<smem>>
      %95 = vector.broadcast %94 : f32 to vector<2x16x2xf32>
      %96 = arith.mulf %95, %93 : vector<2x16x2xf32>
      %97 = arith.addf %77, %96 : vector<2x16x2xf32>
      %c39 = arith.constant 39 : index
      %98 = memref.load %arg4[%c39] : memref<144xf32, #tpu.memory_space<smem>>
      %99 = vector.broadcast %98 : f32 to vector<2x16x2xf32>
      %100 = arith.mulf %99, %93 : vector<2x16x2xf32>
      %101 = arith.addf %81, %100 : vector<2x16x2xf32>
      %c75 = arith.constant 75 : index
      %102 = memref.load %arg4[%c75] : memref<144xf32, #tpu.memory_space<smem>>
      %103 = vector.broadcast %102 : f32 to vector<2x16x2xf32>
      %104 = arith.mulf %103, %93 : vector<2x16x2xf32>
      %105 = arith.addf %85, %104 : vector<2x16x2xf32>
      %c111 = arith.constant 111 : index
      %106 = memref.load %arg4[%c111] : memref<144xf32, #tpu.memory_space<smem>>
      %107 = vector.broadcast %106 : f32 to vector<2x16x2xf32>
      %108 = arith.mulf %107, %93 : vector<2x16x2xf32>
      %109 = arith.addf %89, %108 : vector<2x16x2xf32>
      %c1_i32_71 = arith.constant 1 : i32
      %110 = arith.addi %21, %c1_i32_71 : i32
      %c0_72 = arith.constant 0 : index
      %111 = arith.index_cast %110 : i32 to index
      %c1_73 = arith.constant 1 : index
      %c0_74 = arith.constant 0 : index
      %112 = vector.load %arg8[%c0_72, %111, %c1_73, %c0_74] : memref<4x18x18x2xf32, #tpu.memory_space<vmem>>, vector<1x2x16x2xf32>
      %113 = vector.shape_cast %112 : vector<1x2x16x2xf32> to vector<2x16x2xf32>
      %c4 = arith.constant 4 : index
      %114 = memref.load %arg4[%c4] : memref<144xf32, #tpu.memory_space<smem>>
      %115 = vector.broadcast %114 : f32 to vector<2x16x2xf32>
      %116 = arith.mulf %115, %113 : vector<2x16x2xf32>
      %117 = arith.addf %97, %116 : vector<2x16x2xf32>
      %c40 = arith.constant 40 : index
      %118 = memref.load %arg4[%c40] : memref<144xf32, #tpu.memory_space<smem>>
      %119 = vector.broadcast %118 : f32 to vector<2x16x2xf32>
      %120 = arith.mulf %119, %113 : vector<2x16x2xf32>
      %121 = arith.addf %101, %120 : vector<2x16x2xf32>
      %c76 = arith.constant 76 : index
      %122 = memref.load %arg4[%c76] : memref<144xf32, #tpu.memory_space<smem>>
      %123 = vector.broadcast %122 : f32 to vector<2x16x2xf32>
      %124 = arith.mulf %123, %113 : vector<2x16x2xf32>
      %125 = arith.addf %105, %124 : vector<2x16x2xf32>
      %c112 = arith.constant 112 : index
      %126 = memref.load %arg4[%c112] : memref<144xf32, #tpu.memory_space<smem>>
      %127 = vector.broadcast %126 : f32 to vector<2x16x2xf32>
      %128 = arith.mulf %127, %113 : vector<2x16x2xf32>
      %129 = arith.addf %109, %128 : vector<2x16x2xf32>
      %c1_i32_75 = arith.constant 1 : i32
      %130 = arith.addi %21, %c1_i32_75 : i32
      %c0_76 = arith.constant 0 : index
      %131 = arith.index_cast %130 : i32 to index
      %c2_77 = arith.constant 2 : index
      %c0_78 = arith.constant 0 : index
      %132 = vector.load %arg8[%c0_76, %131, %c2_77, %c0_78] : memref<4x18x18x2xf32, #tpu.memory_space<vmem>>, vector<1x2x16x2xf32>
      %133 = vector.shape_cast %132 : vector<1x2x16x2xf32> to vector<2x16x2xf32>
      %c5 = arith.constant 5 : index
      %134 = memref.load %arg4[%c5] : memref<144xf32, #tpu.memory_space<smem>>
      %135 = vector.broadcast %134 : f32 to vector<2x16x2xf32>
      %136 = arith.mulf %135, %133 : vector<2x16x2xf32>
      %137 = arith.addf %117, %136 : vector<2x16x2xf32>
      %c41 = arith.constant 41 : index
      %138 = memref.load %arg4[%c41] : memref<144xf32, #tpu.memory_space<smem>>
      %139 = vector.broadcast %138 : f32 to vector<2x16x2xf32>
      %140 = arith.mulf %139, %133 : vector<2x16x2xf32>
      %141 = arith.addf %121, %140 : vector<2x16x2xf32>
      %c77 = arith.constant 77 : index
      %142 = memref.load %arg4[%c77] : memref<144xf32, #tpu.memory_space<smem>>
      %143 = vector.broadcast %142 : f32 to vector<2x16x2xf32>
      %144 = arith.mulf %143, %133 : vector<2x16x2xf32>
      %145 = arith.addf %125, %144 : vector<2x16x2xf32>
      %c113 = arith.constant 113 : index
      %146 = memref.load %arg4[%c113] : memref<144xf32, #tpu.memory_space<smem>>
      %147 = vector.broadcast %146 : f32 to vector<2x16x2xf32>
      %148 = arith.mulf %147, %133 : vector<2x16x2xf32>
      %149 = arith.addf %129, %148 : vector<2x16x2xf32>
      %c2_i32_79 = arith.constant 2 : i32
      %150 = arith.addi %21, %c2_i32_79 : i32
      %c0_80 = arith.constant 0 : index
      %151 = arith.index_cast %150 : i32 to index
      %c0_81 = arith.constant 0 : index
      %c0_82 = arith.constant 0 : index
      %152 = vector.load %arg8[%c0_80, %151, %c0_81, %c0_82] : memref<4x18x18x2xf32, #tpu.memory_space<vmem>>, vector<1x2x16x2xf32>
      %153 = vector.shape_cast %152 : vector<1x2x16x2xf32> to vector<2x16x2xf32>
      %c6 = arith.constant 6 : index
      %154 = memref.load %arg4[%c6] : memref<144xf32, #tpu.memory_space<smem>>
      %155 = vector.broadcast %154 : f32 to vector<2x16x2xf32>
      %156 = arith.mulf %155, %153 : vector<2x16x2xf32>
      %157 = arith.addf %137, %156 : vector<2x16x2xf32>
      %c42 = arith.constant 42 : index
      %158 = memref.load %arg4[%c42] : memref<144xf32, #tpu.memory_space<smem>>
      %159 = vector.broadcast %158 : f32 to vector<2x16x2xf32>
      %160 = arith.mulf %159, %153 : vector<2x16x2xf32>
      %161 = arith.addf %141, %160 : vector<2x16x2xf32>
      %c78 = arith.constant 78 : index
      %162 = memref.load %arg4[%c78] : memref<144xf32, #tpu.memory_space<smem>>
      %163 = vector.broadcast %162 : f32 to vector<2x16x2xf32>
      %164 = arith.mulf %163, %153 : vector<2x16x2xf32>
      %165 = arith.addf %145, %164 : vector<2x16x2xf32>
      %c114 = arith.constant 114 : index
      %166 = memref.load %arg4[%c114] : memref<144xf32, #tpu.memory_space<smem>>
      %167 = vector.broadcast %166 : f32 to vector<2x16x2xf32>
      %168 = arith.mulf %167, %153 : vector<2x16x2xf32>
      %169 = arith.addf %149, %168 : vector<2x16x2xf32>
      %c2_i32_83 = arith.constant 2 : i32
      %170 = arith.addi %21, %c2_i32_83 : i32
      %c0_84 = arith.constant 0 : index
      %171 = arith.index_cast %170 : i32 to index
      %c1_85 = arith.constant 1 : index
      %c0_86 = arith.constant 0 : index
      %172 = vector.load %arg8[%c0_84, %171, %c1_85, %c0_86] : memref<4x18x18x2xf32, #tpu.memory_space<vmem>>, vector<1x2x16x2xf32>
      %173 = vector.shape_cast %172 : vector<1x2x16x2xf32> to vector<2x16x2xf32>
      %c7 = arith.constant 7 : index
      %174 = memref.load %arg4[%c7] : memref<144xf32, #tpu.memory_space<smem>>
      %175 = vector.broadcast %174 : f32 to vector<2x16x2xf32>
      %176 = arith.mulf %175, %173 : vector<2x16x2xf32>
      %177 = arith.addf %157, %176 : vector<2x16x2xf32>
      %c43 = arith.constant 43 : index
      %178 = memref.load %arg4[%c43] : memref<144xf32, #tpu.memory_space<smem>>
      %179 = vector.broadcast %178 : f32 to vector<2x16x2xf32>
      %180 = arith.mulf %179, %173 : vector<2x16x2xf32>
      %181 = arith.addf %161, %180 : vector<2x16x2xf32>
      %c79 = arith.constant 79 : index
      %182 = memref.load %arg4[%c79] : memref<144xf32, #tpu.memory_space<smem>>
      %183 = vector.broadcast %182 : f32 to vector<2x16x2xf32>
      %184 = arith.mulf %183, %173 : vector<2x16x2xf32>
      %185 = arith.addf %165, %184 : vector<2x16x2xf32>
      %c115 = arith.constant 115 : index
      %186 = memref.load %arg4[%c115] : memref<144xf32, #tpu.memory_space<smem>>
      %187 = vector.broadcast %186 : f32 to vector<2x16x2xf32>
      %188 = arith.mulf %187, %173 : vector<2x16x2xf32>
      %189 = arith.addf %169, %188 : vector<2x16x2xf32>
      %c2_i32_87 = arith.constant 2 : i32
      %190 = arith.addi %21, %c2_i32_87 : i32
      %c0_88 = arith.constant 0 : index
      %191 = arith.index_cast %190 : i32 to index
      %c2_89 = arith.constant 2 : index
      %c0_90 = arith.constant 0 : index
      %192 = vector.load %arg8[%c0_88, %191, %c2_89, %c0_90] : memref<4x18x18x2xf32, #tpu.memory_space<vmem>>, vector<1x2x16x2xf32>
      %193 = vector.shape_cast %192 : vector<1x2x16x2xf32> to vector<2x16x2xf32>
      %c8 = arith.constant 8 : index
      %194 = memref.load %arg4[%c8] : memref<144xf32, #tpu.memory_space<smem>>
      %195 = vector.broadcast %194 : f32 to vector<2x16x2xf32>
      %196 = arith.mulf %195, %193 : vector<2x16x2xf32>
      %197 = arith.addf %177, %196 : vector<2x16x2xf32>
      %c44 = arith.constant 44 : index
      %198 = memref.load %arg4[%c44] : memref<144xf32, #tpu.memory_space<smem>>
      %199 = vector.broadcast %198 : f32 to vector<2x16x2xf32>
      %200 = arith.mulf %199, %193 : vector<2x16x2xf32>
      %201 = arith.addf %181, %200 : vector<2x16x2xf32>
      %c80 = arith.constant 80 : index
      %202 = memref.load %arg4[%c80] : memref<144xf32, #tpu.memory_space<smem>>
      %203 = vector.broadcast %202 : f32 to vector<2x16x2xf32>
      %204 = arith.mulf %203, %193 : vector<2x16x2xf32>
      %205 = arith.addf %185, %204 : vector<2x16x2xf32>
      %c116 = arith.constant 116 : index
      %206 = memref.load %arg4[%c116] : memref<144xf32, #tpu.memory_space<smem>>
      %207 = vector.broadcast %206 : f32 to vector<2x16x2xf32>
      %208 = arith.mulf %207, %193 : vector<2x16x2xf32>
      %209 = arith.addf %189, %208 : vector<2x16x2xf32>
      %c0_i32_91 = arith.constant 0 : i32
      %210 = arith.addi %21, %c0_i32_91 : i32
      %c1_92 = arith.constant 1 : index
      %211 = arith.index_cast %210 : i32 to index
      %c0_93 = arith.constant 0 : index
      %c0_94 = arith.constant 0 : index
      %212 = vector.load %arg8[%c1_92, %211, %c0_93, %c0_94] : memref<4x18x18x2xf32, #tpu.memory_space<vmem>>, vector<1x2x16x2xf32>
      %213 = vector.shape_cast %212 : vector<1x2x16x2xf32> to vector<2x16x2xf32>
      %c9 = arith.constant 9 : index
      %214 = memref.load %arg4[%c9] : memref<144xf32, #tpu.memory_space<smem>>
      %215 = vector.broadcast %214 : f32 to vector<2x16x2xf32>
      %216 = arith.mulf %215, %213 : vector<2x16x2xf32>
      %217 = arith.addf %197, %216 : vector<2x16x2xf32>
      %c45 = arith.constant 45 : index
      %218 = memref.load %arg4[%c45] : memref<144xf32, #tpu.memory_space<smem>>
      %219 = vector.broadcast %218 : f32 to vector<2x16x2xf32>
      %220 = arith.mulf %219, %213 : vector<2x16x2xf32>
      %221 = arith.addf %201, %220 : vector<2x16x2xf32>
      %c81 = arith.constant 81 : index
      %222 = memref.load %arg4[%c81] : memref<144xf32, #tpu.memory_space<smem>>
      %223 = vector.broadcast %222 : f32 to vector<2x16x2xf32>
      %224 = arith.mulf %223, %213 : vector<2x16x2xf32>
      %225 = arith.addf %205, %224 : vector<2x16x2xf32>
      %c117 = arith.constant 117 : index
      %226 = memref.load %arg4[%c117] : memref<144xf32, #tpu.memory_space<smem>>
      %227 = vector.broadcast %226 : f32 to vector<2x16x2xf32>
      %228 = arith.mulf %227, %213 : vector<2x16x2xf32>
      %229 = arith.addf %209, %228 : vector<2x16x2xf32>
      %c0_i32_95 = arith.constant 0 : i32
      %230 = arith.addi %21, %c0_i32_95 : i32
      %c1_96 = arith.constant 1 : index
      %231 = arith.index_cast %230 : i32 to index
      %c1_97 = arith.constant 1 : index
      %c0_98 = arith.constant 0 : index
      %232 = vector.load %arg8[%c1_96, %231, %c1_97, %c0_98] : memref<4x18x18x2xf32, #tpu.memory_space<vmem>>, vector<1x2x16x2xf32>
      %233 = vector.shape_cast %232 : vector<1x2x16x2xf32> to vector<2x16x2xf32>
      %c10 = arith.constant 10 : index
      %234 = memref.load %arg4[%c10] : memref<144xf32, #tpu.memory_space<smem>>
      %235 = vector.broadcast %234 : f32 to vector<2x16x2xf32>
      %236 = arith.mulf %235, %233 : vector<2x16x2xf32>
      %237 = arith.addf %217, %236 : vector<2x16x2xf32>
      %c46 = arith.constant 46 : index
      %238 = memref.load %arg4[%c46] : memref<144xf32, #tpu.memory_space<smem>>
      %239 = vector.broadcast %238 : f32 to vector<2x16x2xf32>
      %240 = arith.mulf %239, %233 : vector<2x16x2xf32>
      %241 = arith.addf %221, %240 : vector<2x16x2xf32>
      %c82 = arith.constant 82 : index
      %242 = memref.load %arg4[%c82] : memref<144xf32, #tpu.memory_space<smem>>
      %243 = vector.broadcast %242 : f32 to vector<2x16x2xf32>
      %244 = arith.mulf %243, %233 : vector<2x16x2xf32>
      %245 = arith.addf %225, %244 : vector<2x16x2xf32>
      %c118 = arith.constant 118 : index
      %246 = memref.load %arg4[%c118] : memref<144xf32, #tpu.memory_space<smem>>
      %247 = vector.broadcast %246 : f32 to vector<2x16x2xf32>
      %248 = arith.mulf %247, %233 : vector<2x16x2xf32>
      %249 = arith.addf %229, %248 : vector<2x16x2xf32>
      %c0_i32_99 = arith.constant 0 : i32
      %250 = arith.addi %21, %c0_i32_99 : i32
      %c1_100 = arith.constant 1 : index
      %251 = arith.index_cast %250 : i32 to index
      %c2_101 = arith.constant 2 : index
      %c0_102 = arith.constant 0 : index
      %252 = vector.load %arg8[%c1_100, %251, %c2_101, %c0_102] : memref<4x18x18x2xf32, #tpu.memory_space<vmem>>, vector<1x2x16x2xf32>
      %253 = vector.shape_cast %252 : vector<1x2x16x2xf32> to vector<2x16x2xf32>
      %c11 = arith.constant 11 : index
      %254 = memref.load %arg4[%c11] : memref<144xf32, #tpu.memory_space<smem>>
      %255 = vector.broadcast %254 : f32 to vector<2x16x2xf32>
      %256 = arith.mulf %255, %253 : vector<2x16x2xf32>
      %257 = arith.addf %237, %256 : vector<2x16x2xf32>
      %c47 = arith.constant 47 : index
      %258 = memref.load %arg4[%c47] : memref<144xf32, #tpu.memory_space<smem>>
      %259 = vector.broadcast %258 : f32 to vector<2x16x2xf32>
      %260 = arith.mulf %259, %253 : vector<2x16x2xf32>
      %261 = arith.addf %241, %260 : vector<2x16x2xf32>
      %c83 = arith.constant 83 : index
      %262 = memref.load %arg4[%c83] : memref<144xf32, #tpu.memory_space<smem>>
      %263 = vector.broadcast %262 : f32 to vector<2x16x2xf32>
      %264 = arith.mulf %263, %253 : vector<2x16x2xf32>
      %265 = arith.addf %245, %264 : vector<2x16x2xf32>
      %c119 = arith.constant 119 : index
      %266 = memref.load %arg4[%c119] : memref<144xf32, #tpu.memory_space<smem>>
      %267 = vector.broadcast %266 : f32 to vector<2x16x2xf32>
      %268 = arith.mulf %267, %253 : vector<2x16x2xf32>
      %269 = arith.addf %249, %268 : vector<2x16x2xf32>
      %c1_i32_103 = arith.constant 1 : i32
      %270 = arith.addi %21, %c1_i32_103 : i32
      %c1_104 = arith.constant 1 : index
      %271 = arith.index_cast %270 : i32 to index
      %c0_105 = arith.constant 0 : index
      %c0_106 = arith.constant 0 : index
      %272 = vector.load %arg8[%c1_104, %271, %c0_105, %c0_106] : memref<4x18x18x2xf32, #tpu.memory_space<vmem>>, vector<1x2x16x2xf32>
      %273 = vector.shape_cast %272 : vector<1x2x16x2xf32> to vector<2x16x2xf32>
      %c12 = arith.constant 12 : index
      %274 = memref.load %arg4[%c12] : memref<144xf32, #tpu.memory_space<smem>>
      %275 = vector.broadcast %274 : f32 to vector<2x16x2xf32>
      %276 = arith.mulf %275, %273 : vector<2x16x2xf32>
      %277 = arith.addf %257, %276 : vector<2x16x2xf32>
      %c48 = arith.constant 48 : index
      %278 = memref.load %arg4[%c48] : memref<144xf32, #tpu.memory_space<smem>>
      %279 = vector.broadcast %278 : f32 to vector<2x16x2xf32>
      %280 = arith.mulf %279, %273 : vector<2x16x2xf32>
      %281 = arith.addf %261, %280 : vector<2x16x2xf32>
      %c84 = arith.constant 84 : index
      %282 = memref.load %arg4[%c84] : memref<144xf32, #tpu.memory_space<smem>>
      %283 = vector.broadcast %282 : f32 to vector<2x16x2xf32>
      %284 = arith.mulf %283, %273 : vector<2x16x2xf32>
      %285 = arith.addf %265, %284 : vector<2x16x2xf32>
      %c120 = arith.constant 120 : index
      %286 = memref.load %arg4[%c120] : memref<144xf32, #tpu.memory_space<smem>>
      %287 = vector.broadcast %286 : f32 to vector<2x16x2xf32>
      %288 = arith.mulf %287, %273 : vector<2x16x2xf32>
      %289 = arith.addf %269, %288 : vector<2x16x2xf32>
      %c1_i32_107 = arith.constant 1 : i32
      %290 = arith.addi %21, %c1_i32_107 : i32
      %c1_108 = arith.constant 1 : index
      %291 = arith.index_cast %290 : i32 to index
      %c1_109 = arith.constant 1 : index
      %c0_110 = arith.constant 0 : index
      %292 = vector.load %arg8[%c1_108, %291, %c1_109, %c0_110] : memref<4x18x18x2xf32, #tpu.memory_space<vmem>>, vector<1x2x16x2xf32>
      %293 = vector.shape_cast %292 : vector<1x2x16x2xf32> to vector<2x16x2xf32>
      %c13 = arith.constant 13 : index
      %294 = memref.load %arg4[%c13] : memref<144xf32, #tpu.memory_space<smem>>
      %295 = vector.broadcast %294 : f32 to vector<2x16x2xf32>
      %296 = arith.mulf %295, %293 : vector<2x16x2xf32>
      %297 = arith.addf %277, %296 : vector<2x16x2xf32>
      %c49 = arith.constant 49 : index
      %298 = memref.load %arg4[%c49] : memref<144xf32, #tpu.memory_space<smem>>
      %299 = vector.broadcast %298 : f32 to vector<2x16x2xf32>
      %300 = arith.mulf %299, %293 : vector<2x16x2xf32>
      %301 = arith.addf %281, %300 : vector<2x16x2xf32>
      %c85 = arith.constant 85 : index
      %302 = memref.load %arg4[%c85] : memref<144xf32, #tpu.memory_space<smem>>
      %303 = vector.broadcast %302 : f32 to vector<2x16x2xf32>
      %304 = arith.mulf %303, %293 : vector<2x16x2xf32>
      %305 = arith.addf %285, %304 : vector<2x16x2xf32>
      %c121 = arith.constant 121 : index
      %306 = memref.load %arg4[%c121] : memref<144xf32, #tpu.memory_space<smem>>
      %307 = vector.broadcast %306 : f32 to vector<2x16x2xf32>
      %308 = arith.mulf %307, %293 : vector<2x16x2xf32>
      %309 = arith.addf %289, %308 : vector<2x16x2xf32>
      %c1_i32_111 = arith.constant 1 : i32
      %310 = arith.addi %21, %c1_i32_111 : i32
      %c1_112 = arith.constant 1 : index
      %311 = arith.index_cast %310 : i32 to index
      %c2_113 = arith.constant 2 : index
      %c0_114 = arith.constant 0 : index
      %312 = vector.load %arg8[%c1_112, %311, %c2_113, %c0_114] : memref<4x18x18x2xf32, #tpu.memory_space<vmem>>, vector<1x2x16x2xf32>
      %313 = vector.shape_cast %312 : vector<1x2x16x2xf32> to vector<2x16x2xf32>
      %c14 = arith.constant 14 : index
      %314 = memref.load %arg4[%c14] : memref<144xf32, #tpu.memory_space<smem>>
      %315 = vector.broadcast %314 : f32 to vector<2x16x2xf32>
      %316 = arith.mulf %315, %313 : vector<2x16x2xf32>
      %317 = arith.addf %297, %316 : vector<2x16x2xf32>
      %c50 = arith.constant 50 : index
      %318 = memref.load %arg4[%c50] : memref<144xf32, #tpu.memory_space<smem>>
      %319 = vector.broadcast %318 : f32 to vector<2x16x2xf32>
      %320 = arith.mulf %319, %313 : vector<2x16x2xf32>
      %321 = arith.addf %301, %320 : vector<2x16x2xf32>
      %c86 = arith.constant 86 : index
      %322 = memref.load %arg4[%c86] : memref<144xf32, #tpu.memory_space<smem>>
      %323 = vector.broadcast %322 : f32 to vector<2x16x2xf32>
      %324 = arith.mulf %323, %313 : vector<2x16x2xf32>
      %325 = arith.addf %305, %324 : vector<2x16x2xf32>
      %c122 = arith.constant 122 : index
      %326 = memref.load %arg4[%c122] : memref<144xf32, #tpu.memory_space<smem>>
      %327 = vector.broadcast %326 : f32 to vector<2x16x2xf32>
      %328 = arith.mulf %327, %313 : vector<2x16x2xf32>
      %329 = arith.addf %309, %328 : vector<2x16x2xf32>
      %c2_i32_115 = arith.constant 2 : i32
      %330 = arith.addi %21, %c2_i32_115 : i32
      %c1_116 = arith.constant 1 : index
      %331 = arith.index_cast %330 : i32 to index
      %c0_117 = arith.constant 0 : index
      %c0_118 = arith.constant 0 : index
      %332 = vector.load %arg8[%c1_116, %331, %c0_117, %c0_118] : memref<4x18x18x2xf32, #tpu.memory_space<vmem>>, vector<1x2x16x2xf32>
      %333 = vector.shape_cast %332 : vector<1x2x16x2xf32> to vector<2x16x2xf32>
      %c15 = arith.constant 15 : index
      %334 = memref.load %arg4[%c15] : memref<144xf32, #tpu.memory_space<smem>>
      %335 = vector.broadcast %334 : f32 to vector<2x16x2xf32>
      %336 = arith.mulf %335, %333 : vector<2x16x2xf32>
      %337 = arith.addf %317, %336 : vector<2x16x2xf32>
      %c51 = arith.constant 51 : index
      %338 = memref.load %arg4[%c51] : memref<144xf32, #tpu.memory_space<smem>>
      %339 = vector.broadcast %338 : f32 to vector<2x16x2xf32>
      %340 = arith.mulf %339, %333 : vector<2x16x2xf32>
      %341 = arith.addf %321, %340 : vector<2x16x2xf32>
      %c87 = arith.constant 87 : index
      %342 = memref.load %arg4[%c87] : memref<144xf32, #tpu.memory_space<smem>>
      %343 = vector.broadcast %342 : f32 to vector<2x16x2xf32>
      %344 = arith.mulf %343, %333 : vector<2x16x2xf32>
      %345 = arith.addf %325, %344 : vector<2x16x2xf32>
      %c123 = arith.constant 123 : index
      %346 = memref.load %arg4[%c123] : memref<144xf32, #tpu.memory_space<smem>>
      %347 = vector.broadcast %346 : f32 to vector<2x16x2xf32>
      %348 = arith.mulf %347, %333 : vector<2x16x2xf32>
      %349 = arith.addf %329, %348 : vector<2x16x2xf32>
      %c2_i32_119 = arith.constant 2 : i32
      %350 = arith.addi %21, %c2_i32_119 : i32
      %c1_120 = arith.constant 1 : index
      %351 = arith.index_cast %350 : i32 to index
      %c1_121 = arith.constant 1 : index
      %c0_122 = arith.constant 0 : index
      %352 = vector.load %arg8[%c1_120, %351, %c1_121, %c0_122] : memref<4x18x18x2xf32, #tpu.memory_space<vmem>>, vector<1x2x16x2xf32>
      %353 = vector.shape_cast %352 : vector<1x2x16x2xf32> to vector<2x16x2xf32>
      %c16 = arith.constant 16 : index
      %354 = memref.load %arg4[%c16] : memref<144xf32, #tpu.memory_space<smem>>
      %355 = vector.broadcast %354 : f32 to vector<2x16x2xf32>
      %356 = arith.mulf %355, %353 : vector<2x16x2xf32>
      %357 = arith.addf %337, %356 : vector<2x16x2xf32>
      %c52 = arith.constant 52 : index
      %358 = memref.load %arg4[%c52] : memref<144xf32, #tpu.memory_space<smem>>
      %359 = vector.broadcast %358 : f32 to vector<2x16x2xf32>
      %360 = arith.mulf %359, %353 : vector<2x16x2xf32>
      %361 = arith.addf %341, %360 : vector<2x16x2xf32>
      %c88 = arith.constant 88 : index
      %362 = memref.load %arg4[%c88] : memref<144xf32, #tpu.memory_space<smem>>
      %363 = vector.broadcast %362 : f32 to vector<2x16x2xf32>
      %364 = arith.mulf %363, %353 : vector<2x16x2xf32>
      %365 = arith.addf %345, %364 : vector<2x16x2xf32>
      %c124 = arith.constant 124 : index
      %366 = memref.load %arg4[%c124] : memref<144xf32, #tpu.memory_space<smem>>
      %367 = vector.broadcast %366 : f32 to vector<2x16x2xf32>
      %368 = arith.mulf %367, %353 : vector<2x16x2xf32>
      %369 = arith.addf %349, %368 : vector<2x16x2xf32>
      %c2_i32_123 = arith.constant 2 : i32
      %370 = arith.addi %21, %c2_i32_123 : i32
      %c1_124 = arith.constant 1 : index
      %371 = arith.index_cast %370 : i32 to index
      %c2_125 = arith.constant 2 : index
      %c0_126 = arith.constant 0 : index
      %372 = vector.load %arg8[%c1_124, %371, %c2_125, %c0_126] : memref<4x18x18x2xf32, #tpu.memory_space<vmem>>, vector<1x2x16x2xf32>
      %373 = vector.shape_cast %372 : vector<1x2x16x2xf32> to vector<2x16x2xf32>
      %c17_127 = arith.constant 17 : index
      %374 = memref.load %arg4[%c17_127] : memref<144xf32, #tpu.memory_space<smem>>
      %375 = vector.broadcast %374 : f32 to vector<2x16x2xf32>
      %376 = arith.mulf %375, %373 : vector<2x16x2xf32>
      %377 = arith.addf %357, %376 : vector<2x16x2xf32>
      %c53 = arith.constant 53 : index
      %378 = memref.load %arg4[%c53] : memref<144xf32, #tpu.memory_space<smem>>
      %379 = vector.broadcast %378 : f32 to vector<2x16x2xf32>
      %380 = arith.mulf %379, %373 : vector<2x16x2xf32>
      %381 = arith.addf %361, %380 : vector<2x16x2xf32>
      %c89 = arith.constant 89 : index
      %382 = memref.load %arg4[%c89] : memref<144xf32, #tpu.memory_space<smem>>
      %383 = vector.broadcast %382 : f32 to vector<2x16x2xf32>
      %384 = arith.mulf %383, %373 : vector<2x16x2xf32>
      %385 = arith.addf %365, %384 : vector<2x16x2xf32>
      %c125 = arith.constant 125 : index
      %386 = memref.load %arg4[%c125] : memref<144xf32, #tpu.memory_space<smem>>
      %387 = vector.broadcast %386 : f32 to vector<2x16x2xf32>
      %388 = arith.mulf %387, %373 : vector<2x16x2xf32>
      %389 = arith.addf %369, %388 : vector<2x16x2xf32>
      %c0_i32_128 = arith.constant 0 : i32
      %390 = arith.addi %21, %c0_i32_128 : i32
      %c2_129 = arith.constant 2 : index
      %391 = arith.index_cast %390 : i32 to index
      %c0_130 = arith.constant 0 : index
      %c0_131 = arith.constant 0 : index
      %392 = vector.load %arg8[%c2_129, %391, %c0_130, %c0_131] : memref<4x18x18x2xf32, #tpu.memory_space<vmem>>, vector<1x2x16x2xf32>
      %393 = vector.shape_cast %392 : vector<1x2x16x2xf32> to vector<2x16x2xf32>
      %c18 = arith.constant 18 : index
      %394 = memref.load %arg4[%c18] : memref<144xf32, #tpu.memory_space<smem>>
      %395 = vector.broadcast %394 : f32 to vector<2x16x2xf32>
      %396 = arith.mulf %395, %393 : vector<2x16x2xf32>
      %397 = arith.addf %377, %396 : vector<2x16x2xf32>
      %c54 = arith.constant 54 : index
      %398 = memref.load %arg4[%c54] : memref<144xf32, #tpu.memory_space<smem>>
      %399 = vector.broadcast %398 : f32 to vector<2x16x2xf32>
      %400 = arith.mulf %399, %393 : vector<2x16x2xf32>
      %401 = arith.addf %381, %400 : vector<2x16x2xf32>
      %c90 = arith.constant 90 : index
      %402 = memref.load %arg4[%c90] : memref<144xf32, #tpu.memory_space<smem>>
      %403 = vector.broadcast %402 : f32 to vector<2x16x2xf32>
      %404 = arith.mulf %403, %393 : vector<2x16x2xf32>
      %405 = arith.addf %385, %404 : vector<2x16x2xf32>
      %c126 = arith.constant 126 : index
      %406 = memref.load %arg4[%c126] : memref<144xf32, #tpu.memory_space<smem>>
      %407 = vector.broadcast %406 : f32 to vector<2x16x2xf32>
      %408 = arith.mulf %407, %393 : vector<2x16x2xf32>
      %409 = arith.addf %389, %408 : vector<2x16x2xf32>
      %c0_i32_132 = arith.constant 0 : i32
      %410 = arith.addi %21, %c0_i32_132 : i32
      %c2_133 = arith.constant 2 : index
      %411 = arith.index_cast %410 : i32 to index
      %c1_134 = arith.constant 1 : index
      %c0_135 = arith.constant 0 : index
      %412 = vector.load %arg8[%c2_133, %411, %c1_134, %c0_135] : memref<4x18x18x2xf32, #tpu.memory_space<vmem>>, vector<1x2x16x2xf32>
      %413 = vector.shape_cast %412 : vector<1x2x16x2xf32> to vector<2x16x2xf32>
      %c19 = arith.constant 19 : index
      %414 = memref.load %arg4[%c19] : memref<144xf32, #tpu.memory_space<smem>>
      %415 = vector.broadcast %414 : f32 to vector<2x16x2xf32>
      %416 = arith.mulf %415, %413 : vector<2x16x2xf32>
      %417 = arith.addf %397, %416 : vector<2x16x2xf32>
      %c55 = arith.constant 55 : index
      %418 = memref.load %arg4[%c55] : memref<144xf32, #tpu.memory_space<smem>>
      %419 = vector.broadcast %418 : f32 to vector<2x16x2xf32>
      %420 = arith.mulf %419, %413 : vector<2x16x2xf32>
      %421 = arith.addf %401, %420 : vector<2x16x2xf32>
      %c91 = arith.constant 91 : index
      %422 = memref.load %arg4[%c91] : memref<144xf32, #tpu.memory_space<smem>>
      %423 = vector.broadcast %422 : f32 to vector<2x16x2xf32>
      %424 = arith.mulf %423, %413 : vector<2x16x2xf32>
      %425 = arith.addf %405, %424 : vector<2x16x2xf32>
      %c127 = arith.constant 127 : index
      %426 = memref.load %arg4[%c127] : memref<144xf32, #tpu.memory_space<smem>>
      %427 = vector.broadcast %426 : f32 to vector<2x16x2xf32>
      %428 = arith.mulf %427, %413 : vector<2x16x2xf32>
      %429 = arith.addf %409, %428 : vector<2x16x2xf32>
      %c0_i32_136 = arith.constant 0 : i32
      %430 = arith.addi %21, %c0_i32_136 : i32
      %c2_137 = arith.constant 2 : index
      %431 = arith.index_cast %430 : i32 to index
      %c2_138 = arith.constant 2 : index
      %c0_139 = arith.constant 0 : index
      %432 = vector.load %arg8[%c2_137, %431, %c2_138, %c0_139] : memref<4x18x18x2xf32, #tpu.memory_space<vmem>>, vector<1x2x16x2xf32>
      %433 = vector.shape_cast %432 : vector<1x2x16x2xf32> to vector<2x16x2xf32>
      %c20 = arith.constant 20 : index
      %434 = memref.load %arg4[%c20] : memref<144xf32, #tpu.memory_space<smem>>
      %435 = vector.broadcast %434 : f32 to vector<2x16x2xf32>
      %436 = arith.mulf %435, %433 : vector<2x16x2xf32>
      %437 = arith.addf %417, %436 : vector<2x16x2xf32>
      %c56 = arith.constant 56 : index
      %438 = memref.load %arg4[%c56] : memref<144xf32, #tpu.memory_space<smem>>
      %439 = vector.broadcast %438 : f32 to vector<2x16x2xf32>
      %440 = arith.mulf %439, %433 : vector<2x16x2xf32>
      %441 = arith.addf %421, %440 : vector<2x16x2xf32>
      %c92 = arith.constant 92 : index
      %442 = memref.load %arg4[%c92] : memref<144xf32, #tpu.memory_space<smem>>
      %443 = vector.broadcast %442 : f32 to vector<2x16x2xf32>
      %444 = arith.mulf %443, %433 : vector<2x16x2xf32>
      %445 = arith.addf %425, %444 : vector<2x16x2xf32>
      %c128 = arith.constant 128 : index
      %446 = memref.load %arg4[%c128] : memref<144xf32, #tpu.memory_space<smem>>
      %447 = vector.broadcast %446 : f32 to vector<2x16x2xf32>
      %448 = arith.mulf %447, %433 : vector<2x16x2xf32>
      %449 = arith.addf %429, %448 : vector<2x16x2xf32>
      %c1_i32_140 = arith.constant 1 : i32
      %450 = arith.addi %21, %c1_i32_140 : i32
      %c2_141 = arith.constant 2 : index
      %451 = arith.index_cast %450 : i32 to index
      %c0_142 = arith.constant 0 : index
      %c0_143 = arith.constant 0 : index
      %452 = vector.load %arg8[%c2_141, %451, %c0_142, %c0_143] : memref<4x18x18x2xf32, #tpu.memory_space<vmem>>, vector<1x2x16x2xf32>
      %453 = vector.shape_cast %452 : vector<1x2x16x2xf32> to vector<2x16x2xf32>
      %c21 = arith.constant 21 : index
      %454 = memref.load %arg4[%c21] : memref<144xf32, #tpu.memory_space<smem>>
      %455 = vector.broadcast %454 : f32 to vector<2x16x2xf32>
      %456 = arith.mulf %455, %453 : vector<2x16x2xf32>
      %457 = arith.addf %437, %456 : vector<2x16x2xf32>
      %c57 = arith.constant 57 : index
      %458 = memref.load %arg4[%c57] : memref<144xf32, #tpu.memory_space<smem>>
      %459 = vector.broadcast %458 : f32 to vector<2x16x2xf32>
      %460 = arith.mulf %459, %453 : vector<2x16x2xf32>
      %461 = arith.addf %441, %460 : vector<2x16x2xf32>
      %c93 = arith.constant 93 : index
      %462 = memref.load %arg4[%c93] : memref<144xf32, #tpu.memory_space<smem>>
      %463 = vector.broadcast %462 : f32 to vector<2x16x2xf32>
      %464 = arith.mulf %463, %453 : vector<2x16x2xf32>
      %465 = arith.addf %445, %464 : vector<2x16x2xf32>
      %c129 = arith.constant 129 : index
      %466 = memref.load %arg4[%c129] : memref<144xf32, #tpu.memory_space<smem>>
      %467 = vector.broadcast %466 : f32 to vector<2x16x2xf32>
      %468 = arith.mulf %467, %453 : vector<2x16x2xf32>
      %469 = arith.addf %449, %468 : vector<2x16x2xf32>
      %c1_i32_144 = arith.constant 1 : i32
      %470 = arith.addi %21, %c1_i32_144 : i32
      %c2_145 = arith.constant 2 : index
      %471 = arith.index_cast %470 : i32 to index
      %c1_146 = arith.constant 1 : index
      %c0_147 = arith.constant 0 : index
      %472 = vector.load %arg8[%c2_145, %471, %c1_146, %c0_147] : memref<4x18x18x2xf32, #tpu.memory_space<vmem>>, vector<1x2x16x2xf32>
      %473 = vector.shape_cast %472 : vector<1x2x16x2xf32> to vector<2x16x2xf32>
      %c22 = arith.constant 22 : index
      %474 = memref.load %arg4[%c22] : memref<144xf32, #tpu.memory_space<smem>>
      %475 = vector.broadcast %474 : f32 to vector<2x16x2xf32>
      %476 = arith.mulf %475, %473 : vector<2x16x2xf32>
      %477 = arith.addf %457, %476 : vector<2x16x2xf32>
      %c58 = arith.constant 58 : index
      %478 = memref.load %arg4[%c58] : memref<144xf32, #tpu.memory_space<smem>>
      %479 = vector.broadcast %478 : f32 to vector<2x16x2xf32>
      %480 = arith.mulf %479, %473 : vector<2x16x2xf32>
      %481 = arith.addf %461, %480 : vector<2x16x2xf32>
      %c94 = arith.constant 94 : index
      %482 = memref.load %arg4[%c94] : memref<144xf32, #tpu.memory_space<smem>>
      %483 = vector.broadcast %482 : f32 to vector<2x16x2xf32>
      %484 = arith.mulf %483, %473 : vector<2x16x2xf32>
      %485 = arith.addf %465, %484 : vector<2x16x2xf32>
      %c130 = arith.constant 130 : index
      %486 = memref.load %arg4[%c130] : memref<144xf32, #tpu.memory_space<smem>>
      %487 = vector.broadcast %486 : f32 to vector<2x16x2xf32>
      %488 = arith.mulf %487, %473 : vector<2x16x2xf32>
      %489 = arith.addf %469, %488 : vector<2x16x2xf32>
      %c1_i32_148 = arith.constant 1 : i32
      %490 = arith.addi %21, %c1_i32_148 : i32
      %c2_149 = arith.constant 2 : index
      %491 = arith.index_cast %490 : i32 to index
      %c2_150 = arith.constant 2 : index
      %c0_151 = arith.constant 0 : index
      %492 = vector.load %arg8[%c2_149, %491, %c2_150, %c0_151] : memref<4x18x18x2xf32, #tpu.memory_space<vmem>>, vector<1x2x16x2xf32>
      %493 = vector.shape_cast %492 : vector<1x2x16x2xf32> to vector<2x16x2xf32>
      %c23 = arith.constant 23 : index
      %494 = memref.load %arg4[%c23] : memref<144xf32, #tpu.memory_space<smem>>
      %495 = vector.broadcast %494 : f32 to vector<2x16x2xf32>
      %496 = arith.mulf %495, %493 : vector<2x16x2xf32>
      %497 = arith.addf %477, %496 : vector<2x16x2xf32>
      %c59 = arith.constant 59 : index
      %498 = memref.load %arg4[%c59] : memref<144xf32, #tpu.memory_space<smem>>
      %499 = vector.broadcast %498 : f32 to vector<2x16x2xf32>
      %500 = arith.mulf %499, %493 : vector<2x16x2xf32>
      %501 = arith.addf %481, %500 : vector<2x16x2xf32>
      %c95 = arith.constant 95 : index
      %502 = memref.load %arg4[%c95] : memref<144xf32, #tpu.memory_space<smem>>
      %503 = vector.broadcast %502 : f32 to vector<2x16x2xf32>
      %504 = arith.mulf %503, %493 : vector<2x16x2xf32>
      %505 = arith.addf %485, %504 : vector<2x16x2xf32>
      %c131 = arith.constant 131 : index
      %506 = memref.load %arg4[%c131] : memref<144xf32, #tpu.memory_space<smem>>
      %507 = vector.broadcast %506 : f32 to vector<2x16x2xf32>
      %508 = arith.mulf %507, %493 : vector<2x16x2xf32>
      %509 = arith.addf %489, %508 : vector<2x16x2xf32>
      %c2_i32_152 = arith.constant 2 : i32
      %510 = arith.addi %21, %c2_i32_152 : i32
      %c2_153 = arith.constant 2 : index
      %511 = arith.index_cast %510 : i32 to index
      %c0_154 = arith.constant 0 : index
      %c0_155 = arith.constant 0 : index
      %512 = vector.load %arg8[%c2_153, %511, %c0_154, %c0_155] : memref<4x18x18x2xf32, #tpu.memory_space<vmem>>, vector<1x2x16x2xf32>
      %513 = vector.shape_cast %512 : vector<1x2x16x2xf32> to vector<2x16x2xf32>
      %c24 = arith.constant 24 : index
      %514 = memref.load %arg4[%c24] : memref<144xf32, #tpu.memory_space<smem>>
      %515 = vector.broadcast %514 : f32 to vector<2x16x2xf32>
      %516 = arith.mulf %515, %513 : vector<2x16x2xf32>
      %517 = arith.addf %497, %516 : vector<2x16x2xf32>
      %c60 = arith.constant 60 : index
      %518 = memref.load %arg4[%c60] : memref<144xf32, #tpu.memory_space<smem>>
      %519 = vector.broadcast %518 : f32 to vector<2x16x2xf32>
      %520 = arith.mulf %519, %513 : vector<2x16x2xf32>
      %521 = arith.addf %501, %520 : vector<2x16x2xf32>
      %c96 = arith.constant 96 : index
      %522 = memref.load %arg4[%c96] : memref<144xf32, #tpu.memory_space<smem>>
      %523 = vector.broadcast %522 : f32 to vector<2x16x2xf32>
      %524 = arith.mulf %523, %513 : vector<2x16x2xf32>
      %525 = arith.addf %505, %524 : vector<2x16x2xf32>
      %c132 = arith.constant 132 : index
      %526 = memref.load %arg4[%c132] : memref<144xf32, #tpu.memory_space<smem>>
      %527 = vector.broadcast %526 : f32 to vector<2x16x2xf32>
      %528 = arith.mulf %527, %513 : vector<2x16x2xf32>
      %529 = arith.addf %509, %528 : vector<2x16x2xf32>
      %c2_i32_156 = arith.constant 2 : i32
      %530 = arith.addi %21, %c2_i32_156 : i32
      %c2_157 = arith.constant 2 : index
      %531 = arith.index_cast %530 : i32 to index
      %c1_158 = arith.constant 1 : index
      %c0_159 = arith.constant 0 : index
      %532 = vector.load %arg8[%c2_157, %531, %c1_158, %c0_159] : memref<4x18x18x2xf32, #tpu.memory_space<vmem>>, vector<1x2x16x2xf32>
      %533 = vector.shape_cast %532 : vector<1x2x16x2xf32> to vector<2x16x2xf32>
      %c25 = arith.constant 25 : index
      %534 = memref.load %arg4[%c25] : memref<144xf32, #tpu.memory_space<smem>>
      %535 = vector.broadcast %534 : f32 to vector<2x16x2xf32>
      %536 = arith.mulf %535, %533 : vector<2x16x2xf32>
      %537 = arith.addf %517, %536 : vector<2x16x2xf32>
      %c61 = arith.constant 61 : index
      %538 = memref.load %arg4[%c61] : memref<144xf32, #tpu.memory_space<smem>>
      %539 = vector.broadcast %538 : f32 to vector<2x16x2xf32>
      %540 = arith.mulf %539, %533 : vector<2x16x2xf32>
      %541 = arith.addf %521, %540 : vector<2x16x2xf32>
      %c97 = arith.constant 97 : index
      %542 = memref.load %arg4[%c97] : memref<144xf32, #tpu.memory_space<smem>>
      %543 = vector.broadcast %542 : f32 to vector<2x16x2xf32>
      %544 = arith.mulf %543, %533 : vector<2x16x2xf32>
      %545 = arith.addf %525, %544 : vector<2x16x2xf32>
      %c133 = arith.constant 133 : index
      %546 = memref.load %arg4[%c133] : memref<144xf32, #tpu.memory_space<smem>>
      %547 = vector.broadcast %546 : f32 to vector<2x16x2xf32>
      %548 = arith.mulf %547, %533 : vector<2x16x2xf32>
      %549 = arith.addf %529, %548 : vector<2x16x2xf32>
      %c2_i32_160 = arith.constant 2 : i32
      %550 = arith.addi %21, %c2_i32_160 : i32
      %c2_161 = arith.constant 2 : index
      %551 = arith.index_cast %550 : i32 to index
      %c2_162 = arith.constant 2 : index
      %c0_163 = arith.constant 0 : index
      %552 = vector.load %arg8[%c2_161, %551, %c2_162, %c0_163] : memref<4x18x18x2xf32, #tpu.memory_space<vmem>>, vector<1x2x16x2xf32>
      %553 = vector.shape_cast %552 : vector<1x2x16x2xf32> to vector<2x16x2xf32>
      %c26 = arith.constant 26 : index
      %554 = memref.load %arg4[%c26] : memref<144xf32, #tpu.memory_space<smem>>
      %555 = vector.broadcast %554 : f32 to vector<2x16x2xf32>
      %556 = arith.mulf %555, %553 : vector<2x16x2xf32>
      %557 = arith.addf %537, %556 : vector<2x16x2xf32>
      %c62 = arith.constant 62 : index
      %558 = memref.load %arg4[%c62] : memref<144xf32, #tpu.memory_space<smem>>
      %559 = vector.broadcast %558 : f32 to vector<2x16x2xf32>
      %560 = arith.mulf %559, %553 : vector<2x16x2xf32>
      %561 = arith.addf %541, %560 : vector<2x16x2xf32>
      %c98 = arith.constant 98 : index
      %562 = memref.load %arg4[%c98] : memref<144xf32, #tpu.memory_space<smem>>
      %563 = vector.broadcast %562 : f32 to vector<2x16x2xf32>
      %564 = arith.mulf %563, %553 : vector<2x16x2xf32>
      %565 = arith.addf %545, %564 : vector<2x16x2xf32>
      %c134 = arith.constant 134 : index
      %566 = memref.load %arg4[%c134] : memref<144xf32, #tpu.memory_space<smem>>
      %567 = vector.broadcast %566 : f32 to vector<2x16x2xf32>
      %568 = arith.mulf %567, %553 : vector<2x16x2xf32>
      %569 = arith.addf %549, %568 : vector<2x16x2xf32>
      %c0_i32_164 = arith.constant 0 : i32
      %570 = arith.addi %21, %c0_i32_164 : i32
      %c3_165 = arith.constant 3 : index
      %571 = arith.index_cast %570 : i32 to index
      %c0_166 = arith.constant 0 : index
      %c0_167 = arith.constant 0 : index
      %572 = vector.load %arg8[%c3_165, %571, %c0_166, %c0_167] : memref<4x18x18x2xf32, #tpu.memory_space<vmem>>, vector<1x2x16x2xf32>
      %573 = vector.shape_cast %572 : vector<1x2x16x2xf32> to vector<2x16x2xf32>
      %c27 = arith.constant 27 : index
      %574 = memref.load %arg4[%c27] : memref<144xf32, #tpu.memory_space<smem>>
      %575 = vector.broadcast %574 : f32 to vector<2x16x2xf32>
      %576 = arith.mulf %575, %573 : vector<2x16x2xf32>
      %577 = arith.addf %557, %576 : vector<2x16x2xf32>
      %c63 = arith.constant 63 : index
      %578 = memref.load %arg4[%c63] : memref<144xf32, #tpu.memory_space<smem>>
      %579 = vector.broadcast %578 : f32 to vector<2x16x2xf32>
      %580 = arith.mulf %579, %573 : vector<2x16x2xf32>
      %581 = arith.addf %561, %580 : vector<2x16x2xf32>
      %c99 = arith.constant 99 : index
      %582 = memref.load %arg4[%c99] : memref<144xf32, #tpu.memory_space<smem>>
      %583 = vector.broadcast %582 : f32 to vector<2x16x2xf32>
      %584 = arith.mulf %583, %573 : vector<2x16x2xf32>
      %585 = arith.addf %565, %584 : vector<2x16x2xf32>
      %c135 = arith.constant 135 : index
      %586 = memref.load %arg4[%c135] : memref<144xf32, #tpu.memory_space<smem>>
      %587 = vector.broadcast %586 : f32 to vector<2x16x2xf32>
      %588 = arith.mulf %587, %573 : vector<2x16x2xf32>
      %589 = arith.addf %569, %588 : vector<2x16x2xf32>
      %c0_i32_168 = arith.constant 0 : i32
      %590 = arith.addi %21, %c0_i32_168 : i32
      %c3_169 = arith.constant 3 : index
      %591 = arith.index_cast %590 : i32 to index
      %c1_170 = arith.constant 1 : index
      %c0_171 = arith.constant 0 : index
      %592 = vector.load %arg8[%c3_169, %591, %c1_170, %c0_171] : memref<4x18x18x2xf32, #tpu.memory_space<vmem>>, vector<1x2x16x2xf32>
      %593 = vector.shape_cast %592 : vector<1x2x16x2xf32> to vector<2x16x2xf32>
      %c28 = arith.constant 28 : index
      %594 = memref.load %arg4[%c28] : memref<144xf32, #tpu.memory_space<smem>>
      %595 = vector.broadcast %594 : f32 to vector<2x16x2xf32>
      %596 = arith.mulf %595, %593 : vector<2x16x2xf32>
      %597 = arith.addf %577, %596 : vector<2x16x2xf32>
      %c64 = arith.constant 64 : index
      %598 = memref.load %arg4[%c64] : memref<144xf32, #tpu.memory_space<smem>>
      %599 = vector.broadcast %598 : f32 to vector<2x16x2xf32>
      %600 = arith.mulf %599, %593 : vector<2x16x2xf32>
      %601 = arith.addf %581, %600 : vector<2x16x2xf32>
      %c100 = arith.constant 100 : index
      %602 = memref.load %arg4[%c100] : memref<144xf32, #tpu.memory_space<smem>>
      %603 = vector.broadcast %602 : f32 to vector<2x16x2xf32>
      %604 = arith.mulf %603, %593 : vector<2x16x2xf32>
      %605 = arith.addf %585, %604 : vector<2x16x2xf32>
      %c136 = arith.constant 136 : index
      %606 = memref.load %arg4[%c136] : memref<144xf32, #tpu.memory_space<smem>>
      %607 = vector.broadcast %606 : f32 to vector<2x16x2xf32>
      %608 = arith.mulf %607, %593 : vector<2x16x2xf32>
      %609 = arith.addf %589, %608 : vector<2x16x2xf32>
      %c0_i32_172 = arith.constant 0 : i32
      %610 = arith.addi %21, %c0_i32_172 : i32
      %c3_173 = arith.constant 3 : index
      %611 = arith.index_cast %610 : i32 to index
      %c2_174 = arith.constant 2 : index
      %c0_175 = arith.constant 0 : index
      %612 = vector.load %arg8[%c3_173, %611, %c2_174, %c0_175] : memref<4x18x18x2xf32, #tpu.memory_space<vmem>>, vector<1x2x16x2xf32>
      %613 = vector.shape_cast %612 : vector<1x2x16x2xf32> to vector<2x16x2xf32>
      %c29 = arith.constant 29 : index
      %614 = memref.load %arg4[%c29] : memref<144xf32, #tpu.memory_space<smem>>
      %615 = vector.broadcast %614 : f32 to vector<2x16x2xf32>
      %616 = arith.mulf %615, %613 : vector<2x16x2xf32>
      %617 = arith.addf %597, %616 : vector<2x16x2xf32>
      %c65 = arith.constant 65 : index
      %618 = memref.load %arg4[%c65] : memref<144xf32, #tpu.memory_space<smem>>
      %619 = vector.broadcast %618 : f32 to vector<2x16x2xf32>
      %620 = arith.mulf %619, %613 : vector<2x16x2xf32>
      %621 = arith.addf %601, %620 : vector<2x16x2xf32>
      %c101 = arith.constant 101 : index
      %622 = memref.load %arg4[%c101] : memref<144xf32, #tpu.memory_space<smem>>
      %623 = vector.broadcast %622 : f32 to vector<2x16x2xf32>
      %624 = arith.mulf %623, %613 : vector<2x16x2xf32>
      %625 = arith.addf %605, %624 : vector<2x16x2xf32>
      %c137 = arith.constant 137 : index
      %626 = memref.load %arg4[%c137] : memref<144xf32, #tpu.memory_space<smem>>
      %627 = vector.broadcast %626 : f32 to vector<2x16x2xf32>
      %628 = arith.mulf %627, %613 : vector<2x16x2xf32>
      %629 = arith.addf %609, %628 : vector<2x16x2xf32>
      %c1_i32_176 = arith.constant 1 : i32
      %630 = arith.addi %21, %c1_i32_176 : i32
      %c3_177 = arith.constant 3 : index
      %631 = arith.index_cast %630 : i32 to index
      %c0_178 = arith.constant 0 : index
      %c0_179 = arith.constant 0 : index
      %632 = vector.load %arg8[%c3_177, %631, %c0_178, %c0_179] : memref<4x18x18x2xf32, #tpu.memory_space<vmem>>, vector<1x2x16x2xf32>
      %633 = vector.shape_cast %632 : vector<1x2x16x2xf32> to vector<2x16x2xf32>
      %c30 = arith.constant 30 : index
      %634 = memref.load %arg4[%c30] : memref<144xf32, #tpu.memory_space<smem>>
      %635 = vector.broadcast %634 : f32 to vector<2x16x2xf32>
      %636 = arith.mulf %635, %633 : vector<2x16x2xf32>
      %637 = arith.addf %617, %636 : vector<2x16x2xf32>
      %c66 = arith.constant 66 : index
      %638 = memref.load %arg4[%c66] : memref<144xf32, #tpu.memory_space<smem>>
      %639 = vector.broadcast %638 : f32 to vector<2x16x2xf32>
      %640 = arith.mulf %639, %633 : vector<2x16x2xf32>
      %641 = arith.addf %621, %640 : vector<2x16x2xf32>
      %c102 = arith.constant 102 : index
      %642 = memref.load %arg4[%c102] : memref<144xf32, #tpu.memory_space<smem>>
      %643 = vector.broadcast %642 : f32 to vector<2x16x2xf32>
      %644 = arith.mulf %643, %633 : vector<2x16x2xf32>
      %645 = arith.addf %625, %644 : vector<2x16x2xf32>
      %c138 = arith.constant 138 : index
      %646 = memref.load %arg4[%c138] : memref<144xf32, #tpu.memory_space<smem>>
      %647 = vector.broadcast %646 : f32 to vector<2x16x2xf32>
      %648 = arith.mulf %647, %633 : vector<2x16x2xf32>
      %649 = arith.addf %629, %648 : vector<2x16x2xf32>
      %c1_i32_180 = arith.constant 1 : i32
      %650 = arith.addi %21, %c1_i32_180 : i32
      %c3_181 = arith.constant 3 : index
      %651 = arith.index_cast %650 : i32 to index
      %c1_182 = arith.constant 1 : index
      %c0_183 = arith.constant 0 : index
      %652 = vector.load %arg8[%c3_181, %651, %c1_182, %c0_183] : memref<4x18x18x2xf32, #tpu.memory_space<vmem>>, vector<1x2x16x2xf32>
      %653 = vector.shape_cast %652 : vector<1x2x16x2xf32> to vector<2x16x2xf32>
      %c31 = arith.constant 31 : index
      %654 = memref.load %arg4[%c31] : memref<144xf32, #tpu.memory_space<smem>>
      %655 = vector.broadcast %654 : f32 to vector<2x16x2xf32>
      %656 = arith.mulf %655, %653 : vector<2x16x2xf32>
      %657 = arith.addf %637, %656 : vector<2x16x2xf32>
      %c67 = arith.constant 67 : index
      %658 = memref.load %arg4[%c67] : memref<144xf32, #tpu.memory_space<smem>>
      %659 = vector.broadcast %658 : f32 to vector<2x16x2xf32>
      %660 = arith.mulf %659, %653 : vector<2x16x2xf32>
      %661 = arith.addf %641, %660 : vector<2x16x2xf32>
      %c103 = arith.constant 103 : index
      %662 = memref.load %arg4[%c103] : memref<144xf32, #tpu.memory_space<smem>>
      %663 = vector.broadcast %662 : f32 to vector<2x16x2xf32>
      %664 = arith.mulf %663, %653 : vector<2x16x2xf32>
      %665 = arith.addf %645, %664 : vector<2x16x2xf32>
      %c139 = arith.constant 139 : index
      %666 = memref.load %arg4[%c139] : memref<144xf32, #tpu.memory_space<smem>>
      %667 = vector.broadcast %666 : f32 to vector<2x16x2xf32>
      %668 = arith.mulf %667, %653 : vector<2x16x2xf32>
      %669 = arith.addf %649, %668 : vector<2x16x2xf32>
      %c1_i32_184 = arith.constant 1 : i32
      %670 = arith.addi %21, %c1_i32_184 : i32
      %c3_185 = arith.constant 3 : index
      %671 = arith.index_cast %670 : i32 to index
      %c2_186 = arith.constant 2 : index
      %c0_187 = arith.constant 0 : index
      %672 = vector.load %arg8[%c3_185, %671, %c2_186, %c0_187] : memref<4x18x18x2xf32, #tpu.memory_space<vmem>>, vector<1x2x16x2xf32>
      %673 = vector.shape_cast %672 : vector<1x2x16x2xf32> to vector<2x16x2xf32>
      %c32 = arith.constant 32 : index
      %674 = memref.load %arg4[%c32] : memref<144xf32, #tpu.memory_space<smem>>
      %675 = vector.broadcast %674 : f32 to vector<2x16x2xf32>
      %676 = arith.mulf %675, %673 : vector<2x16x2xf32>
      %677 = arith.addf %657, %676 : vector<2x16x2xf32>
      %c68 = arith.constant 68 : index
      %678 = memref.load %arg4[%c68] : memref<144xf32, #tpu.memory_space<smem>>
      %679 = vector.broadcast %678 : f32 to vector<2x16x2xf32>
      %680 = arith.mulf %679, %673 : vector<2x16x2xf32>
      %681 = arith.addf %661, %680 : vector<2x16x2xf32>
      %c104 = arith.constant 104 : index
      %682 = memref.load %arg4[%c104] : memref<144xf32, #tpu.memory_space<smem>>
      %683 = vector.broadcast %682 : f32 to vector<2x16x2xf32>
      %684 = arith.mulf %683, %673 : vector<2x16x2xf32>
      %685 = arith.addf %665, %684 : vector<2x16x2xf32>
      %c140 = arith.constant 140 : index
      %686 = memref.load %arg4[%c140] : memref<144xf32, #tpu.memory_space<smem>>
      %687 = vector.broadcast %686 : f32 to vector<2x16x2xf32>
      %688 = arith.mulf %687, %673 : vector<2x16x2xf32>
      %689 = arith.addf %669, %688 : vector<2x16x2xf32>
      %c2_i32_188 = arith.constant 2 : i32
      %690 = arith.addi %21, %c2_i32_188 : i32
      %c3_189 = arith.constant 3 : index
      %691 = arith.index_cast %690 : i32 to index
      %c0_190 = arith.constant 0 : index
      %c0_191 = arith.constant 0 : index
      %692 = vector.load %arg8[%c3_189, %691, %c0_190, %c0_191] : memref<4x18x18x2xf32, #tpu.memory_space<vmem>>, vector<1x2x16x2xf32>
      %693 = vector.shape_cast %692 : vector<1x2x16x2xf32> to vector<2x16x2xf32>
      %c33 = arith.constant 33 : index
      %694 = memref.load %arg4[%c33] : memref<144xf32, #tpu.memory_space<smem>>
      %695 = vector.broadcast %694 : f32 to vector<2x16x2xf32>
      %696 = arith.mulf %695, %693 : vector<2x16x2xf32>
      %697 = arith.addf %677, %696 : vector<2x16x2xf32>
      %c69 = arith.constant 69 : index
      %698 = memref.load %arg4[%c69] : memref<144xf32, #tpu.memory_space<smem>>
      %699 = vector.broadcast %698 : f32 to vector<2x16x2xf32>
      %700 = arith.mulf %699, %693 : vector<2x16x2xf32>
      %701 = arith.addf %681, %700 : vector<2x16x2xf32>
      %c105 = arith.constant 105 : index
      %702 = memref.load %arg4[%c105] : memref<144xf32, #tpu.memory_space<smem>>
      %703 = vector.broadcast %702 : f32 to vector<2x16x2xf32>
      %704 = arith.mulf %703, %693 : vector<2x16x2xf32>
      %705 = arith.addf %685, %704 : vector<2x16x2xf32>
      %c141 = arith.constant 141 : index
      %706 = memref.load %arg4[%c141] : memref<144xf32, #tpu.memory_space<smem>>
      %707 = vector.broadcast %706 : f32 to vector<2x16x2xf32>
      %708 = arith.mulf %707, %693 : vector<2x16x2xf32>
      %709 = arith.addf %689, %708 : vector<2x16x2xf32>
      %c2_i32_192 = arith.constant 2 : i32
      %710 = arith.addi %21, %c2_i32_192 : i32
      %c3_193 = arith.constant 3 : index
      %711 = arith.index_cast %710 : i32 to index
      %c1_194 = arith.constant 1 : index
      %c0_195 = arith.constant 0 : index
      %712 = vector.load %arg8[%c3_193, %711, %c1_194, %c0_195] : memref<4x18x18x2xf32, #tpu.memory_space<vmem>>, vector<1x2x16x2xf32>
      %713 = vector.shape_cast %712 : vector<1x2x16x2xf32> to vector<2x16x2xf32>
      %c34 = arith.constant 34 : index
      %714 = memref.load %arg4[%c34] : memref<144xf32, #tpu.memory_space<smem>>
      %715 = vector.broadcast %714 : f32 to vector<2x16x2xf32>
      %716 = arith.mulf %715, %713 : vector<2x16x2xf32>
      %717 = arith.addf %697, %716 : vector<2x16x2xf32>
      %c70 = arith.constant 70 : index
      %718 = memref.load %arg4[%c70] : memref<144xf32, #tpu.memory_space<smem>>
      %719 = vector.broadcast %718 : f32 to vector<2x16x2xf32>
      %720 = arith.mulf %719, %713 : vector<2x16x2xf32>
      %721 = arith.addf %701, %720 : vector<2x16x2xf32>
      %c106 = arith.constant 106 : index
      %722 = memref.load %arg4[%c106] : memref<144xf32, #tpu.memory_space<smem>>
      %723 = vector.broadcast %722 : f32 to vector<2x16x2xf32>
      %724 = arith.mulf %723, %713 : vector<2x16x2xf32>
      %725 = arith.addf %705, %724 : vector<2x16x2xf32>
      %c142 = arith.constant 142 : index
      %726 = memref.load %arg4[%c142] : memref<144xf32, #tpu.memory_space<smem>>
      %727 = vector.broadcast %726 : f32 to vector<2x16x2xf32>
      %728 = arith.mulf %727, %713 : vector<2x16x2xf32>
      %729 = arith.addf %709, %728 : vector<2x16x2xf32>
      %c2_i32_196 = arith.constant 2 : i32
      %730 = arith.addi %21, %c2_i32_196 : i32
      %c3_197 = arith.constant 3 : index
      %731 = arith.index_cast %730 : i32 to index
      %c2_198 = arith.constant 2 : index
      %c0_199 = arith.constant 0 : index
      %732 = vector.load %arg8[%c3_197, %731, %c2_198, %c0_199] : memref<4x18x18x2xf32, #tpu.memory_space<vmem>>, vector<1x2x16x2xf32>
      %733 = vector.shape_cast %732 : vector<1x2x16x2xf32> to vector<2x16x2xf32>
      %c35 = arith.constant 35 : index
      %734 = memref.load %arg4[%c35] : memref<144xf32, #tpu.memory_space<smem>>
      %735 = vector.broadcast %734 : f32 to vector<2x16x2xf32>
      %736 = arith.mulf %735, %733 : vector<2x16x2xf32>
      %737 = arith.addf %717, %736 : vector<2x16x2xf32>
      %c71 = arith.constant 71 : index
      %738 = memref.load %arg4[%c71] : memref<144xf32, #tpu.memory_space<smem>>
      %739 = vector.broadcast %738 : f32 to vector<2x16x2xf32>
      %740 = arith.mulf %739, %733 : vector<2x16x2xf32>
      %741 = arith.addf %721, %740 : vector<2x16x2xf32>
      %c107 = arith.constant 107 : index
      %742 = memref.load %arg4[%c107] : memref<144xf32, #tpu.memory_space<smem>>
      %743 = vector.broadcast %742 : f32 to vector<2x16x2xf32>
      %744 = arith.mulf %743, %733 : vector<2x16x2xf32>
      %745 = arith.addf %725, %744 : vector<2x16x2xf32>
      %c143 = arith.constant 143 : index
      %746 = memref.load %arg4[%c143] : memref<144xf32, #tpu.memory_space<smem>>
      %747 = vector.broadcast %746 : f32 to vector<2x16x2xf32>
      %748 = arith.mulf %747, %733 : vector<2x16x2xf32>
      %749 = arith.addf %729, %748 : vector<2x16x2xf32>
      %cst_200 = arith.constant 0.000000e+00 : f32
      %750 = vector.broadcast %cst_200 : f32 to vector<2x16x2xf32>
      %751 = arith.maximumf %737, %750 : vector<2x16x2xf32>
      %c0_201 = arith.constant 0 : index
      %752 = arith.index_cast %21 : i32 to index
      %c0_202 = arith.constant 0 : index
      %c0_203 = arith.constant 0 : index
      %753 = vector.load %arg1[%c0_201, %752, %c0_202, %c0_203] : memref<4x16x16x2xf32, #tpu.memory_space<vmem>>, vector<1x2x16x2xf32>
      %754 = vector.shape_cast %753 : vector<1x2x16x2xf32> to vector<2x16x2xf32>
      %755 = arith.addf %751, %754 : vector<2x16x2xf32>
      %c0_204 = arith.constant 0 : index
      %756 = arith.index_cast %21 : i32 to index
      %c0_205 = arith.constant 0 : index
      %c0_206 = arith.constant 0 : index
      %757 = vector.load %arg6[%c0_204, %756, %c0_205, %c0_206] : memref<4x16x16x2xf32, #tpu.memory_space<vmem>>, vector<1x2x16x2xf32>
      %758 = vector.shape_cast %757 : vector<1x2x16x2xf32> to vector<2x16x2xf32>
      %759 = vector.shape_cast %755 : vector<2x16x2xf32> to vector<1x2x16x2xf32>
      tpu.vector_store %arg6[%c0_204, %756, %c0_205, %c0_206], %759 {strides = array<i32>} : memref<4x16x16x2xf32, #tpu.memory_space<vmem>>, vector<1x2x16x2xf32>,
      %cst_207 = arith.constant 0.000000e+00 : f32
      %760 = vector.broadcast %cst_207 : f32 to vector<2x16x2xf32>
      %761 = arith.maximumf %741, %760 : vector<2x16x2xf32>
      %c1_208 = arith.constant 1 : index
      %762 = arith.index_cast %21 : i32 to index
      %c0_209 = arith.constant 0 : index
      %c0_210 = arith.constant 0 : index
      %763 = vector.load %arg1[%c1_208, %762, %c0_209, %c0_210] : memref<4x16x16x2xf32, #tpu.memory_space<vmem>>, vector<1x2x16x2xf32>
      %764 = vector.shape_cast %763 : vector<1x2x16x2xf32> to vector<2x16x2xf32>
      %765 = arith.addf %761, %764 : vector<2x16x2xf32>
      %c1_211 = arith.constant 1 : index
      %766 = arith.index_cast %21 : i32 to index
      %c0_212 = arith.constant 0 : index
      %c0_213 = arith.constant 0 : index
      %767 = vector.load %arg6[%c1_211, %766, %c0_212, %c0_213] : memref<4x16x16x2xf32, #tpu.memory_space<vmem>>, vector<1x2x16x2xf32>
      %768 = vector.shape_cast %767 : vector<1x2x16x2xf32> to vector<2x16x2xf32>
      %769 = vector.shape_cast %765 : vector<2x16x2xf32> to vector<1x2x16x2xf32>
      tpu.vector_store %arg6[%c1_211, %766, %c0_212, %c0_213], %769 {strides = array<i32>} : memref<4x16x16x2xf32, #tpu.memory_space<vmem>>, vector<1x2x16x2xf32>,
      %cst_214 = arith.constant 0.000000e+00 : f32
      %770 = vector.broadcast %cst_214 : f32 to vector<2x16x2xf32>
      %771 = arith.maximumf %745, %770 : vector<2x16x2xf32>
      %c2_215 = arith.constant 2 : index
      %772 = arith.index_cast %21 : i32 to index
      %c0_216 = arith.constant 0 : index
      %c0_217 = arith.constant 0 : index
      %773 = vector.load %arg1[%c2_215, %772, %c0_216, %c0_217] : memref<4x16x16x2xf32, #tpu.memory_space<vmem>>, vector<1x2x16x2xf32>
      %774 = vector.shape_cast %773 : vector<1x2x16x2xf32> to vector<2x16x2xf32>
      %775 = arith.addf %771, %774 : vector<2x16x2xf32>
      %c2_218 = arith.constant 2 : index
      %776 = arith.index_cast %21 : i32 to index
      %c0_219 = arith.constant 0 : index
      %c0_220 = arith.constant 0 : index
      %777 = vector.load %arg6[%c2_218, %776, %c0_219, %c0_220] : memref<4x16x16x2xf32, #tpu.memory_space<vmem>>, vector<1x2x16x2xf32>
      %778 = vector.shape_cast %777 : vector<1x2x16x2xf32> to vector<2x16x2xf32>
      %779 = vector.shape_cast %775 : vector<2x16x2xf32> to vector<1x2x16x2xf32>
      tpu.vector_store %arg6[%c2_218, %776, %c0_219, %c0_220], %779 {strides = array<i32>} : memref<4x16x16x2xf32, #tpu.memory_space<vmem>>, vector<1x2x16x2xf32>,
      %cst_221 = arith.constant 0.000000e+00 : f32
      %780 = vector.broadcast %cst_221 : f32 to vector<2x16x2xf32>
      %781 = arith.maximumf %749, %780 : vector<2x16x2xf32>
      %c3_222 = arith.constant 3 : index
      %782 = arith.index_cast %21 : i32 to index
      %c0_223 = arith.constant 0 : index
      %c0_224 = arith.constant 0 : index
      %783 = vector.load %arg1[%c3_222, %782, %c0_223, %c0_224] : memref<4x16x16x2xf32, #tpu.memory_space<vmem>>, vector<1x2x16x2xf32>
      %784 = vector.shape_cast %783 : vector<1x2x16x2xf32> to vector<2x16x2xf32>
      %785 = arith.addf %781, %784 : vector<2x16x2xf32>
      %c3_225 = arith.constant 3 : index
      %786 = arith.index_cast %21 : i32 to index
      %c0_226 = arith.constant 0 : index
      %c0_227 = arith.constant 0 : index
      %787 = vector.load %arg6[%c3_225, %786, %c0_226, %c0_227] : memref<4x16x16x2xf32, #tpu.memory_space<vmem>>, vector<1x2x16x2xf32>
      %788 = vector.shape_cast %787 : vector<1x2x16x2xf32> to vector<2x16x2xf32>
      %789 = vector.shape_cast %785 : vector<2x16x2xf32> to vector<1x2x16x2xf32>
      tpu.vector_store %arg6[%c3_225, %786, %c0_226, %c0_227], %789 {strides = array<i32>} : memref<4x16x16x2xf32, #tpu.memory_space<vmem>>, vector<1x2x16x2xf32>,
    }
    %c8_i32_48 = arith.constant 8 : i32
    return
  }
  func.func @transform_0(%arg0: i32) -> (i32, i32, i32, i32) {
    %c0_i32 = arith.constant 0 : i32
    %c0_i32_0 = arith.constant 0 : i32
    %c0_i32_1 = arith.constant 0 : i32
    %c0_i32_2 = arith.constant 0 : i32
    return %c0_i32, %c0_i32_0, %c0_i32_1, %arg0 : i32, i32, i32, i32
  }
  func.func @transform_1(%arg0: i32) -> i32 {
    %c0_i32 = arith.constant 0 : i32
    %c0_i32_0 = arith.constant 0 : i32
    return %c0_i32 : i32
  }
  func.func @transform_2(%arg0: i32) -> i32 {
    %c0_i32 = arith.constant 0 : i32
    %c0_i32_0 = arith.constant 0 : i32
    return %c0_i32 : i32
  }
  func.func @transform_3(%arg0: i32) -> i32 {
    %c0_i32 = arith.constant 0 : i32
    %c0_i32_0 = arith.constant 0 : i32
    return %c0_i32 : i32
  }
  func.func @transform_4(%arg0: i32) -> i32 {
    %c0_i32 = arith.constant 0 : i32
    %c0_i32_0 = arith.constant 0 : i32
    return %c0_i32 : i32
  }
  func.func @transform_5(%arg0: i32) -> (i32, i32, i32, i32) {
    %c0_i32 = arith.constant 0 : i32
    %c0_i32_0 = arith.constant 0 : i32
    %c0_i32_1 = arith.constant 0 : i32
    %c0_i32_2 = arith.constant 0 : i32
    return %c0_i32, %c0_i32_0, %c0_i32_1, %arg0 : i32, i32, i32, i32
  }
}

</mosaic_0001>

<bundles_post_ra>
// kernel: tpu_custom_call.1
= control target key start
LH: loop header
LB: loop body
LE: loop exit
PB: predicated region body
PF: predicated region fallthrough
CT: control target
= control target key end

     0   :  { %10 = vsyncpa [#allocation5], 0  ;;  %s8242_s0 = inlined_call_operand.vmem [shape: f32[4,16,16,2], index: 0, kind: input, shape index: {}]   ;;  %s8243_s1 = inlined_call_operand.vmem [shape: f32[144], index: 1, kind: input, shape index: {}]   ;;  %s8244_s2 = inlined_call_operand.vmem [shape: f32[4], index: 2, kind: input, shape index: {}]   ;;  %s8245_s3 = inlined_call_operand.vmem [shape: f32[144], index: 3, kind: input, shape index: {}]   ;;  %s8246_s4 = inlined_call_operand.vmem [shape: f32[4], index: 4, kind: input, shape index: {}]   ;;  %s8247_s5 = inlined_call_operand.vmem [shape: f32[4,16,16,2], index: 5, kind: output, shape index: {}]  }
   0x1   :  { %11 = vsyncpa [#allocation7], 0  ;;  %s31_s20 = sshll.u32 %s8244_s2, 4  ;;  %s32_s20 = int_to_ptr.vmem [resolvable:$true] %s31_s20 }
   0x2   :  { %12 = vsyncpa [#allocation10], 0  ;;  %s21_s23 = sshll.u32 %s8243_s1, 4  ;;  %s4838_s24 = scalar_lea.vmem %s32_s20, 16  ;;  %s22_s23 = int_to_ptr.vmem [resolvable:$true] %s21_s23 }
   0x3   :  { %p4839_p0 = scmp.ne.s32.totalorder %s32_s20, %s4838_s24  ;;  %p4843_p1 = scmp.lt.s32.totalorder %s32_s20, %s32_s20 }
   0x4   :  { %p4844_p2 = scmp.lt.s32.totalorder %s4838_s24, %s4838_s24 }
   0x6   :  { %p4845_p3 = por %p4844_p2, %p4843_p1 }
   0x8   :  { %p4846_p4 = pnand %p4845_p3, %p4839_p0 }
   0xa   :  { %4849 = shalt.err (!%p4846_p4)
}
   0xb   :  { %s4908_s25 = smov [#allocation6]   ;;  %s4850_s26 = scalar_lea.vmem %s22_s23, 32 }
   0xc   :  { %34 = dma.vmem_to_smem %s32_s20, 16, %s4908_s25, [#allocation7]  }
   0xd   :  { %p4851_p5 = scmp.ne.s32.totalorder %s22_s23, %s4850_s26  ;;  %p4855_p6 = scmp.lt.s32.totalorder %s22_s23, %s22_s23 }
   0xe   :  { %p4856_p7 = scmp.lt.s32.totalorder %s4850_s26, %s4850_s26 }
  0x10   :  { %p4857_p8 = por %p4856_p7, %p4855_p6 }
  0x12   :  { %p4858_p9 = pnand %p4857_p8, %p4851_p5 }
  0x14   :  { %4861 = shalt.err (!%p4858_p9)
}
  0x15   :  { %s4909_s2 = smov [#allocation4]   ;;  %s41_s28 = sshll.u32 %s8245_s3, 4  ;;  %s42_s28 = int_to_ptr.vmem [resolvable:$true] %s41_s28 }
  0x16   :  { %24 = dma.vmem_to_smem %s22_s23, 32, %s4909_s2, [#allocation5]  }
  0x17   :  { %s51_s6 = sshll.u32 %s8246_s4, 4  ;;  %s4862_s7 = scalar_lea.vmem %s42_s28, 32  ;;  %s52_s6 = int_to_ptr.vmem [resolvable:$true] %s51_s6 }
  0x18   :  { %p4863_p10 = scmp.ne.s32.totalorder %s42_s28, %s4862_s7  ;;  %p4867_p11 = scmp.lt.s32.totalorder %s42_s28, %s42_s28 }
  0x19   :  { %p4868_p12 = scmp.lt.s32.totalorder %s4862_s7, %s4862_s7 }
  0x1b   :  { %p4869_p13 = por %p4868_p12, %p4867_p11 }
  0x1d   :  { %p4870_p0 = pnand %p4869_p13, %p4863_p10 }
  0x1f   :  { %4873 = shalt.err (!%p4870_p0)
}
  0x20   :  { %s4910_s8 = smov [#allocation8]   ;;  %s4874_s9 = scalar_lea.vmem %s52_s6, 16 }
  0x21   :  { %44 = dma.vmem_to_smem %s42_s28, 32, %s4910_s8, [#allocation7]  }
  0x22   :  { %p4875_p1 = scmp.ne.s32.totalorder %s52_s6, %s4874_s9  ;;  %p4879_p2 = scmp.lt.s32.totalorder %s52_s6, %s52_s6 }
  0x23   :  { %p4880_p3 = scmp.lt.s32.totalorder %s4874_s9, %s4874_s9 }
  0x25   :  { %p4881_p4 = por %p4880_p3, %p4879_p2 }
  0x27   :  { %p4882_p5 = pnand %p4881_p4, %p4875_p1 }
  0x29   :  { %4885 = shalt.err (!%p4882_p5)
}
  0x2a   :  { %s4911_s3 = smov [#allocation9]  }
  0x2b   :  { %54 = dma.vmem_to_smem %s52_s6, 16, %s4911_s3, [#allocation10]  }
  0x2c   :  { %4894 = dma.done.wait [#allocation5], 32  }
  0x2d   :  { %4895 = vsyncadd [#allocation5], 4294967264 }
  0x2e   :  { %4896 = dma.done.wait [#allocation7], 48  }
  0x2f   :  { %4897 = vsyncadd [#allocation7], 4294967248 }
  0x30   :  { %4898 = dma.done.wait [#allocation10], 16  }
  0x31   :  { %4899 = vsyncadd [#allocation10], 4294967280 }
  0x32   :  { %67 = sfence }
  0x33   :  { %vm68_vm0 = vcmask 15360   ;;  %vm71_vm1 = vcmask 9216   ;;  %vm95_vm2 = vcmask 8192   ;;  %v4958_v0 = vld [vmem:[%s8242_s0] sm:$0xff]  ;;  %v4963_v1 = vld [vmem:[%s8242_s0 + $0x8] sm:$0xff]  ;;  %v4912_v2 = vmov 0.0  }
  0x34   :  { %69 = vst.msk [vmem:[#allocation2] sm:$0xff] %vm68_vm0, %v4912_v2  ;;  %70 = vst.msk [vmem:[#allocation2 + $0x8] sm:$0xff] %vm68_vm0, %v4912_v2  ;;  %v411_v3 = vld [vmem:[%s8242_s0 + $0x10] sm:$0xff]  ;;  %v412_v4 = vld [vmem:[%s8242_s0 + $0x18] sm:$0xff]  ;;  %s6145_s6 = smov 0  }
  0x35   :  { %73 = vst.msk [vmem:[#allocation2 + $0x1b0] sm:$0xff] %vm68_vm0, %v4912_v2  ;;  %74 = vst.msk [vmem:[#allocation2 + $0x1b8] sm:$0xff] %vm68_vm0, %v4912_v2  ;;  %v413_v5 = vld [vmem:[%s8242_s0 + $0x20] sm:$0xff]  ;;  %v414_v6 = vld [vmem:[%s8242_s0 + $0x28] sm:$0xff] }
  0x36   :  { %76 = vst.msk [vmem:[#allocation2 + $0x360] sm:$0xff] %vm68_vm0, %v4912_v2  ;;  %77 = vst.msk [vmem:[#allocation2 + $0x368] sm:$0xff] %vm68_vm0, %v4912_v2  ;;  %v415_v7 = vld [vmem:[%s8242_s0 + $0x30] sm:$0xff]  ;;  %v416_v8 = vld [vmem:[%s8242_s0 + $0x38] sm:$0xff] }
  0x37   :  { %79 = vst.msk [vmem:[#allocation2 + $0x510] sm:$0xff] %vm68_vm0, %v4912_v2  ;;  %80 = vst.msk [vmem:[#allocation2 + $0x518] sm:$0xff] %vm68_vm0, %v4912_v2  ;;  %v417_v9 = vld [vmem:[%s8242_s0 + $0x40] sm:$0xff]  ;;  %v418_v10 = vld [vmem:[%s8242_s0 + $0x48] sm:$0xff] }
  0x38   :  { %83 = vst.msk [vmem:[#allocation2 + $0x198] sm:$0xff] %vm68_vm0, %v4912_v2  ;;  %84 = vst.msk [vmem:[#allocation2 + $0x1a0] sm:$0xff] %vm68_vm0, %v4912_v2  ;;  %v419_v11 = vld [vmem:[%s8242_s0 + $0x50] sm:$0xff]  ;;  %v420_v12 = vld [vmem:[%s8242_s0 + $0x58] sm:$0xff] }
  0x39   :  { %86 = vst.msk [vmem:[#allocation2 + $0x348] sm:$0xff] %vm68_vm0, %v4912_v2  ;;  %87 = vst.msk [vmem:[#allocation2 + $0x350] sm:$0xff] %vm68_vm0, %v4912_v2  ;;  %v421_v13 = vld [vmem:[%s8242_s0 + $0x60] sm:$0xff]  ;;  %v422_v14 = vld [vmem:[%s8242_s0 + $0x68] sm:$0xff] }
  0x3a   :  { %89 = vst.msk [vmem:[#allocation2 + $0x4f8] sm:$0xff] %vm68_vm0, %v4912_v2  ;;  %90 = vst.msk [vmem:[#allocation2 + $0x500] sm:$0xff] %vm68_vm0, %v4912_v2  ;;  %v423_v15 = vld [vmem:[%s8242_s0 + $0x70] sm:$0xff]  ;;  %v424_v16 = vld [vmem:[%s8242_s0 + $0x78] sm:$0xff] }
  0x3b   :  { %92 = vst.msk [vmem:[#allocation2 + $0x6a8] sm:$0xff] %vm68_vm0, %v4912_v2  ;;  %93 = vst.msk [vmem:[#allocation2 + $0x6b0] sm:$0xff] %vm68_vm0, %v4912_v2  ;;  %v425_v17 = vld [vmem:[%s8242_s0 + $0x80] sm:$0xff]  ;;  %v426_v18 = vld [vmem:[%s8242_s0 + $0x88] sm:$0xff] }
  0x3c   :  { %240 = vst.msk [vmem:[#allocation3] sm:$0xff] %vm68_vm0, %v4912_v2  ;;  %241 = vst.msk [vmem:[#allocation3 + $0x8] sm:$0xff] %vm68_vm0, %v4912_v2  ;;  %v427_v19 = vld [vmem:[%s8242_s0 + $0x90] sm:$0xff]  ;;  %v428_v20 = vld [vmem:[%s8242_s0 + $0x98] sm:$0xff] }
  0x3d   :  { %243 = vst.msk [vmem:[#allocation3 + $0x1b0] sm:$0xff] %vm68_vm0, %v4912_v2  ;;  %244 = vst.msk [vmem:[#allocation3 + $0x1b8] sm:$0xff] %vm68_vm0, %v4912_v2  ;;  %v429_v21 = vld [vmem:[%s8242_s0 + $0xa0] sm:$0xff]  ;;  %v430_v22 = vld [vmem:[%s8242_s0 + $0xa8] sm:$0xff] }
  0x3e   :  { %246 = vst.msk [vmem:[#allocation3 + $0x360] sm:$0xff] %vm68_vm0, %v4912_v2  ;;  %247 = vst.msk [vmem:[#allocation3 + $0x368] sm:$0xff] %vm68_vm0, %v4912_v2  ;;  %v431_v23 = vld [vmem:[%s8242_s0 + $0xb0] sm:$0xff]  ;;  %v432_v24 = vld [vmem:[%s8242_s0 + $0xb8] sm:$0xff] }
  0x3f   :  { %249 = vst.msk [vmem:[#allocation3 + $0x510] sm:$0xff] %vm68_vm0, %v4912_v2  ;;  %250 = vst.msk [vmem:[#allocation3 + $0x518] sm:$0xff] %vm68_vm0, %v4912_v2  ;;  %v433_v25 = vld [vmem:[%s8242_s0 + $0xc0] sm:$0xff]  ;;  %v434_v26 = vld [vmem:[%s8242_s0 + $0xc8] sm:$0xff] }
  0x40   :  { %253 = vst.msk [vmem:[#allocation3 + $0x198] sm:$0xff] %vm68_vm0, %v4912_v2  ;;  %254 = vst.msk [vmem:[#allocation3 + $0x1a0] sm:$0xff] %vm68_vm0, %v4912_v2  ;;  %v435_v27 = vld [vmem:[%s8242_s0 + $0xd0] sm:$0xff]  ;;  %v436_v28 = vld [vmem:[%s8242_s0 + $0xd8] sm:$0xff] }
  0x41   :  { %256 = vst.msk [vmem:[#allocation3 + $0x348] sm:$0xff] %vm68_vm0, %v4912_v2  ;;  %257 = vst.msk [vmem:[#allocation3 + $0x350] sm:$0xff] %vm68_vm0, %v4912_v2  ;;  %v437_v29 = vld [vmem:[%s8242_s0 + $0xe0] sm:$0xff]  ;;  %v438_v30 = vld [vmem:[%s8242_s0 + $0xe8] sm:$0xff] }
  0x42   :  { %259 = vst.msk [vmem:[#allocation3 + $0x4f8] sm:$0xff] %vm68_vm0, %v4912_v2  ;;  %260 = vst.msk [vmem:[#allocation3 + $0x500] sm:$0xff] %vm68_vm0, %v4912_v2  ;;  %v439_v31 = vld [vmem:[%s8242_s0 + $0xf0] sm:$0xff]  ;;  %v440_v32 = vld [vmem:[%s8242_s0 + $0xf8] sm:$0xff] }
  0x43   :  { %262 = vst.msk [vmem:[#allocation3 + $0x6a8] sm:$0xff] %vm68_vm0, %v4912_v2  ;;  %263 = vst.msk [vmem:[#allocation3 + $0x6b0] sm:$0xff] %vm68_vm0, %v4912_v2  ;;  %v441_v33 = vld [vmem:[%s8242_s0 + $0x100] sm:$0xff]  ;;  %v442_v34 = vld [vmem:[%s8242_s0 + $0x108] sm:$0xff] }
  0x44   :  { %72 = vst.msk [vmem:[#allocation2 + $0x10] sm:$0x3] %vm71_vm1, %v4912_v2  ;;  %75 = vst.msk [vmem:[#allocation2 + $0x1c0] sm:$0x3] %vm71_vm1, %v4912_v2  ;;  %v443_v35 = vld [vmem:[%s8242_s0 + $0x110] sm:$0xff]  ;;  %v444_v36 = vld [vmem:[%s8242_s0 + $0x118] sm:$0xff] }
  0x45   :  { %78 = vst.msk [vmem:[#allocation2 + $0x370] sm:$0x3] %vm71_vm1, %v4912_v2  ;;  %81 = vst.msk [vmem:[#allocation2 + $0x520] sm:$0x3] %vm71_vm1, %v4912_v2  ;;  %v445_v37 = vld [vmem:[%s8242_s0 + $0x120] sm:$0xff]  ;;  %v446_v38 = vld [vmem:[%s8242_s0 + $0x128] sm:$0xff] }
  0x46   :  { %85 = vst.msk [vmem:[#allocation2 + $0x1a8] sm:$0x3] %vm71_vm1, %v4912_v2  ;;  %88 = vst.msk [vmem:[#allocation2 + $0x358] sm:$0x3] %vm71_vm1, %v4912_v2  ;;  %v447_v39 = vld [vmem:[%s8242_s0 + $0x130] sm:$0xff]  ;;  %v448_v40 = vld [vmem:[%s8242_s0 + $0x138] sm:$0xff] }
  0x47   :  { %91 = vst.msk [vmem:[#allocation2 + $0x508] sm:$0x3] %vm71_vm1, %v4912_v2  ;;  %94 = vst.msk [vmem:[#allocation2 + $0x6b8] sm:$0x3] %vm71_vm1, %v4912_v2  ;;  %v449_v41 = vld [vmem:[%s8242_s0 + $0x140] sm:$0xff]  ;;  %v450_v42 = vld [vmem:[%s8242_s0 + $0x148] sm:$0xff] }
  0x48   :  { %242 = vst.msk [vmem:[#allocation3 + $0x10] sm:$0x3] %vm71_vm1, %v4912_v2  ;;  %245 = vst.msk [vmem:[#allocation3 + $0x1c0] sm:$0x3] %vm71_vm1, %v4912_v2  ;;  %v451_v43 = vld [vmem:[%s8242_s0 + $0x150] sm:$0xff]  ;;  %v452_v44 = vld [vmem:[%s8242_s0 + $0x158] sm:$0xff] }
  0x49   :  { %248 = vst.msk [vmem:[#allocation3 + $0x370] sm:$0x3] %vm71_vm1, %v4912_v2  ;;  %251 = vst.msk [vmem:[#allocation3 + $0x520] sm:$0x3] %vm71_vm1, %v4912_v2  ;;  %v453_v45 = vld [vmem:[%s8242_s0 + $0x160] sm:$0xff]  ;;  %v454_v46 = vld [vmem:[%s8242_s0 + $0x168] sm:$0xff] }
  0x4a   :  { %255 = vst.msk [vmem:[#allocation3 + $0x1a8] sm:$0x3] %vm71_vm1, %v4912_v2  ;;  %258 = vst.msk [vmem:[#allocation3 + $0x358] sm:$0x3] %vm71_vm1, %v4912_v2  ;;  %v455_v47 = vld [vmem:[%s8242_s0 + $0x170] sm:$0xff]  ;;  %v456_v48 = vld [vmem:[%s8242_s0 + $0x178] sm:$0xff] }
  0x4b   :  { %261 = vst.msk [vmem:[#allocation3 + $0x508] sm:$0x3] %vm71_vm1, %v4912_v2  ;;  %264 = vst.msk [vmem:[#allocation3 + $0x6b8] sm:$0x3] %vm71_vm1, %v4912_v2  ;;  %v457_v49 = vld [vmem:[%s8242_s0 + $0x180] sm:$0xff]  ;;  %v458_v50 = vld [vmem:[%s8242_s0 + $0x188] sm:$0xff] }
  0x4c   :  { %97 = vst.msk [vmem:[#allocation2 + $0x18] sm:$0x1] %vm95_vm2, %v4912_v2  ;;  %98 = vst.msk [vmem:[#allocation2 + $0x30] sm:$0x1] %vm95_vm2, %v4912_v2  ;;  %v459_v51 = vld [vmem:[%s8242_s0 + $0x190] sm:$0xff]  ;;  %v460_v52 = vld [vmem:[%s8242_s0 + $0x198] sm:$0xff] }
  0x4d   :  { %99 = vst.msk [vmem:[#allocation2 + $0x48] sm:$0x1] %vm95_vm2, %v4912_v2  ;;  %100 = vst.msk [vmem:[#allocation2 + $0x60] sm:$0x1] %vm95_vm2, %v4912_v2  ;;  %v461_v53 = vld [vmem:[%s8242_s0 + $0x1a0] sm:$0xff]  ;;  %v462_v54 = vld [vmem:[%s8242_s0 + $0x1a8] sm:$0xff] }
  0x4e   :  { %101 = vst.msk [vmem:[#allocation2 + $0x78] sm:$0x1] %vm95_vm2, %v4912_v2  ;;  %102 = vst.msk [vmem:[#allocation2 + $0x90] sm:$0x1] %vm95_vm2, %v4912_v2  ;;  %v463_v55 = vld [vmem:[%s8242_s0 + $0x1b0] sm:$0xff]  ;;  %v464_v56 = vld [vmem:[%s8242_s0 + $0x1b8] sm:$0xff] }
  0x4f   :  { %103 = vst.msk [vmem:[#allocation2 + $0xa8] sm:$0x1] %vm95_vm2, %v4912_v2  ;;  %104 = vst.msk [vmem:[#allocation2 + $0xc0] sm:$0x1] %vm95_vm2, %v4912_v2  ;;  %v465_v57 = vld [vmem:[%s8242_s0 + $0x1c0] sm:$0xff]  ;;  %v466_v58 = vld [vmem:[%s8242_s0 + $0x1c8] sm:$0xff] }
  0x50   :  { %105 = vst.msk [vmem:[#allocation2 + $0xd8] sm:$0x1] %vm95_vm2, %v4912_v2  ;;  %106 = vst.msk [vmem:[#allocation2 + $0xf0] sm:$0x1] %vm95_vm2, %v4912_v2  ;;  %v467_v59 = vld [vmem:[%s8242_s0 + $0x1d0] sm:$0xff]  ;;  %v468_v60 = vld [vmem:[%s8242_s0 + $0x1d8] sm:$0xff] }
  0x51   :  { %107 = vst.msk [vmem:[#allocation2 + $0x108] sm:$0x1] %vm95_vm2, %v4912_v2  ;;  %108 = vst.msk [vmem:[#allocation2 + $0x120] sm:$0x1] %vm95_vm2, %v4912_v2  ;;  %v469_v61 = vld [vmem:[%s8242_s0 + $0x1e0] sm:$0xff]  ;;  %v470_v62 = vld [vmem:[%s8242_s0 + $0x1e8] sm:$0xff] }
  0x52   :  { %109 = vst.msk [vmem:[#allocation2 + $0x138] sm:$0x1] %vm95_vm2, %v4912_v2  ;;  %110 = vst.msk [vmem:[#allocation2 + $0x150] sm:$0x1] %vm95_vm2, %v4912_v2  ;;  %v471_v63 = vld [vmem:[%s8242_s0 + $0x1f0] sm:$0xff] }
  0x53   :  { %111 = vst.msk [vmem:[#allocation2 + $0x168] sm:$0x1] %vm95_vm2, %v4912_v2  ;;  %112 = vst.msk [vmem:[#allocation2 + $0x180] sm:$0x1] %vm95_vm2, %v4912_v2 }
  0x54   :  { %115 = vst.msk [vmem:[#allocation2 + $0x1c8] sm:$0x1] %vm95_vm2, %v4912_v2  ;;  %116 = vst.msk [vmem:[#allocation2 + $0x1e0] sm:$0x1] %vm95_vm2, %v4912_v2 }
  0x55   :  { %117 = vst.msk [vmem:[#allocation2 + $0x1f8] sm:$0x1] %vm95_vm2, %v4912_v2  ;;  %118 = vst.msk [vmem:[#allocation2 + $0x210] sm:$0x1] %vm95_vm2, %v4912_v2 }
  0x56   :  { %119 = vst.msk [vmem:[#allocation2 + $0x228] sm:$0x1] %vm95_vm2, %v4912_v2  ;;  %120 = vst.msk [vmem:[#allocation2 + $0x240] sm:$0x1] %vm95_vm2, %v4912_v2 }
  0x57   :  { %121 = vst.msk [vmem:[#allocation2 + $0x258] sm:$0x1] %vm95_vm2, %v4912_v2  ;;  %122 = vst.msk [vmem:[#allocation2 + $0x270] sm:$0x1] %vm95_vm2, %v4912_v2 }
  0x58   :  { %123 = vst.msk [vmem:[#allocation2 + $0x288] sm:$0x1] %vm95_vm2, %v4912_v2  ;;  %124 = vst.msk [vmem:[#allocation2 + $0x2a0] sm:$0x1] %vm95_vm2, %v4912_v2 }
  0x59   :  { %125 = vst.msk [vmem:[#allocation2 + $0x2b8] sm:$0x1] %vm95_vm2, %v4912_v2  ;;  %126 = vst.msk [vmem:[#allocation2 + $0x2d0] sm:$0x1] %vm95_vm2, %v4912_v2 }
  0x5a   :  { %127 = vst.msk [vmem:[#allocation2 + $0x2e8] sm:$0x1] %vm95_vm2, %v4912_v2  ;;  %128 = vst.msk [vmem:[#allocation2 + $0x300] sm:$0x1] %vm95_vm2, %v4912_v2 }
  0x5b   :  { %129 = vst.msk [vmem:[#allocation2 + $0x318] sm:$0x1] %vm95_vm2, %v4912_v2  ;;  %130 = vst.msk [vmem:[#allocation2 + $0x330] sm:$0x1] %vm95_vm2, %v4912_v2 }
  0x5c   :  { %133 = vst.msk [vmem:[#allocation2 + $0x378] sm:$0x1] %vm95_vm2, %v4912_v2  ;;  %134 = vst.msk [vmem:[#allocation2 + $0x390] sm:$0x1] %vm95_vm2, %v4912_v2 }
  0x5d   :  { %135 = vst.msk [vmem:[#allocation2 + $0x3a8] sm:$0x1] %vm95_vm2, %v4912_v2  ;;  %136 = vst.msk [vmem:[#allocation2 + $0x3c0] sm:$0x1] %vm95_vm2, %v4912_v2 }
  0x5e   :  { %137 = vst.msk [vmem:[#allocation2 + $0x3d8] sm:$0x1] %vm95_vm2, %v4912_v2  ;;  %138 = vst.msk [vmem:[#allocation2 + $0x3f0] sm:$0x1] %vm95_vm2, %v4912_v2 }
  0x5f   :  { %139 = vst.msk [vmem:[#allocation2 + $0x408] sm:$0x1] %vm95_vm2, %v4912_v2  ;;  %140 = vst.msk [vmem:[#allocation2 + $0x420] sm:$0x1] %vm95_vm2, %v4912_v2 }
  0x60   :  { %141 = vst.msk [vmem:[#allocation2 + $0x438] sm:$0x1] %vm95_vm2, %v4912_v2  ;;  %142 = vst.msk [vmem:[#allocation2 + $0x450] sm:$0x1] %vm95_vm2, %v4912_v2 }
  0x61   :  { %143 = vst.msk [vmem:[#allocation2 + $0x468] sm:$0x1] %vm95_vm2, %v4912_v2  ;;  %144 = vst.msk [vmem:[#allocation2 + $0x480] sm:$0x1] %vm95_vm2, %v4912_v2 }
  0x62   :  { %145 = vst.msk [vmem:[#allocation2 + $0x498] sm:$0x1] %vm95_vm2, %v4912_v2  ;;  %146 = vst.msk [vmem:[#allocation2 + $0x4b0] sm:$0x1] %vm95_vm2, %v4912_v2 }
  0x63   :  { %147 = vst.msk [vmem:[#allocation2 + $0x4c8] sm:$0x1] %vm95_vm2, %v4912_v2  ;;  %148 = vst.msk [vmem:[#allocation2 + $0x4e0] sm:$0x1] %vm95_vm2, %v4912_v2 }
  0x64   :  { %151 = vst.msk [vmem:[#allocation2 + $0x528] sm:$0x1] %vm95_vm2, %v4912_v2  ;;  %152 = vst.msk [vmem:[#allocation2 + $0x540] sm:$0x1] %vm95_vm2, %v4912_v2 }
  0x65   :  { %153 = vst.msk [vmem:[#allocation2 + $0x558] sm:$0x1] %vm95_vm2, %v4912_v2  ;;  %154 = vst.msk [vmem:[#allocation2 + $0x570] sm:$0x1] %vm95_vm2, %v4912_v2 }
  0x66   :  { %155 = vst.msk [vmem:[#allocation2 + $0x588] sm:$0x1] %vm95_vm2, %v4912_v2  ;;  %156 = vst.msk [vmem:[#allocation2 + $0x5a0] sm:$0x1] %vm95_vm2, %v4912_v2 }
  0x67   :  { %157 = vst.msk [vmem:[#allocation2 + $0x5b8] sm:$0x1] %vm95_vm2, %v4912_v2  ;;  %158 = vst.msk [vmem:[#allocation2 + $0x5d0] sm:$0x1] %vm95_vm2, %v4912_v2 }
  0x68   :  { %159 = vst.msk [vmem:[#allocation2 + $0x5e8] sm:$0x1] %vm95_vm2, %v4912_v2  ;;  %160 = vst.msk [vmem:[#allocation2 + $0x600] sm:$0x1] %vm95_vm2, %v4912_v2 }
  0x69   :  { %161 = vst.msk [vmem:[#allocation2 + $0x618] sm:$0x1] %vm95_vm2, %v4912_v2  ;;  %162 = vst.msk [vmem:[#allocation2 + $0x630] sm:$0x1] %vm95_vm2, %v4912_v2 }
  0x6a   :  { %163 = vst.msk [vmem:[#allocation2 + $0x648] sm:$0x1] %vm95_vm2, %v4912_v2  ;;  %164 = vst.msk [vmem:[#allocation2 + $0x660] sm:$0x1] %vm95_vm2, %v4912_v2 }
  0x6b   :  { %165 = vst.msk [vmem:[#allocation2 + $0x678] sm:$0x1] %vm95_vm2, %v4912_v2  ;;  %166 = vst.msk [vmem:[#allocation2 + $0x690] sm:$0x1] %vm95_vm2, %v4912_v2 }
  0x6c   :  { %169 = vst.msk [vmem:[#allocation2 + $0x29] sm:$0x1] %vm95_vm2, %v4912_v2  ;;  %170 = vst.msk [vmem:[#allocation2 + $0x41] sm:$0x1] %vm95_vm2, %v4912_v2 }
  0x6d   :  { %171 = vst.msk [vmem:[#allocation2 + $0x59] sm:$0x1] %vm95_vm2, %v4912_v2  ;;  %172 = vst.msk [vmem:[#allocation2 + $0x71] sm:$0x1] %vm95_vm2, %v4912_v2 }
  0x6e   :  { %173 = vst.msk [vmem:[#allocation2 + $0x89] sm:$0x1] %vm95_vm2, %v4912_v2  ;;  %174 = vst.msk [vmem:[#allocation2 + $0xa1] sm:$0x1] %vm95_vm2, %v4912_v2 }
  0x6f   :  { %175 = vst.msk [vmem:[#allocation2 + $0xb9] sm:$0x1] %vm95_vm2, %v4912_v2  ;;  %176 = vst.msk [vmem:[#allocation2 + $0xd1] sm:$0x1] %vm95_vm2, %v4912_v2 }
  0x70   :  { %177 = vst.msk [vmem:[#allocation2 + $0xe9] sm:$0x1] %vm95_vm2, %v4912_v2  ;;  %178 = vst.msk [vmem:[#allocation2 + $0x101] sm:$0x1] %vm95_vm2, %v4912_v2 }
  0x71   :  { %179 = vst.msk [vmem:[#allocation2 + $0x119] sm:$0x1] %vm95_vm2, %v4912_v2  ;;  %180 = vst.msk [vmem:[#allocation2 + $0x131] sm:$0x1] %vm95_vm2, %v4912_v2 }
  0x72   :  { %181 = vst.msk [vmem:[#allocation2 + $0x149] sm:$0x1] %vm95_vm2, %v4912_v2  ;;  %182 = vst.msk [vmem:[#allocation2 + $0x161] sm:$0x1] %vm95_vm2, %v4912_v2 }
  0x73   :  { %183 = vst.msk [vmem:[#allocation2 + $0x179] sm:$0x1] %vm95_vm2, %v4912_v2  ;;  %184 = vst.msk [vmem:[#allocation2 + $0x191] sm:$0x1] %vm95_vm2, %v4912_v2 }
  0x74   :  { %187 = vst.msk [vmem:[#allocation2 + $0x1d9] sm:$0x1] %vm95_vm2, %v4912_v2  ;;  %188 = vst.msk [vmem:[#allocation2 + $0x1f1] sm:$0x1] %vm95_vm2, %v4912_v2 }
  0x75   :  { %189 = vst.msk [vmem:[#allocation2 + $0x209] sm:$0x1] %vm95_vm2, %v4912_v2  ;;  %190 = vst.msk [vmem:[#allocation2 + $0x221] sm:$0x1] %vm95_vm2, %v4912_v2 }
  0x76   :  { %191 = vst.msk [vmem:[#allocation2 + $0x239] sm:$0x1] %vm95_vm2, %v4912_v2  ;;  %192 = vst.msk [vmem:[#allocation2 + $0x251] sm:$0x1] %vm95_vm2, %v4912_v2 }
  0x77   :  { %193 = vst.msk [vmem:[#allocation2 + $0x269] sm:$0x1] %vm95_vm2, %v4912_v2  ;;  %194 = vst.msk [vmem:[#allocation2 + $0x281] sm:$0x1] %vm95_vm2, %v4912_v2 }
  0x78   :  { %195 = vst.msk [vmem:[#allocation2 + $0x299] sm:$0x1] %vm95_vm2, %v4912_v2  ;;  %196 = vst.msk [vmem:[#allocation2 + $0x2b1] sm:$0x1] %vm95_vm2, %v4912_v2 }
  0x79   :  { %197 = vst.msk [vmem:[#allocation2 + $0x2c9] sm:$0x1] %vm95_vm2, %v4912_v2  ;;  %198 = vst.msk [vmem:[#allocation2 + $0x2e1] sm:$0x1] %vm95_vm2, %v4912_v2 }
  0x7a   :  { %199 = vst.msk [vmem:[#allocation2 + $0x2f9] sm:$0x1] %vm95_vm2, %v4912_v2  ;;  %200 = vst.msk [vmem:[#allocation2 + $0x311] sm:$0x1] %vm95_vm2, %v4912_v2 }
  0x7b   :  { %201 = vst.msk [vmem:[#allocation2 + $0x329] sm:$0x1] %vm95_vm2, %v4912_v2  ;;  %202 = vst.msk [vmem:[#allocation2 + $0x341] sm:$0x1] %vm95_vm2, %v4912_v2 }
  0x7c   :  { %205 = vst.msk [vmem:[#allocation2 + $0x389] sm:$0x1] %vm95_vm2, %v4912_v2  ;;  %206 = vst.msk [vmem:[#allocation2 + $0x3a1] sm:$0x1] %vm95_vm2, %v4912_v2 }
  0x7d   :  { %207 = vst.msk [vmem:[#allocation2 + $0x3b9] sm:$0x1] %vm95_vm2, %v4912_v2  ;;  %208 = vst.msk [vmem:[#allocation2 + $0x3d1] sm:$0x1] %vm95_vm2, %v4912_v2 }
  0x7e   :  { %209 = vst.msk [vmem:[#allocation2 + $0x3e9] sm:$0x1] %vm95_vm2, %v4912_v2  ;;  %210 = vst.msk [vmem:[#allocation2 + $0x401] sm:$0x1] %vm95_vm2, %v4912_v2 }
  0x7f   :  { %211 = vst.msk [vmem:[#allocation2 + $0x419] sm:$0x1] %vm95_vm2, %v4912_v2  ;;  %212 = vst.msk [vmem:[#allocation2 + $0x431] sm:$0x1] %vm95_vm2, %v4912_v2 }
  0x80   :  { %213 = vst.msk [vmem:[#allocation2 + $0x449] sm:$0x1] %vm95_vm2, %v4912_v2  ;;  %214 = vst.msk [vmem:[#allocation2 + $0x461] sm:$0x1] %vm95_vm2, %v4912_v2 }
  0x81   :  { %215 = vst.msk [vmem:[#allocation2 + $0x479] sm:$0x1] %vm95_vm2, %v4912_v2  ;;  %216 = vst.msk [vmem:[#allocation2 + $0x491] sm:$0x1] %vm95_vm2, %v4912_v2 }
  0x82   :  { %217 = vst.msk [vmem:[#allocation2 + $0x4a9] sm:$0x1] %vm95_vm2, %v4912_v2  ;;  %218 = vst.msk [vmem:[#allocation2 + $0x4c1] sm:$0x1] %vm95_vm2, %v4912_v2 }
  0x83   :  { %219 = vst.msk [vmem:[#allocation2 + $0x4d9] sm:$0x1] %vm95_vm2, %v4912_v2  ;;  %220 = vst.msk [vmem:[#allocation2 + $0x4f1] sm:$0x1] %vm95_vm2, %v4912_v2 }
  0x84   :  { %223 = vst.msk [vmem:[#allocation2 + $0x539] sm:$0x1] %vm95_vm2, %v4912_v2  ;;  %224 = vst.msk [vmem:[#allocation2 + $0x551] sm:$0x1] %vm95_vm2, %v4912_v2 }
  0x85   :  { %225 = vst.msk [vmem:[#allocation2 + $0x569] sm:$0x1] %vm95_vm2, %v4912_v2  ;;  %226 = vst.msk [vmem:[#allocation2 + $0x581] sm:$0x1] %vm95_vm2, %v4912_v2 }
  0x86   :  { %227 = vst.msk [vmem:[#allocation2 + $0x599] sm:$0x1] %vm95_vm2, %v4912_v2  ;;  %228 = vst.msk [vmem:[#allocation2 + $0x5b1] sm:$0x1] %vm95_vm2, %v4912_v2 }
  0x87   :  { %229 = vst.msk [vmem:[#allocation2 + $0x5c9] sm:$0x1] %vm95_vm2, %v4912_v2  ;;  %230 = vst.msk [vmem:[#allocation2 + $0x5e1] sm:$0x1] %vm95_vm2, %v4912_v2 }
  0x88   :  { %231 = vst.msk [vmem:[#allocation2 + $0x5f9] sm:$0x1] %vm95_vm2, %v4912_v2  ;;  %232 = vst.msk [vmem:[#allocation2 + $0x611] sm:$0x1] %vm95_vm2, %v4912_v2 }
  0x89   :  { %233 = vst.msk [vmem:[#allocation2 + $0x629] sm:$0x1] %vm95_vm2, %v4912_v2  ;;  %234 = vst.msk [vmem:[#allocation2 + $0x641] sm:$0x1] %vm95_vm2, %v4912_v2 }
  0x8a   :  { %235 = vst.msk [vmem:[#allocation2 + $0x659] sm:$0x1] %vm95_vm2, %v4912_v2  ;;  %236 = vst.msk [vmem:[#allocation2 + $0x671] sm:$0x1] %vm95_vm2, %v4912_v2 }
  0x8b   :  { %237 = vst.msk [vmem:[#allocation2 + $0x689] sm:$0x1] %vm95_vm2, %v4912_v2  ;;  %238 = vst.msk [vmem:[#allocation2 + $0x6a1] sm:$0x1] %vm95_vm2, %v4912_v2 }
  0x8c   :  { %266 = vst.msk [vmem:[#allocation3 + $0x18] sm:$0x1] %vm95_vm2, %v4912_v2  ;;  %267 = vst.msk [vmem:[#allocation3 + $0x30] sm:$0x1] %vm95_vm2, %v4912_v2 }
  0x8d   :  { %268 = vst.msk [vmem:[#allocation3 + $0x48] sm:$0x1] %vm95_vm2, %v4912_v2  ;;  %269 = vst.msk [vmem:[#allocation3 + $0x60] sm:$0x1] %vm95_vm2, %v4912_v2 }
  0x8e   :  { %270 = vst.msk [vmem:[#allocation3 + $0x78] sm:$0x1] %vm95_vm2, %v4912_v2  ;;  %271 = vst.msk [vmem:[#allocation3 + $0x90] sm:$0x1] %vm95_vm2, %v4912_v2 }
  0x8f   :  { %272 = vst.msk [vmem:[#allocation3 + $0xa8] sm:$0x1] %vm95_vm2, %v4912_v2  ;;  %273 = vst.msk [vmem:[#allocation3 + $0xc0] sm:$0x1] %vm95_vm2, %v4912_v2 }
  0x90   :  { %274 = vst.msk [vmem:[#allocation3 + $0xd8] sm:$0x1] %vm95_vm2, %v4912_v2  ;;  %275 = vst.msk [vmem:[#allocation3 + $0xf0] sm:$0x1] %vm95_vm2, %v4912_v2 }
  0x91   :  { %276 = vst.msk [vmem:[#allocation3 + $0x108] sm:$0x1] %vm95_vm2, %v4912_v2  ;;  %277 = vst.msk [vmem:[#allocation3 + $0x120] sm:$0x1] %vm95_vm2, %v4912_v2 }
  0x92   :  { %278 = vst.msk [vmem:[#allocation3 + $0x138] sm:$0x1] %vm95_vm2, %v4912_v2  ;;  %279 = vst.msk [vmem:[#allocation3 + $0x150] sm:$0x1] %vm95_vm2, %v4912_v2 }
  0x93   :  { %280 = vst.msk [vmem:[#allocation3 + $0x168] sm:$0x1] %vm95_vm2, %v4912_v2  ;;  %281 = vst.msk [vmem:[#allocation3 + $0x180] sm:$0x1] %vm95_vm2, %v4912_v2 }
  0x94   :  { %284 = vst.msk [vmem:[#allocation3 + $0x1c8] sm:$0x1] %vm95_vm2, %v4912_v2  ;;  %285 = vst.msk [vmem:[#allocation3 + $0x1e0] sm:$0x1] %vm95_vm2, %v4912_v2 }
  0x95   :  { %286 = vst.msk [vmem:[#allocation3 + $0x1f8] sm:$0x1] %vm95_vm2, %v4912_v2  ;;  %287 = vst.msk [vmem:[#allocation3 + $0x210] sm:$0x1] %vm95_vm2, %v4912_v2 }
  0x96   :  { %288 = vst.msk [vmem:[#allocation3 + $0x228] sm:$0x1] %vm95_vm2, %v4912_v2  ;;  %289 = vst.msk [vmem:[#allocation3 + $0x240] sm:$0x1] %vm95_vm2, %v4912_v2 }
  0x97   :  { %290 = vst.msk [vmem:[#allocation3 + $0x258] sm:$0x1] %vm95_vm2, %v4912_v2  ;;  %291 = vst.msk [vmem:[#allocation3 + $0x270] sm:$0x1] %vm95_vm2, %v4912_v2 }
  0x98   :  { %292 = vst.msk [vmem:[#allocation3 + $0x288] sm:$0x1] %vm95_vm2, %v4912_v2  ;;  %293 = vst.msk [vmem:[#allocation3 + $0x2a0] sm:$0x1] %vm95_vm2, %v4912_v2 }
  0x99   :  { %294 = vst.msk [vmem:[#allocation3 + $0x2b8] sm:$0x1] %vm95_vm2, %v4912_v2  ;;  %295 = vst.msk [vmem:[#allocation3 + $0x2d0] sm:$0x1] %vm95_vm2, %v4912_v2 }
  0x9a   :  { %296 = vst.msk [vmem:[#allocation3 + $0x2e8] sm:$0x1] %vm95_vm2, %v4912_v2  ;;  %297 = vst.msk [vmem:[#allocation3 + $0x300] sm:$0x1] %vm95_vm2, %v4912_v2 }
  0x9b   :  { %298 = vst.msk [vmem:[#allocation3 + $0x318] sm:$0x1] %vm95_vm2, %v4912_v2  ;;  %299 = vst.msk [vmem:[#allocation3 + $0x330] sm:$0x1] %vm95_vm2, %v4912_v2 }
  0x9c   :  { %302 = vst.msk [vmem:[#allocation3 + $0x378] sm:$0x1] %vm95_vm2, %v4912_v2  ;;  %303 = vst.msk [vmem:[#allocation3 + $0x390] sm:$0x1] %vm95_vm2, %v4912_v2 }
  0x9d   :  { %304 = vst.msk [vmem:[#allocation3 + $0x3a8] sm:$0x1] %vm95_vm2, %v4912_v2  ;;  %305 = vst.msk [vmem:[#allocation3 + $0x3c0] sm:$0x1] %vm95_vm2, %v4912_v2 }
  0x9e   :  { %306 = vst.msk [vmem:[#allocation3 + $0x3d8] sm:$0x1] %vm95_vm2, %v4912_v2  ;;  %307 = vst.msk [vmem:[#allocation3 + $0x3f0] sm:$0x1] %vm95_vm2, %v4912_v2 }
  0x9f   :  { %308 = vst.msk [vmem:[#allocation3 + $0x408] sm:$0x1] %vm95_vm2, %v4912_v2  ;;  %309 = vst.msk [vmem:[#allocation3 + $0x420] sm:$0x1] %vm95_vm2, %v4912_v2 }
  0xa0   :  { %310 = vst.msk [vmem:[#allocation3 + $0x438] sm:$0x1] %vm95_vm2, %v4912_v2  ;;  %311 = vst.msk [vmem:[#allocation3 + $0x450] sm:$0x1] %vm95_vm2, %v4912_v2 }
  0xa1   :  { %312 = vst.msk [vmem:[#allocation3 + $0x468] sm:$0x1] %vm95_vm2, %v4912_v2  ;;  %313 = vst.msk [vmem:[#allocation3 + $0x480] sm:$0x1] %vm95_vm2, %v4912_v2 }
  0xa2   :  { %314 = vst.msk [vmem:[#allocation3 + $0x498] sm:$0x1] %vm95_vm2, %v4912_v2  ;;  %315 = vst.msk [vmem:[#allocation3 + $0x4b0] sm:$0x1] %vm95_vm2, %v4912_v2 }
  0xa3   :  { %316 = vst.msk [vmem:[#allocation3 + $0x4c8] sm:$0x1] %vm95_vm2, %v4912_v2  ;;  %317 = vst.msk [vmem:[#allocation3 + $0x4e0] sm:$0x1] %vm95_vm2, %v4912_v2 }
  0xa4   :  { %320 = vst.msk [vmem:[#allocation3 + $0x528] sm:$0x1] %vm95_vm2, %v4912_v2  ;;  %321 = vst.msk [vmem:[#allocation3 + $0x540] sm:$0x1] %vm95_vm2, %v4912_v2 }
  0xa5   :  { %322 = vst.msk [vmem:[#allocation3 + $0x558] sm:$0x1] %vm95_vm2, %v4912_v2  ;;  %323 = vst.msk [vmem:[#allocation3 + $0x570] sm:$0x1] %vm95_vm2, %v4912_v2 }
  0xa6   :  { %324 = vst.msk [vmem:[#allocation3 + $0x588] sm:$0x1] %vm95_vm2, %v4912_v2  ;;  %325 = vst.msk [vmem:[#allocation3 + $0x5a0] sm:$0x1] %vm95_vm2, %v4912_v2 }
  0xa7   :  { %326 = vst.msk [vmem:[#allocation3 + $0x5b8] sm:$0x1] %vm95_vm2, %v4912_v2  ;;  %327 = vst.msk [vmem:[#allocation3 + $0x5d0] sm:$0x1] %vm95_vm2, %v4912_v2 }
  0xa8   :  { %328 = vst.msk [vmem:[#allocation3 + $0x5e8] sm:$0x1] %vm95_vm2, %v4912_v2  ;;  %329 = vst.msk [vmem:[#allocation3 + $0x600] sm:$0x1] %vm95_vm2, %v4912_v2 }
  0xa9   :  { %330 = vst.msk [vmem:[#allocation3 + $0x618] sm:$0x1] %vm95_vm2, %v4912_v2  ;;  %331 = vst.msk [vmem:[#allocation3 + $0x630] sm:$0x1] %vm95_vm2, %v4912_v2 }
  0xaa   :  { %332 = vst.msk [vmem:[#allocation3 + $0x648] sm:$0x1] %vm95_vm2, %v4912_v2  ;;  %333 = vst.msk [vmem:[#allocation3 + $0x660] sm:$0x1] %vm95_vm2, %v4912_v2 }
  0xab   :  { %334 = vst.msk [vmem:[#allocation3 + $0x678] sm:$0x1] %vm95_vm2, %v4912_v2  ;;  %335 = vst.msk [vmem:[#allocation3 + $0x690] sm:$0x1] %vm95_vm2, %v4912_v2 }
  0xac   :  { %338 = vst.msk [vmem:[#allocation3 + $0x29] sm:$0x1] %vm95_vm2, %v4912_v2  ;;  %339 = vst.msk [vmem:[#allocation3 + $0x41] sm:$0x1] %vm95_vm2, %v4912_v2 }
  0xad   :  { %340 = vst.msk [vmem:[#allocation3 + $0x59] sm:$0x1] %vm95_vm2, %v4912_v2  ;;  %341 = vst.msk [vmem:[#allocation3 + $0x71] sm:$0x1] %vm95_vm2, %v4912_v2 }
  0xae   :  { %342 = vst.msk [vmem:[#allocation3 + $0x89] sm:$0x1] %vm95_vm2, %v4912_v2  ;;  %343 = vst.msk [vmem:[#allocation3 + $0xa1] sm:$0x1] %vm95_vm2, %v4912_v2 }
  0xaf   :  { %344 = vst.msk [vmem:[#allocation3 + $0xb9] sm:$0x1] %vm95_vm2, %v4912_v2  ;;  %345 = vst.msk [vmem:[#allocation3 + $0xd1] sm:$0x1] %vm95_vm2, %v4912_v2 }
  0xb0   :  { %346 = vst.msk [vmem:[#allocation3 + $0xe9] sm:$0x1] %vm95_vm2, %v4912_v2  ;;  %347 = vst.msk [vmem:[#allocation3 + $0x101] sm:$0x1] %vm95_vm2, %v4912_v2 }
  0xb1   :  { %348 = vst.msk [vmem:[#allocation3 + $0x119] sm:$0x1] %vm95_vm2, %v4912_v2  ;;  %349 = vst.msk [vmem:[#allocation3 + $0x131] sm:$0x1] %vm95_vm2, %v4912_v2 }
  0xb2   :  { %350 = vst.msk [vmem:[#allocation3 + $0x149] sm:$0x1] %vm95_vm2, %v4912_v2  ;;  %351 = vst.msk [vmem:[#allocation3 + $0x161] sm:$0x1] %vm95_vm2, %v4912_v2 }
  0xb3   :  { %352 = vst.msk [vmem:[#allocation3 + $0x179] sm:$0x1] %vm95_vm2, %v4912_v2  ;;  %353 = vst.msk [vmem:[#allocation3 + $0x191] sm:$0x1] %vm95_vm2, %v4912_v2 }
  0xb4   :  { %356 = vst.msk [vmem:[#allocation3 + $0x1d9] sm:$0x1] %vm95_vm2, %v4912_v2  ;;  %357 = vst.msk [vmem:[#allocation3 + $0x1f1] sm:$0x1] %vm95_vm2, %v4912_v2 }
  0xb5   :  { %358 = vst.msk [vmem:[#allocation3 + $0x209] sm:$0x1] %vm95_vm2, %v4912_v2  ;;  %359 = vst.msk [vmem:[#allocation3 + $0x221] sm:$0x1] %vm95_vm2, %v4912_v2 }
  0xb6   :  { %360 = vst.msk [vmem:[#allocation3 + $0x239] sm:$0x1] %vm95_vm2, %v4912_v2  ;;  %361 = vst.msk [vmem:[#allocation3 + $0x251] sm:$0x1] %vm95_vm2, %v4912_v2 }
  0xb7   :  { %362 = vst.msk [vmem:[#allocation3 + $0x269] sm:$0x1] %vm95_vm2, %v4912_v2  ;;  %363 = vst.msk [vmem:[#allocation3 + $0x281] sm:$0x1] %vm95_vm2, %v4912_v2 }
  0xb8   :  { %364 = vst.msk [vmem:[#allocation3 + $0x299] sm:$0x1] %vm95_vm2, %v4912_v2  ;;  %365 = vst.msk [vmem:[#allocation3 + $0x2b1] sm:$0x1] %vm95_vm2, %v4912_v2 }
  0xb9   :  { %366 = vst.msk [vmem:[#allocation3 + $0x2c9] sm:$0x1] %vm95_vm2, %v4912_v2  ;;  %367 = vst.msk [vmem:[#allocation3 + $0x2e1] sm:$0x1] %vm95_vm2, %v4912_v2 }
  0xba   :  { %368 = vst.msk [vmem:[#allocation3 + $0x2f9] sm:$0x1] %vm95_vm2, %v4912_v2  ;;  %369 = vst.msk [vmem:[#allocation3 + $0x311] sm:$0x1] %vm95_vm2, %v4912_v2 }
  0xbb   :  { %370 = vst.msk [vmem:[#allocation3 + $0x329] sm:$0x1] %vm95_vm2, %v4912_v2  ;;  %371 = vst.msk [vmem:[#allocation3 + $0x341] sm:$0x1] %vm95_vm2, %v4912_v2 }
  0xbc   :  { %374 = vst.msk [vmem:[#allocation3 + $0x389] sm:$0x1] %vm95_vm2, %v4912_v2  ;;  %375 = vst.msk [vmem:[#allocation3 + $0x3a1] sm:$0x1] %vm95_vm2, %v4912_v2 }
  0xbd   :  { %376 = vst.msk [vmem:[#allocation3 + $0x3b9] sm:$0x1] %vm95_vm2, %v4912_v2  ;;  %377 = vst.msk [vmem:[#allocation3 + $0x3d1] sm:$0x1] %vm95_vm2, %v4912_v2 }
  0xbe   :  { %378 = vst.msk [vmem:[#allocation3 + $0x3e9] sm:$0x1] %vm95_vm2, %v4912_v2  ;;  %379 = vst.msk [vmem:[#allocation3 + $0x401] sm:$0x1] %vm95_vm2, %v4912_v2 }
  0xbf   :  { %380 = vst.msk [vmem:[#allocation3 + $0x419] sm:$0x1] %vm95_vm2, %v4912_v2  ;;  %381 = vst.msk [vmem:[#allocation3 + $0x431] sm:$0x1] %vm95_vm2, %v4912_v2 }
  0xc0   :  { %382 = vst.msk [vmem:[#allocation3 + $0x449] sm:$0x1] %vm95_vm2, %v4912_v2  ;;  %383 = vst.msk [vmem:[#allocation3 + $0x461] sm:$0x1] %vm95_vm2, %v4912_v2 }
  0xc1   :  { %384 = vst.msk [vmem:[#allocation3 + $0x479] sm:$0x1] %vm95_vm2, %v4912_v2  ;;  %385 = vst.msk [vmem:[#allocation3 + $0x491] sm:$0x1] %vm95_vm2, %v4912_v2 }
  0xc2   :  { %386 = vst.msk [vmem:[#allocation3 + $0x4a9] sm:$0x1] %vm95_vm2, %v4912_v2  ;;  %387 = vst.msk [vmem:[#allocation3 + $0x4c1] sm:$0x1] %vm95_vm2, %v4912_v2 }
  0xc3   :  { %388 = vst.msk [vmem:[#allocation3 + $0x4d9] sm:$0x1] %vm95_vm2, %v4912_v2  ;;  %389 = vst.msk [vmem:[#allocation3 + $0x4f1] sm:$0x1] %vm95_vm2, %v4912_v2 }
  0xc4   :  { %392 = vst.msk [vmem:[#allocation3 + $0x539] sm:$0x1] %vm95_vm2, %v4912_v2  ;;  %393 = vst.msk [vmem:[#allocation3 + $0x551] sm:$0x1] %vm95_vm2, %v4912_v2 }
  0xc5   :  { %394 = vst.msk [vmem:[#allocation3 + $0x569] sm:$0x1] %vm95_vm2, %v4912_v2  ;;  %395 = vst.msk [vmem:[#allocation3 + $0x581] sm:$0x1] %vm95_vm2, %v4912_v2 }
  0xc6   :  { %396 = vst.msk [vmem:[#allocation3 + $0x599] sm:$0x1] %vm95_vm2, %v4912_v2  ;;  %397 = vst.msk [vmem:[#allocation3 + $0x5b1] sm:$0x1] %vm95_vm2, %v4912_v2 }
  0xc7   :  { %398 = vst.msk [vmem:[#allocation3 + $0x5c9] sm:$0x1] %vm95_vm2, %v4912_v2  ;;  %399 = vst.msk [vmem:[#allocation3 + $0x5e1] sm:$0x1] %vm95_vm2, %v4912_v2 }
  0xc8   :  { %400 = vst.msk [vmem:[#allocation3 + $0x5f9] sm:$0x1] %vm95_vm2, %v4912_v2  ;;  %401 = vst.msk [vmem:[#allocation3 + $0x611] sm:$0x1] %vm95_vm2, %v4912_v2 }
  0xc9   :  { %402 = vst.msk [vmem:[#allocation3 + $0x629] sm:$0x1] %vm95_vm2, %v4912_v2  ;;  %403 = vst.msk [vmem:[#allocation3 + $0x641] sm:$0x1] %vm95_vm2, %v4912_v2 }
  0xca   :  { %404 = vst.msk [vmem:[#allocation3 + $0x659] sm:$0x1] %vm95_vm2, %v4912_v2  ;;  %405 = vst.msk [vmem:[#allocation3 + $0x671] sm:$0x1] %vm95_vm2, %v4912_v2 }
  0xcb   :  { %406 = vst.msk [vmem:[#allocation3 + $0x689] sm:$0x1] %vm95_vm2, %v4912_v2  ;;  %407 = vst.msk [vmem:[#allocation3 + $0x6a1] sm:$0x1] %vm95_vm2, %v4912_v2 }
  0xcc   :  { %538 = vst.msk [vmem:[#allocation2 + $0x19] sm:$0xff] %vm68_vm0, %v4958_v0  ;;  %539 = vst.msk [vmem:[#allocation2 + $0x21] sm:$0xff] %vm68_vm0, %v4963_v1  ;;  %v472_v0 = vld [vmem:[%s8242_s0 + $0x1f8] sm:$0xff]  ;;  %v473_v1 = vld [vmem:[%s8242_s0 + $0x200] sm:$0xff] }
  0xcd   :  { %96 = vst.msk [vmem:[#allocation2] sm:$0x1] %vm95_vm2, %v4912_v2  ;;  %113 = vst.msk [vmem:[#allocation2 + $0x198] sm:$0x1] %vm95_vm2, %v4912_v2 }
  0xce   :  { %114 = vst.msk [vmem:[#allocation2 + $0x1b0] sm:$0x1] %vm95_vm2, %v4912_v2  ;;  %131 = vst.msk [vmem:[#allocation2 + $0x348] sm:$0x1] %vm95_vm2, %v4912_v2 }
  0xcf   :  { %132 = vst.msk [vmem:[#allocation2 + $0x360] sm:$0x1] %vm95_vm2, %v4912_v2  ;;  %149 = vst.msk [vmem:[#allocation2 + $0x4f8] sm:$0x1] %vm95_vm2, %v4912_v2 }
  0xd0   :  { %150 = vst.msk [vmem:[#allocation2 + $0x510] sm:$0x1] %vm95_vm2, %v4912_v2  ;;  %167 = vst.msk [vmem:[#allocation2 + $0x6a8] sm:$0x1] %vm95_vm2, %v4912_v2 }
  0xd1   :  { %168 = vst.msk [vmem:[#allocation2 + $0x11] sm:$0x1] %vm95_vm2, %v4912_v2  ;;  %185 = vst.msk [vmem:[#allocation2 + $0x1a9] sm:$0x1] %vm95_vm2, %v4912_v2 }
  0xd2   :  { %186 = vst.msk [vmem:[#allocation2 + $0x1c1] sm:$0x1] %vm95_vm2, %v4912_v2  ;;  %203 = vst.msk [vmem:[#allocation2 + $0x359] sm:$0x1] %vm95_vm2, %v4912_v2 }
  0xd3   :  { %204 = vst.msk [vmem:[#allocation2 + $0x371] sm:$0x1] %vm95_vm2, %v4912_v2  ;;  %221 = vst.msk [vmem:[#allocation2 + $0x509] sm:$0x1] %vm95_vm2, %v4912_v2 }
  0xd4   :  { %222 = vst.msk [vmem:[#allocation2 + $0x521] sm:$0x1] %vm95_vm2, %v4912_v2  ;;  %239 = vst.msk [vmem:[#allocation2 + $0x6b9] sm:$0x1] %vm95_vm2, %v4912_v2 }
  0xd5   :  { %265 = vst.msk [vmem:[#allocation3] sm:$0x1] %vm95_vm2, %v4912_v2  ;;  %282 = vst.msk [vmem:[#allocation3 + $0x198] sm:$0x1] %vm95_vm2, %v4912_v2 }
  0xd6   :  { %283 = vst.msk [vmem:[#allocation3 + $0x1b0] sm:$0x1] %vm95_vm2, %v4912_v2  ;;  %300 = vst.msk [vmem:[#allocation3 + $0x348] sm:$0x1] %vm95_vm2, %v4912_v2 }
  0xd7   :  { %301 = vst.msk [vmem:[#allocation3 + $0x360] sm:$0x1] %vm95_vm2, %v4912_v2  ;;  %318 = vst.msk [vmem:[#allocation3 + $0x4f8] sm:$0x1] %vm95_vm2, %v4912_v2 }
  0xd8   :  { %319 = vst.msk [vmem:[#allocation3 + $0x510] sm:$0x1] %vm95_vm2, %v4912_v2  ;;  %336 = vst.msk [vmem:[#allocation3 + $0x6a8] sm:$0x1] %vm95_vm2, %v4912_v2 }
  0xd9   :  { %337 = vst.msk [vmem:[#allocation3 + $0x11] sm:$0x1] %vm95_vm2, %v4912_v2  ;;  %354 = vst.msk [vmem:[#allocation3 + $0x1a9] sm:$0x1] %vm95_vm2, %v4912_v2 }
  0xda   :  { %355 = vst.msk [vmem:[#allocation3 + $0x1c1] sm:$0x1] %vm95_vm2, %v4912_v2  ;;  %372 = vst.msk [vmem:[#allocation3 + $0x359] sm:$0x1] %vm95_vm2, %v4912_v2 }
  0xdb   :  { %373 = vst.msk [vmem:[#allocation3 + $0x371] sm:$0x1] %vm95_vm2, %v4912_v2  ;;  %390 = vst.msk [vmem:[#allocation3 + $0x509] sm:$0x1] %vm95_vm2, %v4912_v2 }
  0xdc   :  { %391 = vst.msk [vmem:[#allocation3 + $0x521] sm:$0x1] %vm95_vm2, %v4912_v2  ;;  %408 = vst.msk [vmem:[#allocation3 + $0x6b9] sm:$0x1] %vm95_vm2, %v4912_v2  ;;  %v474_v2 = vld [vmem:[%s8242_s0 + $0x208] sm:$0xff] }
  0xdd   :  { %540 = vst.msk [vmem:[#allocation2 + $0x31] sm:$0xff] %vm68_vm0, %v411_v3  ;;  %541 = vst.msk [vmem:[#allocation2 + $0x39] sm:$0xff] %vm68_vm0, %v412_v4  ;;  %v475_v3 = vld [vmem:[%s8242_s0 + $0x210] sm:$0xff]  ;;  %v476_v4 = vld [vmem:[%s8242_s0 + $0x218] sm:$0xff] }
  0xde   :  { %542 = vst.msk [vmem:[#allocation2 + $0x49] sm:$0xff] %vm68_vm0, %v413_v5  ;;  %543 = vst.msk [vmem:[#allocation2 + $0x51] sm:$0xff] %vm68_vm0, %v414_v6  ;;  %v477_v5 = vld [vmem:[%s8242_s0 + $0x220] sm:$0xff]  ;;  %v478_v6 = vld [vmem:[%s8242_s0 + $0x228] sm:$0xff] }
  0xdf   :  { %544 = vst.msk [vmem:[#allocation2 + $0x61] sm:$0xff] %vm68_vm0, %v415_v7  ;;  %545 = vst.msk [vmem:[#allocation2 + $0x69] sm:$0xff] %vm68_vm0, %v416_v8  ;;  %v479_v7 = vld [vmem:[%s8242_s0 + $0x230] sm:$0xff]  ;;  %v480_v8 = vld [vmem:[%s8242_s0 + $0x238] sm:$0xff] }
  0xe0   :  { %546 = vst.msk [vmem:[#allocation2 + $0x79] sm:$0xff] %vm68_vm0, %v417_v9  ;;  %547 = vst.msk [vmem:[#allocation2 + $0x81] sm:$0xff] %vm68_vm0, %v418_v10  ;;  %v481_v9 = vld [vmem:[%s8242_s0 + $0x240] sm:$0xff]  ;;  %v482_v10 = vld [vmem:[%s8242_s0 + $0x248] sm:$0xff] }
  0xe1   :  { %548 = vst.msk [vmem:[#allocation2 + $0x91] sm:$0xff] %vm68_vm0, %v419_v11  ;;  %549 = vst.msk [vmem:[#allocation2 + $0x99] sm:$0xff] %vm68_vm0, %v420_v12  ;;  %v483_v11 = vld [vmem:[%s8242_s0 + $0x250] sm:$0xff]  ;;  %v484_v12 = vld [vmem:[%s8242_s0 + $0x258] sm:$0xff] }
  0xe2   :  { %550 = vst.msk [vmem:[#allocation2 + $0xa9] sm:$0xff] %vm68_vm0, %v421_v13  ;;  %551 = vst.msk [vmem:[#allocation2 + $0xb1] sm:$0xff] %vm68_vm0, %v422_v14  ;;  %v485_v13 = vld [vmem:[%s8242_s0 + $0x260] sm:$0xff]  ;;  %v486_v14 = vld [vmem:[%s8242_s0 + $0x268] sm:$0xff] }
  0xe3   :  { %552 = vst.msk [vmem:[#allocation2 + $0xc1] sm:$0xff] %vm68_vm0, %v423_v15  ;;  %553 = vst.msk [vmem:[#allocation2 + $0xc9] sm:$0xff] %vm68_vm0, %v424_v16  ;;  %v487_v15 = vld [vmem:[%s8242_s0 + $0x270] sm:$0xff]  ;;  %v488_v16 = vld [vmem:[%s8242_s0 + $0x278] sm:$0xff] }
  0xe4   :  { %554 = vst.msk [vmem:[#allocation2 + $0xd9] sm:$0xff] %vm68_vm0, %v425_v17  ;;  %555 = vst.msk [vmem:[#allocation2 + $0xe1] sm:$0xff] %vm68_vm0, %v426_v18  ;;  %v489_v17 = vld [vmem:[%s8242_s0 + $0x280] sm:$0xff]  ;;  %v490_v18 = vld [vmem:[%s8242_s0 + $0x288] sm:$0xff] }
  0xe5   :  { %556 = vst.msk [vmem:[#allocation2 + $0xf1] sm:$0xff] %vm68_vm0, %v427_v19  ;;  %557 = vst.msk [vmem:[#allocation2 + $0xf9] sm:$0xff] %vm68_vm0, %v428_v20  ;;  %v491_v19 = vld [vmem:[%s8242_s0 + $0x290] sm:$0xff]  ;;  %v492_v20 = vld [vmem:[%s8242_s0 + $0x298] sm:$0xff] }
  0xe6   :  { %558 = vst.msk [vmem:[#allocation2 + $0x109] sm:$0xff] %vm68_vm0, %v429_v21  ;;  %559 = vst.msk [vmem:[#allocation2 + $0x111] sm:$0xff] %vm68_vm0, %v430_v22  ;;  %v493_v21 = vld [vmem:[%s8242_s0 + $0x2a0] sm:$0xff]  ;;  %v494_v22 = vld [vmem:[%s8242_s0 + $0x2a8] sm:$0xff] }
  0xe7   :  { %560 = vst.msk [vmem:[#allocation2 + $0x121] sm:$0xff] %vm68_vm0, %v431_v23  ;;  %561 = vst.msk [vmem:[#allocation2 + $0x129] sm:$0xff] %vm68_vm0, %v432_v24  ;;  %v495_v23 = vld [vmem:[%s8242_s0 + $0x2b0] sm:$0xff]  ;;  %v496_v24 = vld [vmem:[%s8242_s0 + $0x2b8] sm:$0xff] }
  0xe8   :  { %562 = vst.msk [vmem:[#allocation2 + $0x139] sm:$0xff] %vm68_vm0, %v433_v25  ;;  %563 = vst.msk [vmem:[#allocation2 + $0x141] sm:$0xff] %vm68_vm0, %v434_v26  ;;  %v497_v25 = vld [vmem:[%s8242_s0 + $0x2c0] sm:$0xff]  ;;  %v498_v26 = vld [vmem:[%s8242_s0 + $0x2c8] sm:$0xff] }
  0xe9   :  { %564 = vst.msk [vmem:[#allocation2 + $0x151] sm:$0xff] %vm68_vm0, %v435_v27  ;;  %565 = vst.msk [vmem:[#allocation2 + $0x159] sm:$0xff] %vm68_vm0, %v436_v28  ;;  %v499_v27 = vld [vmem:[%s8242_s0 + $0x2d0] sm:$0xff]  ;;  %v500_v28 = vld [vmem:[%s8242_s0 + $0x2d8] sm:$0xff] }
  0xea   :  { %566 = vst.msk [vmem:[#allocation2 + $0x169] sm:$0xff] %vm68_vm0, %v437_v29  ;;  %567 = vst.msk [vmem:[#allocation2 + $0x171] sm:$0xff] %vm68_vm0, %v438_v30  ;;  %v501_v29 = vld [vmem:[%s8242_s0 + $0x2e0] sm:$0xff]  ;;  %v502_v30 = vld [vmem:[%s8242_s0 + $0x2e8] sm:$0xff] }
  0xeb   :  { %568 = vst.msk [vmem:[#allocation2 + $0x181] sm:$0xff] %vm68_vm0, %v439_v31  ;;  %569 = vst.msk [vmem:[#allocation2 + $0x189] sm:$0xff] %vm68_vm0, %v440_v32  ;;  %v503_v31 = vld [vmem:[%s8242_s0 + $0x2f0] sm:$0xff]  ;;  %v504_v32 = vld [vmem:[%s8242_s0 + $0x2f8] sm:$0xff] }
  0xec   :  { %570 = vst.msk [vmem:[#allocation2 + $0x1c9] sm:$0xff] %vm68_vm0, %v441_v33  ;;  %571 = vst.msk [vmem:[#allocation2 + $0x1d1] sm:$0xff] %vm68_vm0, %v442_v34  ;;  %v505_v33 = vld [vmem:[%s8242_s0 + $0x300] sm:$0xff]  ;;  %v506_v34 = vld [vmem:[%s8242_s0 + $0x308] sm:$0xff] }
  0xed   :  { %572 = vst.msk [vmem:[#allocation2 + $0x1e1] sm:$0xff] %vm68_vm0, %v443_v35  ;;  %573 = vst.msk [vmem:[#allocation2 + $0x1e9] sm:$0xff] %vm68_vm0, %v444_v36  ;;  %v507_v35 = vld [vmem:[%s8242_s0 + $0x310] sm:$0xff]  ;;  %v508_v36 = vld [vmem:[%s8242_s0 + $0x318] sm:$0xff] }
  0xee   :  { %574 = vst.msk [vmem:[#allocation2 + $0x1f9] sm:$0xff] %vm68_vm0, %v445_v37  ;;  %575 = vst.msk [vmem:[#allocation2 + $0x201] sm:$0xff] %vm68_vm0, %v446_v38  ;;  %v509_v37 = vld [vmem:[%s8242_s0 + $0x320] sm:$0xff]  ;;  %v510_v38 = vld [vmem:[%s8242_s0 + $0x328] sm:$0xff] }
  0xef   :  { %576 = vst.msk [vmem:[#allocation2 + $0x211] sm:$0xff] %vm68_vm0, %v447_v39  ;;  %577 = vst.msk [vmem:[#allocation2 + $0x219] sm:$0xff] %vm68_vm0, %v448_v40  ;;  %v511_v39 = vld [vmem:[%s8242_s0 + $0x330] sm:$0xff]  ;;  %v512_v40 = vld [vmem:[%s8242_s0 + $0x338] sm:$0xff] }
  0xf0   :  { %578 = vst.msk [vmem:[#allocation2 + $0x229] sm:$0xff] %vm68_vm0, %v449_v41  ;;  %579 = vst.msk [vmem:[#allocation2 + $0x231] sm:$0xff] %vm68_vm0, %v450_v42  ;;  %v513_v41 = vld [vmem:[%s8242_s0 + $0x340] sm:$0xff]  ;;  %v514_v42 = vld [vmem:[%s8242_s0 + $0x348] sm:$0xff] }
  0xf1   :  { %580 = vst.msk [vmem:[#allocation2 + $0x241] sm:$0xff] %vm68_vm0, %v451_v43  ;;  %581 = vst.msk [vmem:[#allocation2 + $0x249] sm:$0xff] %vm68_vm0, %v452_v44  ;;  %v515_v43 = vld [vmem:[%s8242_s0 + $0x350] sm:$0xff]  ;;  %v516_v44 = vld [vmem:[%s8242_s0 + $0x358] sm:$0xff] }
  0xf2   :  { %582 = vst.msk [vmem:[#allocation2 + $0x259] sm:$0xff] %vm68_vm0, %v453_v45  ;;  %583 = vst.msk [vmem:[#allocation2 + $0x261] sm:$0xff] %vm68_vm0, %v454_v46  ;;  %v517_v45 = vld [vmem:[%s8242_s0 + $0x360] sm:$0xff]  ;;  %v518_v46 = vld [vmem:[%s8242_s0 + $0x368] sm:$0xff] }
  0xf3   :  { %584 = vst.msk [vmem:[#allocation2 + $0x271] sm:$0xff] %vm68_vm0, %v455_v47  ;;  %585 = vst.msk [vmem:[#allocation2 + $0x279] sm:$0xff] %vm68_vm0, %v456_v48  ;;  %v519_v47 = vld [vmem:[%s8242_s0 + $0x370] sm:$0xff]  ;;  %v520_v48 = vld [vmem:[%s8242_s0 + $0x378] sm:$0xff] }
  0xf4   :  { %586 = vst.msk [vmem:[#allocation2 + $0x289] sm:$0xff] %vm68_vm0, %v457_v49  ;;  %587 = vst.msk [vmem:[#allocation2 + $0x291] sm:$0xff] %vm68_vm0, %v458_v50  ;;  %v521_v49 = vld [vmem:[%s8242_s0 + $0x380] sm:$0xff]  ;;  %v522_v50 = vld [vmem:[%s8242_s0 + $0x388] sm:$0xff] }
  0xf5   :  { %588 = vst.msk [vmem:[#allocation2 + $0x2a1] sm:$0xff] %vm68_vm0, %v459_v51  ;;  %589 = vst.msk [vmem:[#allocation2 + $0x2a9] sm:$0xff] %vm68_vm0, %v460_v52  ;;  %v523_v51 = vld [vmem:[%s8242_s0 + $0x390] sm:$0xff]  ;;  %v524_v52 = vld [vmem:[%s8242_s0 + $0x398] sm:$0xff] }
  0xf6   :  { %590 = vst.msk [vmem:[#allocation2 + $0x2b9] sm:$0xff] %vm68_vm0, %v461_v53  ;;  %591 = vst.msk [vmem:[#allocation2 + $0x2c1] sm:$0xff] %vm68_vm0, %v462_v54  ;;  %v525_v53 = vld [vmem:[%s8242_s0 + $0x3a0] sm:$0xff]  ;;  %v526_v54 = vld [vmem:[%s8242_s0 + $0x3a8] sm:$0xff] }
  0xf7   :  { %592 = vst.msk [vmem:[#allocation2 + $0x2d1] sm:$0xff] %vm68_vm0, %v463_v55  ;;  %593 = vst.msk [vmem:[#allocation2 + $0x2d9] sm:$0xff] %vm68_vm0, %v464_v56  ;;  %v527_v55 = vld [vmem:[%s8242_s0 + $0x3b0] sm:$0xff]  ;;  %v528_v56 = vld [vmem:[%s8242_s0 + $0x3b8] sm:$0xff] }
  0xf8   :  { %594 = vst.msk [vmem:[#allocation2 + $0x2e9] sm:$0xff] %vm68_vm0, %v465_v57  ;;  %595 = vst.msk [vmem:[#allocation2 + $0x2f1] sm:$0xff] %vm68_vm0, %v466_v58  ;;  %v529_v57 = vld [vmem:[%s8242_s0 + $0x3c0] sm:$0xff]  ;;  %v530_v58 = vld [vmem:[%s8242_s0 + $0x3c8] sm:$0xff] }
  0xf9   :  { %596 = vst.msk [vmem:[#allocation2 + $0x301] sm:$0xff] %vm68_vm0, %v467_v59  ;;  %597 = vst.msk [vmem:[#allocation2 + $0x309] sm:$0xff] %vm68_vm0, %v468_v60  ;;  %v531_v59 = vld [vmem:[%s8242_s0 + $0x3d0] sm:$0xff]  ;;  %v532_v60 = vld [vmem:[%s8242_s0 + $0x3d8] sm:$0xff] }
  0xfa   :  { %598 = vst.msk [vmem:[#allocation2 + $0x319] sm:$0xff] %vm68_vm0, %v469_v61  ;;  %599 = vst.msk [vmem:[#allocation2 + $0x321] sm:$0xff] %vm68_vm0, %v470_v62  ;;  %v533_v61 = vld [vmem:[%s8242_s0 + $0x3e0] sm:$0xff]  ;;  %v534_v62 = vld [vmem:[%s8242_s0 + $0x3e8] sm:$0xff] }
  0xfb   :  { %600 = vst.msk [vmem:[#allocation2 + $0x331] sm:$0xff] %vm68_vm0, %v471_v63  ;;  %601 = vst.msk [vmem:[#allocation2 + $0x339] sm:$0xff] %vm68_vm0, %v472_v0  ;;  %v535_v63 = vld [vmem:[%s8242_s0 + $0x3f0] sm:$0xff]  ;;  %v536_v0 = vld [vmem:[%s8242_s0 + $0x3f8] sm:$0xff] }
  0xfc   :  { %602 = vst.msk [vmem:[#allocation2 + $0x379] sm:$0xff] %vm68_vm0, %v473_v1  ;;  %603 = vst.msk [vmem:[#allocation2 + $0x381] sm:$0xff] %vm68_vm0, %v474_v2 }
  0xfd   :  { %604 = vst.msk [vmem:[#allocation2 + $0x391] sm:$0xff] %vm68_vm0, %v475_v3  ;;  %605 = vst.msk [vmem:[#allocation2 + $0x399] sm:$0xff] %vm68_vm0, %v476_v4 }
  0xfe   :  { %606 = vst.msk [vmem:[#allocation2 + $0x3a9] sm:$0xff] %vm68_vm0, %v477_v5  ;;  %607 = vst.msk [vmem:[#allocation2 + $0x3b1] sm:$0xff] %vm68_vm0, %v478_v6 }
  0xff   :  { %608 = vst.msk [vmem:[#allocation2 + $0x3c1] sm:$0xff] %vm68_vm0, %v479_v7  ;;  %609 = vst.msk [vmem:[#allocation2 + $0x3c9] sm:$0xff] %vm68_vm0, %v480_v8 }
 0x100   :  { %610 = vst.msk [vmem:[#allocation2 + $0x3d9] sm:$0xff] %vm68_vm0, %v481_v9  ;;  %611 = vst.msk [vmem:[#allocation2 + $0x3e1] sm:$0xff] %vm68_vm0, %v482_v10 }
 0x101   :  { %612 = vst.msk [vmem:[#allocation2 + $0x3f1] sm:$0xff] %vm68_vm0, %v483_v11  ;;  %613 = vst.msk [vmem:[#allocation2 + $0x3f9] sm:$0xff] %vm68_vm0, %v484_v12 }
 0x102   :  { %614 = vst.msk [vmem:[#allocation2 + $0x409] sm:$0xff] %vm68_vm0, %v485_v13  ;;  %615 = vst.msk [vmem:[#allocation2 + $0x411] sm:$0xff] %vm68_vm0, %v486_v14 }
 0x103   :  { %616 = vst.msk [vmem:[#allocation2 + $0x421] sm:$0xff] %vm68_vm0, %v487_v15  ;;  %617 = vst.msk [vmem:[#allocation2 + $0x429] sm:$0xff] %vm68_vm0, %v488_v16 }
 0x104   :  { %618 = vst.msk [vmem:[#allocation2 + $0x439] sm:$0xff] %vm68_vm0, %v489_v17  ;;  %619 = vst.msk [vmem:[#allocation2 + $0x441] sm:$0xff] %vm68_vm0, %v490_v18 }
 0x105   :  { %620 = vst.msk [vmem:[#allocation2 + $0x451] sm:$0xff] %vm68_vm0, %v491_v19  ;;  %621 = vst.msk [vmem:[#allocation2 + $0x459] sm:$0xff] %vm68_vm0, %v492_v20 }
 0x106   :  { %622 = vst.msk [vmem:[#allocation2 + $0x469] sm:$0xff] %vm68_vm0, %v493_v21  ;;  %623 = vst.msk [vmem:[#allocation2 + $0x471] sm:$0xff] %vm68_vm0, %v494_v22 }
 0x107   :  { %624 = vst.msk [vmem:[#allocation2 + $0x481] sm:$0xff] %vm68_vm0, %v495_v23  ;;  %625 = vst.msk [vmem:[#allocation2 + $0x489] sm:$0xff] %vm68_vm0, %v496_v24 }
 0x108   :  { %626 = vst.msk [vmem:[#allocation2 + $0x499] sm:$0xff] %vm68_vm0, %v497_v25  ;;  %627 = vst.msk [vmem:[#allocation2 + $0x4a1] sm:$0xff] %vm68_vm0, %v498_v26 }
 0x109   :  { %628 = vst.msk [vmem:[#allocation2 + $0x4b1] sm:$0xff] %vm68_vm0, %v499_v27  ;;  %629 = vst.msk [vmem:[#allocation2 + $0x4b9] sm:$0xff] %vm68_vm0, %v500_v28 }
 0x10a   :  { %630 = vst.msk [vmem:[#allocation2 + $0x4c9] sm:$0xff] %vm68_vm0, %v501_v29  ;;  %631 = vst.msk [vmem:[#allocation2 + $0x4d1] sm:$0xff] %vm68_vm0, %v502_v30 }
 0x10b   :  { %632 = vst.msk [vmem:[#allocation2 + $0x4e1] sm:$0xff] %vm68_vm0, %v503_v31  ;;  %633 = vst.msk [vmem:[#allocation2 + $0x4e9] sm:$0xff] %vm68_vm0, %v504_v32 }
 0x10c   :  { %634 = vst.msk [vmem:[#allocation2 + $0x529] sm:$0xff] %vm68_vm0, %v505_v33  ;;  %635 = vst.msk [vmem:[#allocation2 + $0x531] sm:$0xff] %vm68_vm0, %v506_v34 }
 0x10d   :  { %636 = vst.msk [vmem:[#allocation2 + $0x541] sm:$0xff] %vm68_vm0, %v507_v35  ;;  %637 = vst.msk [vmem:[#allocation2 + $0x549] sm:$0xff] %vm68_vm0, %v508_v36 }
 0x10e   :  { %638 = vst.msk [vmem:[#allocation2 + $0x559] sm:$0xff] %vm68_vm0, %v509_v37  ;;  %639 = vst.msk [vmem:[#allocation2 + $0x561] sm:$0xff] %vm68_vm0, %v510_v38 }
 0x10f   :  { %640 = vst.msk [vmem:[#allocation2 + $0x571] sm:$0xff] %vm68_vm0, %v511_v39  ;;  %641 = vst.msk [vmem:[#allocation2 + $0x579] sm:$0xff] %vm68_vm0, %v512_v40 }
 0x110   :  { %642 = vst.msk [vmem:[#allocation2 + $0x589] sm:$0xff] %vm68_vm0, %v513_v41  ;;  %643 = vst.msk [vmem:[#allocation2 + $0x591] sm:$0xff] %vm68_vm0, %v514_v42 }
 0x111   :  { %644 = vst.msk [vmem:[#allocation2 + $0x5a1] sm:$0xff] %vm68_vm0, %v515_v43  ;;  %645 = vst.msk [vmem:[#allocation2 + $0x5a9] sm:$0xff] %vm68_vm0, %v516_v44 }
 0x112   :  { %646 = vst.msk [vmem:[#allocation2 + $0x5b9] sm:$0xff] %vm68_vm0, %v517_v45  ;;  %647 = vst.msk [vmem:[#allocation2 + $0x5c1] sm:$0xff] %vm68_vm0, %v518_v46 }
 0x113   :  { %648 = vst.msk [vmem:[#allocation2 + $0x5d1] sm:$0xff] %vm68_vm0, %v519_v47  ;;  %649 = vst.msk [vmem:[#allocation2 + $0x5d9] sm:$0xff] %vm68_vm0, %v520_v48 }
 0x114   :  { %650 = vst.msk [vmem:[#allocation2 + $0x5e9] sm:$0xff] %vm68_vm0, %v521_v49  ;;  %651 = vst.msk [vmem:[#allocation2 + $0x5f1] sm:$0xff] %vm68_vm0, %v522_v50 }
 0x115   :  { %652 = vst.msk [vmem:[#allocation2 + $0x601] sm:$0xff] %vm68_vm0, %v523_v51  ;;  %653 = vst.msk [vmem:[#allocation2 + $0x609] sm:$0xff] %vm68_vm0, %v524_v52 }
 0x116   :  { %654 = vst.msk [vmem:[#allocation2 + $0x619] sm:$0xff] %vm68_vm0, %v525_v53  ;;  %655 = vst.msk [vmem:[#allocation2 + $0x621] sm:$0xff] %vm68_vm0, %v526_v54 }
 0x117   :  { %656 = vst.msk [vmem:[#allocation2 + $0x631] sm:$0xff] %vm68_vm0, %v527_v55  ;;  %657 = vst.msk [vmem:[#allocation2 + $0x639] sm:$0xff] %vm68_vm0, %v528_v56 }
 0x118   :  { %658 = vst.msk [vmem:[#allocation2 + $0x649] sm:$0xff] %vm68_vm0, %v529_v57  ;;  %659 = vst.msk [vmem:[#allocation2 + $0x651] sm:$0xff] %vm68_vm0, %v530_v58 }
 0x119   :  { %660 = vst.msk [vmem:[#allocation2 + $0x661] sm:$0xff] %vm68_vm0, %v531_v59  ;;  %661 = vst.msk [vmem:[#allocation2 + $0x669] sm:$0xff] %vm68_vm0, %v532_v60 }
 0x11a   :  { %662 = vst.msk [vmem:[#allocation2 + $0x679] sm:$0xff] %vm68_vm0, %v533_v61  ;;  %663 = vst.msk [vmem:[#allocation2 + $0x681] sm:$0xff] %vm68_vm0, %v534_v62 }
 0x11b   :  { %664 = vst.msk [vmem:[#allocation2 + $0x691] sm:$0xff] %vm68_vm0, %v535_v63  ;;  %665 = vst.msk [vmem:[#allocation2 + $0x699] sm:$0xff] %vm68_vm0, %v536_v0 }
 0x11c LB: > { %s673_s7 = sld [smem:[#allocation6]]  ;;  %s4170_s8 = sld [smem:[#allocation6 + $0x1]]  ;;  %s4902_s6 = sphi %s6145_s6, %s671_s6  }
 0x11d   : > { %s4171_s9 = sld [smem:[#allocation6 + $0x2]]  ;;  %s4172_s3 = sld [smem:[#allocation6 + $0x3]] }
 0x11e   : > { %s4173_s4 = smul.u32 48, %s4902_s6  ;;  %s687_s10 = sld [smem:[#allocation4]] }
 0x11f   : > { %s4174_s11 = sld [smem:[#allocation4 + $0x24]]  ;;  %s4175_s12 = sld [smem:[#allocation4 + $0x48]] }
 0x120   : > { %s4176_s13 = sld [smem:[#allocation4 + $0x6c]]  ;;  %s6153_s14 = scalar_lea.vmem [#allocation2], %s4173_s4 }
 0x121   : > { %s6163_s15 = sld [smem:[#allocation4 + $0x1]]  ;;  %s6165_s16 = sld [smem:[#allocation4 + $0x25]] }
 0x122   : > { %v683_v1 = vld [vmem:[%s6153_s14] sm:$0xff]  ;;  %v684_v2 = vld [vmem:[%s6153_s14 + $0x8] sm:$0xff]  ;;  %v6158_v3 = vld [vmem:[%s6153_s14 + $0x18] sm:$0xff]  ;;  %v674_v5 = vstv %s673_s7  ;;  %s6169_s17 = sld [smem:[#allocation4 + $0x49]]  ;;  %s6171_s18 = sld [smem:[#allocation4 + $0x6d]] }
 0x123   : > { %v6161_v4 = vld [vmem:[%s6153_s14 + $0x20] sm:$0xff]  ;;  %v676_v6 = vstv %s4170_s8  ;;  %v678_v7 = vstv %s4171_s9  ;;  %v680_v13 = vstv %s4172_s3  ;;  %s6191_s19 = sld [smem:[#allocation4 + $0x2]]  ;;  %s6193_s20 = sld [smem:[#allocation4 + $0x26]] }
 0x124   : > { %v688_v8 = vstv %s687_s10  ;;  %v727_v37 = vld [vmem:[%s6153_s14 + $0x1] sm:$0xff]  ;;  %v728_v42 = vld [vmem:[%s6153_s14 + $0x9] sm:$0xff]  ;;  %v6182_v43 = vld [vmem:[%s6153_s14 + $0x19] sm:$0xff]  ;;  %s6197_s21 = sld [smem:[#allocation4 + $0x4a]]  ;;  %s6199_s22 = sld [smem:[#allocation4 + $0x6e]] }
 0x125   : > { %v689_v9 = vmul.f32 %v688_v8, %v683_v1  ;;  %v690_v10 = vmul.f32 %v688_v8, %v684_v2  ;;  %v691_v11 = vmul.f32 %v688_v8, %v6158_v3  ;;  %v692_v12 = vmul.f32 %v688_v8, %v6161_v4  ;;  %v6185_v44 = vld [vmem:[%s6153_s14 + $0x21] sm:$0xff]  ;;  %s6219_s23 = sld [smem:[#allocation4 + $0x3]]  ;;  %s6221_s24 = sld [smem:[#allocation4 + $0x27]] }
 0x126   : > { %v698_v14 = vstv %s4174_s11  ;;  %v708_v15 = vstv %s4175_s12  ;;  %v718_v16 = vstv %s4176_s13  ;;  %s6225_s25 = sld [smem:[#allocation4 + $0x4b]]  ;;  %s6227_s26 = sld [smem:[#allocation4 + $0x6f]] }
 0x127   : > { %v693_v17 = vadd.f32 %v689_v9, %v674_v5  ;;  %v694_v18 = vadd.f32 %v690_v10, %v674_v5  ;;  %v695_v19 = vadd.f32 %v691_v11, %v674_v5  ;;  %v696_v20 = vadd.f32 %v692_v12, %v674_v5  ;;  %s6245_s2 = sld [smem:[#allocation4 + $0x4]]  ;;  %s6247_s1 = sld [smem:[#allocation4 + $0x28]] }
 0x128   : > { %v699_v21 = vmul.f32 %v698_v14, %v683_v1  ;;  %v700_v22 = vmul.f32 %v698_v14, %v684_v2  ;;  %v701_v23 = vmul.f32 %v698_v14, %v6158_v3  ;;  %v702_v24 = vmul.f32 %v698_v14, %v6161_v4  ;;  %s6253_s27 = sld [smem:[#allocation4 + $0x4c]]  ;;  %s6255_s28 = sld [smem:[#allocation4 + $0x70]] }
 0x129   : > { %v709_v25 = vmul.f32 %v708_v15, %v683_v1  ;;  %v710_v26 = vmul.f32 %v708_v15, %v684_v2  ;;  %v711_v27 = vmul.f32 %v708_v15, %v6158_v3  ;;  %v712_v28 = vmul.f32 %v708_v15, %v6161_v4  ;;  %v771_v15 = vld [vmem:[%s6153_s14 + $0x2] sm:$0xff]  ;;  %s6279_s29 = sld [smem:[#allocation4 + $0x5]]  ;;  %s6281_s30 = sld [smem:[#allocation4 + $0x29]] }
 0x12a   : > { %v703_v29 = vadd.f32 %v699_v21, %v676_v6  ;;  %v704_v30 = vadd.f32 %v700_v22, %v676_v6  ;;  %v705_v31 = vadd.f32 %v701_v23, %v676_v6  ;;  %v706_v32 = vadd.f32 %v702_v24, %v676_v6  ;;  %v6210_v21 = vld [vmem:[%s6153_s14 + $0x1a] sm:$0xff]  ;;  %v6213_v22 = vld [vmem:[%s6153_s14 + $0x22] sm:$0xff]  ;;  %s6287_s7 = sld [smem:[#allocation4 + $0x4d]]  ;;  %s6289_s8 = sld [smem:[#allocation4 + $0x71]] }
 0x12b   : > { %v713_v33 = vadd.f32 %v709_v25, %v678_v7  ;;  %v714_v34 = vadd.f32 %v710_v26, %v678_v7  ;;  %v715_v35 = vadd.f32 %v711_v27, %v678_v7  ;;  %v716_v36 = vadd.f32 %v712_v28, %v678_v7  ;;  %s6313_s9 = sld [smem:[#allocation4 + $0x6]]  ;;  %s6315_s3 = sld [smem:[#allocation4 + $0x2a]] }
 0x12c   : > { %v719_v38 = vmul.f32 %v718_v16, %v683_v1  ;;  %v720_v39 = vmul.f32 %v718_v16, %v684_v2  ;;  %v721_v40 = vmul.f32 %v718_v16, %v6158_v3  ;;  %v722_v41 = vmul.f32 %v718_v16, %v6161_v4  ;;  %s6321_s10 = sld [smem:[#allocation4 + $0x4e]]  ;;  %s6323_s11 = sld [smem:[#allocation4 + $0x72]] }
 0x12d   : > { %v732_v45 = vstv %s6163_s15  ;;  %v742_v46 = vstv %s6165_s16  ;;  %v752_v47 = vstv %s6169_s17  ;;  %v762_v48 = vstv %s6171_s18  ;;  %s6343_s12 = sld [smem:[#allocation4 + $0x7]]  ;;  %s6345_s13 = sld [smem:[#allocation4 + $0x2b]] }
 0x12e   : > { %v723_v49 = vadd.f32 %v719_v38, %v680_v13  ;;  %v724_v50 = vadd.f32 %v720_v39, %v680_v13  ;;  %v725_v51 = vadd.f32 %v721_v40, %v680_v13  ;;  %v726_v52 = vadd.f32 %v722_v41, %v680_v13  ;;  %s6349_s15 = sld [smem:[#allocation4 + $0x4f]]  ;;  %s6351_s16 = sld [smem:[#allocation4 + $0x73]] }
 0x12f   : > { %v733_v53 = vmul.f32 %v732_v45, %v727_v37  ;;  %v734_v54 = vmul.f32 %v732_v45, %v728_v42  ;;  %v735_v55 = vmul.f32 %v732_v45, %v6182_v43  ;;  %v736_v56 = vmul.f32 %v732_v45, %v6185_v44  ;;  %s6365_s17 = sld [smem:[#allocation4 + $0x8]]  ;;  %s6367_s18 = sld [smem:[#allocation4 + $0x2c]] }
 0x130   : > { %v743_v57 = vmul.f32 %v742_v46, %v727_v37  ;;  %v744_v58 = vmul.f32 %v742_v46, %v728_v42  ;;  %v745_v59 = vmul.f32 %v742_v46, %v6182_v43  ;;  %v746_v60 = vmul.f32 %v742_v46, %v6185_v44  ;;  %s671_s6 = sadd.s32 1, %s4902_s6  }
 0x131   : > { %v737_v61 = vadd.f32 %v733_v53, %v693_v17  ;;  %v738_v62 = vadd.f32 %v734_v54, %v694_v18  ;;  %v739_v63 = vadd.f32 %v735_v55, %v695_v19  ;;  %v740_v0 = vadd.f32 %v736_v56, %v696_v20  ;;  %v772_v20 = vld [vmem:[%s6153_s14 + $0xa] sm:$0xff]  ;;  %p668_p6 = scmp.ge.s32.totalorder %s671_s6, 8  }
 0x132   : > { %v747_v1 = vadd.f32 %v743_v57, %v703_v29  ;;  %v748_v2 = vadd.f32 %v744_v58, %v704_v30  ;;  %v749_v5 = vadd.f32 %v745_v59, %v705_v31  ;;  %v750_v6 = vadd.f32 %v746_v60, %v706_v32 }
 0x133   : > { %v753_v7 = vmul.f32 %v752_v47, %v727_v37  ;;  %v754_v8 = vmul.f32 %v752_v47, %v728_v42  ;;  %v755_v9 = vmul.f32 %v752_v47, %v6182_v43  ;;  %v756_v10 = vmul.f32 %v752_v47, %v6185_v44 }
 0x134   : > { %v763_v11 = vmul.f32 %v762_v48, %v727_v37  ;;  %v764_v12 = vmul.f32 %v762_v48, %v728_v42  ;;  %v765_v13 = vmul.f32 %v762_v48, %v6182_v43  ;;  %v766_v14 = vmul.f32 %v762_v48, %v6185_v44 }
 0x135   : > { %v757_v16 = vadd.f32 %v753_v7, %v713_v33  ;;  %v758_v17 = vadd.f32 %v754_v8, %v714_v34  ;;  %v759_v18 = vadd.f32 %v755_v9, %v715_v35  ;;  %v760_v19 = vadd.f32 %v756_v10, %v716_v36 }
 0x136   : > { %v767_v23 = vadd.f32 %v763_v11, %v723_v49  ;;  %v768_v24 = vadd.f32 %v764_v12, %v724_v50  ;;  %v769_v25 = vadd.f32 %v765_v13, %v725_v51  ;;  %v770_v26 = vadd.f32 %v766_v14, %v726_v52 }
 0x137   : > { %v776_v27 = vstv %s6191_s19  ;;  %v786_v28 = vstv %s6193_s20  ;;  %v796_v29 = vstv %s6197_s21  ;;  %v806_v30 = vstv %s6199_s22  ;;  %s6371_s19 = sld [smem:[#allocation4 + $0x50]]  ;;  %s6373_s20 = sld [smem:[#allocation4 + $0x74]] }
 0x138   : > { %v777_v31 = vmul.f32 %v776_v27, %v771_v15  ;;  %v778_v32 = vmul.f32 %v776_v27, %v772_v20  ;;  %v779_v33 = vmul.f32 %v776_v27, %v6210_v21  ;;  %v780_v34 = vmul.f32 %v776_v27, %v6213_v22  ;;  %s6387_s21 = sld [smem:[#allocation4 + $0x9]]  ;;  %s6389_s22 = sld [smem:[#allocation4 + $0x2d]] }
 0x139   : > { %v787_v35 = vmul.f32 %v786_v28, %v771_v15  ;;  %v788_v36 = vmul.f32 %v786_v28, %v772_v20  ;;  %v789_v37 = vmul.f32 %v786_v28, %v6210_v21  ;;  %v790_v38 = vmul.f32 %v786_v28, %v6213_v22 }
 0x13a   : > { %v781_v39 = vadd.f32 %v777_v31, %v737_v61  ;;  %v782_v40 = vadd.f32 %v778_v32, %v738_v62  ;;  %v783_v41 = vadd.f32 %v779_v33, %v739_v63  ;;  %v784_v42 = vadd.f32 %v780_v34, %v740_v0  ;;  %v6236_v61 = vld [vmem:[%s6153_s14 + $0x30] sm:$0xff]  ;;  %v6239_v62 = vld [vmem:[%s6153_s14 + $0x38] sm:$0xff] }
 0x13b   : > { %v791_v45 = vadd.f32 %v787_v35, %v747_v1  ;;  %v792_v46 = vadd.f32 %v788_v36, %v748_v2  ;;  %v793_v47 = vadd.f32 %v789_v37, %v749_v5  ;;  %v794_v48 = vadd.f32 %v790_v38, %v750_v6 }
 0x13c   : > { %v797_v49 = vmul.f32 %v796_v29, %v771_v15  ;;  %v798_v50 = vmul.f32 %v796_v29, %v772_v20  ;;  %v799_v51 = vmul.f32 %v796_v29, %v6210_v21  ;;  %v800_v52 = vmul.f32 %v796_v29, %v6213_v22 }
 0x13d   : > { %v807_v53 = vmul.f32 %v806_v30, %v771_v15  ;;  %v808_v54 = vmul.f32 %v806_v30, %v772_v20  ;;  %v809_v55 = vmul.f32 %v806_v30, %v6210_v21  ;;  %v810_v56 = vmul.f32 %v806_v30, %v6213_v22 }
 0x13e   : > { %v801_v57 = vadd.f32 %v797_v49, %v757_v16  ;;  %v802_v58 = vadd.f32 %v798_v50, %v758_v17  ;;  %v803_v59 = vadd.f32 %v799_v51, %v759_v18  ;;  %v804_v60 = vadd.f32 %v800_v52, %v760_v19 }
 0x13f   : > { %v811_v63 = vadd.f32 %v807_v53, %v767_v23  ;;  %v812_v0 = vadd.f32 %v808_v54, %v768_v24  ;;  %v813_v1 = vadd.f32 %v809_v55, %v769_v25  ;;  %v814_v2 = vadd.f32 %v810_v56, %v770_v26 }
 0x140   : > { %v823_v5 = vstv %s6219_s23  ;;  %v833_v6 = vstv %s6221_s24  ;;  %v843_v7 = vstv %s6225_s25  ;;  %v853_v8 = vstv %s6227_s26  ;;  %s6393_s23 = sld [smem:[#allocation4 + $0x51]]  ;;  %s6395_s24 = sld [smem:[#allocation4 + $0x75]] }
 0x141   : > { %v824_v9 = vmul.f32 %v823_v5, %v6158_v3  ;;  %v825_v10 = vmul.f32 %v823_v5, %v6161_v4  ;;  %v826_v11 = vmul.f32 %v6236_v61, %v823_v5  ;;  %v827_v12 = vmul.f32 %v6239_v62, %v823_v5  ;;  %s6415_s25 = sld [smem:[#allocation4 + $0xa]]  ;;  %s6417_s26 = sld [smem:[#allocation4 + $0x2e]] }
 0x142   : > { %v834_v13 = vmul.f32 %v833_v6, %v6158_v3  ;;  %v835_v14 = vmul.f32 %v833_v6, %v6161_v4  ;;  %v836_v15 = vmul.f32 %v6236_v61, %v833_v6  ;;  %v837_v16 = vmul.f32 %v6239_v62, %v833_v6 }
 0x143   : > { %v828_v17 = vadd.f32 %v824_v9, %v781_v39  ;;  %v829_v18 = vadd.f32 %v825_v10, %v782_v40  ;;  %v830_v19 = vadd.f32 %v826_v11, %v783_v41  ;;  %v831_v20 = vadd.f32 %v827_v12, %v784_v42  ;;  %v6270_v39 = vld [vmem:[%s6153_s14 + $0x31] sm:$0xff]  ;;  %v6273_v40 = vld [vmem:[%s6153_s14 + $0x39] sm:$0xff] }
 0x144   : > { %v838_v23 = vadd.f32 %v834_v13, %v791_v45  ;;  %v839_v24 = vadd.f32 %v835_v14, %v792_v46  ;;  %v840_v25 = vadd.f32 %v836_v15, %v793_v47  ;;  %v841_v26 = vadd.f32 %v837_v16, %v794_v48 }
 0x145   : > { %v844_v27 = vmul.f32 %v843_v7, %v6158_v3  ;;  %v845_v28 = vmul.f32 %v843_v7, %v6161_v4  ;;  %v846_v29 = vmul.f32 %v6236_v61, %v843_v7  ;;  %v847_v30 = vmul.f32 %v6239_v62, %v843_v7 }
 0x146   : > { %v854_v31 = vmul.f32 %v853_v8, %v6158_v3  ;;  %v855_v32 = vmul.f32 %v853_v8, %v6161_v4  ;;  %v856_v33 = vmul.f32 %v6236_v61, %v853_v8  ;;  %v857_v34 = vmul.f32 %v6239_v62, %v853_v8 }
 0x147   : > { %v848_v35 = vadd.f32 %v844_v27, %v801_v57  ;;  %v849_v36 = vadd.f32 %v845_v28, %v802_v58  ;;  %v850_v37 = vadd.f32 %v846_v29, %v803_v59  ;;  %v851_v38 = vadd.f32 %v847_v30, %v804_v60 }
 0x148   : > { %v858_v41 = vadd.f32 %v854_v31, %v811_v63  ;;  %v859_v42 = vadd.f32 %v855_v32, %v812_v0  ;;  %v860_v45 = vadd.f32 %v856_v33, %v813_v1  ;;  %v861_v3 = vadd.f32 %v857_v34, %v814_v2 }
 0x149   : > { %v867_v46 = vstv %s6245_s2  ;;  %v877_v47 = vstv %s6247_s1  ;;  %v887_v4 = vstv %s6253_s27  ;;  %v897_v48 = vstv %s6255_s28  ;;  %s6421_s2 = sld [smem:[#allocation4 + $0x52]]  ;;  %s6423_s1 = sld [smem:[#allocation4 + $0x76]] }
 0x14a   : > { %v868_v49 = vmul.f32 %v867_v46, %v6182_v43  ;;  %v869_v50 = vmul.f32 %v867_v46, %v6185_v44  ;;  %v870_v51 = vmul.f32 %v6270_v39, %v867_v46  ;;  %v871_v52 = vmul.f32 %v6273_v40, %v867_v46  ;;  %s6443_s27 = sld [smem:[#allocation4 + $0xb]]  ;;  %s6445_s28 = sld [smem:[#allocation4 + $0x2f]] }
 0x14b   : > { %v878_v53 = vmul.f32 %v877_v47, %v6182_v43  ;;  %v879_v54 = vmul.f32 %v877_v47, %v6185_v44  ;;  %v880_v55 = vmul.f32 %v6270_v39, %v877_v47  ;;  %v881_v56 = vmul.f32 %v6273_v40, %v877_v47 }
 0x14c   : > { %v872_v57 = vadd.f32 %v868_v49, %v828_v17  ;;  %v873_v58 = vadd.f32 %v869_v50, %v829_v18  ;;  %v874_v59 = vadd.f32 %v870_v51, %v830_v19  ;;  %v875_v60 = vadd.f32 %v871_v52, %v831_v20  ;;  %v6304_v17 = vld [vmem:[%s6153_s14 + $0x32] sm:$0xff]  ;;  %v6307_v18 = vld [vmem:[%s6153_s14 + $0x3a] sm:$0xff] }
 0x14d   : > { %v882_v63 = vadd.f32 %v878_v53, %v838_v23  ;;  %v883_v0 = vadd.f32 %v879_v54, %v839_v24  ;;  %v884_v1 = vadd.f32 %v880_v55, %v840_v25  ;;  %v885_v2 = vadd.f32 %v881_v56, %v841_v26 }
 0x14e   : > { %v888_v5 = vmul.f32 %v887_v4, %v6182_v43  ;;  %v889_v6 = vmul.f32 %v887_v4, %v6185_v44  ;;  %v890_v7 = vmul.f32 %v6270_v39, %v887_v4  ;;  %v891_v8 = vmul.f32 %v6273_v40, %v887_v4 }
 0x14f   : > { %v898_v9 = vmul.f32 %v897_v48, %v6182_v43  ;;  %v899_v10 = vmul.f32 %v897_v48, %v6185_v44  ;;  %v900_v11 = vmul.f32 %v6270_v39, %v897_v48  ;;  %v901_v12 = vmul.f32 %v6273_v40, %v897_v48 }
 0x150   : > { %v892_v13 = vadd.f32 %v888_v5, %v848_v35  ;;  %v893_v14 = vadd.f32 %v889_v6, %v849_v36  ;;  %v894_v15 = vadd.f32 %v890_v7, %v850_v37  ;;  %v895_v16 = vadd.f32 %v891_v8, %v851_v38 }
 0x151   : > { %v902_v19 = vadd.f32 %v898_v9, %v858_v41  ;;  %v903_v20 = vadd.f32 %v899_v10, %v859_v42  ;;  %v904_v23 = vadd.f32 %v900_v11, %v860_v45  ;;  %v905_v43 = vadd.f32 %v901_v12, %v861_v3 }
 0x152   : > { %v911_v24 = vstv %s6279_s29  ;;  %v921_v25 = vstv %s6281_s30  ;;  %v931_v44 = vstv %s6287_s7  ;;  %v941_v26 = vstv %s6289_s8  ;;  %s6449_s29 = sld [smem:[#allocation4 + $0x53]]  ;;  %s6451_s30 = sld [smem:[#allocation4 + $0x77]] }
 0x153   : > { %v912_v27 = vmul.f32 %v911_v24, %v6210_v21  ;;  %v913_v28 = vmul.f32 %v911_v24, %v6213_v22  ;;  %v914_v29 = vmul.f32 %v6304_v17, %v911_v24  ;;  %v915_v30 = vmul.f32 %v6307_v18, %v911_v24  ;;  %s6471_s7 = sld [smem:[#allocation4 + $0xc]]  ;;  %s6473_s8 = sld [smem:[#allocation4 + $0x30]] }
 0x154   : > { %v922_v31 = vmul.f32 %v921_v25, %v6210_v21  ;;  %v923_v32 = vmul.f32 %v921_v25, %v6213_v22  ;;  %v924_v33 = vmul.f32 %v6304_v17, %v921_v25  ;;  %v925_v34 = vmul.f32 %v6307_v18, %v921_v25 }
 0x155   : > { %v916_v35 = vadd.f32 %v912_v27, %v872_v57  ;;  %v917_v36 = vadd.f32 %v913_v28, %v873_v58  ;;  %v918_v37 = vadd.f32 %v914_v29, %v874_v59  ;;  %v919_v38 = vadd.f32 %v915_v30, %v875_v60  ;;  %v4215_v57 = vld [vmem:[%s6153_s14 + $0x48] sm:$0xff]  ;;  %v4216_v58 = vld [vmem:[%s6153_s14 + $0x50] sm:$0xff] }
 0x156   : > { %v926_v41 = vadd.f32 %v922_v31, %v882_v63  ;;  %v927_v42 = vadd.f32 %v923_v32, %v883_v0  ;;  %v928_v45 = vadd.f32 %v924_v33, %v884_v1  ;;  %v929_v3 = vadd.f32 %v925_v34, %v885_v2 }
 0x157   : > { %v932_v46 = vmul.f32 %v931_v44, %v6210_v21  ;;  %v933_v47 = vmul.f32 %v931_v44, %v6213_v22  ;;  %v934_v4 = vmul.f32 %v6304_v17, %v931_v44  ;;  %v935_v48 = vmul.f32 %v6307_v18, %v931_v44 }
 0x158   : > { %v942_v49 = vmul.f32 %v941_v26, %v6210_v21  ;;  %v943_v50 = vmul.f32 %v941_v26, %v6213_v22  ;;  %v944_v51 = vmul.f32 %v6304_v17, %v941_v26  ;;  %v945_v52 = vmul.f32 %v6307_v18, %v941_v26 }
 0x159   : > { %v936_v53 = vadd.f32 %v932_v46, %v892_v13  ;;  %v937_v54 = vadd.f32 %v933_v47, %v893_v14  ;;  %v938_v55 = vadd.f32 %v934_v4, %v894_v15  ;;  %v939_v56 = vadd.f32 %v935_v48, %v895_v16 }
 0x15a   : > { %v946_v59 = vadd.f32 %v942_v49, %v902_v19  ;;  %v947_v60 = vadd.f32 %v943_v50, %v903_v20  ;;  %v948_v63 = vadd.f32 %v944_v51, %v904_v23  ;;  %v949_v0 = vadd.f32 %v945_v52, %v905_v43 }
 0x15b   : > { %v958_v1 = vstv %s6313_s9  ;;  %v968_v21 = vstv %s6315_s3  ;;  %v978_v2 = vstv %s6321_s10  ;;  %v988_v5 = vstv %s6323_s11  ;;  %s6477_s9 = sld [smem:[#allocation4 + $0x54]]  ;;  %s6479_s3 = sld [smem:[#allocation4 + $0x78]] }
 0x15c   : > { %v959_v22 = vmul.f32 %v6236_v61, %v958_v1  ;;  %v960_v6 = vmul.f32 %v6239_v62, %v958_v1  ;;  %v961_v7 = vmul.f32 %v4215_v57, %v958_v1  ;;  %v962_v8 = vmul.f32 %v4216_v58, %v958_v1  ;;  %s6497_s10 = sld [smem:[#allocation4 + $0xd]]  ;;  %s6499_s11 = sld [smem:[#allocation4 + $0x31]] }
 0x15d   : > { %v969_v9 = vmul.f32 %v6236_v61, %v968_v21  ;;  %v970_v10 = vmul.f32 %v6239_v62, %v968_v21  ;;  %v971_v11 = vmul.f32 %v4215_v57, %v968_v21  ;;  %v972_v12 = vmul.f32 %v4216_v58, %v968_v21 }
 0x15e   : > { %v963_v13 = vadd.f32 %v959_v22, %v916_v35  ;;  %v964_v14 = vadd.f32 %v960_v6, %v917_v36  ;;  %v965_v15 = vadd.f32 %v961_v7, %v918_v37  ;;  %v966_v16 = vadd.f32 %v962_v8, %v919_v38  ;;  %v4223_v35 = vld [vmem:[%s6153_s14 + $0x49] sm:$0xff]  ;;  %v4224_v36 = vld [vmem:[%s6153_s14 + $0x51] sm:$0xff] }
 0x15f   : > { %v973_v19 = vadd.f32 %v969_v9, %v926_v41  ;;  %v974_v20 = vadd.f32 %v970_v10, %v927_v42  ;;  %v975_v23 = vadd.f32 %v971_v11, %v928_v45  ;;  %v976_v43 = vadd.f32 %v972_v12, %v929_v3  ;;  %v4231_v11 = vld [vmem:[%s6153_s14 + $0x4a] sm:$0xff]  ;;  %v4232_v12 = vld [vmem:[%s6153_s14 + $0x52] sm:$0xff] }
 0x160   : > { %v979_v24 = vmul.f32 %v6236_v61, %v978_v2  ;;  %v980_v25 = vmul.f32 %v6239_v62, %v978_v2  ;;  %v981_v44 = vmul.f32 %v4215_v57, %v978_v2  ;;  %v982_v26 = vmul.f32 %v4216_v58, %v978_v2 }
 0x161   : > { %v989_v27 = vmul.f32 %v6236_v61, %v988_v5  ;;  %v990_v28 = vmul.f32 %v6239_v62, %v988_v5  ;;  %v991_v29 = vmul.f32 %v4215_v57, %v988_v5  ;;  %v992_v30 = vmul.f32 %v4216_v58, %v988_v5 }
 0x162   : > { %v983_v31 = vadd.f32 %v979_v24, %v936_v53  ;;  %v984_v32 = vadd.f32 %v980_v25, %v937_v54  ;;  %v985_v33 = vadd.f32 %v981_v44, %v938_v55  ;;  %v986_v34 = vadd.f32 %v982_v26, %v939_v56 }
 0x163   : > { %v993_v37 = vadd.f32 %v989_v27, %v946_v59  ;;  %v994_v38 = vadd.f32 %v990_v28, %v947_v60  ;;  %v995_v41 = vadd.f32 %v991_v29, %v948_v63  ;;  %v996_v42 = vadd.f32 %v992_v30, %v949_v0 }
 0x164   : > { %v1002_v45 = vstv %s6343_s12  ;;  %v1012_v3 = vstv %s6345_s13  ;;  %v1022_v46 = vstv %s6349_s15  ;;  %v1032_v61 = vstv %s6351_s16  ;;  %s6505_s12 = sld [smem:[#allocation4 + $0x55]]  ;;  %s6507_s13 = sld [smem:[#allocation4 + $0x79]] }
 0x165   : > { %v1003_v62 = vmul.f32 %v6270_v39, %v1002_v45  ;;  %v1004_v47 = vmul.f32 %v6273_v40, %v1002_v45  ;;  %v1005_v4 = vmul.f32 %v4223_v35, %v1002_v45  ;;  %v1006_v48 = vmul.f32 %v4224_v36, %v1002_v45  ;;  %s6531_s15 = sld [smem:[#allocation4 + $0xe]]  ;;  %s6533_s16 = sld [smem:[#allocation4 + $0x32]] }
 0x166   : > { %v1013_v49 = vmul.f32 %v6270_v39, %v1012_v3  ;;  %v1014_v50 = vmul.f32 %v6273_v40, %v1012_v3  ;;  %v1015_v51 = vmul.f32 %v4223_v35, %v1012_v3  ;;  %v1016_v52 = vmul.f32 %v4224_v36, %v1012_v3 }
 0x167   : > { %v1007_v53 = vadd.f32 %v1003_v62, %v963_v13  ;;  %v1008_v54 = vadd.f32 %v1004_v47, %v964_v14  ;;  %v1009_v55 = vadd.f32 %v1005_v4, %v965_v15  ;;  %v1010_v56 = vadd.f32 %v1006_v48, %v966_v16  ;;  %v4237_v62 = vld [vmem:[%s6153_s14 + $0x1b0] sm:$0xff] }
 0x168   : > { %v1017_v57 = vadd.f32 %v1013_v49, %v973_v19  ;;  %v1018_v58 = vadd.f32 %v1014_v50, %v974_v20  ;;  %v1019_v59 = vadd.f32 %v1015_v51, %v975_v23  ;;  %v1020_v60 = vadd.f32 %v1016_v52, %v976_v43  ;;  %v4238_v50 = vld [vmem:[%s6153_s14 + $0x1b8] sm:$0xff]  ;;  %v6406_v51 = vld [vmem:[%s6153_s14 + $0x1c8] sm:$0xff]  ;;  %v6409_v52 = vld [vmem:[%s6153_s14 + $0x1d0] sm:$0xff] }
 0x169   : > { %v1023_v63 = vmul.f32 %v6270_v39, %v1022_v46  ;;  %v1024_v0 = vmul.f32 %v6273_v40, %v1022_v46  ;;  %v1025_v1 = vmul.f32 %v4223_v35, %v1022_v46  ;;  %v1026_v21 = vmul.f32 %v4224_v36, %v1022_v46 }
 0x16a   : > { %v1033_v2 = vmul.f32 %v6270_v39, %v1032_v61  ;;  %v1034_v5 = vmul.f32 %v6273_v40, %v1032_v61  ;;  %v1035_v22 = vmul.f32 %v4223_v35, %v1032_v61  ;;  %v1036_v6 = vmul.f32 %v4224_v36, %v1032_v61 }
 0x16b   : > { %v1027_v7 = vadd.f32 %v1023_v63, %v983_v31  ;;  %v1028_v8 = vadd.f32 %v1024_v0, %v984_v32  ;;  %v1029_v9 = vadd.f32 %v1025_v1, %v985_v33  ;;  %v1030_v10 = vadd.f32 %v1026_v21, %v986_v34 }
 0x16c   : > { %v1037_v13 = vadd.f32 %v1033_v2, %v993_v37  ;;  %v1038_v14 = vadd.f32 %v1034_v5, %v994_v38  ;;  %v1039_v15 = vadd.f32 %v1035_v22, %v995_v41  ;;  %v1040_v16 = vadd.f32 %v1036_v6, %v996_v42 }
 0x16d   : > { %v1046_v19 = vstv %s6365_s17  ;;  %v1056_v20 = vstv %s6367_s18  ;;  %v1066_v23 = vstv %s6371_s19  ;;  %v1076_v39 = vstv %s6373_s20  ;;  %s6539_s17 = sld [smem:[#allocation4 + $0x56]]  ;;  %s6541_s18 = sld [smem:[#allocation4 + $0x7a]] }
 0x16e   : > { %v1047_v40 = vmul.f32 %v6304_v17, %v1046_v19  ;;  %v1048_v43 = vmul.f32 %v6307_v18, %v1046_v19  ;;  %v1049_v24 = vmul.f32 %v4231_v11, %v1046_v19  ;;  %v1050_v25 = vmul.f32 %v4232_v12, %v1046_v19  ;;  %s6565_s19 = sld [smem:[#allocation4 + $0xf]]  ;;  %s6567_s20 = sld [smem:[#allocation4 + $0x33]] }
 0x16f   : > { %v1057_v44 = vmul.f32 %v6304_v17, %v1056_v20  ;;  %v1058_v26 = vmul.f32 %v6307_v18, %v1056_v20  ;;  %v1059_v27 = vmul.f32 %v4231_v11, %v1056_v20  ;;  %v1060_v28 = vmul.f32 %v4232_v12, %v1056_v20 }
 0x170   : > { %v1051_v29 = vadd.f32 %v1047_v40, %v1007_v53  ;;  %v1052_v30 = vadd.f32 %v1048_v43, %v1008_v54  ;;  %v1053_v31 = vadd.f32 %v1049_v24, %v1009_v55  ;;  %v1054_v32 = vadd.f32 %v1050_v25, %v1010_v56  ;;  %v4245_v40 = vld [vmem:[%s6153_s14 + $0x1b1] sm:$0xff] }
 0x171   : > { %v1061_v33 = vadd.f32 %v1057_v44, %v1017_v57  ;;  %v1062_v34 = vadd.f32 %v1058_v26, %v1018_v58  ;;  %v1063_v35 = vadd.f32 %v1059_v27, %v1019_v59  ;;  %v1064_v36 = vadd.f32 %v1060_v28, %v1020_v60  ;;  %v4246_v26 = vld [vmem:[%s6153_s14 + $0x1b9] sm:$0xff]  ;;  %v6434_v27 = vld [vmem:[%s6153_s14 + $0x1c9] sm:$0xff]  ;;  %v6437_v28 = vld [vmem:[%s6153_s14 + $0x1d1] sm:$0xff] }
 0x172   : > { %v1067_v37 = vmul.f32 %v6304_v17, %v1066_v23  ;;  %v1068_v38 = vmul.f32 %v6307_v18, %v1066_v23  ;;  %v1069_v41 = vmul.f32 %v4231_v11, %v1066_v23  ;;  %v1070_v42 = vmul.f32 %v4232_v12, %v1066_v23 }
 0x173   : > { %v1077_v45 = vmul.f32 %v6304_v17, %v1076_v39  ;;  %v1078_v3 = vmul.f32 %v6307_v18, %v1076_v39  ;;  %v1079_v46 = vmul.f32 %v4231_v11, %v1076_v39  ;;  %v1080_v61 = vmul.f32 %v4232_v12, %v1076_v39 }
 0x174   : > { %v1071_v47 = vadd.f32 %v1067_v37, %v1027_v7  ;;  %v1072_v4 = vadd.f32 %v1068_v38, %v1028_v8  ;;  %v1073_v48 = vadd.f32 %v1069_v41, %v1029_v9  ;;  %v1074_v49 = vadd.f32 %v1070_v42, %v1030_v10 }
 0x175   : > { %v1081_v53 = vadd.f32 %v1077_v45, %v1037_v13  ;;  %v1082_v17 = vadd.f32 %v1078_v3, %v1038_v14  ;;  %v1083_v54 = vadd.f32 %v1079_v46, %v1039_v15  ;;  %v1084_v55 = vadd.f32 %v1080_v61, %v1040_v16 }
 0x176   : > { %v1092_v18 = vstv %s6387_s21  ;;  %v1102_v56 = vstv %s6389_s22  ;;  %v1112_v57 = vstv %s6393_s23  ;;  %v1122_v58 = vstv %s6395_s24  ;;  %s6573_s21 = sld [smem:[#allocation4 + $0x57]]  ;;  %s6575_s22 = sld [smem:[#allocation4 + $0x7b]] }
 0x177   : > { %v1093_v59 = vmul.f32 %v4237_v62, %v1092_v18  ;;  %v1094_v60 = vmul.f32 %v4238_v50, %v1092_v18  ;;  %v1095_v63 = vmul.f32 %v6406_v51, %v1092_v18  ;;  %v1096_v0 = vmul.f32 %v6409_v52, %v1092_v18  ;;  %s6595_s23 = sld [smem:[#allocation4 + $0x10]]  ;;  %s6597_s24 = sld [smem:[#allocation4 + $0x34]] }
 0x178   : > { %v1103_v1 = vmul.f32 %v4237_v62, %v1102_v56  ;;  %v1104_v21 = vmul.f32 %v4238_v50, %v1102_v56  ;;  %v1105_v2 = vmul.f32 %v6406_v51, %v1102_v56  ;;  %v1106_v5 = vmul.f32 %v6409_v52, %v1102_v56 }
 0x179   : > { %v1097_v22 = vadd.f32 %v1093_v59, %v1051_v29  ;;  %v1098_v6 = vadd.f32 %v1094_v60, %v1052_v30  ;;  %v1099_v7 = vadd.f32 %v1095_v63, %v1053_v31  ;;  %v1100_v8 = vadd.f32 %v1096_v0, %v1054_v32  ;;  %v4253_v63 = vld [vmem:[%s6153_s14 + $0x1b2] sm:$0xff] }
 0x17a   : > { %v1107_v9 = vadd.f32 %v1103_v1, %v1061_v33  ;;  %v1108_v10 = vadd.f32 %v1104_v21, %v1062_v34  ;;  %v1109_v11 = vadd.f32 %v1105_v2, %v1063_v35  ;;  %v1110_v12 = vadd.f32 %v1106_v5, %v1064_v36  ;;  %v4254_v5 = vld [vmem:[%s6153_s14 + $0x1ba] sm:$0xff] }
 0x17b   : > { %v1113_v13 = vmul.f32 %v4237_v62, %v1112_v57  ;;  %v1114_v14 = vmul.f32 %v4238_v50, %v1112_v57  ;;  %v1115_v15 = vmul.f32 %v6406_v51, %v1112_v57  ;;  %v1116_v16 = vmul.f32 %v6409_v52, %v1112_v57 }
 0x17c   : > { %v1123_v19 = vmul.f32 %v4237_v62, %v1122_v58  ;;  %v1124_v20 = vmul.f32 %v4238_v50, %v1122_v58  ;;  %v1125_v23 = vmul.f32 %v6406_v51, %v1122_v58  ;;  %v1126_v39 = vmul.f32 %v6409_v52, %v1122_v58 }
 0x17d   : > { %v1117_v43 = vadd.f32 %v1113_v13, %v1071_v47  ;;  %v1118_v24 = vadd.f32 %v1114_v14, %v1072_v4  ;;  %v1119_v25 = vadd.f32 %v1115_v15, %v1073_v48  ;;  %v1120_v44 = vadd.f32 %v1116_v16, %v1074_v49 }
 0x17e   : > { %v1127_v29 = vadd.f32 %v1123_v19, %v1081_v53  ;;  %v1128_v30 = vadd.f32 %v1124_v20, %v1082_v17  ;;  %v1129_v31 = vadd.f32 %v1125_v23, %v1083_v54  ;;  %v1130_v32 = vadd.f32 %v1126_v39, %v1084_v55 }
 0x17f   : > { %v1136_v33 = vstv %s6415_s25  ;;  %v1146_v34 = vstv %s6417_s26  ;;  %v1156_v35 = vstv %s6421_s2  ;;  %v1166_v36 = vstv %s6423_s1  ;;  %s6601_s25 = sld [smem:[#allocation4 + $0x58]]  ;;  %s6603_s26 = sld [smem:[#allocation4 + $0x7c]] }
 0x180   : > { %v1137_v37 = vmul.f32 %v4245_v40, %v1136_v33  ;;  %v1138_v38 = vmul.f32 %v4246_v26, %v1136_v33  ;;  %v1139_v41 = vmul.f32 %v6434_v27, %v1136_v33  ;;  %v1140_v42 = vmul.f32 %v6437_v28, %v1136_v33  ;;  %s6617_s2 = sld [smem:[#allocation4 + $0x11]]  ;;  %s6619_s1 = sld [smem:[#allocation4 + $0x35]] }
 0x181   : > { %v1147_v45 = vmul.f32 %v4245_v40, %v1146_v34  ;;  %v1148_v3 = vmul.f32 %v4246_v26, %v1146_v34  ;;  %v1149_v46 = vmul.f32 %v6434_v27, %v1146_v34  ;;  %v1150_v61 = vmul.f32 %v6437_v28, %v1146_v34 }
 0x182   : > { %v1141_v62 = vadd.f32 %v1137_v37, %v1097_v22  ;;  %v1142_v47 = vadd.f32 %v1138_v38, %v1098_v6  ;;  %v1143_v4 = vadd.f32 %v1139_v41, %v1099_v7  ;;  %v1144_v48 = vadd.f32 %v1140_v42, %v1100_v8  ;;  %v6462_v22 = vld [vmem:[%s6153_s14 + $0x1ca] sm:$0xff]  ;;  %v6465_v6 = vld [vmem:[%s6153_s14 + $0x1d2] sm:$0xff] }
 0x183   : > { %v1151_v49 = vadd.f32 %v1147_v45, %v1107_v9  ;;  %v1152_v50 = vadd.f32 %v1148_v3, %v1108_v10  ;;  %v1153_v53 = vadd.f32 %v1149_v46, %v1109_v11  ;;  %v1154_v17 = vadd.f32 %v1150_v61, %v1110_v12 }
 0x184   : > { %v1157_v54 = vmul.f32 %v4245_v40, %v1156_v35  ;;  %v1158_v55 = vmul.f32 %v4246_v26, %v1156_v35  ;;  %v1159_v18 = vmul.f32 %v6434_v27, %v1156_v35  ;;  %v1160_v56 = vmul.f32 %v6437_v28, %v1156_v35 }
 0x185   : > { %v1167_v57 = vmul.f32 %v4245_v40, %v1166_v36  ;;  %v1168_v58 = vmul.f32 %v4246_v26, %v1166_v36  ;;  %v1169_v59 = vmul.f32 %v6434_v27, %v1166_v36  ;;  %v1170_v60 = vmul.f32 %v6437_v28, %v1166_v36 }
 0x186   : > { %v1161_v0 = vadd.f32 %v1157_v54, %v1117_v43  ;;  %v1162_v1 = vadd.f32 %v1158_v55, %v1118_v24  ;;  %v1163_v21 = vadd.f32 %v1159_v18, %v1119_v25  ;;  %v1164_v2 = vadd.f32 %v1160_v56, %v1120_v44 }
 0x187   : > { %v1171_v7 = vadd.f32 %v1167_v57, %v1127_v29  ;;  %v1172_v8 = vadd.f32 %v1168_v58, %v1128_v30  ;;  %v1173_v9 = vadd.f32 %v1169_v59, %v1129_v31  ;;  %v1174_v10 = vadd.f32 %v1170_v60, %v1130_v32 }
 0x188   : > { %v1180_v11 = vstv %s6443_s27  ;;  %v1190_v12 = vstv %s6445_s28  ;;  %v1200_v13 = vstv %s6449_s29  ;;  %v1210_v14 = vstv %s6451_s30  ;;  %s6623_s27 = sld [smem:[#allocation4 + $0x59]]  ;;  %s6625_s28 = sld [smem:[#allocation4 + $0x7d]] }
 0x189   : > { %v1181_v15 = vmul.f32 %v4253_v63, %v1180_v11  ;;  %v1182_v16 = vmul.f32 %v4254_v5, %v1180_v11  ;;  %v1183_v19 = vmul.f32 %v6462_v22, %v1180_v11  ;;  %v1184_v20 = vmul.f32 %v6465_v6, %v1180_v11  ;;  %s6639_s29 = sld [smem:[#allocation4 + $0x12]]  ;;  %s6641_s30 = sld [smem:[#allocation4 + $0x36]] }
 0x18a   : > { %v1191_v23 = vmul.f32 %v4253_v63, %v1190_v12  ;;  %v1192_v39 = vmul.f32 %v4254_v5, %v1190_v12  ;;  %v1193_v40 = vmul.f32 %v6462_v22, %v1190_v12  ;;  %v1194_v43 = vmul.f32 %v6465_v6, %v1190_v12 }
 0x18b   : > { %v1185_v24 = vadd.f32 %v1181_v15, %v1141_v62  ;;  %v1186_v25 = vadd.f32 %v1182_v16, %v1142_v47  ;;  %v1187_v44 = vadd.f32 %v1183_v19, %v1143_v4  ;;  %v1188_v26 = vadd.f32 %v1184_v20, %v1144_v48  ;;  %v6488_v62 = vld [vmem:[%s6153_s14 + $0x1e0] sm:$0xff]  ;;  %v6491_v47 = vld [vmem:[%s6153_s14 + $0x1e8] sm:$0xff] }
 0x18c   : > { %v1195_v29 = vadd.f32 %v1191_v23, %v1151_v49  ;;  %v1196_v30 = vadd.f32 %v1192_v39, %v1152_v50  ;;  %v1197_v31 = vadd.f32 %v1193_v40, %v1153_v53  ;;  %v1198_v32 = vadd.f32 %v1194_v43, %v1154_v17 }
 0x18d   : > { %v1201_v33 = vmul.f32 %v4253_v63, %v1200_v13  ;;  %v1202_v34 = vmul.f32 %v4254_v5, %v1200_v13  ;;  %v1203_v35 = vmul.f32 %v6462_v22, %v1200_v13  ;;  %v1204_v36 = vmul.f32 %v6465_v6, %v1200_v13 }
 0x18e   : > { %v1211_v37 = vmul.f32 %v4253_v63, %v1210_v14  ;;  %v1212_v38 = vmul.f32 %v4254_v5, %v1210_v14  ;;  %v1213_v41 = vmul.f32 %v6462_v22, %v1210_v14  ;;  %v1214_v42 = vmul.f32 %v6465_v6, %v1210_v14 }
 0x18f   : > { %v1205_v45 = vadd.f32 %v1201_v33, %v1161_v0  ;;  %v1206_v3 = vadd.f32 %v1202_v34, %v1162_v1  ;;  %v1207_v46 = vadd.f32 %v1203_v35, %v1163_v21  ;;  %v1208_v61 = vadd.f32 %v1204_v36, %v1164_v2 }
 0x190   : > { %v1215_v4 = vadd.f32 %v1211_v37, %v1171_v7  ;;  %v1216_v48 = vadd.f32 %v1212_v38, %v1172_v8  ;;  %v1217_v49 = vadd.f32 %v1213_v41, %v1173_v9  ;;  %v1218_v50 = vadd.f32 %v1214_v42, %v1174_v10 }
 0x191   : > { %v1226_v53 = vstv %s6471_s7  ;;  %v1236_v17 = vstv %s6473_s8  ;;  %v1246_v54 = vstv %s6477_s9  ;;  %v1256_v55 = vstv %s6479_s3  ;;  %s6645_s7 = sld [smem:[#allocation4 + $0x5a]]  ;;  %s6647_s8 = sld [smem:[#allocation4 + $0x7e]] }
 0x192   : > { %v1227_v18 = vmul.f32 %v6406_v51, %v1226_v53  ;;  %v1228_v56 = vmul.f32 %v6409_v52, %v1226_v53  ;;  %v1229_v57 = vmul.f32 %v6488_v62, %v1226_v53  ;;  %v1230_v58 = vmul.f32 %v6491_v47, %v1226_v53  ;;  %s6667_s9 = sld [smem:[#allocation4 + $0x13]]  ;;  %s6669_s3 = sld [smem:[#allocation4 + $0x37]] }
 0x193   : > { %v1237_v59 = vmul.f32 %v6406_v51, %v1236_v17  ;;  %v1238_v60 = vmul.f32 %v6409_v52, %v1236_v17  ;;  %v1239_v63 = vmul.f32 %v6488_v62, %v1236_v17  ;;  %v1240_v0 = vmul.f32 %v6491_v47, %v1236_v17 }
 0x194   : > { %v1231_v1 = vadd.f32 %v1227_v18, %v1185_v24  ;;  %v1232_v21 = vadd.f32 %v1228_v56, %v1186_v25  ;;  %v1233_v2 = vadd.f32 %v1229_v57, %v1187_v44  ;;  %v1234_v5 = vadd.f32 %v1230_v58, %v1188_v26  ;;  %v6522_v24 = vld [vmem:[%s6153_s14 + $0x1e1] sm:$0xff]  ;;  %v6525_v25 = vld [vmem:[%s6153_s14 + $0x1e9] sm:$0xff] }
 0x195   : > { %v1241_v7 = vadd.f32 %v1237_v59, %v1195_v29  ;;  %v1242_v8 = vadd.f32 %v1238_v60, %v1196_v30  ;;  %v1243_v9 = vadd.f32 %v1239_v63, %v1197_v31  ;;  %v1244_v10 = vadd.f32 %v1240_v0, %v1198_v32 }
 0x196   : > { %v1247_v11 = vmul.f32 %v6406_v51, %v1246_v54  ;;  %v1248_v12 = vmul.f32 %v6409_v52, %v1246_v54  ;;  %v1249_v13 = vmul.f32 %v6488_v62, %v1246_v54  ;;  %v1250_v14 = vmul.f32 %v6491_v47, %v1246_v54 }
 0x197   : > { %v1257_v15 = vmul.f32 %v6406_v51, %v1256_v55  ;;  %v1258_v16 = vmul.f32 %v6409_v52, %v1256_v55  ;;  %v1259_v19 = vmul.f32 %v6488_v62, %v1256_v55  ;;  %v1260_v20 = vmul.f32 %v6491_v47, %v1256_v55 }
 0x198   : > { %v1251_v23 = vadd.f32 %v1247_v11, %v1205_v45  ;;  %v1252_v39 = vadd.f32 %v1248_v12, %v1206_v3  ;;  %v1253_v40 = vadd.f32 %v1249_v13, %v1207_v46  ;;  %v1254_v43 = vadd.f32 %v1250_v14, %v1208_v61 }
 0x199   : > { %v1261_v44 = vadd.f32 %v1257_v15, %v1215_v4  ;;  %v1262_v26 = vadd.f32 %v1258_v16, %v1216_v48  ;;  %v1263_v29 = vadd.f32 %v1259_v19, %v1217_v49  ;;  %v1264_v51 = vadd.f32 %v1260_v20, %v1218_v50 }
 0x19a   : > { %v1270_v30 = vstv %s6497_s10  ;;  %v1280_v31 = vstv %s6499_s11  ;;  %v1290_v52 = vstv %s6505_s12  ;;  %v1300_v32 = vstv %s6507_s13  ;;  %s6673_s10 = sld [smem:[#allocation4 + $0x5b]]  ;;  %s6675_s11 = sld [smem:[#allocation4 + $0x7f]] }
 0x19b   : > { %v1271_v33 = vmul.f32 %v6434_v27, %v1270_v30  ;;  %v1272_v34 = vmul.f32 %v6437_v28, %v1270_v30  ;;  %v1273_v35 = vmul.f32 %v6522_v24, %v1270_v30  ;;  %v1274_v36 = vmul.f32 %v6525_v25, %v1270_v30  ;;  %s6695_s12 = sld [smem:[#allocation4 + $0x14]]  ;;  %s6697_s13 = sld [smem:[#allocation4 + $0x38]] }
 0x19c   : > { %v1281_v37 = vmul.f32 %v6434_v27, %v1280_v31  ;;  %v1282_v38 = vmul.f32 %v6437_v28, %v1280_v31  ;;  %v1283_v41 = vmul.f32 %v6522_v24, %v1280_v31  ;;  %v1284_v42 = vmul.f32 %v6525_v25, %v1280_v31 }
 0x19d   : > { %v1275_v45 = vadd.f32 %v1271_v33, %v1231_v1  ;;  %v1276_v3 = vadd.f32 %v1272_v34, %v1232_v21  ;;  %v1277_v46 = vadd.f32 %v1273_v35, %v1233_v2  ;;  %v1278_v61 = vadd.f32 %v1274_v36, %v1234_v5  ;;  %v6556_v1 = vld [vmem:[%s6153_s14 + $0x1e2] sm:$0xff]  ;;  %v6559_v21 = vld [vmem:[%s6153_s14 + $0x1ea] sm:$0xff] }
 0x19e   : > { %v1285_v4 = vadd.f32 %v1281_v37, %v1241_v7  ;;  %v1286_v48 = vadd.f32 %v1282_v38, %v1242_v8  ;;  %v1287_v49 = vadd.f32 %v1283_v41, %v1243_v9  ;;  %v1288_v50 = vadd.f32 %v1284_v42, %v1244_v10 }
 0x19f   : > { %v1291_v53 = vmul.f32 %v6434_v27, %v1290_v52  ;;  %v1292_v17 = vmul.f32 %v6437_v28, %v1290_v52  ;;  %v1293_v54 = vmul.f32 %v6522_v24, %v1290_v52  ;;  %v1294_v55 = vmul.f32 %v6525_v25, %v1290_v52 }
 0x1a0   : > { %v1301_v18 = vmul.f32 %v6434_v27, %v1300_v32  ;;  %v1302_v56 = vmul.f32 %v6437_v28, %v1300_v32  ;;  %v1303_v57 = vmul.f32 %v6522_v24, %v1300_v32  ;;  %v1304_v58 = vmul.f32 %v6525_v25, %v1300_v32 }
 0x1a1   : > { %v1295_v59 = vadd.f32 %v1291_v53, %v1251_v23  ;;  %v1296_v60 = vadd.f32 %v1292_v17, %v1252_v39  ;;  %v1297_v63 = vadd.f32 %v1293_v54, %v1253_v40  ;;  %v1298_v0 = vadd.f32 %v1294_v55, %v1254_v43 }
 0x1a2   : > { %v1305_v2 = vadd.f32 %v1301_v18, %v1261_v44  ;;  %v1306_v5 = vadd.f32 %v1302_v56, %v1262_v26  ;;  %v1307_v7 = vadd.f32 %v1303_v57, %v1263_v29  ;;  %v1308_v27 = vadd.f32 %v1304_v58, %v1264_v51 }
 0x1a3   : > { %v1314_v8 = vstv %s6531_s15  ;;  %v1324_v9 = vstv %s6533_s16  ;;  %v1334_v28 = vstv %s6539_s17  ;;  %v1344_v10 = vstv %s6541_s18  ;;  %s6701_s15 = sld [smem:[#allocation4 + $0x5c]]  ;;  %s6703_s16 = sld [smem:[#allocation4 + $0x80]] }
 0x1a4   : > { %v1315_v11 = vmul.f32 %v6462_v22, %v1314_v8  ;;  %v1316_v12 = vmul.f32 %v6465_v6, %v1314_v8  ;;  %v1317_v13 = vmul.f32 %v6556_v1, %v1314_v8  ;;  %v1318_v14 = vmul.f32 %v6559_v21, %v1314_v8  ;;  %s6723_s17 = sld [smem:[#allocation4 + $0x15]]  ;;  %s6725_s18 = sld [smem:[#allocation4 + $0x39]] }
 0x1a5   : > { %v1325_v15 = vmul.f32 %v6462_v22, %v1324_v9  ;;  %v1326_v16 = vmul.f32 %v6465_v6, %v1324_v9  ;;  %v1327_v19 = vmul.f32 %v6556_v1, %v1324_v9  ;;  %v1328_v20 = vmul.f32 %v6559_v21, %v1324_v9 }
 0x1a6   : > { %v1319_v23 = vadd.f32 %v1315_v11, %v1275_v45  ;;  %v1320_v39 = vadd.f32 %v1316_v12, %v1276_v3  ;;  %v1321_v40 = vadd.f32 %v1317_v13, %v1277_v46  ;;  %v1322_v43 = vadd.f32 %v1318_v14, %v1278_v61  ;;  %v4291_v45 = vld [vmem:[%s6153_s14 + $0x1f8] sm:$0xff]  ;;  %v4292_v3 = vld [vmem:[%s6153_s14 + $0x200] sm:$0xff] }
 0x1a7   : > { %v1329_v44 = vadd.f32 %v1325_v15, %v1285_v4  ;;  %v1330_v26 = vadd.f32 %v1326_v16, %v1286_v48  ;;  %v1331_v29 = vadd.f32 %v1327_v19, %v1287_v49  ;;  %v1332_v51 = vadd.f32 %v1328_v20, %v1288_v50 }
 0x1a8   : > { %v1335_v30 = vmul.f32 %v6462_v22, %v1334_v28  ;;  %v1336_v31 = vmul.f32 %v6465_v6, %v1334_v28  ;;  %v1337_v52 = vmul.f32 %v6556_v1, %v1334_v28  ;;  %v1338_v32 = vmul.f32 %v6559_v21, %v1334_v28 }
 0x1a9   : > { %v1345_v33 = vmul.f32 %v6462_v22, %v1344_v10  ;;  %v1346_v34 = vmul.f32 %v6465_v6, %v1344_v10  ;;  %v1347_v35 = vmul.f32 %v6556_v1, %v1344_v10  ;;  %v1348_v36 = vmul.f32 %v6559_v21, %v1344_v10 }
 0x1aa   : > { %v1339_v37 = vadd.f32 %v1335_v30, %v1295_v59  ;;  %v1340_v38 = vadd.f32 %v1336_v31, %v1296_v60  ;;  %v1341_v41 = vadd.f32 %v1337_v52, %v1297_v63  ;;  %v1342_v42 = vadd.f32 %v1338_v32, %v1298_v0 }
 0x1ab   : > { %v1349_v46 = vadd.f32 %v1345_v33, %v1305_v2  ;;  %v1350_v61 = vadd.f32 %v1346_v34, %v1306_v5  ;;  %v1351_v4 = vadd.f32 %v1347_v35, %v1307_v7  ;;  %v1352_v48 = vadd.f32 %v1348_v36, %v1308_v27 }
 0x1ac   : > { %v1360_v49 = vstv %s6565_s19  ;;  %v1370_v22 = vstv %s6567_s20  ;;  %v1380_v50 = vstv %s6573_s21  ;;  %v1390_v53 = vstv %s6575_s22  ;;  %s6729_s19 = sld [smem:[#allocation4 + $0x5d]]  ;;  %s6731_s20 = sld [smem:[#allocation4 + $0x81]] }
 0x1ad   : > { %v1361_v6 = vmul.f32 %v6488_v62, %v1360_v49  ;;  %v1362_v17 = vmul.f32 %v6491_v47, %v1360_v49  ;;  %v1363_v54 = vmul.f32 %v4291_v45, %v1360_v49  ;;  %v1364_v55 = vmul.f32 %v4292_v3, %v1360_v49  ;;  %s6749_s21 = sld [smem:[#allocation4 + $0x16]]  ;;  %s6751_s22 = sld [smem:[#allocation4 + $0x3a]] }
 0x1ae   : > { %v1371_v18 = vmul.f32 %v6488_v62, %v1370_v22  ;;  %v1372_v56 = vmul.f32 %v6491_v47, %v1370_v22  ;;  %v1373_v57 = vmul.f32 %v4291_v45, %v1370_v22  ;;  %v1374_v58 = vmul.f32 %v4292_v3, %v1370_v22 }
 0x1af   : > { %v1365_v59 = vadd.f32 %v1361_v6, %v1319_v23  ;;  %v1366_v60 = vadd.f32 %v1362_v17, %v1320_v39  ;;  %v1367_v63 = vadd.f32 %v1363_v54, %v1321_v40  ;;  %v1368_v0 = vadd.f32 %v1364_v55, %v1322_v43  ;;  %v4299_v23 = vld [vmem:[%s6153_s14 + $0x1f9] sm:$0xff]  ;;  %v4300_v39 = vld [vmem:[%s6153_s14 + $0x201] sm:$0xff] }
 0x1b0   : > { %v1375_v2 = vadd.f32 %v1371_v18, %v1329_v44  ;;  %v1376_v5 = vadd.f32 %v1372_v56, %v1330_v26  ;;  %v1377_v7 = vadd.f32 %v1373_v57, %v1331_v29  ;;  %v1378_v27 = vadd.f32 %v1374_v58, %v1332_v51  ;;  %v4307_v57 = vld [vmem:[%s6153_s14 + $0x1fa] sm:$0xff]  ;;  %v4308_v58 = vld [vmem:[%s6153_s14 + $0x202] sm:$0xff] }
 0x1b1   : > { %v1381_v8 = vmul.f32 %v6488_v62, %v1380_v50  ;;  %v1382_v9 = vmul.f32 %v6491_v47, %v1380_v50  ;;  %v1383_v28 = vmul.f32 %v4291_v45, %v1380_v50  ;;  %v1384_v10 = vmul.f32 %v4292_v3, %v1380_v50 }
 0x1b2   : > { %v1391_v11 = vmul.f32 %v6488_v62, %v1390_v53  ;;  %v1392_v12 = vmul.f32 %v6491_v47, %v1390_v53  ;;  %v1393_v13 = vmul.f32 %v4291_v45, %v1390_v53  ;;  %v1394_v14 = vmul.f32 %v4292_v3, %v1390_v53 }
 0x1b3   : > { %v1385_v15 = vadd.f32 %v1381_v8, %v1339_v37  ;;  %v1386_v16 = vadd.f32 %v1382_v9, %v1340_v38  ;;  %v1387_v19 = vadd.f32 %v1383_v28, %v1341_v41  ;;  %v1388_v20 = vadd.f32 %v1384_v10, %v1342_v42 }
 0x1b4   : > { %v1395_v40 = vadd.f32 %v1391_v11, %v1349_v46  ;;  %v1396_v43 = vadd.f32 %v1392_v12, %v1350_v61  ;;  %v1397_v44 = vadd.f32 %v1393_v13, %v1351_v4  ;;  %v1398_v26 = vadd.f32 %v1394_v14, %v1352_v48 }
 0x1b5   : > { %v1404_v29 = vstv %s6595_s23  ;;  %v1414_v51 = vstv %s6597_s24  ;;  %v1424_v30 = vstv %s6601_s25  ;;  %v1434_v62 = vstv %s6603_s26  ;;  %s6757_s23 = sld [smem:[#allocation4 + $0x5e]]  ;;  %s6759_s24 = sld [smem:[#allocation4 + $0x82]] }
 0x1b6   : > { %v1405_v47 = vmul.f32 %v6522_v24, %v1404_v29  ;;  %v1406_v31 = vmul.f32 %v6525_v25, %v1404_v29  ;;  %v1407_v52 = vmul.f32 %v4299_v23, %v1404_v29  ;;  %v1408_v32 = vmul.f32 %v4300_v39, %v1404_v29  ;;  %s6783_s25 = sld [smem:[#allocation4 + $0x17]]  ;;  %s6785_s26 = sld [smem:[#allocation4 + $0x3b]] }
 0x1b7   : > { %v1415_v33 = vmul.f32 %v6522_v24, %v1414_v51  ;;  %v1416_v34 = vmul.f32 %v6525_v25, %v1414_v51  ;;  %v1417_v35 = vmul.f32 %v4299_v23, %v1414_v51  ;;  %v1418_v36 = vmul.f32 %v4300_v39, %v1414_v51 }
 0x1b8   : > { %v1409_v37 = vadd.f32 %v1405_v47, %v1365_v59  ;;  %v1410_v38 = vadd.f32 %v1406_v31, %v1366_v60  ;;  %v1411_v41 = vadd.f32 %v1407_v52, %v1367_v63  ;;  %v1412_v42 = vadd.f32 %v1408_v32, %v1368_v0  ;;  %v4313_v47 = vld [vmem:[%s6153_s14 + $0x360] sm:$0xff] }
 0x1b9   : > { %v1419_v45 = vadd.f32 %v1415_v33, %v1375_v2  ;;  %v1420_v3 = vadd.f32 %v1416_v34, %v1376_v5  ;;  %v1421_v46 = vadd.f32 %v1417_v35, %v1377_v7  ;;  %v1422_v61 = vadd.f32 %v1418_v36, %v1378_v27  ;;  %v4314_v34 = vld [vmem:[%s6153_s14 + $0x368] sm:$0xff]  ;;  %v6658_v35 = vld [vmem:[%s6153_s14 + $0x378] sm:$0xff]  ;;  %v6661_v36 = vld [vmem:[%s6153_s14 + $0x380] sm:$0xff] }
 0x1ba   : > { %v1425_v4 = vmul.f32 %v6522_v24, %v1424_v30  ;;  %v1426_v48 = vmul.f32 %v6525_v25, %v1424_v30  ;;  %v1427_v49 = vmul.f32 %v4299_v23, %v1424_v30  ;;  %v1428_v22 = vmul.f32 %v4300_v39, %v1424_v30 }
 0x1bb   : > { %v1435_v50 = vmul.f32 %v6522_v24, %v1434_v62  ;;  %v1436_v53 = vmul.f32 %v6525_v25, %v1434_v62  ;;  %v1437_v6 = vmul.f32 %v4299_v23, %v1434_v62  ;;  %v1438_v17 = vmul.f32 %v4300_v39, %v1434_v62 }
 0x1bc   : > { %v1429_v54 = vadd.f32 %v1425_v4, %v1385_v15  ;;  %v1430_v55 = vadd.f32 %v1426_v48, %v1386_v16  ;;  %v1431_v18 = vadd.f32 %v1427_v49, %v1387_v19  ;;  %v1432_v56 = vadd.f32 %v1428_v22, %v1388_v20 }
 0x1bd   : > { %v1439_v59 = vadd.f32 %v1435_v50, %v1395_v40  ;;  %v1440_v60 = vadd.f32 %v1436_v53, %v1396_v43  ;;  %v1441_v63 = vadd.f32 %v1437_v6, %v1397_v44  ;;  %v1442_v0 = vadd.f32 %v1438_v17, %v1398_v26 }
 0x1be   : > { %v1448_v2 = vstv %s6617_s2  ;;  %v1458_v5 = vstv %s6619_s1  ;;  %v1468_v7 = vstv %s6623_s27  ;;  %v1478_v24 = vstv %s6625_s28  ;;  %s6791_s2 = sld [smem:[#allocation4 + $0x5f]]  ;;  %s6793_s1 = sld [smem:[#allocation4 + $0x83]] }
 0x1bf   : > { %v1449_v25 = vmul.f32 %v6556_v1, %v1448_v2  ;;  %v1450_v27 = vmul.f32 %v6559_v21, %v1448_v2  ;;  %v1451_v8 = vmul.f32 %v4307_v57, %v1448_v2  ;;  %v1452_v9 = vmul.f32 %v4308_v58, %v1448_v2  ;;  %s6817_s27 = sld [smem:[#allocation4 + $0x18]]  ;;  %s6819_s28 = sld [smem:[#allocation4 + $0x3c]] }
 0x1c0   : > { %v1459_v28 = vmul.f32 %v6556_v1, %v1458_v5  ;;  %v1460_v10 = vmul.f32 %v6559_v21, %v1458_v5  ;;  %v1461_v11 = vmul.f32 %v4307_v57, %v1458_v5  ;;  %v1462_v12 = vmul.f32 %v4308_v58, %v1458_v5 }
 0x1c1   : > { %v1453_v13 = vadd.f32 %v1449_v25, %v1409_v37  ;;  %v1454_v14 = vadd.f32 %v1450_v27, %v1410_v38  ;;  %v1455_v15 = vadd.f32 %v1451_v8, %v1411_v41  ;;  %v1456_v16 = vadd.f32 %v1452_v9, %v1412_v42  ;;  %v4321_v25 = vld [vmem:[%s6153_s14 + $0x361] sm:$0xff] }
 0x1c2   : > { %v1463_v19 = vadd.f32 %v1459_v28, %v1419_v45  ;;  %v1464_v20 = vadd.f32 %v1460_v10, %v1420_v3  ;;  %v1465_v23 = vadd.f32 %v1461_v11, %v1421_v46  ;;  %v1466_v39 = vadd.f32 %v1462_v12, %v1422_v61  ;;  %v4322_v10 = vld [vmem:[%s6153_s14 + $0x369] sm:$0xff]  ;;  %v6686_v11 = vld [vmem:[%s6153_s14 + $0x379] sm:$0xff]  ;;  %v6689_v12 = vld [vmem:[%s6153_s14 + $0x381] sm:$0xff] }
 0x1c3   : > { %v1469_v40 = vmul.f32 %v6556_v1, %v1468_v7  ;;  %v1470_v43 = vmul.f32 %v6559_v21, %v1468_v7  ;;  %v1471_v44 = vmul.f32 %v4307_v57, %v1468_v7  ;;  %v1472_v26 = vmul.f32 %v4308_v58, %v1468_v7 }
 0x1c4   : > { %v1479_v29 = vmul.f32 %v6556_v1, %v1478_v24  ;;  %v1480_v51 = vmul.f32 %v6559_v21, %v1478_v24  ;;  %v1481_v30 = vmul.f32 %v4307_v57, %v1478_v24  ;;  %v1482_v62 = vmul.f32 %v4308_v58, %v1478_v24 }
 0x1c5   : > { %v1473_v31 = vadd.f32 %v1469_v40, %v1429_v54  ;;  %v1474_v52 = vadd.f32 %v1470_v43, %v1430_v55  ;;  %v1475_v32 = vadd.f32 %v1471_v44, %v1431_v18  ;;  %v1476_v33 = vadd.f32 %v1472_v26, %v1432_v56 }
 0x1c6   : > { %v1483_v37 = vadd.f32 %v1479_v29, %v1439_v59  ;;  %v1484_v1 = vadd.f32 %v1480_v51, %v1440_v60  ;;  %v1485_v38 = vadd.f32 %v1481_v30, %v1441_v63  ;;  %v1486_v41 = vadd.f32 %v1482_v62, %v1442_v0 }
 0x1c7   : > { %v1494_v21 = vstv %s6639_s29  ;;  %v1504_v42 = vstv %s6641_s30  ;;  %v1514_v45 = vstv %s6645_s7  ;;  %v1524_v3 = vstv %s6647_s8  ;;  %s6825_s29 = sld [smem:[#allocation4 + $0x60]]  ;;  %s6827_s30 = sld [smem:[#allocation4 + $0x84]] }
 0x1c8   : > { %v1495_v46 = vmul.f32 %v4313_v47, %v1494_v21  ;;  %v1496_v61 = vmul.f32 %v4314_v34, %v1494_v21  ;;  %v1497_v4 = vmul.f32 %v6658_v35, %v1494_v21  ;;  %v1498_v48 = vmul.f32 %v6661_v36, %v1494_v21  ;;  %s6847_s7 = sld [smem:[#allocation4 + $0x19]]  ;;  %s6849_s8 = sld [smem:[#allocation4 + $0x3d]] }
 0x1c9   : > { %v1505_v49 = vmul.f32 %v4313_v47, %v1504_v42  ;;  %v1506_v22 = vmul.f32 %v4314_v34, %v1504_v42  ;;  %v1507_v50 = vmul.f32 %v6658_v35, %v1504_v42  ;;  %v1508_v53 = vmul.f32 %v6661_v36, %v1504_v42 }
 0x1ca   : > { %v1499_v6 = vadd.f32 %v1495_v46, %v1453_v13  ;;  %v1500_v17 = vadd.f32 %v1496_v61, %v1454_v14  ;;  %v1501_v54 = vadd.f32 %v1497_v4, %v1455_v15  ;;  %v1502_v55 = vadd.f32 %v1498_v48, %v1456_v16  ;;  %v4329_v4 = vld [vmem:[%s6153_s14 + $0x362] sm:$0xff] }
 0x1cb   : > { %v1509_v18 = vadd.f32 %v1505_v49, %v1463_v19  ;;  %v1510_v56 = vadd.f32 %v1506_v22, %v1464_v20  ;;  %v1511_v57 = vadd.f32 %v1507_v50, %v1465_v23  ;;  %v1512_v58 = vadd.f32 %v1508_v53, %v1466_v39  ;;  %v4330_v53 = vld [vmem:[%s6153_s14 + $0x36a] sm:$0xff] }
 0x1cc   : > { %v1515_v59 = vmul.f32 %v4313_v47, %v1514_v45  ;;  %v1516_v60 = vmul.f32 %v4314_v34, %v1514_v45  ;;  %v1517_v63 = vmul.f32 %v6658_v35, %v1514_v45  ;;  %v1518_v0 = vmul.f32 %v6661_v36, %v1514_v45 }
 0x1cd   : > { %v1525_v2 = vmul.f32 %v4313_v47, %v1524_v3  ;;  %v1526_v5 = vmul.f32 %v4314_v34, %v1524_v3  ;;  %v1527_v7 = vmul.f32 %v6658_v35, %v1524_v3  ;;  %v1528_v24 = vmul.f32 %v6661_v36, %v1524_v3 }
 0x1ce   : > { %v1519_v27 = vadd.f32 %v1515_v59, %v1473_v31  ;;  %v1520_v8 = vadd.f32 %v1516_v60, %v1474_v52  ;;  %v1521_v9 = vadd.f32 %v1517_v63, %v1475_v32  ;;  %v1522_v28 = vadd.f32 %v1518_v0, %v1476_v33 }
 0x1cf   : > { %v1529_v13 = vadd.f32 %v1525_v2, %v1483_v37  ;;  %v1530_v14 = vadd.f32 %v1526_v5, %v1484_v1  ;;  %v1531_v15 = vadd.f32 %v1527_v7, %v1485_v38  ;;  %v1532_v16 = vadd.f32 %v1528_v24, %v1486_v41 }
 0x1d0   : > { %v1538_v19 = vstv %s6667_s9  ;;  %v1548_v20 = vstv %s6669_s3  ;;  %v1558_v23 = vstv %s6673_s10  ;;  %v1568_v39 = vstv %s6675_s11  ;;  %s6853_s9 = sld [smem:[#allocation4 + $0x61]]  ;;  %s6855_s3 = sld [smem:[#allocation4 + $0x85]] }
 0x1d1   : > { %v1539_v40 = vmul.f32 %v4321_v25, %v1538_v19  ;;  %v1540_v43 = vmul.f32 %v4322_v10, %v1538_v19  ;;  %v1541_v44 = vmul.f32 %v6686_v11, %v1538_v19  ;;  %v1542_v26 = vmul.f32 %v6689_v12, %v1538_v19  ;;  %s6869_s10 = sld [smem:[#allocation4 + $0x1a]]  ;;  %s6871_s11 = sld [smem:[#allocation4 + $0x3e]] }
 0x1d2   : > { %v1549_v29 = vmul.f32 %v4321_v25, %v1548_v20  ;;  %v1550_v51 = vmul.f32 %v4322_v10, %v1548_v20  ;;  %v1551_v30 = vmul.f32 %v6686_v11, %v1548_v20  ;;  %v1552_v62 = vmul.f32 %v6689_v12, %v1548_v20 }
 0x1d3   : > { %v1543_v47 = vadd.f32 %v1539_v40, %v1499_v6  ;;  %v1544_v31 = vadd.f32 %v1540_v43, %v1500_v17  ;;  %v1545_v52 = vadd.f32 %v1541_v44, %v1501_v54  ;;  %v1546_v32 = vadd.f32 %v1542_v26, %v1502_v55  ;;  %v6714_v6 = vld [vmem:[%s6153_s14 + $0x37a] sm:$0xff]  ;;  %v6717_v17 = vld [vmem:[%s6153_s14 + $0x382] sm:$0xff] }
 0x1d4   : > { %v1553_v33 = vadd.f32 %v1549_v29, %v1509_v18  ;;  %v1554_v34 = vadd.f32 %v1550_v51, %v1510_v56  ;;  %v1555_v37 = vadd.f32 %v1551_v30, %v1511_v57  ;;  %v1556_v1 = vadd.f32 %v1552_v62, %v1512_v58 }
 0x1d5   : > { %v1559_v38 = vmul.f32 %v4321_v25, %v1558_v23  ;;  %v1560_v41 = vmul.f32 %v4322_v10, %v1558_v23  ;;  %v1561_v21 = vmul.f32 %v6686_v11, %v1558_v23  ;;  %v1562_v42 = vmul.f32 %v6689_v12, %v1558_v23 }
 0x1d6   : > { %v1569_v45 = vmul.f32 %v4321_v25, %v1568_v39  ;;  %v1570_v3 = vmul.f32 %v4322_v10, %v1568_v39  ;;  %v1571_v46 = vmul.f32 %v6686_v11, %v1568_v39  ;;  %v1572_v61 = vmul.f32 %v6689_v12, %v1568_v39 }
 0x1d7   : > { %v1563_v48 = vadd.f32 %v1559_v38, %v1519_v27  ;;  %v1564_v49 = vadd.f32 %v1560_v41, %v1520_v8  ;;  %v1565_v22 = vadd.f32 %v1561_v21, %v1521_v9  ;;  %v1566_v50 = vadd.f32 %v1562_v42, %v1522_v28 }
 0x1d8   : > { %v1573_v54 = vadd.f32 %v1569_v45, %v1529_v13  ;;  %v1574_v55 = vadd.f32 %v1570_v3, %v1530_v14  ;;  %v1575_v18 = vadd.f32 %v1571_v46, %v1531_v15  ;;  %v1576_v56 = vadd.f32 %v1572_v61, %v1532_v16 }
 0x1d9   : > { %v1582_v57 = vstv %s6695_s12  ;;  %v1592_v58 = vstv %s6697_s13  ;;  %v1602_v59 = vstv %s6701_s15  ;;  %v1612_v60 = vstv %s6703_s16  ;;  %s6875_s12 = sld [smem:[#allocation4 + $0x62]]  ;;  %s6877_s13 = sld [smem:[#allocation4 + $0x86]] }
 0x1da   : > { %v1583_v63 = vmul.f32 %v4329_v4, %v1582_v57  ;;  %v1584_v0 = vmul.f32 %v4330_v53, %v1582_v57  ;;  %v1585_v2 = vmul.f32 %v6714_v6, %v1582_v57  ;;  %v1586_v5 = vmul.f32 %v6717_v17, %v1582_v57  ;;  %s6891_s15 = sld [smem:[#allocation4 + $0x1b]]  ;;  %s6893_s16 = sld [smem:[#allocation4 + $0x3f]] }
 0x1db   : > { %v1593_v7 = vmul.f32 %v4329_v4, %v1592_v58  ;;  %v1594_v24 = vmul.f32 %v4330_v53, %v1592_v58  ;;  %v1595_v25 = vmul.f32 %v6714_v6, %v1592_v58  ;;  %v1596_v27 = vmul.f32 %v6717_v17, %v1592_v58 }
 0x1dc   : > { %v1587_v8 = vadd.f32 %v1583_v63, %v1543_v47  ;;  %v1588_v9 = vadd.f32 %v1584_v0, %v1544_v31  ;;  %v1589_v28 = vadd.f32 %v1585_v2, %v1545_v52  ;;  %v1590_v10 = vadd.f32 %v1586_v5, %v1546_v32  ;;  %v6740_v47 = vld [vmem:[%s6153_s14 + $0x390] sm:$0xff]  ;;  %v6743_v31 = vld [vmem:[%s6153_s14 + $0x398] sm:$0xff] }
 0x1dd   : > { %v1597_v13 = vadd.f32 %v1593_v7, %v1553_v33  ;;  %v1598_v14 = vadd.f32 %v1594_v24, %v1554_v34  ;;  %v1599_v15 = vadd.f32 %v1595_v25, %v1555_v37  ;;  %v1600_v16 = vadd.f32 %v1596_v27, %v1556_v1 }
 0x1de   : > { %v1603_v19 = vmul.f32 %v4329_v4, %v1602_v59  ;;  %v1604_v20 = vmul.f32 %v4330_v53, %v1602_v59  ;;  %v1605_v23 = vmul.f32 %v6714_v6, %v1602_v59  ;;  %v1606_v39 = vmul.f32 %v6717_v17, %v1602_v59 }
 0x1df   : > { %v1613_v40 = vmul.f32 %v4329_v4, %v1612_v60  ;;  %v1614_v43 = vmul.f32 %v4330_v53, %v1612_v60  ;;  %v1615_v44 = vmul.f32 %v6714_v6, %v1612_v60  ;;  %v1616_v26 = vmul.f32 %v6717_v17, %v1612_v60 }
 0x1e0   : > { %v1607_v29 = vadd.f32 %v1603_v19, %v1563_v48  ;;  %v1608_v51 = vadd.f32 %v1604_v20, %v1564_v49  ;;  %v1609_v30 = vadd.f32 %v1605_v23, %v1565_v22  ;;  %v1610_v62 = vadd.f32 %v1606_v39, %v1566_v50 }
 0x1e1   : > { %v1617_v52 = vadd.f32 %v1613_v40, %v1573_v54  ;;  %v1618_v32 = vadd.f32 %v1614_v43, %v1574_v55  ;;  %v1619_v33 = vadd.f32 %v1615_v44, %v1575_v18  ;;  %v1620_v34 = vadd.f32 %v1616_v26, %v1576_v56 }
 0x1e2   : > { %v1628_v37 = vstv %s6723_s17  ;;  %v1638_v1 = vstv %s6725_s18  ;;  %v1648_v38 = vstv %s6729_s19  ;;  %v1658_v41 = vstv %s6731_s20  ;;  %s6897_s17 = sld [smem:[#allocation4 + $0x63]]  ;;  %s6899_s18 = sld [smem:[#allocation4 + $0x87]] }
 0x1e3   : > { %v1629_v21 = vmul.f32 %v6658_v35, %v1628_v37  ;;  %v1630_v42 = vmul.f32 %v6661_v36, %v1628_v37  ;;  %v1631_v45 = vmul.f32 %v6740_v47, %v1628_v37  ;;  %v1632_v3 = vmul.f32 %v6743_v31, %v1628_v37  ;;  %s6919_s19 = sld [smem:[#allocation4 + $0x1c]]  ;;  %s6921_s20 = sld [smem:[#allocation4 + $0x40]] }
 0x1e4   : > { %v1639_v46 = vmul.f32 %v6658_v35, %v1638_v1  ;;  %v1640_v61 = vmul.f32 %v6661_v36, %v1638_v1  ;;  %v1641_v4 = vmul.f32 %v6740_v47, %v1638_v1  ;;  %v1642_v48 = vmul.f32 %v6743_v31, %v1638_v1 }
 0x1e5   : > { %v1633_v49 = vadd.f32 %v1629_v21, %v1587_v8  ;;  %v1634_v22 = vadd.f32 %v1630_v42, %v1588_v9  ;;  %v1635_v50 = vadd.f32 %v1631_v45, %v1589_v28  ;;  %v1636_v53 = vadd.f32 %v1632_v3, %v1590_v10  ;;  %v6774_v8 = vld [vmem:[%s6153_s14 + $0x391] sm:$0xff]  ;;  %v6777_v9 = vld [vmem:[%s6153_s14 + $0x399] sm:$0xff] }
 0x1e6   : > { %v1643_v54 = vadd.f32 %v1639_v46, %v1597_v13  ;;  %v1644_v55 = vadd.f32 %v1640_v61, %v1598_v14  ;;  %v1645_v18 = vadd.f32 %v1641_v4, %v1599_v15  ;;  %v1646_v56 = vadd.f32 %v1642_v48, %v1600_v16 }
 0x1e7   : > { %v1649_v57 = vmul.f32 %v6658_v35, %v1648_v38  ;;  %v1650_v58 = vmul.f32 %v6661_v36, %v1648_v38  ;;  %v1651_v59 = vmul.f32 %v6740_v47, %v1648_v38  ;;  %v1652_v60 = vmul.f32 %v6743_v31, %v1648_v38 }
 0x1e8   : > { %v1659_v63 = vmul.f32 %v6658_v35, %v1658_v41  ;;  %v1660_v0 = vmul.f32 %v6661_v36, %v1658_v41  ;;  %v1661_v2 = vmul.f32 %v6740_v47, %v1658_v41  ;;  %v1662_v5 = vmul.f32 %v6743_v31, %v1658_v41 }
 0x1e9   : > { %v1653_v7 = vadd.f32 %v1649_v57, %v1607_v29  ;;  %v1654_v24 = vadd.f32 %v1650_v58, %v1608_v51  ;;  %v1655_v25 = vadd.f32 %v1651_v59, %v1609_v30  ;;  %v1656_v27 = vadd.f32 %v1652_v60, %v1610_v62 }
 0x1ea   : > { %v1663_v28 = vadd.f32 %v1659_v63, %v1617_v52  ;;  %v1664_v10 = vadd.f32 %v1660_v0, %v1618_v32  ;;  %v1665_v13 = vadd.f32 %v1661_v2, %v1619_v33  ;;  %v1666_v35 = vadd.f32 %v1662_v5, %v1620_v34 }
 0x1eb   : > { %v1672_v14 = vstv %s6749_s21  ;;  %v1682_v15 = vstv %s6751_s22  ;;  %v1692_v36 = vstv %s6757_s23  ;;  %v1702_v16 = vstv %s6759_s24  ;;  %s6925_s21 = sld [smem:[#allocation4 + $0x64]]  ;;  %s6927_s22 = sld [smem:[#allocation4 + $0x88]] }
 0x1ec   : > { %v1673_v19 = vmul.f32 %v6686_v11, %v1672_v14  ;;  %v1674_v20 = vmul.f32 %v6689_v12, %v1672_v14  ;;  %v1675_v23 = vmul.f32 %v6774_v8, %v1672_v14  ;;  %v1676_v39 = vmul.f32 %v6777_v9, %v1672_v14  ;;  %s6947_s23 = sld [smem:[#allocation4 + $0x1d]]  ;;  %s6949_s24 = sld [smem:[#allocation4 + $0x41]] }
 0x1ed   : > { %v1683_v40 = vmul.f32 %v6686_v11, %v1682_v15  ;;  %v1684_v43 = vmul.f32 %v6689_v12, %v1682_v15  ;;  %v1685_v44 = vmul.f32 %v6774_v8, %v1682_v15  ;;  %v1686_v26 = vmul.f32 %v6777_v9, %v1682_v15 }
 0x1ee   : > { %v1677_v29 = vadd.f32 %v1673_v19, %v1633_v49  ;;  %v1678_v51 = vadd.f32 %v1674_v20, %v1634_v22  ;;  %v1679_v30 = vadd.f32 %v1675_v23, %v1635_v50  ;;  %v1680_v62 = vadd.f32 %v1676_v39, %v1636_v53  ;;  %v6808_v49 = vld [vmem:[%s6153_s14 + $0x392] sm:$0xff]  ;;  %v6811_v22 = vld [vmem:[%s6153_s14 + $0x39a] sm:$0xff] }
 0x1ef   : > { %v1687_v52 = vadd.f32 %v1683_v40, %v1643_v54  ;;  %v1688_v32 = vadd.f32 %v1684_v43, %v1644_v55  ;;  %v1689_v33 = vadd.f32 %v1685_v44, %v1645_v18  ;;  %v1690_v34 = vadd.f32 %v1686_v26, %v1646_v56 }
 0x1f0   : > { %v1693_v37 = vmul.f32 %v6686_v11, %v1692_v36  ;;  %v1694_v1 = vmul.f32 %v6689_v12, %v1692_v36  ;;  %v1695_v38 = vmul.f32 %v6774_v8, %v1692_v36  ;;  %v1696_v41 = vmul.f32 %v6777_v9, %v1692_v36 }
 0x1f1   : > { %v1703_v21 = vmul.f32 %v6686_v11, %v1702_v16  ;;  %v1704_v42 = vmul.f32 %v6689_v12, %v1702_v16  ;;  %v1705_v45 = vmul.f32 %v6774_v8, %v1702_v16  ;;  %v1706_v3 = vmul.f32 %v6777_v9, %v1702_v16 }
 0x1f2   : > { %v1697_v46 = vadd.f32 %v1693_v37, %v1653_v7  ;;  %v1698_v61 = vadd.f32 %v1694_v1, %v1654_v24  ;;  %v1699_v4 = vadd.f32 %v1695_v38, %v1655_v25  ;;  %v1700_v48 = vadd.f32 %v1696_v41, %v1656_v27 }
 0x1f3   : > { %v1707_v50 = vadd.f32 %v1703_v21, %v1663_v28  ;;  %v1708_v53 = vadd.f32 %v1704_v42, %v1664_v10  ;;  %v1709_v54 = vadd.f32 %v1705_v45, %v1665_v13  ;;  %v1710_v11 = vadd.f32 %v1706_v3, %v1666_v35 }
 0x1f4   : > { %v1716_v55 = vstv %s6783_s25  ;;  %v1726_v18 = vstv %s6785_s26  ;;  %v1736_v12 = vstv %s6791_s2  ;;  %v1746_v56 = vstv %s6793_s1  ;;  %s6953_s25 = sld [smem:[#allocation4 + $0x65]]  ;;  %s6955_s26 = sld [smem:[#allocation4 + $0x89]] }
 0x1f5   : > { %v1717_v57 = vmul.f32 %v6714_v6, %v1716_v55  ;;  %v1718_v58 = vmul.f32 %v6717_v17, %v1716_v55  ;;  %v1719_v59 = vmul.f32 %v6808_v49, %v1716_v55  ;;  %v1720_v60 = vmul.f32 %v6811_v22, %v1716_v55  ;;  %s6975_s2 = sld [smem:[#allocation4 + $0x1e]]  ;;  %s6977_s1 = sld [smem:[#allocation4 + $0x42]] }
 0x1f6   : > { %v1727_v63 = vmul.f32 %v6714_v6, %v1726_v18  ;;  %v1728_v0 = vmul.f32 %v6717_v17, %v1726_v18  ;;  %v1729_v2 = vmul.f32 %v6808_v49, %v1726_v18  ;;  %v1730_v5 = vmul.f32 %v6811_v22, %v1726_v18 }
 0x1f7   : > { %v1721_v7 = vadd.f32 %v1717_v57, %v1677_v29  ;;  %v1722_v24 = vadd.f32 %v1718_v58, %v1678_v51  ;;  %v1723_v25 = vadd.f32 %v1719_v59, %v1679_v30  ;;  %v1724_v27 = vadd.f32 %v1720_v60, %v1680_v62  ;;  %v4367_v29 = vld [vmem:[%s6153_s14 + $0x3a8] sm:$0xff]  ;;  %v4368_v51 = vld [vmem:[%s6153_s14 + $0x3b0] sm:$0xff] }
 0x1f8   : > { %v1731_v28 = vadd.f32 %v1727_v63, %v1687_v52  ;;  %v1732_v10 = vadd.f32 %v1728_v0, %v1688_v32  ;;  %v1733_v13 = vadd.f32 %v1729_v2, %v1689_v33  ;;  %v1734_v35 = vadd.f32 %v1730_v5, %v1690_v34 }
 0x1f9   : > { %v1737_v14 = vmul.f32 %v6714_v6, %v1736_v12  ;;  %v1738_v15 = vmul.f32 %v6717_v17, %v1736_v12  ;;  %v1739_v36 = vmul.f32 %v6808_v49, %v1736_v12  ;;  %v1740_v16 = vmul.f32 %v6811_v22, %v1736_v12 }
 0x1fa   : > { %v1747_v19 = vmul.f32 %v6714_v6, %v1746_v56  ;;  %v1748_v20 = vmul.f32 %v6717_v17, %v1746_v56  ;;  %v1749_v23 = vmul.f32 %v6808_v49, %v1746_v56  ;;  %v1750_v39 = vmul.f32 %v6811_v22, %v1746_v56 }
 0x1fb   : > { %v1741_v40 = vadd.f32 %v1737_v14, %v1697_v46  ;;  %v1742_v43 = vadd.f32 %v1738_v15, %v1698_v61  ;;  %v1743_v44 = vadd.f32 %v1739_v36, %v1699_v4  ;;  %v1744_v26 = vadd.f32 %v1740_v16, %v1700_v48 }
 0x1fc   : > { %v1751_v30 = vadd.f32 %v1747_v19, %v1707_v50  ;;  %v1752_v62 = vadd.f32 %v1748_v20, %v1708_v53  ;;  %v1753_v52 = vadd.f32 %v1749_v23, %v1709_v54  ;;  %v1754_v32 = vadd.f32 %v1750_v39, %v1710_v11 }
 0x1fd   : > { %v1762_v33 = vstv %s6817_s27  ;;  %v1772_v6 = vstv %s6819_s28  ;;  %v1782_v34 = vstv %s6825_s29  ;;  %v1792_v37 = vstv %s6827_s30  ;;  %s6981_s27 = sld [smem:[#allocation4 + $0x66]]  ;;  %s6983_s28 = sld [smem:[#allocation4 + $0x8a]] }
 0x1fe   : > { %v1763_v17 = vmul.f32 %v6740_v47, %v1762_v33  ;;  %v1764_v1 = vmul.f32 %v6743_v31, %v1762_v33  ;;  %v1765_v38 = vmul.f32 %v4367_v29, %v1762_v33  ;;  %v1766_v41 = vmul.f32 %v4368_v51, %v1762_v33  ;;  %s7001_s29 = sld [smem:[#allocation4 + $0x1f]]  ;;  %s7003_s30 = sld [smem:[#allocation4 + $0x43]] }
 0x1ff   : > { %v1773_v21 = vmul.f32 %v6740_v47, %v1772_v6  ;;  %v1774_v42 = vmul.f32 %v6743_v31, %v1772_v6  ;;  %v1775_v45 = vmul.f32 %v4367_v29, %v1772_v6  ;;  %v1776_v3 = vmul.f32 %v4368_v51, %v1772_v6 }
 0x200   : > { %v1767_v46 = vadd.f32 %v1763_v17, %v1721_v7  ;;  %v1768_v61 = vadd.f32 %v1764_v1, %v1722_v24  ;;  %v1769_v4 = vadd.f32 %v1765_v38, %v1723_v25  ;;  %v1770_v48 = vadd.f32 %v1766_v41, %v1724_v27  ;;  %v4375_v7 = vld [vmem:[%s6153_s14 + $0x3a9] sm:$0xff]  ;;  %v4376_v24 = vld [vmem:[%s6153_s14 + $0x3b1] sm:$0xff] }
 0x201   : > { %v1777_v50 = vadd.f32 %v1773_v21, %v1731_v28  ;;  %v1778_v53 = vadd.f32 %v1774_v42, %v1732_v10  ;;  %v1779_v54 = vadd.f32 %v1775_v45, %v1733_v13  ;;  %v1780_v11 = vadd.f32 %v1776_v3, %v1734_v35  ;;  %v4383_v45 = vld [vmem:[%s6153_s14 + $0x3aa] sm:$0xff]  ;;  %v4384_v3 = vld [vmem:[%s6153_s14 + $0x3b2] sm:$0xff] }
 0x202   : > { %v1783_v55 = vmul.f32 %v6740_v47, %v1782_v34  ;;  %v1784_v18 = vmul.f32 %v6743_v31, %v1782_v34  ;;  %v1785_v12 = vmul.f32 %v4367_v29, %v1782_v34  ;;  %v1786_v56 = vmul.f32 %v4368_v51, %v1782_v34 }
 0x203   : > { %v1793_v57 = vmul.f32 %v6740_v47, %v1792_v37  ;;  %v1794_v58 = vmul.f32 %v6743_v31, %v1792_v37  ;;  %v1795_v59 = vmul.f32 %v4367_v29, %v1792_v37  ;;  %v1796_v60 = vmul.f32 %v4368_v51, %v1792_v37 }
 0x204   : > { %v1787_v63 = vadd.f32 %v1783_v55, %v1741_v40  ;;  %v1788_v0 = vadd.f32 %v1784_v18, %v1742_v43  ;;  %v1789_v2 = vadd.f32 %v1785_v12, %v1743_v44  ;;  %v1790_v5 = vadd.f32 %v1786_v56, %v1744_v26 }
 0x205   : > { %v1797_v25 = vadd.f32 %v1793_v57, %v1751_v30  ;;  %v1798_v27 = vadd.f32 %v1794_v58, %v1752_v62  ;;  %v1799_v28 = vadd.f32 %v1795_v59, %v1753_v52  ;;  %v1800_v10 = vadd.f32 %v1796_v60, %v1754_v32 }
 0x206   : > { %v1806_v13 = vstv %s6847_s7  ;;  %v1816_v35 = vstv %s6849_s8  ;;  %v1826_v14 = vstv %s6853_s9  ;;  %v1836_v47 = vstv %s6855_s3  ;;  %s7009_s7 = sld [smem:[#allocation4 + $0x67]]  ;;  %s7011_s8 = sld [smem:[#allocation4 + $0x8b]] }
 0x207   : > { %v1807_v31 = vmul.f32 %v6774_v8, %v1806_v13  ;;  %v1808_v15 = vmul.f32 %v6777_v9, %v1806_v13  ;;  %v1809_v36 = vmul.f32 %v4375_v7, %v1806_v13  ;;  %v1810_v16 = vmul.f32 %v4376_v24, %v1806_v13  ;;  %s7035_s9 = sld [smem:[#allocation4 + $0x20]]  ;;  %s7037_s3 = sld [smem:[#allocation4 + $0x44]] }
 0x208   : > { %v1817_v19 = vmul.f32 %v6774_v8, %v1816_v35  ;;  %v1818_v20 = vmul.f32 %v6777_v9, %v1816_v35  ;;  %v1819_v23 = vmul.f32 %v4375_v7, %v1816_v35  ;;  %v1820_v39 = vmul.f32 %v4376_v24, %v1816_v35 }
 0x209   : > { %v1811_v40 = vadd.f32 %v1807_v31, %v1767_v46  ;;  %v1812_v43 = vadd.f32 %v1808_v15, %v1768_v61  ;;  %v1813_v44 = vadd.f32 %v1809_v36, %v1769_v4  ;;  %v1814_v26 = vadd.f32 %v1810_v16, %v1770_v48  ;;  %v4389_v31 = vld [vmem:[%s6153_s14 + $0x510] sm:$0xff] }
 0x20a   : > { %v1821_v29 = vadd.f32 %v1817_v19, %v1777_v50  ;;  %v1822_v51 = vadd.f32 %v1818_v20, %v1778_v53  ;;  %v1823_v30 = vadd.f32 %v1819_v23, %v1779_v54  ;;  %v1824_v62 = vadd.f32 %v1820_v39, %v1780_v11  ;;  %v4390_v20 = vld [vmem:[%s6153_s14 + $0x518] sm:$0xff]  ;;  %v6910_v23 = vld [vmem:[%s6153_s14 + $0x528] sm:$0xff]  ;;  %v6913_v39 = vld [vmem:[%s6153_s14 + $0x530] sm:$0xff] }
 0x20b   : > { %v1827_v52 = vmul.f32 %v6774_v8, %v1826_v14  ;;  %v1828_v32 = vmul.f32 %v6777_v9, %v1826_v14  ;;  %v1829_v33 = vmul.f32 %v4375_v7, %v1826_v14  ;;  %v1830_v6 = vmul.f32 %v4376_v24, %v1826_v14 }
 0x20c   : > { %v1837_v34 = vmul.f32 %v6774_v8, %v1836_v47  ;;  %v1838_v37 = vmul.f32 %v6777_v9, %v1836_v47  ;;  %v1839_v17 = vmul.f32 %v4375_v7, %v1836_v47  ;;  %v1840_v1 = vmul.f32 %v4376_v24, %v1836_v47 }
 0x20d   : > { %v1831_v38 = vadd.f32 %v1827_v52, %v1787_v63  ;;  %v1832_v41 = vadd.f32 %v1828_v32, %v1788_v0  ;;  %v1833_v21 = vadd.f32 %v1829_v33, %v1789_v2  ;;  %v1834_v42 = vadd.f32 %v1830_v6, %v1790_v5 }
 0x20e   : > { %v1841_v46 = vadd.f32 %v1837_v34, %v1797_v25  ;;  %v1842_v61 = vadd.f32 %v1838_v37, %v1798_v27  ;;  %v1843_v4 = vadd.f32 %v1839_v17, %v1799_v28  ;;  %v1844_v48 = vadd.f32 %v1840_v1, %v1800_v10 }
 0x20f   : > { %v1850_v50 = vstv %s6869_s10  ;;  %v1860_v53 = vstv %s6871_s11  ;;  %v1870_v54 = vstv %s6875_s12  ;;  %v1880_v8 = vstv %s6877_s13  ;;  %s7043_s10 = sld [smem:[#allocation4 + $0x68]]  ;;  %s7045_s11 = sld [smem:[#allocation4 + $0x8c]] }
 0x210   : > { %v1851_v9 = vmul.f32 %v6808_v49, %v1850_v50  ;;  %v1852_v11 = vmul.f32 %v6811_v22, %v1850_v50  ;;  %v1853_v55 = vmul.f32 %v4383_v45, %v1850_v50  ;;  %v1854_v18 = vmul.f32 %v4384_v3, %v1850_v50  ;;  %s7069_s12 = sld [smem:[#allocation4 + $0x21]]  ;;  %s7071_s13 = sld [smem:[#allocation4 + $0x45]] }
 0x211   : > { %v1861_v12 = vmul.f32 %v6808_v49, %v1860_v53  ;;  %v1862_v56 = vmul.f32 %v6811_v22, %v1860_v53  ;;  %v1863_v57 = vmul.f32 %v4383_v45, %v1860_v53  ;;  %v1864_v58 = vmul.f32 %v4384_v3, %v1860_v53 }
 0x212   : > { %v1855_v59 = vadd.f32 %v1851_v9, %v1811_v40  ;;  %v1856_v60 = vadd.f32 %v1852_v11, %v1812_v43  ;;  %v1857_v63 = vadd.f32 %v1853_v55, %v1813_v44  ;;  %v1858_v0 = vadd.f32 %v1854_v18, %v1814_v26  ;;  %v4397_v9 = vld [vmem:[%s6153_s14 + $0x511] sm:$0xff] }
 0x213   : > { %v1865_v2 = vadd.f32 %v1861_v12, %v1821_v29  ;;  %v1866_v5 = vadd.f32 %v1862_v56, %v1822_v51  ;;  %v1867_v7 = vadd.f32 %v1863_v57, %v1823_v30  ;;  %v1868_v24 = vadd.f32 %v1864_v58, %v1824_v62  ;;  %v4398_v56 = vld [vmem:[%s6153_s14 + $0x519] sm:$0xff]  ;;  %v6938_v57 = vld [vmem:[%s6153_s14 + $0x529] sm:$0xff]  ;;  %v6941_v58 = vld [vmem:[%s6153_s14 + $0x531] sm:$0xff] }
 0x214   : > { %v1871_v25 = vmul.f32 %v6808_v49, %v1870_v54  ;;  %v1872_v27 = vmul.f32 %v6811_v22, %v1870_v54  ;;  %v1873_v28 = vmul.f32 %v4383_v45, %v1870_v54  ;;  %v1874_v10 = vmul.f32 %v4384_v3, %v1870_v54 }
 0x215   : > { %v1881_v13 = vmul.f32 %v6808_v49, %v1880_v8  ;;  %v1882_v35 = vmul.f32 %v6811_v22, %v1880_v8  ;;  %v1883_v14 = vmul.f32 %v4383_v45, %v1880_v8  ;;  %v1884_v47 = vmul.f32 %v4384_v3, %v1880_v8 }
 0x216   : > { %v1875_v15 = vadd.f32 %v1871_v25, %v1831_v38  ;;  %v1876_v36 = vadd.f32 %v1872_v27, %v1832_v41  ;;  %v1877_v16 = vadd.f32 %v1873_v28, %v1833_v21  ;;  %v1878_v19 = vadd.f32 %v1874_v10, %v1834_v42 }
 0x217   : > { %v1885_v40 = vadd.f32 %v1881_v13, %v1841_v46  ;;  %v1886_v49 = vadd.f32 %v1882_v35, %v1842_v61  ;;  %v1887_v43 = vadd.f32 %v1883_v14, %v1843_v4  ;;  %v1888_v44 = vadd.f32 %v1884_v47, %v1844_v48 }
 0x218   : > { %v1896_v22 = vstv %s6891_s15  ;;  %v1906_v26 = vstv %s6893_s16  ;;  %v1916_v29 = vstv %s6897_s17  ;;  %v1926_v51 = vstv %s6899_s18  ;;  %s7077_s15 = sld [smem:[#allocation4 + $0x69]]  ;;  %s7079_s16 = sld [smem:[#allocation4 + $0x8d]] }
 0x219   : > { %v1897_v30 = vmul.f32 %v4389_v31, %v1896_v22  ;;  %v1898_v62 = vmul.f32 %v4390_v20, %v1896_v22  ;;  %v1899_v52 = vmul.f32 %v6910_v23, %v1896_v22  ;;  %v1900_v32 = vmul.f32 %v6913_v39, %v1896_v22  ;;  %s7099_s17 = sld [smem:[#allocation4 + $0x22]]  ;;  %s7101_s18 = sld [smem:[#allocation4 + $0x46]] }
 0x21a   : > { %v1907_v33 = vmul.f32 %v4389_v31, %v1906_v26  ;;  %v1908_v6 = vmul.f32 %v4390_v20, %v1906_v26  ;;  %v1909_v34 = vmul.f32 %v6910_v23, %v1906_v26  ;;  %v1910_v37 = vmul.f32 %v6913_v39, %v1906_v26 }
 0x21b   : > { %v1901_v17 = vadd.f32 %v1897_v30, %v1855_v59  ;;  %v1902_v1 = vadd.f32 %v1898_v62, %v1856_v60  ;;  %v1903_v38 = vadd.f32 %v1899_v52, %v1857_v63  ;;  %v1904_v41 = vadd.f32 %v1900_v32, %v1858_v0  ;;  %v4405_v52 = vld [vmem:[%s6153_s14 + $0x512] sm:$0xff] }
 0x21c   : > { %v1911_v21 = vadd.f32 %v1907_v33, %v1865_v2  ;;  %v1912_v42 = vadd.f32 %v1908_v6, %v1866_v5  ;;  %v1913_v45 = vadd.f32 %v1909_v34, %v1867_v7  ;;  %v1914_v3 = vadd.f32 %v1910_v37, %v1868_v24  ;;  %v4406_v37 = vld [vmem:[%s6153_s14 + $0x51a] sm:$0xff] }
 0x21d   : > { %v1917_v46 = vmul.f32 %v4389_v31, %v1916_v29  ;;  %v1918_v61 = vmul.f32 %v4390_v20, %v1916_v29  ;;  %v1919_v4 = vmul.f32 %v6910_v23, %v1916_v29  ;;  %v1920_v48 = vmul.f32 %v6913_v39, %v1916_v29 }
 0x21e   : > { %v1927_v50 = vmul.f32 %v4389_v31, %v1926_v51  ;;  %v1928_v53 = vmul.f32 %v4390_v20, %v1926_v51  ;;  %v1929_v54 = vmul.f32 %v6910_v23, %v1926_v51  ;;  %v1930_v8 = vmul.f32 %v6913_v39, %v1926_v51 }
 0x21f   : > { %v1921_v11 = vadd.f32 %v1917_v46, %v1875_v15  ;;  %v1922_v55 = vadd.f32 %v1918_v61, %v1876_v36  ;;  %v1923_v18 = vadd.f32 %v1919_v4, %v1877_v16  ;;  %v1924_v12 = vadd.f32 %v1920_v48, %v1878_v19 }
 0x220   : > { %v1931_v59 = vadd.f32 %v1927_v50, %v1885_v40  ;;  %v1932_v60 = vadd.f32 %v1928_v53, %v1886_v49  ;;  %v1933_v63 = vadd.f32 %v1929_v54, %v1887_v43  ;;  %v1934_v0 = vadd.f32 %v1930_v8, %v1888_v44 }
 0x221   : > { %v1940_v2 = vstv %s6919_s19  ;;  %v1950_v5 = vstv %s6921_s20  ;;  %v1960_v7 = vstv %s6925_s21  ;;  %v1970_v24 = vstv %s6927_s22  ;;  %s7105_s19 = sld [smem:[#allocation4 + $0x6a]]  ;;  %s7107_s20 = sld [smem:[#allocation4 + $0x8e]] }
 0x222   : > { %v1941_v25 = vmul.f32 %v4397_v9, %v1940_v2  ;;  %v1942_v27 = vmul.f32 %v4398_v56, %v1940_v2  ;;  %v1943_v28 = vmul.f32 %v6938_v57, %v1940_v2  ;;  %v1944_v10 = vmul.f32 %v6941_v58, %v1940_v2  ;;  %s7121_s21 = sld [smem:[#allocation4 + $0x23]]  ;;  %s7123_s22 = sld [smem:[#allocation4 + $0x47]] }
 0x223   : > { %v1951_v13 = vmul.f32 %v4397_v9, %v1950_v5  ;;  %v1952_v35 = vmul.f32 %v4398_v56, %v1950_v5  ;;  %v1953_v14 = vmul.f32 %v6938_v57, %v1950_v5  ;;  %v1954_v47 = vmul.f32 %v6941_v58, %v1950_v5 }
 0x224   : > { %v1945_v31 = vadd.f32 %v1941_v25, %v1901_v17  ;;  %v1946_v15 = vadd.f32 %v1942_v27, %v1902_v1  ;;  %v1947_v36 = vadd.f32 %v1943_v28, %v1903_v38  ;;  %v1948_v16 = vadd.f32 %v1944_v10, %v1904_v41  ;;  %v6966_v17 = vld [vmem:[%s6153_s14 + $0x52a] sm:$0xff]  ;;  %v6969_v1 = vld [vmem:[%s6153_s14 + $0x532] sm:$0xff] }
 0x225   : > { %v1955_v19 = vadd.f32 %v1951_v13, %v1911_v21  ;;  %v1956_v20 = vadd.f32 %v1952_v35, %v1912_v42  ;;  %v1957_v40 = vadd.f32 %v1953_v14, %v1913_v45  ;;  %v1958_v49 = vadd.f32 %v1954_v47, %v1914_v3 }
 0x226   : > { %v1961_v43 = vmul.f32 %v4397_v9, %v1960_v7  ;;  %v1962_v44 = vmul.f32 %v4398_v56, %v1960_v7  ;;  %v1963_v22 = vmul.f32 %v6938_v57, %v1960_v7  ;;  %v1964_v26 = vmul.f32 %v6941_v58, %v1960_v7 }
 0x227   : > { %v1971_v29 = vmul.f32 %v4397_v9, %v1970_v24  ;;  %v1972_v51 = vmul.f32 %v4398_v56, %v1970_v24  ;;  %v1973_v30 = vmul.f32 %v6938_v57, %v1970_v24  ;;  %v1974_v62 = vmul.f32 %v6941_v58, %v1970_v24 }
 0x228   : > { %v1965_v32 = vadd.f32 %v1961_v43, %v1921_v11  ;;  %v1966_v33 = vadd.f32 %v1962_v44, %v1922_v55  ;;  %v1967_v6 = vadd.f32 %v1963_v22, %v1923_v18  ;;  %v1968_v34 = vadd.f32 %v1964_v26, %v1924_v12 }
 0x229   : > { %v1975_v38 = vadd.f32 %v1971_v29, %v1931_v59  ;;  %v1976_v41 = vadd.f32 %v1972_v51, %v1932_v60  ;;  %v1977_v21 = vadd.f32 %v1973_v30, %v1933_v63  ;;  %v1978_v42 = vadd.f32 %v1974_v62, %v1934_v0 }
 0x22a   : > { %v1984_v45 = vstv %s6947_s23  ;;  %v1994_v3 = vstv %s6949_s24  ;;  %v2004_v46 = vstv %s6953_s25  ;;  %v2014_v61 = vstv %s6955_s26  ;;  %s7127_s23 = sld [smem:[#allocation4 + $0x6b]]  ;;  %s7129_s24 = sld [smem:[#allocation4 + $0x8f]] }
 0x22b   : > { %v1985_v4 = vmul.f32 %v4405_v52, %v1984_v45  ;;  %v1986_v48 = vmul.f32 %v4406_v37, %v1984_v45  ;;  %v1987_v50 = vmul.f32 %v6966_v17, %v1984_v45  ;;  %v1988_v53 = vmul.f32 %v6969_v1, %v1984_v45 }
 0x22c   : > { %v1995_v54 = vmul.f32 %v4405_v52, %v1994_v3  ;;  %v1996_v8 = vmul.f32 %v4406_v37, %v1994_v3  ;;  %v1997_v9 = vmul.f32 %v6966_v17, %v1994_v3  ;;  %v1998_v11 = vmul.f32 %v6969_v1, %v1994_v3 }
 0x22d   : > { %v1989_v55 = vadd.f32 %v1985_v4, %v1945_v31  ;;  %v1990_v18 = vadd.f32 %v1986_v48, %v1946_v15  ;;  %v1991_v12 = vadd.f32 %v1987_v50, %v1947_v36  ;;  %v1992_v56 = vadd.f32 %v1988_v53, %v1948_v16  ;;  %v6992_v31 = vld [vmem:[%s6153_s14 + $0x540] sm:$0xff]  ;;  %v6995_v15 = vld [vmem:[%s6153_s14 + $0x548] sm:$0xff] }
 0x22e   : > { %v1999_v59 = vadd.f32 %v1995_v54, %v1955_v19  ;;  %v2000_v60 = vadd.f32 %v1996_v8, %v1956_v20  ;;  %v2001_v63 = vadd.f32 %v1997_v9, %v1957_v40  ;;  %v2002_v0 = vadd.f32 %v1998_v11, %v1958_v49 }
 0x22f   : > { %v2005_v2 = vmul.f32 %v4405_v52, %v2004_v46  ;;  %v2006_v5 = vmul.f32 %v4406_v37, %v2004_v46  ;;  %v2007_v7 = vmul.f32 %v6966_v17, %v2004_v46  ;;  %v2008_v24 = vmul.f32 %v6969_v1, %v2004_v46 }
 0x230   : > { %v2015_v25 = vmul.f32 %v4405_v52, %v2014_v61  ;;  %v2016_v27 = vmul.f32 %v4406_v37, %v2014_v61  ;;  %v2017_v28 = vmul.f32 %v6966_v17, %v2014_v61  ;;  %v2018_v10 = vmul.f32 %v6969_v1, %v2014_v61 }
 0x231   : > { %v2009_v13 = vadd.f32 %v2005_v2, %v1965_v32  ;;  %v2010_v35 = vadd.f32 %v2006_v5, %v1966_v33  ;;  %v2011_v14 = vadd.f32 %v2007_v7, %v1967_v6  ;;  %v2012_v47 = vadd.f32 %v2008_v24, %v1968_v34 }
 0x232   : > { %v2019_v36 = vadd.f32 %v2015_v25, %v1975_v38  ;;  %v2020_v16 = vadd.f32 %v2016_v27, %v1976_v41  ;;  %v2021_v19 = vadd.f32 %v2017_v28, %v1977_v21  ;;  %v2022_v20 = vadd.f32 %v2018_v10, %v1978_v42 }
 0x233   : > { %v2030_v40 = vstv %s6975_s2  ;;  %v2040_v49 = vstv %s6977_s1  ;;  %v2050_v43 = vstv %s6981_s27  ;;  %v2060_v44 = vstv %s6983_s28 }
 0x234   : > { %v2031_v22 = vmul.f32 %v6910_v23, %v2030_v40  ;;  %v2032_v26 = vmul.f32 %v6913_v39, %v2030_v40  ;;  %v2033_v29 = vmul.f32 %v6992_v31, %v2030_v40  ;;  %v2034_v51 = vmul.f32 %v6995_v15, %v2030_v40 }
 0x235   : > { %v2041_v30 = vmul.f32 %v6910_v23, %v2040_v49  ;;  %v2042_v62 = vmul.f32 %v6913_v39, %v2040_v49  ;;  %v2043_v52 = vmul.f32 %v6992_v31, %v2040_v49  ;;  %v2044_v32 = vmul.f32 %v6995_v15, %v2040_v49 }
 0x236   : > { %v2035_v33 = vadd.f32 %v2031_v22, %v1989_v55  ;;  %v2036_v6 = vadd.f32 %v2032_v26, %v1990_v18  ;;  %v2037_v34 = vadd.f32 %v2033_v29, %v1991_v12  ;;  %v2038_v37 = vadd.f32 %v2034_v51, %v1992_v56  ;;  %v7026_v55 = vld [vmem:[%s6153_s14 + $0x541] sm:$0xff]  ;;  %v7029_v18 = vld [vmem:[%s6153_s14 + $0x549] sm:$0xff] }
 0x237   : > { %v2045_v38 = vadd.f32 %v2041_v30, %v1999_v59  ;;  %v2046_v41 = vadd.f32 %v2042_v62, %v2000_v60  ;;  %v2047_v21 = vadd.f32 %v2043_v52, %v2001_v63  ;;  %v2048_v42 = vadd.f32 %v2044_v32, %v2002_v0 }
 0x238   : > { %v2051_v45 = vmul.f32 %v6910_v23, %v2050_v43  ;;  %v2052_v3 = vmul.f32 %v6913_v39, %v2050_v43  ;;  %v2053_v46 = vmul.f32 %v6992_v31, %v2050_v43  ;;  %v2054_v61 = vmul.f32 %v6995_v15, %v2050_v43 }
 0x239   : > { %v2061_v4 = vmul.f32 %v6910_v23, %v2060_v44  ;;  %v2062_v48 = vmul.f32 %v6913_v39, %v2060_v44  ;;  %v2063_v50 = vmul.f32 %v6992_v31, %v2060_v44  ;;  %v2064_v53 = vmul.f32 %v6995_v15, %v2060_v44 }
 0x23a   : > { %v2055_v54 = vadd.f32 %v2051_v45, %v2009_v13  ;;  %v2056_v8 = vadd.f32 %v2052_v3, %v2010_v35  ;;  %v2057_v9 = vadd.f32 %v2053_v46, %v2011_v14  ;;  %v2058_v11 = vadd.f32 %v2054_v61, %v2012_v47 }
 0x23b   : > { %v2065_v12 = vadd.f32 %v2061_v4, %v2019_v36  ;;  %v2066_v56 = vadd.f32 %v2062_v48, %v2020_v16  ;;  %v2067_v59 = vadd.f32 %v2063_v50, %v2021_v19  ;;  %v2068_v23 = vadd.f32 %v2064_v53, %v2022_v20 }
 0x23c   : > { %v2074_v60 = vstv %s7001_s29  ;;  %v2084_v63 = vstv %s7003_s30  ;;  %v2094_v39 = vstv %s7009_s7  ;;  %v2104_v0 = vstv %s7011_s8 }
 0x23d   : > { %v2075_v2 = vmul.f32 %v6938_v57, %v2074_v60  ;;  %v2076_v5 = vmul.f32 %v6941_v58, %v2074_v60  ;;  %v2077_v7 = vmul.f32 %v7026_v55, %v2074_v60  ;;  %v2078_v24 = vmul.f32 %v7029_v18, %v2074_v60 }
 0x23e   : > { %v2085_v25 = vmul.f32 %v6938_v57, %v2084_v63  ;;  %v2086_v27 = vmul.f32 %v6941_v58, %v2084_v63  ;;  %v2087_v28 = vmul.f32 %v7026_v55, %v2084_v63  ;;  %v2088_v10 = vmul.f32 %v7029_v18, %v2084_v63 }
 0x23f   : > { %v2079_v13 = vadd.f32 %v2075_v2, %v2035_v33  ;;  %v2080_v35 = vadd.f32 %v2076_v5, %v2036_v6  ;;  %v2081_v14 = vadd.f32 %v2077_v7, %v2037_v34  ;;  %v2082_v47 = vadd.f32 %v2078_v24, %v2038_v37  ;;  %v7060_v33 = vld [vmem:[%s6153_s14 + $0x542] sm:$0xff]  ;;  %v7063_v6 = vld [vmem:[%s6153_s14 + $0x54a] sm:$0xff] }
 0x240   : > { %v2089_v36 = vadd.f32 %v2085_v25, %v2045_v38  ;;  %v2090_v16 = vadd.f32 %v2086_v27, %v2046_v41  ;;  %v2091_v19 = vadd.f32 %v2087_v28, %v2047_v21  ;;  %v2092_v20 = vadd.f32 %v2088_v10, %v2048_v42 }
 0x241   : > { %v2095_v40 = vmul.f32 %v6938_v57, %v2094_v39  ;;  %v2096_v49 = vmul.f32 %v6941_v58, %v2094_v39  ;;  %v2097_v43 = vmul.f32 %v7026_v55, %v2094_v39  ;;  %v2098_v44 = vmul.f32 %v7029_v18, %v2094_v39 }
 0x242   : > { %v2105_v22 = vmul.f32 %v6938_v57, %v2104_v0  ;;  %v2106_v26 = vmul.f32 %v6941_v58, %v2104_v0  ;;  %v2107_v29 = vmul.f32 %v7026_v55, %v2104_v0  ;;  %v2108_v51 = vmul.f32 %v7029_v18, %v2104_v0 }
 0x243   : > { %v2099_v30 = vadd.f32 %v2095_v40, %v2055_v54  ;;  %v2100_v62 = vadd.f32 %v2096_v49, %v2056_v8  ;;  %v2101_v52 = vadd.f32 %v2097_v43, %v2057_v9  ;;  %v2102_v32 = vadd.f32 %v2098_v44, %v2058_v11 }
 0x244   : > { %v2109_v34 = vadd.f32 %v2105_v22, %v2065_v12  ;;  %v2110_v37 = vadd.f32 %v2106_v26, %v2066_v56  ;;  %v2111_v38 = vadd.f32 %v2107_v29, %v2067_v59  ;;  %v2112_v57 = vadd.f32 %v2108_v51, %v2068_v23 }
 0x245   : > { %v2118_v41 = vstv %s7035_s9  ;;  %v2128_v21 = vstv %s7037_s3  ;;  %v2138_v58 = vstv %s7043_s10  ;;  %v2148_v42 = vstv %s7045_s11 }
 0x246   : > { %v2119_v45 = vmul.f32 %v6966_v17, %v2118_v41  ;;  %v2120_v3 = vmul.f32 %v6969_v1, %v2118_v41  ;;  %v2121_v46 = vmul.f32 %v7060_v33, %v2118_v41  ;;  %v2122_v61 = vmul.f32 %v7063_v6, %v2118_v41 }
 0x247   : > { %v2129_v4 = vmul.f32 %v6966_v17, %v2128_v21  ;;  %v2130_v48 = vmul.f32 %v6969_v1, %v2128_v21  ;;  %v2131_v50 = vmul.f32 %v7060_v33, %v2128_v21  ;;  %v2132_v53 = vmul.f32 %v7063_v6, %v2128_v21 }
 0x248   : > { %v2123_v54 = vadd.f32 %v2119_v45, %v2079_v13  ;;  %v2124_v8 = vadd.f32 %v2120_v3, %v2080_v35  ;;  %v2125_v9 = vadd.f32 %v2121_v46, %v2081_v14  ;;  %v2126_v11 = vadd.f32 %v2122_v61, %v2082_v47  ;;  %v4443_v13 = vld [vmem:[%s6153_s14 + $0x558] sm:$0xff]  ;;  %v4444_v35 = vld [vmem:[%s6153_s14 + $0x560] sm:$0xff] }
 0x249   : > { %v2133_v12 = vadd.f32 %v2129_v4, %v2089_v36  ;;  %v2134_v56 = vadd.f32 %v2130_v48, %v2090_v16  ;;  %v2135_v59 = vadd.f32 %v2131_v50, %v2091_v19  ;;  %v2136_v23 = vadd.f32 %v2132_v53, %v2092_v20 }
 0x24a   : > { %v2139_v60 = vmul.f32 %v6966_v17, %v2138_v58  ;;  %v2140_v63 = vmul.f32 %v6969_v1, %v2138_v58  ;;  %v2141_v39 = vmul.f32 %v7060_v33, %v2138_v58  ;;  %v2142_v0 = vmul.f32 %v7063_v6, %v2138_v58 }
 0x24b   : > { %v2149_v2 = vmul.f32 %v6966_v17, %v2148_v42  ;;  %v2150_v5 = vmul.f32 %v6969_v1, %v2148_v42  ;;  %v2151_v7 = vmul.f32 %v7060_v33, %v2148_v42  ;;  %v2152_v24 = vmul.f32 %v7063_v6, %v2148_v42 }
 0x24c   : > { %v2143_v25 = vadd.f32 %v2139_v60, %v2099_v30  ;;  %v2144_v27 = vadd.f32 %v2140_v63, %v2100_v62  ;;  %v2145_v28 = vadd.f32 %v2141_v39, %v2101_v52  ;;  %v2146_v10 = vadd.f32 %v2142_v0, %v2102_v32 }
 0x24d   : > { %v2153_v14 = vadd.f32 %v2149_v2, %v2109_v34  ;;  %v2154_v47 = vadd.f32 %v2150_v5, %v2110_v37  ;;  %v2155_v36 = vadd.f32 %v2151_v7, %v2111_v38  ;;  %v2156_v16 = vadd.f32 %v2152_v24, %v2112_v57 }
 0x24e   : > { %v2164_v19 = vstv %s7069_s12  ;;  %v2174_v17 = vstv %s7071_s13  ;;  %v2184_v20 = vstv %s7077_s15  ;;  %v2194_v40 = vstv %s7079_s16 }
 0x24f   : > { %v2165_v1 = vmul.f32 %v6992_v31, %v2164_v19  ;;  %v2166_v49 = vmul.f32 %v6995_v15, %v2164_v19  ;;  %v2167_v43 = vmul.f32 %v4443_v13, %v2164_v19  ;;  %v2168_v44 = vmul.f32 %v4444_v35, %v2164_v19 }
 0x250   : > { %v2175_v22 = vmul.f32 %v6992_v31, %v2174_v17  ;;  %v2176_v26 = vmul.f32 %v6995_v15, %v2174_v17  ;;  %v2177_v29 = vmul.f32 %v4443_v13, %v2174_v17  ;;  %v2178_v51 = vmul.f32 %v4444_v35, %v2174_v17 }
 0x251   : > { %v2169_v30 = vadd.f32 %v2165_v1, %v2123_v54  ;;  %v2170_v62 = vadd.f32 %v2166_v49, %v2124_v8  ;;  %v2171_v52 = vadd.f32 %v2167_v43, %v2125_v9  ;;  %v2172_v32 = vadd.f32 %v2168_v44, %v2126_v11  ;;  %v4451_v54 = vld [vmem:[%s6153_s14 + $0x559] sm:$0xff]  ;;  %v4452_v8 = vld [vmem:[%s6153_s14 + $0x561] sm:$0xff] }
 0x252   : > { %v2179_v34 = vadd.f32 %v2175_v22, %v2133_v12  ;;  %v2180_v37 = vadd.f32 %v2176_v26, %v2134_v56  ;;  %v2181_v38 = vadd.f32 %v2177_v29, %v2135_v59  ;;  %v2182_v57 = vadd.f32 %v2178_v51, %v2136_v23  ;;  %v4459_v29 = vld [vmem:[%s6153_s14 + $0x55a] sm:$0xff]  ;;  %v4460_v51 = vld [vmem:[%s6153_s14 + $0x562] sm:$0xff]  ;;  %s4080_s14 = scalar_lea.vmem [#allocation3], %s4173_s4  ;;  %s7172_s4 = smov (%p668_p6), 0  }
 0x253   : > { %v2185_v41 = vmul.f32 %v6992_v31, %v2184_v20  ;;  %v2186_v21 = vmul.f32 %v6995_v15, %v2184_v20  ;;  %v2187_v58 = vmul.f32 %v4443_v13, %v2184_v20  ;;  %v2188_v42 = vmul.f32 %v4444_v35, %v2184_v20 }
 0x254   : > { %v2195_v45 = vmul.f32 %v6992_v31, %v2194_v40  ;;  %v2196_v3 = vmul.f32 %v6995_v15, %v2194_v40  ;;  %v2197_v46 = vmul.f32 %v4443_v13, %v2194_v40  ;;  %v2198_v61 = vmul.f32 %v4444_v35, %v2194_v40 }
 0x255   : > { %v2189_v4 = vadd.f32 %v2185_v41, %v2143_v25  ;;  %v2190_v48 = vadd.f32 %v2186_v21, %v2144_v27  ;;  %v2191_v50 = vadd.f32 %v2187_v58, %v2145_v28  ;;  %v2192_v53 = vadd.f32 %v2188_v42, %v2146_v10 }
 0x256   : > { %v2199_v9 = vadd.f32 %v2195_v45, %v2153_v14  ;;  %v2200_v11 = vadd.f32 %v2196_v3, %v2154_v47  ;;  %v2201_v12 = vadd.f32 %v2197_v46, %v2155_v36  ;;  %v2202_v56 = vadd.f32 %v2198_v61, %v2156_v16 }
 0x257   : > { %v2208_v59 = vstv %s7099_s17  ;;  %v2218_v23 = vstv %s7101_s18  ;;  %v2228_v60 = vstv %s7105_s19  ;;  %v2238_v31 = vstv %s7107_s20 }
 0x258   : > { %v2209_v15 = vmul.f32 %v7026_v55, %v2208_v59  ;;  %v2210_v63 = vmul.f32 %v7029_v18, %v2208_v59  ;;  %v2211_v39 = vmul.f32 %v4451_v54, %v2208_v59  ;;  %v2212_v0 = vmul.f32 %v4452_v8, %v2208_v59 }
 0x259   : > { %v2219_v2 = vmul.f32 %v7026_v55, %v2218_v23  ;;  %v2220_v5 = vmul.f32 %v7029_v18, %v2218_v23  ;;  %v2221_v7 = vmul.f32 %v4451_v54, %v2218_v23  ;;  %v2222_v24 = vmul.f32 %v4452_v8, %v2218_v23 }
 0x25a   : > { %v2213_v25 = vadd.f32 %v2209_v15, %v2169_v30  ;;  %v2214_v27 = vadd.f32 %v2210_v63, %v2170_v62  ;;  %v2215_v28 = vadd.f32 %v2211_v39, %v2171_v52  ;;  %v2216_v10 = vadd.f32 %v2212_v0, %v2172_v32 }
 0x25b   : > { %v2223_v13 = vadd.f32 %v2219_v2, %v2179_v34  ;;  %v2224_v35 = vadd.f32 %v2220_v5, %v2180_v37  ;;  %v2225_v14 = vadd.f32 %v2221_v7, %v2181_v38  ;;  %v2226_v47 = vadd.f32 %v2222_v24, %v2182_v57 }
 0x25c   : > { %v2229_v36 = vmul.f32 %v7026_v55, %v2228_v60  ;;  %v2230_v16 = vmul.f32 %v7029_v18, %v2228_v60  ;;  %v2231_v19 = vmul.f32 %v4451_v54, %v2228_v60  ;;  %v2232_v17 = vmul.f32 %v4452_v8, %v2228_v60 }
 0x25d   : > { %v2239_v20 = vmul.f32 %v7026_v55, %v2238_v31  ;;  %v2240_v40 = vmul.f32 %v7029_v18, %v2238_v31  ;;  %v2241_v1 = vmul.f32 %v4451_v54, %v2238_v31  ;;  %v2242_v49 = vmul.f32 %v4452_v8, %v2238_v31 }
 0x25e   : > { %v2233_v43 = vadd.f32 %v2229_v36, %v2189_v4  ;;  %v2234_v44 = vadd.f32 %v2230_v16, %v2190_v48  ;;  %v2235_v22 = vadd.f32 %v2231_v19, %v2191_v50  ;;  %v2236_v26 = vadd.f32 %v2232_v17, %v2192_v53 }
 0x25f   : > { %v2243_v30 = vadd.f32 %v2239_v20, %v2199_v9  ;;  %v2244_v62 = vadd.f32 %v2240_v40, %v2200_v11  ;;  %v2245_v52 = vadd.f32 %v2241_v1, %v2201_v12  ;;  %v2246_v32 = vadd.f32 %v2242_v49, %v2202_v56 }
 0x260   : > { %v2252_v34 = vstv %s7121_s21  ;;  %v2262_v37 = vstv %s7123_s22  ;;  %v2272_v38 = vstv %s7127_s23  ;;  %v2282_v55 = vstv %s7129_s24 }
 0x261   : > { %v2253_v57 = vmul.f32 %v7060_v33, %v2252_v34  ;;  %v2254_v18 = vmul.f32 %v7063_v6, %v2252_v34  ;;  %v2255_v41 = vmul.f32 %v4459_v29, %v2252_v34  ;;  %v2256_v21 = vmul.f32 %v4460_v51, %v2252_v34 }
 0x262   : > { %v2263_v58 = vmul.f32 %v7060_v33, %v2262_v37  ;;  %v2264_v42 = vmul.f32 %v7063_v6, %v2262_v37  ;;  %v2265_v45 = vmul.f32 %v4459_v29, %v2262_v37  ;;  %v2266_v3 = vmul.f32 %v4460_v51, %v2262_v37 }
 0x263   : > { %v2257_v46 = vadd.f32 %v2253_v57, %v2213_v25  ;;  %v2258_v61 = vadd.f32 %v2254_v18, %v2214_v27  ;;  %v2259_v4 = vadd.f32 %v2255_v41, %v2215_v28  ;;  %v2260_v48 = vadd.f32 %v2256_v21, %v2216_v10 }
 0x264   : > { %v2267_v50 = vadd.f32 %v2263_v58, %v2223_v13  ;;  %v2268_v53 = vadd.f32 %v2264_v42, %v2224_v35  ;;  %v2269_v54 = vadd.f32 %v2265_v45, %v2225_v14  ;;  %v2270_v8 = vadd.f32 %v2266_v3, %v2226_v47 }
 0x265   : > { %v2273_v9 = vmul.f32 %v7060_v33, %v2272_v38  ;;  %v2274_v11 = vmul.f32 %v7063_v6, %v2272_v38  ;;  %v2275_v12 = vmul.f32 %v4459_v29, %v2272_v38  ;;  %v2276_v56 = vmul.f32 %v4460_v51, %v2272_v38 }
 0x266   : > { %v2283_v59 = vmul.f32 %v7060_v33, %v2282_v55  ;;  %v2284_v23 = vmul.f32 %v7063_v6, %v2282_v55  ;;  %v2285_v60 = vmul.f32 %v4459_v29, %v2282_v55  ;;  %v2286_v31 = vmul.f32 %v4460_v51, %v2282_v55 }
 0x267   : > { %v2277_v15 = vadd.f32 %v2273_v9, %v2233_v43  ;;  %v2278_v63 = vadd.f32 %v2274_v11, %v2234_v44  ;;  %v2279_v39 = vadd.f32 %v2275_v12, %v2235_v22  ;;  %v2280_v0 = vadd.f32 %v2276_v56, %v2236_v26 }
 0x268   : > { %v2287_v2 = vadd.f32 %v2283_v59, %v2243_v30  ;;  %v2288_v5 = vadd.f32 %v2284_v23, %v2244_v62  ;;  %v2289_v7 = vadd.f32 %v2285_v60, %v2245_v52  ;;  %v2290_v24 = vadd.f32 %v2286_v31, %v2246_v32 }
 0x269   : > { %v2291_v25 = vmax.f32 %v2257_v46, 0.0  ;;  %v2292_v27 = vmax.f32 %v2258_v61, 0.0  ;;  %v2293_v28 = vmax.f32 %v2259_v4, 0.0  ;;  %v2294_v10 = vmax.f32 %v2260_v48, 0.0 }
 0x26a   : > { %v2300_v13 = vmax.f32 %v2267_v50, 0.0  ;;  %v2301_v35 = vmax.f32 %v2268_v53, 0.0  ;;  %v2302_v33 = vmax.f32 %v2269_v54, 0.0  ;;  %v2303_v14 = vmax.f32 %v2270_v8, 0.0 }
 0x26b   : > { %4467 = vst.msk [vmem:[%s4080_s14 + $0x19] sm:$0xff] %vm68_vm0, %v2291_v25  ;;  %4468 = vst.msk [vmem:[%s4080_s14 + $0x21] sm:$0xff] %vm68_vm0, %v2292_v27  ;;  %v2309_v6 = vmax.f32 %v2277_v15, 0.0  ;;  %v2310_v47 = vmax.f32 %v2278_v63, 0.0  ;;  %v2311_v36 = vmax.f32 %v2279_v39, 0.0  ;;  %v2312_v16 = vmax.f32 %v2280_v0, 0.0 }
 0x26c   : > { %4469 = vst.msk [vmem:[%s4080_s14 + $0x31] sm:$0xff] %vm68_vm0, %v2293_v28  ;;  %4470 = vst.msk [vmem:[%s4080_s14 + $0x39] sm:$0xff] %vm68_vm0, %v2294_v10  ;;  %v2318_v19 = vmax.f32 %v2287_v2, 0.0  ;;  %v2319_v17 = vmax.f32 %v2288_v5, 0.0  ;;  %v2320_v20 = vmax.f32 %v2289_v7, 0.0  ;;  %v2321_v40 = vmax.f32 %v2290_v24, 0.0 }
 0x26d   : > { %4473 = vst.msk [vmem:[%s4080_s14 + $0x1c9] sm:$0xff] %vm68_vm0, %v2300_v13  ;;  %4474 = vst.msk [vmem:[%s4080_s14 + $0x1d1] sm:$0xff] %vm68_vm0, %v2301_v35  ;;  %670 = sbr.rel (!%p668_p6) target bundleno = 284 (0x11c), region = 109 }
 0x26e   : > { %4475 = vst.msk [vmem:[%s4080_s14 + $0x1e1] sm:$0xff] %vm68_vm0, %v2302_v33  ;;  %4476 = vst.msk [vmem:[%s4080_s14 + $0x1e9] sm:$0xff] %vm68_vm0, %v2303_v14 }
 0x26f   : > { %4479 = vst.msk [vmem:[%s4080_s14 + $0x379] sm:$0xff] %vm68_vm0, %v2309_v6  ;;  %4480 = vst.msk [vmem:[%s4080_s14 + $0x381] sm:$0xff] %vm68_vm0, %v2310_v47 }
 0x270   : > { %4481 = vst.msk [vmem:[%s4080_s14 + $0x391] sm:$0xff] %vm68_vm0, %v2311_v36  ;;  %4482 = vst.msk [vmem:[%s4080_s14 + $0x399] sm:$0xff] %vm68_vm0, %v2312_v16 }
 0x271   : > { %4485 = vst.msk [vmem:[%s4080_s14 + $0x529] sm:$0xff] %vm68_vm0, %v2318_v19  ;;  %4486 = vst.msk [vmem:[%s4080_s14 + $0x531] sm:$0xff] %vm68_vm0, %v2319_v17 }
 0x272   : > { %4487 = vst.msk [vmem:[%s4080_s14 + $0x541] sm:$0xff] %vm68_vm0, %v2320_v20  ;;  %4488 = vst.msk [vmem:[%s4080_s14 + $0x549] sm:$0xff] %vm68_vm0, %v2321_v40 }
 0x274 LB: > { %s2334_s25 = sld [smem:[#allocation9]]  ;;  %s4490_s26 = sld [smem:[#allocation9 + $0x1]]  ;;  %s4906_s4 = sphi %s7172_s4, %s2332_s4  }
 0x275   : > { %s4491_s2 = sld [smem:[#allocation9 + $0x2]]  ;;  %s4492_s1 = sld [smem:[#allocation9 + $0x3]] }
 0x276   : > { %s4493_s27 = smul.u32 48, %s4906_s4  ;;  %s2348_s28 = sld [smem:[#allocation8]] }
 0x277   : > { %s4494_s29 = sld [smem:[#allocation8 + $0x24]]  ;;  %s4495_s30 = sld [smem:[#allocation8 + $0x48]] }
 0x278   : > { %s4496_s7 = sld [smem:[#allocation8 + $0x6c]]  ;;  %s7178_s8 = scalar_lea.vmem [#allocation3], %s4493_s27 }
 0x279   : > { %v2344_v1 = vld [vmem:[%s7178_s8] sm:$0xff]  ;;  %v2345_v49 = vld [vmem:[%s7178_s8 + $0x8] sm:$0xff]  ;;  %v7183_v43 = vld [vmem:[%s7178_s8 + $0x18] sm:$0xff]  ;;  %s7188_s6 = sld [smem:[#allocation8 + $0x1]]  ;;  %s7190_s9 = sld [smem:[#allocation8 + $0x25]] }
 0x27a   : > { %v7186_v44 = vld [vmem:[%s7178_s8 + $0x20] sm:$0xff]  ;;  %v2335_v22 = vstv %s2334_s25  ;;  %v2337_v26 = vstv %s4490_s26  ;;  %s7194_s3 = sld [smem:[#allocation8 + $0x49]]  ;;  %s7196_s10 = sld [smem:[#allocation8 + $0x6d]]  ;;  %v2389_v63 = vld [vmem:[%s7178_s8 + $0x9] sm:$0xff] }
 0x27b   : > { %v2339_v29 = vstv %s4491_s2  ;;  %v2341_v34 = vstv %s4492_s1  ;;  %v2388_v59 = vld [vmem:[%s7178_s8 + $0x1] sm:$0xff]  ;;  %v7207_v39 = vld [vmem:[%s7178_s8 + $0x19] sm:$0xff]  ;;  %s7216_s11 = sld [smem:[#allocation8 + $0x2]]  ;;  %s7218_s12 = sld [smem:[#allocation8 + $0x26]] }
 0x27c   : > { %v2349_v51 = vstv %s2348_s28  ;;  %v7210_v0 = vld [vmem:[%s7178_s8 + $0x21] sm:$0xff]  ;;  %s7222_s13 = sld [smem:[#allocation8 + $0x4a]]  ;;  %s7224_s15 = sld [smem:[#allocation8 + $0x6e]] }
 0x27d   : > { %v2350_v30 = vmul.f32 %v2349_v51, %v2344_v1  ;;  %v2351_v62 = vmul.f32 %v2349_v51, %v2345_v49  ;;  %v2352_v52 = vmul.f32 %v2349_v51, %v7183_v43  ;;  %v2353_v32 = vmul.f32 %v2349_v51, %v7186_v44  ;;  %s7244_s16 = sld [smem:[#allocation8 + $0x3]]  ;;  %s7246_s17 = sld [smem:[#allocation8 + $0x27]] }
 0x27e   : > { %v2359_v37 = vstv %s4494_s29  ;;  %v2369_v38 = vstv %s4495_s30  ;;  %v2379_v55 = vstv %s4496_s7  ;;  %s7250_s18 = sld [smem:[#allocation8 + $0x4b]]  ;;  %s7252_s19 = sld [smem:[#allocation8 + $0x6f]] }
 0x27f   : > { %v2354_v57 = vadd.f32 %v2350_v30, %v2335_v22  ;;  %v2355_v18 = vadd.f32 %v2351_v62, %v2335_v22  ;;  %v2356_v41 = vadd.f32 %v2352_v52, %v2335_v22  ;;  %v2357_v21 = vadd.f32 %v2353_v32, %v2335_v22  ;;  %s7270_s20 = sld [smem:[#allocation8 + $0x4]]  ;;  %s7272_s21 = sld [smem:[#allocation8 + $0x28]] }
 0x280   : > { %v2360_v58 = vmul.f32 %v2359_v37, %v2344_v1  ;;  %v2361_v42 = vmul.f32 %v2359_v37, %v2345_v49  ;;  %v2362_v45 = vmul.f32 %v2359_v37, %v7183_v43  ;;  %v2363_v3 = vmul.f32 %v2359_v37, %v7186_v44  ;;  %s7278_s22 = sld [smem:[#allocation8 + $0x4c]]  ;;  %s7280_s23 = sld [smem:[#allocation8 + $0x70]] }
 0x281   : > { %v2370_v46 = vmul.f32 %v2369_v38, %v2344_v1  ;;  %v2371_v61 = vmul.f32 %v2369_v38, %v2345_v49  ;;  %v2372_v4 = vmul.f32 %v2369_v38, %v7183_v43  ;;  %v2373_v48 = vmul.f32 %v2369_v38, %v7186_v44  ;;  %v2432_v38 = vld [vmem:[%s7178_s8 + $0x2] sm:$0xff]  ;;  %s7304_s24 = sld [smem:[#allocation8 + $0x5]]  ;;  %s7306_s14 = sld [smem:[#allocation8 + $0x29]] }
 0x282   : > { %v2364_v50 = vadd.f32 %v2360_v58, %v2337_v26  ;;  %v2365_v53 = vadd.f32 %v2361_v42, %v2337_v26  ;;  %v2366_v54 = vadd.f32 %v2362_v45, %v2337_v26  ;;  %v2367_v8 = vadd.f32 %v2363_v3, %v2337_v26  ;;  %v7235_v58 = vld [vmem:[%s7178_s8 + $0x1a] sm:$0xff]  ;;  %v7238_v42 = vld [vmem:[%s7178_s8 + $0x22] sm:$0xff]  ;;  %s7312_s25 = sld [smem:[#allocation8 + $0x4d]]  ;;  %s7314_s26 = sld [smem:[#allocation8 + $0x71]] }
 0x283   : > { %v2374_v9 = vadd.f32 %v2370_v46, %v2339_v29  ;;  %v2375_v11 = vadd.f32 %v2371_v61, %v2339_v29  ;;  %v2376_v12 = vadd.f32 %v2372_v4, %v2339_v29  ;;  %v2377_v56 = vadd.f32 %v2373_v48, %v2339_v29  ;;  %s7338_s2 = sld [smem:[#allocation8 + $0x6]]  ;;  %s7340_s1 = sld [smem:[#allocation8 + $0x2a]] }
 0x284   : > { %v2380_v23 = vmul.f32 %v2379_v55, %v2344_v1  ;;  %v2381_v60 = vmul.f32 %v2379_v55, %v2345_v49  ;;  %v2382_v31 = vmul.f32 %v2379_v55, %v7183_v43  ;;  %v2383_v15 = vmul.f32 %v2379_v55, %v7186_v44  ;;  %s7346_s27 = sld [smem:[#allocation8 + $0x4e]]  ;;  %s7348_s28 = sld [smem:[#allocation8 + $0x72]] }
 0x285   : > { %v2393_v2 = vstv %s7188_s6  ;;  %v2403_v5 = vstv %s7190_s9  ;;  %v2413_v7 = vstv %s7194_s3  ;;  %v2423_v24 = vstv %s7196_s10  ;;  %s7368_s29 = sld [smem:[#allocation8 + $0x7]]  ;;  %s7370_s30 = sld [smem:[#allocation8 + $0x2b]] }
 0x286   : > { %v2384_v25 = vadd.f32 %v2380_v23, %v2341_v34  ;;  %v2385_v27 = vadd.f32 %v2381_v60, %v2341_v34  ;;  %v2386_v28 = vadd.f32 %v2382_v31, %v2341_v34  ;;  %v2387_v10 = vadd.f32 %v2383_v15, %v2341_v34  ;;  %s7374_s7 = sld [smem:[#allocation8 + $0x4f]]  ;;  %s7376_s6 = sld [smem:[#allocation8 + $0x73]] }
 0x287   : > { %v2394_v13 = vmul.f32 %v2393_v2, %v2388_v59  ;;  %v2395_v35 = vmul.f32 %v2393_v2, %v2389_v63  ;;  %v2396_v33 = vmul.f32 %v2393_v2, %v7207_v39  ;;  %v2397_v14 = vmul.f32 %v2393_v2, %v7210_v0  ;;  %s7390_s9 = sld [smem:[#allocation8 + $0x8]]  ;;  %s7392_s3 = sld [smem:[#allocation8 + $0x2c]] }
 0x288   : > { %v2404_v6 = vmul.f32 %v2403_v5, %v2388_v59  ;;  %v2405_v47 = vmul.f32 %v2403_v5, %v2389_v63  ;;  %v2406_v36 = vmul.f32 %v2403_v5, %v7207_v39  ;;  %v2407_v16 = vmul.f32 %v2403_v5, %v7210_v0  ;;  %s7396_s10 = sld [smem:[#allocation8 + $0x50]] }
 0x289   : > { %v2398_v19 = vadd.f32 %v2394_v13, %v2354_v57  ;;  %v2399_v17 = vadd.f32 %v2395_v35, %v2355_v18  ;;  %v2400_v20 = vadd.f32 %v2396_v33, %v2356_v41  ;;  %v2401_v40 = vadd.f32 %v2397_v14, %v2357_v21  ;;  %v2433_v21 = vld [vmem:[%s7178_s8 + $0xa] sm:$0xff] }
 0x28a   : > { %v2408_v1 = vadd.f32 %v2404_v6, %v2364_v50  ;;  %v2409_v49 = vadd.f32 %v2405_v47, %v2365_v53  ;;  %v2410_v22 = vadd.f32 %v2406_v36, %v2366_v54  ;;  %v2411_v26 = vadd.f32 %v2407_v16, %v2367_v8 }
 0x28b   : > { %v2414_v29 = vmul.f32 %v2413_v7, %v2388_v59  ;;  %v2415_v51 = vmul.f32 %v2413_v7, %v2389_v63  ;;  %v2416_v30 = vmul.f32 %v2413_v7, %v7207_v39  ;;  %v2417_v62 = vmul.f32 %v2413_v7, %v7210_v0 }
 0x28c   : > { %v2424_v52 = vmul.f32 %v2423_v24, %v2388_v59  ;;  %v2425_v32 = vmul.f32 %v2423_v24, %v2389_v63  ;;  %v2426_v34 = vmul.f32 %v2423_v24, %v7207_v39  ;;  %v2427_v37 = vmul.f32 %v2423_v24, %v7210_v0 }
 0x28d   : > { %v2418_v55 = vadd.f32 %v2414_v29, %v2374_v9  ;;  %v2419_v57 = vadd.f32 %v2415_v51, %v2375_v11  ;;  %v2420_v18 = vadd.f32 %v2416_v30, %v2376_v12  ;;  %v2421_v41 = vadd.f32 %v2417_v62, %v2377_v56 }
 0x28e   : > { %v2428_v45 = vadd.f32 %v2424_v52, %v2384_v25  ;;  %v2429_v3 = vadd.f32 %v2425_v32, %v2385_v27  ;;  %v2430_v46 = vadd.f32 %v2426_v34, %v2386_v28  ;;  %v2431_v61 = vadd.f32 %v2427_v37, %v2387_v10 }
 0x28f   : > { %v2437_v4 = vstv %s7216_s11  ;;  %v2447_v48 = vstv %s7218_s12  ;;  %v2457_v50 = vstv %s7222_s13  ;;  %v2467_v53 = vstv %s7224_s15  ;;  %s7398_s11 = sld [smem:[#allocation8 + $0x74]]  ;;  %s7412_s12 = sld [smem:[#allocation8 + $0x9]] }
 0x290   : > { %v2438_v54 = vmul.f32 %v2437_v4, %v2432_v38  ;;  %v2439_v8 = vmul.f32 %v2437_v4, %v2433_v21  ;;  %v2440_v9 = vmul.f32 %v2437_v4, %v7235_v58  ;;  %v2441_v11 = vmul.f32 %v2437_v4, %v7238_v42  ;;  %s7414_s13 = sld [smem:[#allocation8 + $0x2d]]  ;;  %s7418_s15 = sld [smem:[#allocation8 + $0x51]] }
 0x291   : > { %v2448_v12 = vmul.f32 %v2447_v48, %v2432_v38  ;;  %v2449_v56 = vmul.f32 %v2447_v48, %v2433_v21  ;;  %v2450_v59 = vmul.f32 %v2447_v48, %v7235_v58  ;;  %v2451_v23 = vmul.f32 %v2447_v48, %v7238_v42 }
 0x292   : > { %v2442_v60 = vadd.f32 %v2438_v54, %v2398_v19  ;;  %v2443_v31 = vadd.f32 %v2439_v8, %v2399_v17  ;;  %v2444_v15 = vadd.f32 %v2440_v9, %v2400_v20  ;;  %v2445_v63 = vadd.f32 %v2441_v11, %v2401_v40  ;;  %v7261_v19 = vld [vmem:[%s7178_s8 + $0x30] sm:$0xff]  ;;  %v7264_v17 = vld [vmem:[%s7178_s8 + $0x38] sm:$0xff] }
 0x293   : > { %v2452_v2 = vadd.f32 %v2448_v12, %v2408_v1  ;;  %v2453_v5 = vadd.f32 %v2449_v56, %v2409_v49  ;;  %v2454_v7 = vadd.f32 %v2450_v59, %v2410_v22  ;;  %v2455_v24 = vadd.f32 %v2451_v23, %v2411_v26 }
 0x294   : > { %v2458_v25 = vmul.f32 %v2457_v50, %v2432_v38  ;;  %v2459_v27 = vmul.f32 %v2457_v50, %v2433_v21  ;;  %v2460_v28 = vmul.f32 %v2457_v50, %v7235_v58  ;;  %v2461_v10 = vmul.f32 %v2457_v50, %v7238_v42 }
 0x295   : > { %v2468_v13 = vmul.f32 %v2467_v53, %v2432_v38  ;;  %v2469_v35 = vmul.f32 %v2467_v53, %v2433_v21  ;;  %v2470_v33 = vmul.f32 %v2467_v53, %v7235_v58  ;;  %v2471_v14 = vmul.f32 %v2467_v53, %v7238_v42 }
 0x296   : > { %v2462_v6 = vadd.f32 %v2458_v25, %v2418_v55  ;;  %v2463_v47 = vadd.f32 %v2459_v27, %v2419_v57  ;;  %v2464_v36 = vadd.f32 %v2460_v28, %v2420_v18  ;;  %v2465_v16 = vadd.f32 %v2461_v10, %v2421_v41 }
 0x297   : > { %v2472_v20 = vadd.f32 %v2468_v13, %v2428_v45  ;;  %v2473_v40 = vadd.f32 %v2469_v35, %v2429_v3  ;;  %v2474_v1 = vadd.f32 %v2470_v33, %v2430_v46  ;;  %v2475_v49 = vadd.f32 %v2471_v14, %v2431_v61 }
 0x298   : > { %v2484_v22 = vstv %s7244_s16  ;;  %v2494_v26 = vstv %s7246_s17  ;;  %v2504_v29 = vstv %s7250_s18  ;;  %v2514_v51 = vstv %s7252_s19  ;;  %s7420_s16 = sld [smem:[#allocation8 + $0x75]]  ;;  %s7440_s17 = sld [smem:[#allocation8 + $0xa]] }
 0x299   : > { %v2485_v30 = vmul.f32 %v2484_v22, %v7183_v43  ;;  %v2486_v62 = vmul.f32 %v2484_v22, %v7186_v44  ;;  %v2487_v52 = vmul.f32 %v7261_v19, %v2484_v22  ;;  %v2488_v32 = vmul.f32 %v7264_v17, %v2484_v22  ;;  %s7442_s18 = sld [smem:[#allocation8 + $0x2e]]  ;;  %s7446_s19 = sld [smem:[#allocation8 + $0x52]] }
 0x29a   : > { %v2495_v34 = vmul.f32 %v2494_v26, %v7183_v43  ;;  %v2496_v37 = vmul.f32 %v2494_v26, %v7186_v44  ;;  %v2497_v38 = vmul.f32 %v7261_v19, %v2494_v26  ;;  %v2498_v55 = vmul.f32 %v7264_v17, %v2494_v26 }
 0x29b   : > { %v2489_v57 = vadd.f32 %v2485_v30, %v2442_v60  ;;  %v2490_v18 = vadd.f32 %v2486_v62, %v2443_v31  ;;  %v2491_v41 = vadd.f32 %v2487_v52, %v2444_v15  ;;  %v2492_v21 = vadd.f32 %v2488_v32, %v2445_v63  ;;  %v7295_v60 = vld [vmem:[%s7178_s8 + $0x31] sm:$0xff]  ;;  %v7298_v31 = vld [vmem:[%s7178_s8 + $0x39] sm:$0xff] }
 0x29c   : > { %v2499_v45 = vadd.f32 %v2495_v34, %v2452_v2  ;;  %v2500_v3 = vadd.f32 %v2496_v37, %v2453_v5  ;;  %v2501_v46 = vadd.f32 %v2497_v38, %v2454_v7  ;;  %v2502_v61 = vadd.f32 %v2498_v55, %v2455_v24 }
 0x29d   : > { %v2505_v4 = vmul.f32 %v2504_v29, %v7183_v43  ;;  %v2506_v48 = vmul.f32 %v2504_v29, %v7186_v44  ;;  %v2507_v50 = vmul.f32 %v7261_v19, %v2504_v29  ;;  %v2508_v53 = vmul.f32 %v7264_v17, %v2504_v29 }
 0x29e   : > { %v2515_v54 = vmul.f32 %v2514_v51, %v7183_v43  ;;  %v2516_v8 = vmul.f32 %v2514_v51, %v7186_v44  ;;  %v2517_v9 = vmul.f32 %v7261_v19, %v2514_v51  ;;  %v2518_v11 = vmul.f32 %v7264_v17, %v2514_v51 }
 0x29f   : > { %v2509_v12 = vadd.f32 %v2505_v4, %v2462_v6  ;;  %v2510_v56 = vadd.f32 %v2506_v48, %v2463_v47  ;;  %v2511_v59 = vadd.f32 %v2507_v50, %v2464_v36  ;;  %v2512_v23 = vadd.f32 %v2508_v53, %v2465_v16 }
 0x2a0   : > { %v2519_v15 = vadd.f32 %v2515_v54, %v2472_v20  ;;  %v2520_v63 = vadd.f32 %v2516_v8, %v2473_v40  ;;  %v2521_v2 = vadd.f32 %v2517_v9, %v2474_v1  ;;  %v2522_v43 = vadd.f32 %v2518_v11, %v2475_v49 }
 0x2a1   : > { %v2528_v5 = vstv %s7270_s20  ;;  %v2538_v7 = vstv %s7272_s21  ;;  %v2548_v44 = vstv %s7278_s22  ;;  %v2558_v24 = vstv %s7280_s23  ;;  %s7448_s20 = sld [smem:[#allocation8 + $0x76]]  ;;  %s7468_s21 = sld [smem:[#allocation8 + $0xb]] }
 0x2a2   : > { %v2529_v25 = vmul.f32 %v2528_v5, %v7207_v39  ;;  %v2530_v27 = vmul.f32 %v2528_v5, %v7210_v0  ;;  %v2531_v28 = vmul.f32 %v7295_v60, %v2528_v5  ;;  %v2532_v10 = vmul.f32 %v7298_v31, %v2528_v5  ;;  %s7470_s22 = sld [smem:[#allocation8 + $0x2f]]  ;;  %s7474_s23 = sld [smem:[#allocation8 + $0x53]] }
 0x2a3   : > { %v2539_v13 = vmul.f32 %v2538_v7, %v7207_v39  ;;  %v2540_v35 = vmul.f32 %v2538_v7, %v7210_v0  ;;  %v2541_v33 = vmul.f32 %v7295_v60, %v2538_v7  ;;  %v2542_v14 = vmul.f32 %v7298_v31, %v2538_v7 }
 0x2a4   : > { %v2533_v6 = vadd.f32 %v2529_v25, %v2489_v57  ;;  %v2534_v47 = vadd.f32 %v2530_v27, %v2490_v18  ;;  %v2535_v36 = vadd.f32 %v2531_v28, %v2491_v41  ;;  %v2536_v16 = vadd.f32 %v2532_v10, %v2492_v21  ;;  %v7329_v57 = vld [vmem:[%s7178_s8 + $0x32] sm:$0xff]  ;;  %v7332_v18 = vld [vmem:[%s7178_s8 + $0x3a] sm:$0xff] }
 0x2a5   : > { %v2543_v20 = vadd.f32 %v2539_v13, %v2499_v45  ;;  %v2544_v40 = vadd.f32 %v2540_v35, %v2500_v3  ;;  %v2545_v1 = vadd.f32 %v2541_v33, %v2501_v46  ;;  %v2546_v49 = vadd.f32 %v2542_v14, %v2502_v61 }
 0x2a6   : > { %v2549_v22 = vmul.f32 %v2548_v44, %v7207_v39  ;;  %v2550_v26 = vmul.f32 %v2548_v44, %v7210_v0  ;;  %v2551_v29 = vmul.f32 %v7295_v60, %v2548_v44  ;;  %v2552_v51 = vmul.f32 %v7298_v31, %v2548_v44 }
 0x2a7   : > { %v2559_v30 = vmul.f32 %v2558_v24, %v7207_v39  ;;  %v2560_v62 = vmul.f32 %v2558_v24, %v7210_v0  ;;  %v2561_v52 = vmul.f32 %v7295_v60, %v2558_v24  ;;  %v2562_v32 = vmul.f32 %v7298_v31, %v2558_v24 }
 0x2a8   : > { %v2553_v34 = vadd.f32 %v2549_v22, %v2509_v12  ;;  %v2554_v37 = vadd.f32 %v2550_v26, %v2510_v56  ;;  %v2555_v38 = vadd.f32 %v2551_v29, %v2511_v59  ;;  %v2556_v55 = vadd.f32 %v2552_v51, %v2512_v23 }
 0x2a9   : > { %v2563_v41 = vadd.f32 %v2559_v30, %v2519_v15  ;;  %v2564_v21 = vadd.f32 %v2560_v62, %v2520_v63  ;;  %v2565_v45 = vadd.f32 %v2561_v52, %v2521_v2  ;;  %v2566_v39 = vadd.f32 %v2562_v32, %v2522_v43 }
 0x2aa   : > { %v2572_v3 = vstv %s7304_s24  ;;  %v2582_v46 = vstv %s7306_s14  ;;  %v2592_v0 = vstv %s7312_s25  ;;  %v2602_v61 = vstv %s7314_s26  ;;  %s7476_s24 = sld [smem:[#allocation8 + $0x77]]  ;;  %s7496_s14 = sld [smem:[#allocation8 + $0xc]] }
 0x2ab   : > { %v2573_v4 = vmul.f32 %v2572_v3, %v7235_v58  ;;  %v2574_v48 = vmul.f32 %v2572_v3, %v7238_v42  ;;  %v2575_v50 = vmul.f32 %v7329_v57, %v2572_v3  ;;  %v2576_v53 = vmul.f32 %v7332_v18, %v2572_v3  ;;  %s7498_s25 = sld [smem:[#allocation8 + $0x30]]  ;;  %s7502_s26 = sld [smem:[#allocation8 + $0x54]] }
 0x2ac   : > { %v2583_v54 = vmul.f32 %v2582_v46, %v7235_v58  ;;  %v2584_v8 = vmul.f32 %v2582_v46, %v7238_v42  ;;  %v2585_v9 = vmul.f32 %v7329_v57, %v2582_v46  ;;  %v2586_v11 = vmul.f32 %v7332_v18, %v2582_v46 }
 0x2ad   : > { %v2577_v12 = vadd.f32 %v2573_v4, %v2533_v6  ;;  %v2578_v56 = vadd.f32 %v2574_v48, %v2534_v47  ;;  %v2579_v59 = vadd.f32 %v2575_v50, %v2535_v36  ;;  %v2580_v23 = vadd.f32 %v2576_v53, %v2536_v16  ;;  %v4535_v6 = vld [vmem:[%s7178_s8 + $0x48] sm:$0xff]  ;;  %v4536_v47 = vld [vmem:[%s7178_s8 + $0x50] sm:$0xff] }
 0x2ae   : > { %v2587_v15 = vadd.f32 %v2583_v54, %v2543_v20  ;;  %v2588_v63 = vadd.f32 %v2584_v8, %v2544_v40  ;;  %v2589_v2 = vadd.f32 %v2585_v9, %v2545_v1  ;;  %v2590_v43 = vadd.f32 %v2586_v11, %v2546_v49 }
 0x2af   : > { %v2593_v5 = vmul.f32 %v2592_v0, %v7235_v58  ;;  %v2594_v7 = vmul.f32 %v2592_v0, %v7238_v42  ;;  %v2595_v44 = vmul.f32 %v7329_v57, %v2592_v0  ;;  %v2596_v24 = vmul.f32 %v7332_v18, %v2592_v0 }
 0x2b0   : > { %v2603_v25 = vmul.f32 %v2602_v61, %v7235_v58  ;;  %v2604_v27 = vmul.f32 %v2602_v61, %v7238_v42  ;;  %v2605_v28 = vmul.f32 %v7329_v57, %v2602_v61  ;;  %v2606_v10 = vmul.f32 %v7332_v18, %v2602_v61 }
 0x2b1   : > { %v2597_v13 = vadd.f32 %v2593_v5, %v2553_v34  ;;  %v2598_v35 = vadd.f32 %v2594_v7, %v2554_v37  ;;  %v2599_v33 = vadd.f32 %v2595_v44, %v2555_v38  ;;  %v2600_v14 = vadd.f32 %v2596_v24, %v2556_v55 }
 0x2b2   : > { %v2607_v36 = vadd.f32 %v2603_v25, %v2563_v41  ;;  %v2608_v16 = vadd.f32 %v2604_v27, %v2564_v21  ;;  %v2609_v20 = vadd.f32 %v2605_v28, %v2565_v45  ;;  %v2610_v40 = vadd.f32 %v2606_v10, %v2566_v39 }
 0x2b3   : > { %v2619_v1 = vstv %s7338_s2  ;;  %v2629_v58 = vstv %s7340_s1  ;;  %v2639_v49 = vstv %s7346_s27  ;;  %v2649_v22 = vstv %s7348_s28  ;;  %s7504_s2 = sld [smem:[#allocation8 + $0x78]]  ;;  %s7522_s1 = sld [smem:[#allocation8 + $0xd]] }
 0x2b4   : > { %v2620_v42 = vmul.f32 %v7261_v19, %v2619_v1  ;;  %v2621_v26 = vmul.f32 %v7264_v17, %v2619_v1  ;;  %v2622_v29 = vmul.f32 %v4535_v6, %v2619_v1  ;;  %v2623_v51 = vmul.f32 %v4536_v47, %v2619_v1  ;;  %s7524_s27 = sld [smem:[#allocation8 + $0x31]]  ;;  %s7530_s28 = sld [smem:[#allocation8 + $0x55]] }
 0x2b5   : > { %v2630_v30 = vmul.f32 %v7261_v19, %v2629_v58  ;;  %v2631_v62 = vmul.f32 %v7264_v17, %v2629_v58  ;;  %v2632_v52 = vmul.f32 %v4535_v6, %v2629_v58  ;;  %v2633_v32 = vmul.f32 %v4536_v47, %v2629_v58 }
 0x2b6   : > { %v2624_v34 = vadd.f32 %v2620_v42, %v2577_v12  ;;  %v2625_v37 = vadd.f32 %v2621_v26, %v2578_v56  ;;  %v2626_v38 = vadd.f32 %v2622_v29, %v2579_v59  ;;  %v2627_v55 = vadd.f32 %v2623_v51, %v2580_v23  ;;  %v4543_v12 = vld [vmem:[%s7178_s8 + $0x49] sm:$0xff]  ;;  %v4544_v56 = vld [vmem:[%s7178_s8 + $0x51] sm:$0xff] }
 0x2b7   : > { %v2634_v41 = vadd.f32 %v2630_v30, %v2587_v15  ;;  %v2635_v21 = vadd.f32 %v2631_v62, %v2588_v63  ;;  %v2636_v45 = vadd.f32 %v2632_v52, %v2589_v2  ;;  %v2637_v39 = vadd.f32 %v2633_v32, %v2590_v43  ;;  %v4551_v52 = vld [vmem:[%s7178_s8 + $0x4a] sm:$0xff]  ;;  %v4552_v32 = vld [vmem:[%s7178_s8 + $0x52] sm:$0xff] }
 0x2b8   : > { %v2640_v3 = vmul.f32 %v7261_v19, %v2639_v49  ;;  %v2641_v46 = vmul.f32 %v7264_v17, %v2639_v49  ;;  %v2642_v0 = vmul.f32 %v4535_v6, %v2639_v49  ;;  %v2643_v61 = vmul.f32 %v4536_v47, %v2639_v49 }
 0x2b9   : > { %v2650_v4 = vmul.f32 %v7261_v19, %v2649_v22  ;;  %v2651_v48 = vmul.f32 %v7264_v17, %v2649_v22  ;;  %v2652_v50 = vmul.f32 %v4535_v6, %v2649_v22  ;;  %v2653_v53 = vmul.f32 %v4536_v47, %v2649_v22 }
 0x2ba   : > { %v2644_v54 = vadd.f32 %v2640_v3, %v2597_v13  ;;  %v2645_v8 = vadd.f32 %v2641_v46, %v2598_v35  ;;  %v2646_v9 = vadd.f32 %v2642_v0, %v2599_v33  ;;  %v2647_v11 = vadd.f32 %v2643_v61, %v2600_v14 }
 0x2bb   : > { %v2654_v59 = vadd.f32 %v2650_v4, %v2607_v36  ;;  %v2655_v23 = vadd.f32 %v2651_v48, %v2608_v16  ;;  %v2656_v15 = vadd.f32 %v2652_v50, %v2609_v20  ;;  %v2657_v63 = vadd.f32 %v2653_v53, %v2610_v40 }
 0x2bc   : > { %v2663_v2 = vstv %s7368_s29  ;;  %v2673_v43 = vstv %s7370_s30  ;;  %v2683_v5 = vstv %s7374_s7  ;;  %v2693_v19 = vstv %s7376_s6  ;;  %s7532_s29 = sld [smem:[#allocation8 + $0x79]]  ;;  %s7556_s30 = sld [smem:[#allocation8 + $0xe]] }
 0x2bd   : > { %v2664_v17 = vmul.f32 %v7295_v60, %v2663_v2  ;;  %v2665_v7 = vmul.f32 %v7298_v31, %v2663_v2  ;;  %v2666_v44 = vmul.f32 %v4543_v12, %v2663_v2  ;;  %v2667_v24 = vmul.f32 %v4544_v56, %v2663_v2  ;;  %s7558_s7 = sld [smem:[#allocation8 + $0x32]]  ;;  %s7564_s6 = sld [smem:[#allocation8 + $0x56]] }
 0x2be   : > { %v2674_v25 = vmul.f32 %v7295_v60, %v2673_v43  ;;  %v2675_v27 = vmul.f32 %v7298_v31, %v2673_v43  ;;  %v2676_v28 = vmul.f32 %v4543_v12, %v2673_v43  ;;  %v2677_v10 = vmul.f32 %v4544_v56, %v2673_v43 }
 0x2bf   : > { %v2668_v13 = vadd.f32 %v2664_v17, %v2624_v34  ;;  %v2669_v35 = vadd.f32 %v2665_v7, %v2625_v37  ;;  %v2670_v33 = vadd.f32 %v2666_v44, %v2626_v38  ;;  %v2671_v14 = vadd.f32 %v2667_v24, %v2627_v55  ;;  %v4557_v17 = vld [vmem:[%s7178_s8 + $0x1b0] sm:$0xff] }
 0x2c0   : > { %v2678_v6 = vadd.f32 %v2674_v25, %v2634_v41  ;;  %v2679_v47 = vadd.f32 %v2675_v27, %v2635_v21  ;;  %v2680_v36 = vadd.f32 %v2676_v28, %v2636_v45  ;;  %v2681_v16 = vadd.f32 %v2677_v10, %v2637_v39  ;;  %v4558_v27 = vld [vmem:[%s7178_s8 + $0x1b8] sm:$0xff]  ;;  %v7431_v28 = vld [vmem:[%s7178_s8 + $0x1c8] sm:$0xff]  ;;  %v7434_v10 = vld [vmem:[%s7178_s8 + $0x1d0] sm:$0xff] }
 0x2c1   : > { %v2684_v20 = vmul.f32 %v7295_v60, %v2683_v5  ;;  %v2685_v40 = vmul.f32 %v7298_v31, %v2683_v5  ;;  %v2686_v1 = vmul.f32 %v4543_v12, %v2683_v5  ;;  %v2687_v58 = vmul.f32 %v4544_v56, %v2683_v5 }
 0x2c2   : > { %v2694_v49 = vmul.f32 %v7295_v60, %v2693_v19  ;;  %v2695_v22 = vmul.f32 %v7298_v31, %v2693_v19  ;;  %v2696_v42 = vmul.f32 %v4543_v12, %v2693_v19  ;;  %v2697_v26 = vmul.f32 %v4544_v56, %v2693_v19 }
 0x2c3   : > { %v2688_v29 = vadd.f32 %v2684_v20, %v2644_v54  ;;  %v2689_v51 = vadd.f32 %v2685_v40, %v2645_v8  ;;  %v2690_v30 = vadd.f32 %v2686_v1, %v2646_v9  ;;  %v2691_v62 = vadd.f32 %v2687_v58, %v2647_v11 }
 0x2c4   : > { %v2698_v34 = vadd.f32 %v2694_v49, %v2654_v59  ;;  %v2699_v37 = vadd.f32 %v2695_v22, %v2655_v23  ;;  %v2700_v38 = vadd.f32 %v2696_v42, %v2656_v15  ;;  %v2701_v55 = vadd.f32 %v2697_v26, %v2657_v63 }
 0x2c5   : > { %v2707_v41 = vstv %s7390_s9  ;;  %v2717_v21 = vstv %s7392_s3  ;;  %v2727_v45 = vstv %s7396_s10  ;;  %v2737_v60 = vstv %s7398_s11  ;;  %s7566_s9 = sld [smem:[#allocation8 + $0x7a]]  ;;  %s7590_s3 = sld [smem:[#allocation8 + $0xf]] }
 0x2c6   : > { %v2708_v31 = vmul.f32 %v7329_v57, %v2707_v41  ;;  %v2709_v39 = vmul.f32 %v7332_v18, %v2707_v41  ;;  %v2710_v3 = vmul.f32 %v4551_v52, %v2707_v41  ;;  %v2711_v46 = vmul.f32 %v4552_v32, %v2707_v41  ;;  %s7592_s10 = sld [smem:[#allocation8 + $0x33]]  ;;  %s7598_s11 = sld [smem:[#allocation8 + $0x57]] }
 0x2c7   : > { %v2718_v0 = vmul.f32 %v7329_v57, %v2717_v21  ;;  %v2719_v61 = vmul.f32 %v7332_v18, %v2717_v21  ;;  %v2720_v4 = vmul.f32 %v4551_v52, %v2717_v21  ;;  %v2721_v48 = vmul.f32 %v4552_v32, %v2717_v21 }
 0x2c8   : > { %v2712_v50 = vadd.f32 %v2708_v31, %v2668_v13  ;;  %v2713_v53 = vadd.f32 %v2709_v39, %v2669_v35  ;;  %v2714_v54 = vadd.f32 %v2710_v3, %v2670_v33  ;;  %v2715_v8 = vadd.f32 %v2711_v46, %v2671_v14  ;;  %v4565_v31 = vld [vmem:[%s7178_s8 + $0x1b1] sm:$0xff] }
 0x2c9   : > { %v2722_v9 = vadd.f32 %v2718_v0, %v2678_v6  ;;  %v2723_v11 = vadd.f32 %v2719_v61, %v2679_v47  ;;  %v2724_v12 = vadd.f32 %v2720_v4, %v2680_v36  ;;  %v2725_v56 = vadd.f32 %v2721_v48, %v2681_v16  ;;  %v4566_v61 = vld [vmem:[%s7178_s8 + $0x1b9] sm:$0xff]  ;;  %v7459_v4 = vld [vmem:[%s7178_s8 + $0x1c9] sm:$0xff]  ;;  %v7462_v48 = vld [vmem:[%s7178_s8 + $0x1d1] sm:$0xff] }
 0x2ca   : > { %v2728_v59 = vmul.f32 %v7329_v57, %v2727_v45  ;;  %v2729_v23 = vmul.f32 %v7332_v18, %v2727_v45  ;;  %v2730_v15 = vmul.f32 %v4551_v52, %v2727_v45  ;;  %v2731_v63 = vmul.f32 %v4552_v32, %v2727_v45 }
 0x2cb   : > { %v2738_v2 = vmul.f32 %v7329_v57, %v2737_v60  ;;  %v2739_v43 = vmul.f32 %v7332_v18, %v2737_v60  ;;  %v2740_v5 = vmul.f32 %v4551_v52, %v2737_v60  ;;  %v2741_v19 = vmul.f32 %v4552_v32, %v2737_v60 }
 0x2cc   : > { %v2732_v7 = vadd.f32 %v2728_v59, %v2688_v29  ;;  %v2733_v44 = vadd.f32 %v2729_v23, %v2689_v51  ;;  %v2734_v24 = vadd.f32 %v2730_v15, %v2690_v30  ;;  %v2735_v25 = vadd.f32 %v2731_v63, %v2691_v62 }
 0x2cd   : > { %v2742_v13 = vadd.f32 %v2738_v2, %v2698_v34  ;;  %v2743_v57 = vadd.f32 %v2739_v43, %v2699_v37  ;;  %v2744_v35 = vadd.f32 %v2740_v5, %v2700_v38  ;;  %v2745_v33 = vadd.f32 %v2741_v19, %v2701_v55 }
 0x2ce   : > { %v2753_v18 = vstv %s7412_s12  ;;  %v2763_v14 = vstv %s7414_s13  ;;  %v2773_v6 = vstv %s7418_s15  ;;  %v2783_v47 = vstv %s7420_s16  ;;  %s7600_s12 = sld [smem:[#allocation8 + $0x7b]]  ;;  %s7620_s13 = sld [smem:[#allocation8 + $0x10]] }
 0x2cf   : > { %v2754_v36 = vmul.f32 %v4557_v17, %v2753_v18  ;;  %v2755_v16 = vmul.f32 %v4558_v27, %v2753_v18  ;;  %v2756_v20 = vmul.f32 %v7431_v28, %v2753_v18  ;;  %v2757_v40 = vmul.f32 %v7434_v10, %v2753_v18  ;;  %s7622_s15 = sld [smem:[#allocation8 + $0x34]]  ;;  %s7626_s16 = sld [smem:[#allocation8 + $0x58]] }
 0x2d0   : > { %v2764_v1 = vmul.f32 %v4557_v17, %v2763_v14  ;;  %v2765_v58 = vmul.f32 %v4558_v27, %v2763_v14  ;;  %v2766_v49 = vmul.f32 %v7431_v28, %v2763_v14  ;;  %v2767_v22 = vmul.f32 %v7434_v10, %v2763_v14 }
 0x2d1   : > { %v2758_v42 = vadd.f32 %v2754_v36, %v2712_v50  ;;  %v2759_v26 = vadd.f32 %v2755_v16, %v2713_v53  ;;  %v2760_v29 = vadd.f32 %v2756_v20, %v2714_v54  ;;  %v2761_v51 = vadd.f32 %v2757_v40, %v2715_v8  ;;  %v4573_v20 = vld [vmem:[%s7178_s8 + $0x1b2] sm:$0xff] }
 0x2d2   : > { %v2768_v30 = vadd.f32 %v2764_v1, %v2722_v9  ;;  %v2769_v62 = vadd.f32 %v2765_v58, %v2723_v11  ;;  %v2770_v52 = vadd.f32 %v2766_v49, %v2724_v12  ;;  %v2771_v32 = vadd.f32 %v2767_v22, %v2725_v56  ;;  %v4574_v22 = vld [vmem:[%s7178_s8 + $0x1ba] sm:$0xff] }
 0x2d3   : > { %v2774_v34 = vmul.f32 %v4557_v17, %v2773_v6  ;;  %v2775_v37 = vmul.f32 %v4558_v27, %v2773_v6  ;;  %v2776_v38 = vmul.f32 %v7431_v28, %v2773_v6  ;;  %v2777_v55 = vmul.f32 %v7434_v10, %v2773_v6 }
 0x2d4   : > { %v2784_v41 = vmul.f32 %v4557_v17, %v2783_v47  ;;  %v2785_v21 = vmul.f32 %v4558_v27, %v2783_v47  ;;  %v2786_v45 = vmul.f32 %v7431_v28, %v2783_v47  ;;  %v2787_v60 = vmul.f32 %v7434_v10, %v2783_v47 }
 0x2d5   : > { %v2778_v39 = vadd.f32 %v2774_v34, %v2732_v7  ;;  %v2779_v3 = vadd.f32 %v2775_v37, %v2733_v44  ;;  %v2780_v46 = vadd.f32 %v2776_v38, %v2734_v24  ;;  %v2781_v0 = vadd.f32 %v2777_v55, %v2735_v25 }
 0x2d6   : > { %v2788_v50 = vadd.f32 %v2784_v41, %v2742_v13  ;;  %v2789_v53 = vadd.f32 %v2785_v21, %v2743_v57  ;;  %v2790_v54 = vadd.f32 %v2786_v45, %v2744_v35  ;;  %v2791_v8 = vadd.f32 %v2787_v60, %v2745_v33 }
 0x2d7   : > { %v2797_v9 = vstv %s7440_s17  ;;  %v2807_v11 = vstv %s7442_s18  ;;  %v2817_v12 = vstv %s7446_s19  ;;  %v2827_v56 = vstv %s7448_s20  ;;  %s7628_s17 = sld [smem:[#allocation8 + $0x7c]]  ;;  %s7642_s18 = sld [smem:[#allocation8 + $0x11]] }
 0x2d8   : > { %v2798_v59 = vmul.f32 %v4565_v31, %v2797_v9  ;;  %v2799_v23 = vmul.f32 %v4566_v61, %v2797_v9  ;;  %v2800_v15 = vmul.f32 %v7459_v4, %v2797_v9  ;;  %v2801_v63 = vmul.f32 %v7462_v48, %v2797_v9  ;;  %s7644_s19 = sld [smem:[#allocation8 + $0x35]]  ;;  %s7648_s20 = sld [smem:[#allocation8 + $0x59]] }
 0x2d9   : > { %v2808_v2 = vmul.f32 %v4565_v31, %v2807_v11  ;;  %v2809_v43 = vmul.f32 %v4566_v61, %v2807_v11  ;;  %v2810_v5 = vmul.f32 %v7459_v4, %v2807_v11  ;;  %v2811_v19 = vmul.f32 %v7462_v48, %v2807_v11 }
 0x2da   : > { %v2802_v17 = vadd.f32 %v2798_v59, %v2758_v42  ;;  %v2803_v7 = vadd.f32 %v2799_v23, %v2759_v26  ;;  %v2804_v44 = vadd.f32 %v2800_v15, %v2760_v29  ;;  %v2805_v24 = vadd.f32 %v2801_v63, %v2761_v51  ;;  %v7487_v42 = vld [vmem:[%s7178_s8 + $0x1ca] sm:$0xff]  ;;  %v7490_v26 = vld [vmem:[%s7178_s8 + $0x1d2] sm:$0xff] }
 0x2db   : > { %v2812_v25 = vadd.f32 %v2808_v2, %v2768_v30  ;;  %v2813_v27 = vadd.f32 %v2809_v43, %v2769_v62  ;;  %v2814_v13 = vadd.f32 %v2810_v5, %v2770_v52  ;;  %v2815_v57 = vadd.f32 %v2811_v19, %v2771_v32 }
 0x2dc   : > { %v2818_v35 = vmul.f32 %v4565_v31, %v2817_v12  ;;  %v2819_v33 = vmul.f32 %v4566_v61, %v2817_v12  ;;  %v2820_v18 = vmul.f32 %v7459_v4, %v2817_v12  ;;  %v2821_v14 = vmul.f32 %v7462_v48, %v2817_v12 }
 0x2dd   : > { %v2828_v6 = vmul.f32 %v4565_v31, %v2827_v56  ;;  %v2829_v47 = vmul.f32 %v4566_v61, %v2827_v56  ;;  %v2830_v36 = vmul.f32 %v7459_v4, %v2827_v56  ;;  %v2831_v16 = vmul.f32 %v7462_v48, %v2827_v56 }
 0x2de   : > { %v2822_v40 = vadd.f32 %v2818_v35, %v2778_v39  ;;  %v2823_v1 = vadd.f32 %v2819_v33, %v2779_v3  ;;  %v2824_v58 = vadd.f32 %v2820_v18, %v2780_v46  ;;  %v2825_v49 = vadd.f32 %v2821_v14, %v2781_v0 }
 0x2df   : > { %v2832_v29 = vadd.f32 %v2828_v6, %v2788_v50  ;;  %v2833_v51 = vadd.f32 %v2829_v47, %v2789_v53  ;;  %v2834_v30 = vadd.f32 %v2830_v36, %v2790_v54  ;;  %v2835_v62 = vadd.f32 %v2831_v16, %v2791_v8 }
 0x2e0   : > { %v2841_v52 = vstv %s7468_s21  ;;  %v2851_v32 = vstv %s7470_s22  ;;  %v2861_v34 = vstv %s7474_s23  ;;  %v2871_v37 = vstv %s7476_s24  ;;  %s7650_s21 = sld [smem:[#allocation8 + $0x7d]]  ;;  %s7664_s22 = sld [smem:[#allocation8 + $0x12]] }
 0x2e1   : > { %v2842_v38 = vmul.f32 %v4573_v20, %v2841_v52  ;;  %v2843_v55 = vmul.f32 %v4574_v22, %v2841_v52  ;;  %v2844_v41 = vmul.f32 %v7487_v42, %v2841_v52  ;;  %v2845_v21 = vmul.f32 %v7490_v26, %v2841_v52  ;;  %s7666_s23 = sld [smem:[#allocation8 + $0x36]]  ;;  %s7670_s24 = sld [smem:[#allocation8 + $0x5a]] }
 0x2e2   : > { %v2852_v45 = vmul.f32 %v4573_v20, %v2851_v32  ;;  %v2853_v60 = vmul.f32 %v4574_v22, %v2851_v32  ;;  %v2854_v31 = vmul.f32 %v7487_v42, %v2851_v32  ;;  %v2855_v39 = vmul.f32 %v7490_v26, %v2851_v32 }
 0x2e3   : > { %v2846_v3 = vadd.f32 %v2842_v38, %v2802_v17  ;;  %v2847_v46 = vadd.f32 %v2843_v55, %v2803_v7  ;;  %v2848_v0 = vadd.f32 %v2844_v41, %v2804_v44  ;;  %v2849_v61 = vadd.f32 %v2845_v21, %v2805_v24  ;;  %v7513_v17 = vld [vmem:[%s7178_s8 + $0x1e0] sm:$0xff]  ;;  %v7516_v7 = vld [vmem:[%s7178_s8 + $0x1e8] sm:$0xff] }
 0x2e4   : > { %v2856_v50 = vadd.f32 %v2852_v45, %v2812_v25  ;;  %v2857_v53 = vadd.f32 %v2853_v60, %v2813_v27  ;;  %v2858_v54 = vadd.f32 %v2854_v31, %v2814_v13  ;;  %v2859_v8 = vadd.f32 %v2855_v39, %v2815_v57 }
 0x2e5   : > { %v2862_v9 = vmul.f32 %v4573_v20, %v2861_v34  ;;  %v2863_v11 = vmul.f32 %v4574_v22, %v2861_v34  ;;  %v2864_v12 = vmul.f32 %v7487_v42, %v2861_v34  ;;  %v2865_v56 = vmul.f32 %v7490_v26, %v2861_v34 }
 0x2e6   : > { %v2872_v59 = vmul.f32 %v4573_v20, %v2871_v37  ;;  %v2873_v23 = vmul.f32 %v4574_v22, %v2871_v37  ;;  %v2874_v15 = vmul.f32 %v7487_v42, %v2871_v37  ;;  %v2875_v63 = vmul.f32 %v7490_v26, %v2871_v37 }
 0x2e7   : > { %v2866_v2 = vadd.f32 %v2862_v9, %v2822_v40  ;;  %v2867_v43 = vadd.f32 %v2863_v11, %v2823_v1  ;;  %v2868_v5 = vadd.f32 %v2864_v12, %v2824_v58  ;;  %v2869_v19 = vadd.f32 %v2865_v56, %v2825_v49 }
 0x2e8   : > { %v2876_v44 = vadd.f32 %v2872_v59, %v2832_v29  ;;  %v2877_v24 = vadd.f32 %v2873_v23, %v2833_v51  ;;  %v2878_v25 = vadd.f32 %v2874_v15, %v2834_v30  ;;  %v2879_v27 = vadd.f32 %v2875_v63, %v2835_v62 }
 0x2e9   : > { %v2887_v13 = vstv %s7496_s14  ;;  %v2897_v57 = vstv %s7498_s25  ;;  %v2907_v35 = vstv %s7502_s26  ;;  %v2917_v33 = vstv %s7504_s2  ;;  %s7672_s14 = sld [smem:[#allocation8 + $0x7e]]  ;;  %s7692_s25 = sld [smem:[#allocation8 + $0x13]] }
 0x2ea   : > { %v2888_v18 = vmul.f32 %v7431_v28, %v2887_v13  ;;  %v2889_v14 = vmul.f32 %v7434_v10, %v2887_v13  ;;  %v2890_v6 = vmul.f32 %v7513_v17, %v2887_v13  ;;  %v2891_v47 = vmul.f32 %v7516_v7, %v2887_v13  ;;  %s7694_s26 = sld [smem:[#allocation8 + $0x37]]  ;;  %s7698_s2 = sld [smem:[#allocation8 + $0x5b]] }
 0x2eb   : > { %v2898_v36 = vmul.f32 %v7431_v28, %v2897_v57  ;;  %v2899_v16 = vmul.f32 %v7434_v10, %v2897_v57  ;;  %v2900_v20 = vmul.f32 %v7513_v17, %v2897_v57  ;;  %v2901_v40 = vmul.f32 %v7516_v7, %v2897_v57 }
 0x2ec   : > { %v2892_v1 = vadd.f32 %v2888_v18, %v2846_v3  ;;  %v2893_v58 = vadd.f32 %v2889_v14, %v2847_v46  ;;  %v2894_v49 = vadd.f32 %v2890_v6, %v2848_v0  ;;  %v2895_v22 = vadd.f32 %v2891_v47, %v2849_v61  ;;  %v7547_v3 = vld [vmem:[%s7178_s8 + $0x1e1] sm:$0xff]  ;;  %v7550_v46 = vld [vmem:[%s7178_s8 + $0x1e9] sm:$0xff] }
 0x2ed   : > { %v2902_v29 = vadd.f32 %v2898_v36, %v2856_v50  ;;  %v2903_v51 = vadd.f32 %v2899_v16, %v2857_v53  ;;  %v2904_v30 = vadd.f32 %v2900_v20, %v2858_v54  ;;  %v2905_v62 = vadd.f32 %v2901_v40, %v2859_v8 }
 0x2ee   : > { %v2908_v52 = vmul.f32 %v7431_v28, %v2907_v35  ;;  %v2909_v32 = vmul.f32 %v7434_v10, %v2907_v35  ;;  %v2910_v34 = vmul.f32 %v7513_v17, %v2907_v35  ;;  %v2911_v37 = vmul.f32 %v7516_v7, %v2907_v35 }
 0x2ef   : > { %v2918_v38 = vmul.f32 %v7431_v28, %v2917_v33  ;;  %v2919_v55 = vmul.f32 %v7434_v10, %v2917_v33  ;;  %v2920_v41 = vmul.f32 %v7513_v17, %v2917_v33  ;;  %v2921_v21 = vmul.f32 %v7516_v7, %v2917_v33 }
 0x2f0   : > { %v2912_v45 = vadd.f32 %v2908_v52, %v2866_v2  ;;  %v2913_v60 = vadd.f32 %v2909_v32, %v2867_v43  ;;  %v2914_v31 = vadd.f32 %v2910_v34, %v2868_v5  ;;  %v2915_v39 = vadd.f32 %v2911_v37, %v2869_v19 }
 0x2f1   : > { %v2922_v0 = vadd.f32 %v2918_v38, %v2876_v44  ;;  %v2923_v61 = vadd.f32 %v2919_v55, %v2877_v24  ;;  %v2924_v50 = vadd.f32 %v2920_v41, %v2878_v25  ;;  %v2925_v28 = vadd.f32 %v2921_v21, %v2879_v27 }
 0x2f2   : > { %v2931_v53 = vstv %s7522_s1  ;;  %v2941_v54 = vstv %s7524_s27  ;;  %v2951_v10 = vstv %s7530_s28  ;;  %v2961_v8 = vstv %s7532_s29  ;;  %s7700_s1 = sld [smem:[#allocation8 + $0x7f]]  ;;  %s7720_s27 = sld [smem:[#allocation8 + $0x14]] }
 0x2f3   : > { %v2932_v9 = vmul.f32 %v7459_v4, %v2931_v53  ;;  %v2933_v11 = vmul.f32 %v7462_v48, %v2931_v53  ;;  %v2934_v12 = vmul.f32 %v7547_v3, %v2931_v53  ;;  %v2935_v56 = vmul.f32 %v7550_v46, %v2931_v53  ;;  %s7722_s28 = sld [smem:[#allocation8 + $0x38]]  ;;  %s7726_s29 = sld [smem:[#allocation8 + $0x5c]] }
 0x2f4   : > { %v2942_v59 = vmul.f32 %v7459_v4, %v2941_v54  ;;  %v2943_v23 = vmul.f32 %v7462_v48, %v2941_v54  ;;  %v2944_v15 = vmul.f32 %v7547_v3, %v2941_v54  ;;  %v2945_v63 = vmul.f32 %v7550_v46, %v2941_v54 }
 0x2f5   : > { %v2936_v2 = vadd.f32 %v2932_v9, %v2892_v1  ;;  %v2937_v43 = vadd.f32 %v2933_v11, %v2893_v58  ;;  %v2938_v5 = vadd.f32 %v2934_v12, %v2894_v49  ;;  %v2939_v19 = vadd.f32 %v2935_v56, %v2895_v22  ;;  %v7581_v1 = vld [vmem:[%s7178_s8 + $0x1e2] sm:$0xff]  ;;  %v7584_v58 = vld [vmem:[%s7178_s8 + $0x1ea] sm:$0xff] }
 0x2f6   : > { %v2946_v44 = vadd.f32 %v2942_v59, %v2902_v29  ;;  %v2947_v24 = vadd.f32 %v2943_v23, %v2903_v51  ;;  %v2948_v25 = vadd.f32 %v2944_v15, %v2904_v30  ;;  %v2949_v27 = vadd.f32 %v2945_v63, %v2905_v62 }
 0x2f7   : > { %v2952_v13 = vmul.f32 %v7459_v4, %v2951_v10  ;;  %v2953_v57 = vmul.f32 %v7462_v48, %v2951_v10  ;;  %v2954_v35 = vmul.f32 %v7547_v3, %v2951_v10  ;;  %v2955_v33 = vmul.f32 %v7550_v46, %v2951_v10 }
 0x2f8   : > { %v2962_v18 = vmul.f32 %v7459_v4, %v2961_v8  ;;  %v2963_v14 = vmul.f32 %v7462_v48, %v2961_v8  ;;  %v2964_v6 = vmul.f32 %v7547_v3, %v2961_v8  ;;  %v2965_v47 = vmul.f32 %v7550_v46, %v2961_v8 }
 0x2f9   : > { %v2956_v36 = vadd.f32 %v2952_v13, %v2912_v45  ;;  %v2957_v16 = vadd.f32 %v2953_v57, %v2913_v60  ;;  %v2958_v20 = vadd.f32 %v2954_v35, %v2914_v31  ;;  %v2959_v40 = vadd.f32 %v2955_v33, %v2915_v39 }
 0x2fa   : > { %v2966_v49 = vadd.f32 %v2962_v18, %v2922_v0  ;;  %v2967_v22 = vadd.f32 %v2963_v14, %v2923_v61  ;;  %v2968_v29 = vadd.f32 %v2964_v6, %v2924_v50  ;;  %v2969_v4 = vadd.f32 %v2965_v47, %v2925_v28 }
 0x2fb   : > { %v2975_v51 = vstv %s7556_s30  ;;  %v2985_v30 = vstv %s7558_s7  ;;  %v2995_v48 = vstv %s7564_s6  ;;  %v3005_v62 = vstv %s7566_s9  ;;  %s7728_s30 = sld [smem:[#allocation8 + $0x80]]  ;;  %s7748_s7 = sld [smem:[#allocation8 + $0x15]] }
 0x2fc   : > { %v2976_v52 = vmul.f32 %v7487_v42, %v2975_v51  ;;  %v2977_v32 = vmul.f32 %v7490_v26, %v2975_v51  ;;  %v2978_v34 = vmul.f32 %v7581_v1, %v2975_v51  ;;  %v2979_v37 = vmul.f32 %v7584_v58, %v2975_v51  ;;  %s7750_s6 = sld [smem:[#allocation8 + $0x39]]  ;;  %s7754_s9 = sld [smem:[#allocation8 + $0x5d]] }
 0x2fd   : > { %v2986_v38 = vmul.f32 %v7487_v42, %v2985_v30  ;;  %v2987_v55 = vmul.f32 %v7490_v26, %v2985_v30  ;;  %v2988_v41 = vmul.f32 %v7581_v1, %v2985_v30  ;;  %v2989_v21 = vmul.f32 %v7584_v58, %v2985_v30 }
 0x2fe   : > { %v2980_v45 = vadd.f32 %v2976_v52, %v2936_v2  ;;  %v2981_v60 = vadd.f32 %v2977_v32, %v2937_v43  ;;  %v2982_v31 = vadd.f32 %v2978_v34, %v2938_v5  ;;  %v2983_v39 = vadd.f32 %v2979_v37, %v2939_v19  ;;  %v4611_v2 = vld [vmem:[%s7178_s8 + $0x1f8] sm:$0xff]  ;;  %v4612_v43 = vld [vmem:[%s7178_s8 + $0x200] sm:$0xff] }
 0x2ff   : > { %v2990_v0 = vadd.f32 %v2986_v38, %v2946_v44  ;;  %v2991_v61 = vadd.f32 %v2987_v55, %v2947_v24  ;;  %v2992_v50 = vadd.f32 %v2988_v41, %v2948_v25  ;;  %v2993_v28 = vadd.f32 %v2989_v21, %v2949_v27 }
 0x300   : > { %v2996_v53 = vmul.f32 %v7487_v42, %v2995_v48  ;;  %v2997_v54 = vmul.f32 %v7490_v26, %v2995_v48  ;;  %v2998_v10 = vmul.f32 %v7581_v1, %v2995_v48  ;;  %v2999_v8 = vmul.f32 %v7584_v58, %v2995_v48 }
 0x301   : > { %v3006_v9 = vmul.f32 %v7487_v42, %v3005_v62  ;;  %v3007_v11 = vmul.f32 %v7490_v26, %v3005_v62  ;;  %v3008_v12 = vmul.f32 %v7581_v1, %v3005_v62  ;;  %v3009_v56 = vmul.f32 %v7584_v58, %v3005_v62 }
 0x302   : > { %v3000_v59 = vadd.f32 %v2996_v53, %v2956_v36  ;;  %v3001_v23 = vadd.f32 %v2997_v54, %v2957_v16  ;;  %v3002_v15 = vadd.f32 %v2998_v10, %v2958_v20  ;;  %v3003_v63 = vadd.f32 %v2999_v8, %v2959_v40 }
 0x303   : > { %v3010_v5 = vadd.f32 %v3006_v9, %v2966_v49  ;;  %v3011_v19 = vadd.f32 %v3007_v11, %v2967_v22  ;;  %v3012_v44 = vadd.f32 %v3008_v12, %v2968_v29  ;;  %v3013_v24 = vadd.f32 %v3009_v56, %v2969_v4 }
 0x304   : > { %v3021_v25 = vstv %s7590_s3  ;;  %v3031_v42 = vstv %s7592_s10  ;;  %v3041_v27 = vstv %s7598_s11  ;;  %v3051_v13 = vstv %s7600_s12  ;;  %s7756_s3 = sld [smem:[#allocation8 + $0x81]]  ;;  %s7774_s10 = sld [smem:[#allocation8 + $0x16]] }
 0x305   : > { %v3022_v26 = vmul.f32 %v7513_v17, %v3021_v25  ;;  %v3023_v57 = vmul.f32 %v7516_v7, %v3021_v25  ;;  %v3024_v35 = vmul.f32 %v4611_v2, %v3021_v25  ;;  %v3025_v33 = vmul.f32 %v4612_v43, %v3021_v25  ;;  %s7776_s11 = sld [smem:[#allocation8 + $0x3a]]  ;;  %s7782_s12 = sld [smem:[#allocation8 + $0x5e]] }
 0x306   : > { %v3032_v18 = vmul.f32 %v7513_v17, %v3031_v42  ;;  %v3033_v14 = vmul.f32 %v7516_v7, %v3031_v42  ;;  %v3034_v6 = vmul.f32 %v4611_v2, %v3031_v42  ;;  %v3035_v47 = vmul.f32 %v4612_v43, %v3031_v42 }
 0x307   : > { %v3026_v36 = vadd.f32 %v3022_v26, %v2980_v45  ;;  %v3027_v16 = vadd.f32 %v3023_v57, %v2981_v60  ;;  %v3028_v20 = vadd.f32 %v3024_v35, %v2982_v31  ;;  %v3029_v40 = vadd.f32 %v3025_v33, %v2983_v39  ;;  %v4619_v45 = vld [vmem:[%s7178_s8 + $0x1f9] sm:$0xff]  ;;  %v4620_v60 = vld [vmem:[%s7178_s8 + $0x201] sm:$0xff] }
 0x308   : > { %v3036_v49 = vadd.f32 %v3032_v18, %v2990_v0  ;;  %v3037_v22 = vadd.f32 %v3033_v14, %v2991_v61  ;;  %v3038_v29 = vadd.f32 %v3034_v6, %v2992_v50  ;;  %v3039_v4 = vadd.f32 %v3035_v47, %v2993_v28  ;;  %v4627_v6 = vld [vmem:[%s7178_s8 + $0x1fa] sm:$0xff]  ;;  %v4628_v47 = vld [vmem:[%s7178_s8 + $0x202] sm:$0xff] }
 0x309   : > { %v3042_v51 = vmul.f32 %v7513_v17, %v3041_v27  ;;  %v3043_v30 = vmul.f32 %v7516_v7, %v3041_v27  ;;  %v3044_v48 = vmul.f32 %v4611_v2, %v3041_v27  ;;  %v3045_v62 = vmul.f32 %v4612_v43, %v3041_v27 }
 0x30a   : > { %v3052_v52 = vmul.f32 %v7513_v17, %v3051_v13  ;;  %v3053_v32 = vmul.f32 %v7516_v7, %v3051_v13  ;;  %v3054_v34 = vmul.f32 %v4611_v2, %v3051_v13  ;;  %v3055_v37 = vmul.f32 %v4612_v43, %v3051_v13 }
 0x30b   : > { %v3046_v38 = vadd.f32 %v3042_v51, %v3000_v59  ;;  %v3047_v55 = vadd.f32 %v3043_v30, %v3001_v23  ;;  %v3048_v41 = vadd.f32 %v3044_v48, %v3002_v15  ;;  %v3049_v21 = vadd.f32 %v3045_v62, %v3003_v63 }
 0x30c   : > { %v3056_v31 = vadd.f32 %v3052_v52, %v3010_v5  ;;  %v3057_v39 = vadd.f32 %v3053_v32, %v3011_v19  ;;  %v3058_v0 = vadd.f32 %v3054_v34, %v3012_v44  ;;  %v3059_v61 = vadd.f32 %v3055_v37, %v3013_v24 }
 0x30d   : > { %v3065_v50 = vstv %s7620_s13  ;;  %v3075_v28 = vstv %s7622_s15  ;;  %v3085_v53 = vstv %s7626_s16  ;;  %v3095_v17 = vstv %s7628_s17  ;;  %s7784_s13 = sld [smem:[#allocation8 + $0x82]]  ;;  %s7808_s15 = sld [smem:[#allocation8 + $0x17]] }
 0x30e   : > { %v3066_v7 = vmul.f32 %v7547_v3, %v3065_v50  ;;  %v3067_v54 = vmul.f32 %v7550_v46, %v3065_v50  ;;  %v3068_v10 = vmul.f32 %v4619_v45, %v3065_v50  ;;  %v3069_v8 = vmul.f32 %v4620_v60, %v3065_v50  ;;  %s7810_s16 = sld [smem:[#allocation8 + $0x3b]]  ;;  %s7816_s17 = sld [smem:[#allocation8 + $0x5f]] }
 0x30f   : > { %v3076_v9 = vmul.f32 %v7547_v3, %v3075_v28  ;;  %v3077_v11 = vmul.f32 %v7550_v46, %v3075_v28  ;;  %v3078_v12 = vmul.f32 %v4619_v45, %v3075_v28  ;;  %v3079_v56 = vmul.f32 %v4620_v60, %v3075_v28 }
 0x310   : > { %v3070_v59 = vadd.f32 %v3066_v7, %v3026_v36  ;;  %v3071_v23 = vadd.f32 %v3067_v54, %v3027_v16  ;;  %v3072_v15 = vadd.f32 %v3068_v10, %v3028_v20  ;;  %v3073_v63 = vadd.f32 %v3069_v8, %v3029_v40  ;;  %v4633_v7 = vld [vmem:[%s7178_s8 + $0x360] sm:$0xff] }
 0x311   : > { %v3080_v2 = vadd.f32 %v3076_v9, %v3036_v49  ;;  %v3081_v43 = vadd.f32 %v3077_v11, %v3037_v22  ;;  %v3082_v5 = vadd.f32 %v3078_v12, %v3038_v29  ;;  %v3083_v19 = vadd.f32 %v3079_v56, %v3039_v4  ;;  %v4634_v11 = vld [vmem:[%s7178_s8 + $0x368] sm:$0xff]  ;;  %v7683_v12 = vld [vmem:[%s7178_s8 + $0x378] sm:$0xff]  ;;  %v7686_v56 = vld [vmem:[%s7178_s8 + $0x380] sm:$0xff] }
 0x312   : > { %v3086_v44 = vmul.f32 %v7547_v3, %v3085_v53  ;;  %v3087_v24 = vmul.f32 %v7550_v46, %v3085_v53  ;;  %v3088_v25 = vmul.f32 %v4619_v45, %v3085_v53  ;;  %v3089_v42 = vmul.f32 %v4620_v60, %v3085_v53 }
 0x313   : > { %v3096_v27 = vmul.f32 %v7547_v3, %v3095_v17  ;;  %v3097_v13 = vmul.f32 %v7550_v46, %v3095_v17  ;;  %v3098_v26 = vmul.f32 %v4619_v45, %v3095_v17  ;;  %v3099_v57 = vmul.f32 %v4620_v60, %v3095_v17 }
 0x314   : > { %v3090_v35 = vadd.f32 %v3086_v44, %v3046_v38  ;;  %v3091_v33 = vadd.f32 %v3087_v24, %v3047_v55  ;;  %v3092_v18 = vadd.f32 %v3088_v25, %v3048_v41  ;;  %v3093_v14 = vadd.f32 %v3089_v42, %v3049_v21 }
 0x315   : > { %v3100_v36 = vadd.f32 %v3096_v27, %v3056_v31  ;;  %v3101_v16 = vadd.f32 %v3097_v13, %v3057_v39  ;;  %v3102_v20 = vadd.f32 %v3098_v26, %v3058_v0  ;;  %v3103_v40 = vadd.f32 %v3099_v57, %v3059_v61 }
 0x316   : > { %v3109_v49 = vstv %s7642_s18  ;;  %v3119_v22 = vstv %s7644_s19  ;;  %v3129_v29 = vstv %s7648_s20  ;;  %v3139_v3 = vstv %s7650_s21  ;;  %s7818_s18 = sld [smem:[#allocation8 + $0x83]]  ;;  %s7842_s19 = sld [smem:[#allocation8 + $0x18]] }
 0x317   : > { %v3110_v46 = vmul.f32 %v7581_v1, %v3109_v49  ;;  %v3111_v4 = vmul.f32 %v7584_v58, %v3109_v49  ;;  %v3112_v51 = vmul.f32 %v4627_v6, %v3109_v49  ;;  %v3113_v30 = vmul.f32 %v4628_v47, %v3109_v49  ;;  %s7844_s20 = sld [smem:[#allocation8 + $0x3c]]  ;;  %s7850_s21 = sld [smem:[#allocation8 + $0x60]] }
 0x318   : > { %v3120_v48 = vmul.f32 %v7581_v1, %v3119_v22  ;;  %v3121_v62 = vmul.f32 %v7584_v58, %v3119_v22  ;;  %v3122_v52 = vmul.f32 %v4627_v6, %v3119_v22  ;;  %v3123_v32 = vmul.f32 %v4628_v47, %v3119_v22 }
 0x319   : > { %v3114_v34 = vadd.f32 %v3110_v46, %v3070_v59  ;;  %v3115_v37 = vadd.f32 %v3111_v4, %v3071_v23  ;;  %v3116_v38 = vadd.f32 %v3112_v51, %v3072_v15  ;;  %v3117_v55 = vadd.f32 %v3113_v30, %v3073_v63  ;;  %v4641_v46 = vld [vmem:[%s7178_s8 + $0x361] sm:$0xff] }
 0x31a   : > { %v3124_v41 = vadd.f32 %v3120_v48, %v3080_v2  ;;  %v3125_v21 = vadd.f32 %v3121_v62, %v3081_v43  ;;  %v3126_v45 = vadd.f32 %v3122_v52, %v3082_v5  ;;  %v3127_v60 = vadd.f32 %v3123_v32, %v3083_v19  ;;  %v4642_v62 = vld [vmem:[%s7178_s8 + $0x369] sm:$0xff]  ;;  %v7711_v52 = vld [vmem:[%s7178_s8 + $0x379] sm:$0xff]  ;;  %v7714_v32 = vld [vmem:[%s7178_s8 + $0x381] sm:$0xff] }
 0x31b   : > { %v3130_v31 = vmul.f32 %v7581_v1, %v3129_v29  ;;  %v3131_v39 = vmul.f32 %v7584_v58, %v3129_v29  ;;  %v3132_v0 = vmul.f32 %v4627_v6, %v3129_v29  ;;  %v3133_v61 = vmul.f32 %v4628_v47, %v3129_v29 }
 0x31c   : > { %v3140_v50 = vmul.f32 %v7581_v1, %v3139_v3  ;;  %v3141_v28 = vmul.f32 %v7584_v58, %v3139_v3  ;;  %v3142_v53 = vmul.f32 %v4627_v6, %v3139_v3  ;;  %v3143_v17 = vmul.f32 %v4628_v47, %v3139_v3 }
 0x31d   : > { %v3134_v54 = vadd.f32 %v3130_v31, %v3090_v35  ;;  %v3135_v10 = vadd.f32 %v3131_v39, %v3091_v33  ;;  %v3136_v8 = vadd.f32 %v3132_v0, %v3092_v18  ;;  %v3137_v9 = vadd.f32 %v3133_v61, %v3093_v14 }
 0x31e   : > { %v3144_v59 = vadd.f32 %v3140_v50, %v3100_v36  ;;  %v3145_v1 = vadd.f32 %v3141_v28, %v3101_v16  ;;  %v3146_v23 = vadd.f32 %v3142_v53, %v3102_v20  ;;  %v3147_v15 = vadd.f32 %v3143_v17, %v3103_v40 }
 0x31f   : > { %v3155_v58 = vstv %s7664_s22  ;;  %v3165_v63 = vstv %s7666_s23  ;;  %v3175_v2 = vstv %s7670_s24  ;;  %v3185_v43 = vstv %s7672_s14  ;;  %s7852_s22 = sld [smem:[#allocation8 + $0x84]]  ;;  %s7872_s23 = sld [smem:[#allocation8 + $0x19]] }
 0x320   : > { %v3156_v5 = vmul.f32 %v4633_v7, %v3155_v58  ;;  %v3157_v19 = vmul.f32 %v4634_v11, %v3155_v58  ;;  %v3158_v44 = vmul.f32 %v7683_v12, %v3155_v58  ;;  %v3159_v24 = vmul.f32 %v7686_v56, %v3155_v58  ;;  %s7874_s24 = sld [smem:[#allocation8 + $0x3d]]  ;;  %s7878_s14 = sld [smem:[#allocation8 + $0x61]] }
 0x321   : > { %v3166_v25 = vmul.f32 %v4633_v7, %v3165_v63  ;;  %v3167_v42 = vmul.f32 %v4634_v11, %v3165_v63  ;;  %v3168_v27 = vmul.f32 %v7683_v12, %v3165_v63  ;;  %v3169_v13 = vmul.f32 %v7686_v56, %v3165_v63 }
 0x322   : > { %v3160_v26 = vadd.f32 %v3156_v5, %v3114_v34  ;;  %v3161_v57 = vadd.f32 %v3157_v19, %v3115_v37  ;;  %v3162_v35 = vadd.f32 %v3158_v44, %v3116_v38  ;;  %v3163_v33 = vadd.f32 %v3159_v24, %v3117_v55  ;;  %v4649_v44 = vld [vmem:[%s7178_s8 + $0x362] sm:$0xff] }
 0x323   : > { %v3170_v18 = vadd.f32 %v3166_v25, %v3124_v41  ;;  %v3171_v14 = vadd.f32 %v3167_v42, %v3125_v21  ;;  %v3172_v6 = vadd.f32 %v3168_v27, %v3126_v45  ;;  %v3173_v47 = vadd.f32 %v3169_v13, %v3127_v60  ;;  %v4650_v13 = vld [vmem:[%s7178_s8 + $0x36a] sm:$0xff] }
 0x324   : > { %v3176_v36 = vmul.f32 %v4633_v7, %v3175_v2  ;;  %v3177_v16 = vmul.f32 %v4634_v11, %v3175_v2  ;;  %v3178_v20 = vmul.f32 %v7683_v12, %v3175_v2  ;;  %v3179_v40 = vmul.f32 %v7686_v56, %v3175_v2 }
 0x325   : > { %v3186_v49 = vmul.f32 %v4633_v7, %v3185_v43  ;;  %v3187_v22 = vmul.f32 %v4634_v11, %v3185_v43  ;;  %v3188_v29 = vmul.f32 %v7683_v12, %v3185_v43  ;;  %v3189_v3 = vmul.f32 %v7686_v56, %v3185_v43 }
 0x326   : > { %v3180_v4 = vadd.f32 %v3176_v36, %v3134_v54  ;;  %v3181_v51 = vadd.f32 %v3177_v16, %v3135_v10  ;;  %v3182_v30 = vadd.f32 %v3178_v20, %v3136_v8  ;;  %v3183_v48 = vadd.f32 %v3179_v40, %v3137_v9 }
 0x327   : > { %v3190_v34 = vadd.f32 %v3186_v49, %v3144_v59  ;;  %v3191_v37 = vadd.f32 %v3187_v22, %v3145_v1  ;;  %v3192_v38 = vadd.f32 %v3188_v29, %v3146_v23  ;;  %v3193_v55 = vadd.f32 %v3189_v3, %v3147_v15 }
 0x328   : > { %v3199_v41 = vstv %s7692_s25  ;;  %v3209_v21 = vstv %s7694_s26  ;;  %v3219_v45 = vstv %s7698_s2  ;;  %v3229_v60 = vstv %s7700_s1  ;;  %s7880_s25 = sld [smem:[#allocation8 + $0x85]]  ;;  %s7894_s26 = sld [smem:[#allocation8 + $0x1a]] }
 0x329   : > { %v3200_v31 = vmul.f32 %v4641_v46, %v3199_v41  ;;  %v3201_v39 = vmul.f32 %v4642_v62, %v3199_v41  ;;  %v3202_v0 = vmul.f32 %v7711_v52, %v3199_v41  ;;  %v3203_v61 = vmul.f32 %v7714_v32, %v3199_v41  ;;  %s7896_s2 = sld [smem:[#allocation8 + $0x3e]]  ;;  %s7900_s1 = sld [smem:[#allocation8 + $0x62]] }
 0x32a   : > { %v3210_v50 = vmul.f32 %v4641_v46, %v3209_v21  ;;  %v3211_v28 = vmul.f32 %v4642_v62, %v3209_v21  ;;  %v3212_v53 = vmul.f32 %v7711_v52, %v3209_v21  ;;  %v3213_v17 = vmul.f32 %v7714_v32, %v3209_v21 }
 0x32b   : > { %v3204_v7 = vadd.f32 %v3200_v31, %v3160_v26  ;;  %v3205_v54 = vadd.f32 %v3201_v39, %v3161_v57  ;;  %v3206_v10 = vadd.f32 %v3202_v0, %v3162_v35  ;;  %v3207_v8 = vadd.f32 %v3203_v61, %v3163_v33  ;;  %v7739_v26 = vld [vmem:[%s7178_s8 + $0x37a] sm:$0xff]  ;;  %v7742_v57 = vld [vmem:[%s7178_s8 + $0x382] sm:$0xff] }
 0x32c   : > { %v3214_v9 = vadd.f32 %v3210_v50, %v3170_v18  ;;  %v3215_v11 = vadd.f32 %v3211_v28, %v3171_v14  ;;  %v3216_v59 = vadd.f32 %v3212_v53, %v3172_v6  ;;  %v3217_v1 = vadd.f32 %v3213_v17, %v3173_v47 }
 0x32d   : > { %v3220_v23 = vmul.f32 %v4641_v46, %v3219_v45  ;;  %v3221_v15 = vmul.f32 %v4642_v62, %v3219_v45  ;;  %v3222_v58 = vmul.f32 %v7711_v52, %v3219_v45  ;;  %v3223_v63 = vmul.f32 %v7714_v32, %v3219_v45 }
 0x32e   : > { %v3230_v2 = vmul.f32 %v4641_v46, %v3229_v60  ;;  %v3231_v43 = vmul.f32 %v4642_v62, %v3229_v60  ;;  %v3232_v5 = vmul.f32 %v7711_v52, %v3229_v60  ;;  %v3233_v19 = vmul.f32 %v7714_v32, %v3229_v60 }
 0x32f   : > { %v3224_v24 = vadd.f32 %v3220_v23, %v3180_v4  ;;  %v3225_v25 = vadd.f32 %v3221_v15, %v3181_v51  ;;  %v3226_v42 = vadd.f32 %v3222_v58, %v3182_v30  ;;  %v3227_v27 = vadd.f32 %v3223_v63, %v3183_v48 }
 0x330   : > { %v3234_v35 = vadd.f32 %v3230_v2, %v3190_v34  ;;  %v3235_v33 = vadd.f32 %v3231_v43, %v3191_v37  ;;  %v3236_v18 = vadd.f32 %v3232_v5, %v3192_v38  ;;  %v3237_v14 = vadd.f32 %v3233_v19, %v3193_v55 }
 0x331   : > { %v3243_v6 = vstv %s7720_s27  ;;  %v3253_v47 = vstv %s7722_s28  ;;  %v3263_v36 = vstv %s7726_s29  ;;  %v3273_v16 = vstv %s7728_s30  ;;  %s7902_s27 = sld [smem:[#allocation8 + $0x86]]  ;;  %s7916_s28 = sld [smem:[#allocation8 + $0x1b]] }
 0x332   : > { %v3244_v20 = vmul.f32 %v4649_v44, %v3243_v6  ;;  %v3245_v40 = vmul.f32 %v4650_v13, %v3243_v6  ;;  %v3246_v49 = vmul.f32 %v7739_v26, %v3243_v6  ;;  %v3247_v22 = vmul.f32 %v7742_v57, %v3243_v6  ;;  %s7918_s29 = sld [smem:[#allocation8 + $0x3f]]  ;;  %s7922_s30 = sld [smem:[#allocation8 + $0x63]] }
 0x333   : > { %v3254_v29 = vmul.f32 %v4649_v44, %v3253_v47  ;;  %v3255_v3 = vmul.f32 %v4650_v13, %v3253_v47  ;;  %v3256_v46 = vmul.f32 %v7739_v26, %v3253_v47  ;;  %v3257_v4 = vmul.f32 %v7742_v57, %v3253_v47 }
 0x334   : > { %v3248_v51 = vadd.f32 %v3244_v20, %v3204_v7  ;;  %v3249_v30 = vadd.f32 %v3245_v40, %v3205_v54  ;;  %v3250_v48 = vadd.f32 %v3246_v49, %v3206_v10  ;;  %v3251_v62 = vadd.f32 %v3247_v22, %v3207_v8  ;;  %v7765_v7 = vld [vmem:[%s7178_s8 + $0x390] sm:$0xff]  ;;  %v7768_v54 = vld [vmem:[%s7178_s8 + $0x398] sm:$0xff] }
 0x335   : > { %v3258_v34 = vadd.f32 %v3254_v29, %v3214_v9  ;;  %v3259_v37 = vadd.f32 %v3255_v3, %v3215_v11  ;;  %v3260_v38 = vadd.f32 %v3256_v46, %v3216_v59  ;;  %v3261_v55 = vadd.f32 %v3257_v4, %v3217_v1 }
 0x336   : > { %v3264_v41 = vmul.f32 %v4649_v44, %v3263_v36  ;;  %v3265_v21 = vmul.f32 %v4650_v13, %v3263_v36  ;;  %v3266_v45 = vmul.f32 %v7739_v26, %v3263_v36  ;;  %v3267_v60 = vmul.f32 %v7742_v57, %v3263_v36 }
 0x337   : > { %v3274_v31 = vmul.f32 %v4649_v44, %v3273_v16  ;;  %v3275_v39 = vmul.f32 %v4650_v13, %v3273_v16  ;;  %v3276_v0 = vmul.f32 %v7739_v26, %v3273_v16  ;;  %v3277_v61 = vmul.f32 %v7742_v57, %v3273_v16 }
 0x338   : > { %v3268_v50 = vadd.f32 %v3264_v41, %v3224_v24  ;;  %v3269_v28 = vadd.f32 %v3265_v21, %v3225_v25  ;;  %v3270_v53 = vadd.f32 %v3266_v45, %v3226_v42  ;;  %v3271_v17 = vadd.f32 %v3267_v60, %v3227_v27 }
 0x339   : > { %v3278_v10 = vadd.f32 %v3274_v31, %v3234_v35  ;;  %v3279_v8 = vadd.f32 %v3275_v39, %v3235_v33  ;;  %v3280_v9 = vadd.f32 %v3276_v0, %v3236_v18  ;;  %v3281_v11 = vadd.f32 %v3277_v61, %v3237_v14 }
 0x33a   : > { %v3289_v59 = vstv %s7748_s7  ;;  %v3299_v1 = vstv %s7750_s6  ;;  %v3309_v23 = vstv %s7754_s9  ;;  %v3319_v15 = vstv %s7756_s3  ;;  %s7924_s7 = sld [smem:[#allocation8 + $0x87]]  ;;  %s7944_s6 = sld [smem:[#allocation8 + $0x1c]] }
 0x33b   : > { %v3290_v58 = vmul.f32 %v7683_v12, %v3289_v59  ;;  %v3291_v63 = vmul.f32 %v7686_v56, %v3289_v59  ;;  %v3292_v2 = vmul.f32 %v7765_v7, %v3289_v59  ;;  %v3293_v43 = vmul.f32 %v7768_v54, %v3289_v59  ;;  %s7946_s9 = sld [smem:[#allocation8 + $0x40]]  ;;  %s7950_s3 = sld [smem:[#allocation8 + $0x64]] }
 0x33c   : > { %v3300_v5 = vmul.f32 %v7683_v12, %v3299_v1  ;;  %v3301_v19 = vmul.f32 %v7686_v56, %v3299_v1  ;;  %v3302_v44 = vmul.f32 %v7765_v7, %v3299_v1  ;;  %v3303_v24 = vmul.f32 %v7768_v54, %v3299_v1 }
 0x33d   : > { %v3294_v25 = vadd.f32 %v3290_v58, %v3248_v51  ;;  %v3295_v42 = vadd.f32 %v3291_v63, %v3249_v30  ;;  %v3296_v27 = vadd.f32 %v3292_v2, %v3250_v48  ;;  %v3297_v13 = vadd.f32 %v3293_v43, %v3251_v62  ;;  %v7799_v51 = vld [vmem:[%s7178_s8 + $0x391] sm:$0xff]  ;;  %v7802_v30 = vld [vmem:[%s7178_s8 + $0x399] sm:$0xff] }
 0x33e   : > { %v3304_v35 = vadd.f32 %v3300_v5, %v3258_v34  ;;  %v3305_v33 = vadd.f32 %v3301_v19, %v3259_v37  ;;  %v3306_v18 = vadd.f32 %v3302_v44, %v3260_v38  ;;  %v3307_v14 = vadd.f32 %v3303_v24, %v3261_v55 }
 0x33f   : > { %v3310_v6 = vmul.f32 %v7683_v12, %v3309_v23  ;;  %v3311_v47 = vmul.f32 %v7686_v56, %v3309_v23  ;;  %v3312_v36 = vmul.f32 %v7765_v7, %v3309_v23  ;;  %v3313_v16 = vmul.f32 %v7768_v54, %v3309_v23 }
 0x340   : > { %v3320_v20 = vmul.f32 %v7683_v12, %v3319_v15  ;;  %v3321_v40 = vmul.f32 %v7686_v56, %v3319_v15  ;;  %v3322_v49 = vmul.f32 %v7765_v7, %v3319_v15  ;;  %v3323_v22 = vmul.f32 %v7768_v54, %v3319_v15 }
 0x341   : > { %v3314_v29 = vadd.f32 %v3310_v6, %v3268_v50  ;;  %v3315_v3 = vadd.f32 %v3311_v47, %v3269_v28  ;;  %v3316_v46 = vadd.f32 %v3312_v36, %v3270_v53  ;;  %v3317_v4 = vadd.f32 %v3313_v16, %v3271_v17 }
 0x342   : > { %v3324_v48 = vadd.f32 %v3320_v20, %v3278_v10  ;;  %v3325_v62 = vadd.f32 %v3321_v40, %v3279_v8  ;;  %v3326_v34 = vadd.f32 %v3322_v49, %v3280_v9  ;;  %v3327_v12 = vadd.f32 %v3323_v22, %v3281_v11 }
 0x343   : > { %v3333_v37 = vstv %s7774_s10  ;;  %v3343_v38 = vstv %s7776_s11  ;;  %v3353_v56 = vstv %s7782_s12  ;;  %v3363_v55 = vstv %s7784_s13  ;;  %s7952_s10 = sld [smem:[#allocation8 + $0x88]]  ;;  %s7972_s11 = sld [smem:[#allocation8 + $0x1d]] }
 0x344   : > { %v3334_v41 = vmul.f32 %v7711_v52, %v3333_v37  ;;  %v3335_v21 = vmul.f32 %v7714_v32, %v3333_v37  ;;  %v3336_v45 = vmul.f32 %v7799_v51, %v3333_v37  ;;  %v3337_v60 = vmul.f32 %v7802_v30, %v3333_v37  ;;  %s7974_s12 = sld [smem:[#allocation8 + $0x41]]  ;;  %s7978_s13 = sld [smem:[#allocation8 + $0x65]] }
 0x345   : > { %v3344_v31 = vmul.f32 %v7711_v52, %v3343_v38  ;;  %v3345_v39 = vmul.f32 %v7714_v32, %v3343_v38  ;;  %v3346_v0 = vmul.f32 %v7799_v51, %v3343_v38  ;;  %v3347_v61 = vmul.f32 %v7802_v30, %v3343_v38 }
 0x346   : > { %v3338_v50 = vadd.f32 %v3334_v41, %v3294_v25  ;;  %v3339_v28 = vadd.f32 %v3335_v21, %v3295_v42  ;;  %v3340_v53 = vadd.f32 %v3336_v45, %v3296_v27  ;;  %v3341_v17 = vadd.f32 %v3337_v60, %v3297_v13  ;;  %v7833_v25 = vld [vmem:[%s7178_s8 + $0x392] sm:$0xff]  ;;  %v7836_v42 = vld [vmem:[%s7178_s8 + $0x39a] sm:$0xff] }
 0x347   : > { %v3348_v10 = vadd.f32 %v3344_v31, %v3304_v35  ;;  %v3349_v8 = vadd.f32 %v3345_v39, %v3305_v33  ;;  %v3350_v9 = vadd.f32 %v3346_v0, %v3306_v18  ;;  %v3351_v11 = vadd.f32 %v3347_v61, %v3307_v14 }
 0x348   : > { %v3354_v59 = vmul.f32 %v7711_v52, %v3353_v56  ;;  %v3355_v1 = vmul.f32 %v7714_v32, %v3353_v56  ;;  %v3356_v23 = vmul.f32 %v7799_v51, %v3353_v56  ;;  %v3357_v15 = vmul.f32 %v7802_v30, %v3353_v56 }
 0x349   : > { %v3364_v58 = vmul.f32 %v7711_v52, %v3363_v55  ;;  %v3365_v63 = vmul.f32 %v7714_v32, %v3363_v55  ;;  %v3366_v2 = vmul.f32 %v7799_v51, %v3363_v55  ;;  %v3367_v43 = vmul.f32 %v7802_v30, %v3363_v55 }
 0x34a   : > { %v3358_v5 = vadd.f32 %v3354_v59, %v3314_v29  ;;  %v3359_v19 = vadd.f32 %v3355_v1, %v3315_v3  ;;  %v3360_v44 = vadd.f32 %v3356_v23, %v3316_v46  ;;  %v3361_v24 = vadd.f32 %v3357_v15, %v3317_v4 }
 0x34b   : > { %v3368_v27 = vadd.f32 %v3364_v58, %v3324_v48  ;;  %v3369_v13 = vadd.f32 %v3365_v63, %v3325_v62  ;;  %v3370_v35 = vadd.f32 %v3366_v2, %v3326_v34  ;;  %v3371_v52 = vadd.f32 %v3367_v43, %v3327_v12 }
 0x34c   : > { %v3377_v33 = vstv %s7808_s15  ;;  %v3387_v18 = vstv %s7810_s16  ;;  %v3397_v32 = vstv %s7816_s17  ;;  %v3407_v14 = vstv %s7818_s18  ;;  %s7980_s15 = sld [smem:[#allocation8 + $0x89]]  ;;  %s8000_s16 = sld [smem:[#allocation8 + $0x1e]] }
 0x34d   : > { %v3378_v6 = vmul.f32 %v7739_v26, %v3377_v33  ;;  %v3379_v47 = vmul.f32 %v7742_v57, %v3377_v33  ;;  %v3380_v36 = vmul.f32 %v7833_v25, %v3377_v33  ;;  %v3381_v16 = vmul.f32 %v7836_v42, %v3377_v33  ;;  %s8002_s17 = sld [smem:[#allocation8 + $0x42]]  ;;  %s8006_s18 = sld [smem:[#allocation8 + $0x66]] }
 0x34e   : > { %v3388_v20 = vmul.f32 %v7739_v26, %v3387_v18  ;;  %v3389_v40 = vmul.f32 %v7742_v57, %v3387_v18  ;;  %v3390_v49 = vmul.f32 %v7833_v25, %v3387_v18  ;;  %v3391_v22 = vmul.f32 %v7836_v42, %v3387_v18 }
 0x34f   : > { %v3382_v29 = vadd.f32 %v3378_v6, %v3338_v50  ;;  %v3383_v3 = vadd.f32 %v3379_v47, %v3339_v28  ;;  %v3384_v46 = vadd.f32 %v3380_v36, %v3340_v53  ;;  %v3385_v4 = vadd.f32 %v3381_v16, %v3341_v17  ;;  %v4687_v50 = vld [vmem:[%s7178_s8 + $0x3a8] sm:$0xff]  ;;  %v4688_v28 = vld [vmem:[%s7178_s8 + $0x3b0] sm:$0xff] }
 0x350   : > { %v3392_v48 = vadd.f32 %v3388_v20, %v3348_v10  ;;  %v3393_v62 = vadd.f32 %v3389_v40, %v3349_v8  ;;  %v3394_v34 = vadd.f32 %v3390_v49, %v3350_v9  ;;  %v3395_v12 = vadd.f32 %v3391_v22, %v3351_v11 }
 0x351   : > { %v3398_v37 = vmul.f32 %v7739_v26, %v3397_v32  ;;  %v3399_v38 = vmul.f32 %v7742_v57, %v3397_v32  ;;  %v3400_v56 = vmul.f32 %v7833_v25, %v3397_v32  ;;  %v3401_v55 = vmul.f32 %v7836_v42, %v3397_v32 }
 0x352   : > { %v3408_v41 = vmul.f32 %v7739_v26, %v3407_v14  ;;  %v3409_v21 = vmul.f32 %v7742_v57, %v3407_v14  ;;  %v3410_v45 = vmul.f32 %v7833_v25, %v3407_v14  ;;  %v3411_v60 = vmul.f32 %v7836_v42, %v3407_v14 }
 0x353   : > { %v3402_v31 = vadd.f32 %v3398_v37, %v3358_v5  ;;  %v3403_v39 = vadd.f32 %v3399_v38, %v3359_v19  ;;  %v3404_v0 = vadd.f32 %v3400_v56, %v3360_v44  ;;  %v3405_v61 = vadd.f32 %v3401_v55, %v3361_v24 }
 0x354   : > { %v3412_v53 = vadd.f32 %v3408_v41, %v3368_v27  ;;  %v3413_v17 = vadd.f32 %v3409_v21, %v3369_v13  ;;  %v3414_v10 = vadd.f32 %v3410_v45, %v3370_v35  ;;  %v3415_v8 = vadd.f32 %v3411_v60, %v3371_v52 }
 0x355   : > { %v3423_v9 = vstv %s7842_s19  ;;  %v3433_v26 = vstv %s7844_s20  ;;  %v3443_v11 = vstv %s7850_s21  ;;  %v3453_v59 = vstv %s7852_s22  ;;  %s8008_s19 = sld [smem:[#allocation8 + $0x8a]]  ;;  %s8026_s20 = sld [smem:[#allocation8 + $0x1f]] }
 0x356   : > { %v3424_v57 = vmul.f32 %v7765_v7, %v3423_v9  ;;  %v3425_v1 = vmul.f32 %v7768_v54, %v3423_v9  ;;  %v3426_v23 = vmul.f32 %v4687_v50, %v3423_v9  ;;  %v3427_v15 = vmul.f32 %v4688_v28, %v3423_v9  ;;  %s8028_s21 = sld [smem:[#allocation8 + $0x43]]  ;;  %s8034_s22 = sld [smem:[#allocation8 + $0x67]] }
 0x357   : > { %v3434_v58 = vmul.f32 %v7765_v7, %v3433_v26  ;;  %v3435_v63 = vmul.f32 %v7768_v54, %v3433_v26  ;;  %v3436_v2 = vmul.f32 %v4687_v50, %v3433_v26  ;;  %v3437_v43 = vmul.f32 %v4688_v28, %v3433_v26 }
 0x358   : > { %v3428_v5 = vadd.f32 %v3424_v57, %v3382_v29  ;;  %v3429_v19 = vadd.f32 %v3425_v1, %v3383_v3  ;;  %v3430_v44 = vadd.f32 %v3426_v23, %v3384_v46  ;;  %v3431_v24 = vadd.f32 %v3427_v15, %v3385_v4  ;;  %v4695_v29 = vld [vmem:[%s7178_s8 + $0x3a9] sm:$0xff]  ;;  %v4696_v3 = vld [vmem:[%s7178_s8 + $0x3b1] sm:$0xff] }
 0x359   : > { %v3438_v27 = vadd.f32 %v3434_v58, %v3392_v48  ;;  %v3439_v13 = vadd.f32 %v3435_v63, %v3393_v62  ;;  %v3440_v35 = vadd.f32 %v3436_v2, %v3394_v34  ;;  %v3441_v52 = vadd.f32 %v3437_v43, %v3395_v12  ;;  %v4703_v2 = vld [vmem:[%s7178_s8 + $0x3aa] sm:$0xff]  ;;  %v4704_v43 = vld [vmem:[%s7178_s8 + $0x3b2] sm:$0xff] }
 0x35a   : > { %v3444_v33 = vmul.f32 %v7765_v7, %v3443_v11  ;;  %v3445_v18 = vmul.f32 %v7768_v54, %v3443_v11  ;;  %v3446_v32 = vmul.f32 %v4687_v50, %v3443_v11  ;;  %v3447_v14 = vmul.f32 %v4688_v28, %v3443_v11 }
 0x35b   : > { %v3454_v6 = vmul.f32 %v7765_v7, %v3453_v59  ;;  %v3455_v47 = vmul.f32 %v7768_v54, %v3453_v59  ;;  %v3456_v36 = vmul.f32 %v4687_v50, %v3453_v59  ;;  %v3457_v16 = vmul.f32 %v4688_v28, %v3453_v59 }
 0x35c   : > { %v3448_v20 = vadd.f32 %v3444_v33, %v3402_v31  ;;  %v3449_v40 = vadd.f32 %v3445_v18, %v3403_v39  ;;  %v3450_v49 = vadd.f32 %v3446_v32, %v3404_v0  ;;  %v3451_v22 = vadd.f32 %v3447_v14, %v3405_v61 }
 0x35d   : > { %v3458_v46 = vadd.f32 %v3454_v6, %v3412_v53  ;;  %v3459_v4 = vadd.f32 %v3455_v47, %v3413_v17  ;;  %v3460_v48 = vadd.f32 %v3456_v36, %v3414_v10  ;;  %v3461_v62 = vadd.f32 %v3457_v16, %v3415_v8 }
 0x35e   : > { %v3467_v34 = vstv %s7872_s23  ;;  %v3477_v12 = vstv %s7874_s24  ;;  %v3487_v37 = vstv %s7878_s14  ;;  %v3497_v7 = vstv %s7880_s25  ;;  %s8036_s23 = sld [smem:[#allocation8 + $0x8b]]  ;;  %s8060_s24 = sld [smem:[#allocation8 + $0x20]] }
 0x35f   : > { %v3468_v54 = vmul.f32 %v7799_v51, %v3467_v34  ;;  %v3469_v38 = vmul.f32 %v7802_v30, %v3467_v34  ;;  %v3470_v56 = vmul.f32 %v4695_v29, %v3467_v34  ;;  %v3471_v55 = vmul.f32 %v4696_v3, %v3467_v34  ;;  %s8062_s14 = sld [smem:[#allocation8 + $0x44]]  ;;  %s8068_s25 = sld [smem:[#allocation8 + $0x68]] }
 0x360   : > { %v3478_v41 = vmul.f32 %v7799_v51, %v3477_v12  ;;  %v3479_v21 = vmul.f32 %v7802_v30, %v3477_v12  ;;  %v3480_v45 = vmul.f32 %v4695_v29, %v3477_v12  ;;  %v3481_v60 = vmul.f32 %v4696_v3, %v3477_v12 }
 0x361   : > { %v3472_v31 = vadd.f32 %v3468_v54, %v3428_v5  ;;  %v3473_v39 = vadd.f32 %v3469_v38, %v3429_v19  ;;  %v3474_v0 = vadd.f32 %v3470_v56, %v3430_v44  ;;  %v3475_v61 = vadd.f32 %v3471_v55, %v3431_v24  ;;  %v4709_v54 = vld [vmem:[%s7178_s8 + $0x510] sm:$0xff] }
 0x362   : > { %v3482_v50 = vadd.f32 %v3478_v41, %v3438_v27  ;;  %v3483_v28 = vadd.f32 %v3479_v21, %v3439_v13  ;;  %v3484_v53 = vadd.f32 %v3480_v45, %v3440_v35  ;;  %v3485_v17 = vadd.f32 %v3481_v60, %v3441_v52  ;;  %v4710_v21 = vld [vmem:[%s7178_s8 + $0x518] sm:$0xff]  ;;  %v7935_v45 = vld [vmem:[%s7178_s8 + $0x528] sm:$0xff]  ;;  %v7938_v60 = vld [vmem:[%s7178_s8 + $0x530] sm:$0xff] }
 0x363   : > { %v3488_v10 = vmul.f32 %v7799_v51, %v3487_v37  ;;  %v3489_v8 = vmul.f32 %v7802_v30, %v3487_v37  ;;  %v3490_v9 = vmul.f32 %v4695_v29, %v3487_v37  ;;  %v3491_v26 = vmul.f32 %v4696_v3, %v3487_v37 }
 0x364   : > { %v3498_v11 = vmul.f32 %v7799_v51, %v3497_v7  ;;  %v3499_v59 = vmul.f32 %v7802_v30, %v3497_v7  ;;  %v3500_v57 = vmul.f32 %v4695_v29, %v3497_v7  ;;  %v3501_v1 = vmul.f32 %v4696_v3, %v3497_v7 }
 0x365   : > { %v3492_v23 = vadd.f32 %v3488_v10, %v3448_v20  ;;  %v3493_v15 = vadd.f32 %v3489_v8, %v3449_v40  ;;  %v3494_v58 = vadd.f32 %v3490_v9, %v3450_v49  ;;  %v3495_v63 = vadd.f32 %v3491_v26, %v3451_v22 }
 0x366   : > { %v3502_v5 = vadd.f32 %v3498_v11, %v3458_v46  ;;  %v3503_v19 = vadd.f32 %v3499_v59, %v3459_v4  ;;  %v3504_v44 = vadd.f32 %v3500_v57, %v3460_v48  ;;  %v3505_v24 = vadd.f32 %v3501_v1, %v3461_v62 }
 0x367   : > { %v3511_v27 = vstv %s7894_s26  ;;  %v3521_v13 = vstv %s7896_s2  ;;  %v3531_v35 = vstv %s7900_s1  ;;  %v3541_v51 = vstv %s7902_s27  ;;  %s8070_s26 = sld [smem:[#allocation8 + $0x8c]]  ;;  %s8094_s2 = sld [smem:[#allocation8 + $0x21]] }
 0x368   : > { %v3512_v30 = vmul.f32 %v7833_v25, %v3511_v27  ;;  %v3513_v52 = vmul.f32 %v7836_v42, %v3511_v27  ;;  %v3514_v33 = vmul.f32 %v4703_v2, %v3511_v27  ;;  %v3515_v18 = vmul.f32 %v4704_v43, %v3511_v27  ;;  %s8096_s1 = sld [smem:[#allocation8 + $0x45]]  ;;  %s8102_s27 = sld [smem:[#allocation8 + $0x69]] }
 0x369   : > { %v3522_v32 = vmul.f32 %v7833_v25, %v3521_v13  ;;  %v3523_v14 = vmul.f32 %v7836_v42, %v3521_v13  ;;  %v3524_v6 = vmul.f32 %v4703_v2, %v3521_v13  ;;  %v3525_v47 = vmul.f32 %v4704_v43, %v3521_v13 }
 0x36a   : > { %v3516_v36 = vadd.f32 %v3512_v30, %v3472_v31  ;;  %v3517_v16 = vadd.f32 %v3513_v52, %v3473_v39  ;;  %v3518_v20 = vadd.f32 %v3514_v33, %v3474_v0  ;;  %v3519_v40 = vadd.f32 %v3515_v18, %v3475_v61  ;;  %v4717_v30 = vld [vmem:[%s7178_s8 + $0x511] sm:$0xff] }
 0x36b   : > { %v3526_v49 = vadd.f32 %v3522_v32, %v3482_v50  ;;  %v3527_v22 = vadd.f32 %v3523_v14, %v3483_v28  ;;  %v3528_v29 = vadd.f32 %v3524_v6, %v3484_v53  ;;  %v3529_v3 = vadd.f32 %v3525_v47, %v3485_v17  ;;  %v4718_v14 = vld [vmem:[%s7178_s8 + $0x519] sm:$0xff]  ;;  %v7963_v6 = vld [vmem:[%s7178_s8 + $0x529] sm:$0xff]  ;;  %v7966_v47 = vld [vmem:[%s7178_s8 + $0x531] sm:$0xff] }
 0x36c   : > { %v3532_v46 = vmul.f32 %v7833_v25, %v3531_v35  ;;  %v3533_v4 = vmul.f32 %v7836_v42, %v3531_v35  ;;  %v3534_v48 = vmul.f32 %v4703_v2, %v3531_v35  ;;  %v3535_v62 = vmul.f32 %v4704_v43, %v3531_v35 }
 0x36d   : > { %v3542_v34 = vmul.f32 %v7833_v25, %v3541_v51  ;;  %v3543_v12 = vmul.f32 %v7836_v42, %v3541_v51  ;;  %v3544_v37 = vmul.f32 %v4703_v2, %v3541_v51  ;;  %v3545_v7 = vmul.f32 %v4704_v43, %v3541_v51 }
 0x36e   : > { %v3536_v38 = vadd.f32 %v3532_v46, %v3492_v23  ;;  %v3537_v56 = vadd.f32 %v3533_v4, %v3493_v15  ;;  %v3538_v55 = vadd.f32 %v3534_v48, %v3494_v58  ;;  %v3539_v41 = vadd.f32 %v3535_v62, %v3495_v63 }
 0x36f   : > { %v3546_v31 = vadd.f32 %v3542_v34, %v3502_v5  ;;  %v3547_v25 = vadd.f32 %v3543_v12, %v3503_v19  ;;  %v3548_v39 = vadd.f32 %v3544_v37, %v3504_v44  ;;  %v3549_v0 = vadd.f32 %v3545_v7, %v3505_v24 }
 0x370   : > { %v3557_v42 = vstv %s7916_s28  ;;  %v3567_v61 = vstv %s7918_s29  ;;  %v3577_v50 = vstv %s7922_s30  ;;  %v3587_v28 = vstv %s7924_s7  ;;  %s8104_s28 = sld [smem:[#allocation8 + $0x8d]]  ;;  %s8124_s29 = sld [smem:[#allocation8 + $0x22]] }
 0x371   : > { %v3558_v53 = vmul.f32 %v4709_v54, %v3557_v42  ;;  %v3559_v17 = vmul.f32 %v4710_v21, %v3557_v42  ;;  %v3560_v10 = vmul.f32 %v7935_v45, %v3557_v42  ;;  %v3561_v8 = vmul.f32 %v7938_v60, %v3557_v42  ;;  %s8126_s30 = sld [smem:[#allocation8 + $0x46]]  ;;  %s8130_s7 = sld [smem:[#allocation8 + $0x6a]] }
 0x372   : > { %v3568_v9 = vmul.f32 %v4709_v54, %v3567_v61  ;;  %v3569_v26 = vmul.f32 %v4710_v21, %v3567_v61  ;;  %v3570_v11 = vmul.f32 %v7935_v45, %v3567_v61  ;;  %v3571_v59 = vmul.f32 %v7938_v60, %v3567_v61 }
 0x373   : > { %v3562_v57 = vadd.f32 %v3558_v53, %v3516_v36  ;;  %v3563_v1 = vadd.f32 %v3559_v17, %v3517_v16  ;;  %v3564_v23 = vadd.f32 %v3560_v10, %v3518_v20  ;;  %v3565_v15 = vadd.f32 %v3561_v8, %v3519_v40  ;;  %v4725_v10 = vld [vmem:[%s7178_s8 + $0x512] sm:$0xff] }
 0x374   : > { %v3572_v58 = vadd.f32 %v3568_v9, %v3526_v49  ;;  %v3573_v63 = vadd.f32 %v3569_v26, %v3527_v22  ;;  %v3574_v2 = vadd.f32 %v3570_v11, %v3528_v29  ;;  %v3575_v43 = vadd.f32 %v3571_v59, %v3529_v3  ;;  %v4726_v59 = vld [vmem:[%s7178_s8 + $0x51a] sm:$0xff] }
 0x375   : > { %v3578_v5 = vmul.f32 %v4709_v54, %v3577_v50  ;;  %v3579_v19 = vmul.f32 %v4710_v21, %v3577_v50  ;;  %v3580_v44 = vmul.f32 %v7935_v45, %v3577_v50  ;;  %v3581_v24 = vmul.f32 %v7938_v60, %v3577_v50 }
 0x376   : > { %v3588_v27 = vmul.f32 %v4709_v54, %v3587_v28  ;;  %v3589_v13 = vmul.f32 %v4710_v21, %v3587_v28  ;;  %v3590_v35 = vmul.f32 %v7935_v45, %v3587_v28  ;;  %v3591_v51 = vmul.f32 %v7938_v60, %v3587_v28 }
 0x377   : > { %v3582_v52 = vadd.f32 %v3578_v5, %v3536_v38  ;;  %v3583_v33 = vadd.f32 %v3579_v19, %v3537_v56  ;;  %v3584_v18 = vadd.f32 %v3580_v44, %v3538_v55  ;;  %v3585_v32 = vadd.f32 %v3581_v24, %v3539_v41 }
 0x378   : > { %v3592_v36 = vadd.f32 %v3588_v27, %v3546_v31  ;;  %v3593_v16 = vadd.f32 %v3589_v13, %v3547_v25  ;;  %v3594_v20 = vadd.f32 %v3590_v35, %v3548_v39  ;;  %v3595_v40 = vadd.f32 %v3591_v51, %v3549_v0 }
 0x379   : > { %v3601_v49 = vstv %s7944_s6  ;;  %v3611_v22 = vstv %s7946_s9  ;;  %v3621_v29 = vstv %s7950_s3  ;;  %v3631_v3 = vstv %s7952_s10  ;;  %s8132_s6 = sld [smem:[#allocation8 + $0x8e]]  ;;  %s8146_s9 = sld [smem:[#allocation8 + $0x23]] }
 0x37a   : > { %v3602_v46 = vmul.f32 %v4717_v30, %v3601_v49  ;;  %v3603_v4 = vmul.f32 %v4718_v14, %v3601_v49  ;;  %v3604_v48 = vmul.f32 %v7963_v6, %v3601_v49  ;;  %v3605_v62 = vmul.f32 %v7966_v47, %v3601_v49  ;;  %s8148_s3 = sld [smem:[#allocation8 + $0x47]]  ;;  %s8152_s10 = sld [smem:[#allocation8 + $0x6b]] }
 0x37b   : > { %v3612_v34 = vmul.f32 %v4717_v30, %v3611_v22  ;;  %v3613_v12 = vmul.f32 %v4718_v14, %v3611_v22  ;;  %v3614_v37 = vmul.f32 %v7963_v6, %v3611_v22  ;;  %v3615_v7 = vmul.f32 %v7966_v47, %v3611_v22 }
 0x37c   : > { %v3606_v54 = vadd.f32 %v3602_v46, %v3562_v57  ;;  %v3607_v38 = vadd.f32 %v3603_v4, %v3563_v1  ;;  %v3608_v56 = vadd.f32 %v3604_v48, %v3564_v23  ;;  %v3609_v55 = vadd.f32 %v3605_v62, %v3565_v15  ;;  %v7991_v57 = vld [vmem:[%s7178_s8 + $0x52a] sm:$0xff]  ;;  %v7994_v1 = vld [vmem:[%s7178_s8 + $0x532] sm:$0xff] }
 0x37d   : > { %v3616_v41 = vadd.f32 %v3612_v34, %v3572_v58  ;;  %v3617_v21 = vadd.f32 %v3613_v12, %v3573_v63  ;;  %v3618_v31 = vadd.f32 %v3614_v37, %v3574_v2  ;;  %v3619_v25 = vadd.f32 %v3615_v7, %v3575_v43 }
 0x37e   : > { %v3622_v39 = vmul.f32 %v4717_v30, %v3621_v29  ;;  %v3623_v0 = vmul.f32 %v4718_v14, %v3621_v29  ;;  %v3624_v42 = vmul.f32 %v7963_v6, %v3621_v29  ;;  %v3625_v61 = vmul.f32 %v7966_v47, %v3621_v29 }
 0x37f   : > { %v3632_v50 = vmul.f32 %v4717_v30, %v3631_v3  ;;  %v3633_v28 = vmul.f32 %v4718_v14, %v3631_v3  ;;  %v3634_v53 = vmul.f32 %v7963_v6, %v3631_v3  ;;  %v3635_v17 = vmul.f32 %v7966_v47, %v3631_v3 }
 0x380   : > { %v3626_v8 = vadd.f32 %v3622_v39, %v3582_v52  ;;  %v3627_v9 = vadd.f32 %v3623_v0, %v3583_v33  ;;  %v3628_v26 = vadd.f32 %v3624_v42, %v3584_v18  ;;  %v3629_v11 = vadd.f32 %v3625_v61, %v3585_v32 }
 0x381   : > { %v3636_v23 = vadd.f32 %v3632_v50, %v3592_v36  ;;  %v3637_v15 = vadd.f32 %v3633_v28, %v3593_v16  ;;  %v3638_v58 = vadd.f32 %v3634_v53, %v3594_v20  ;;  %v3639_v63 = vadd.f32 %v3635_v17, %v3595_v40 }
 0x382   : > { %v3645_v2 = vstv %s7972_s11  ;;  %v3655_v43 = vstv %s7974_s12  ;;  %v3665_v5 = vstv %s7978_s13  ;;  %v3675_v19 = vstv %s7980_s15  ;;  %s8154_s11 = sld [smem:[#allocation8 + $0x8f]]  ;;  %s4816_s12 = sshll.u32 %s4906_s4, 5 }
 0x383   : > { %v3646_v44 = vmul.f32 %v4725_v10, %v3645_v2  ;;  %v3647_v24 = vmul.f32 %v4726_v59, %v3645_v2  ;;  %v3648_v27 = vmul.f32 %v7991_v57, %v3645_v2  ;;  %v3649_v13 = vmul.f32 %v7994_v1, %v3645_v2  ;;  %s8178_s15 = scalar_lea.vmem %s8242_s0, %s4816_s12  ;;  %s2332_s4 = sadd.s32 1, %s4906_s4  }
 0x384   : > { %v3656_v35 = vmul.f32 %v4725_v10, %v3655_v43  ;;  %v3657_v51 = vmul.f32 %v4726_v59, %v3655_v43  ;;  %v3658_v30 = vmul.f32 %v7991_v57, %v3655_v43  ;;  %v3659_v52 = vmul.f32 %v7994_v1, %v3655_v43  ;;  %p2329_p7 = scmp.ge.s32.totalorder %s2332_s4, 8  }
 0x385   : > { %v3650_v33 = vadd.f32 %v3646_v44, %v3606_v54  ;;  %v3651_v18 = vadd.f32 %v3647_v24, %v3607_v38  ;;  %v3652_v32 = vadd.f32 %v3648_v27, %v3608_v56  ;;  %v3653_v14 = vadd.f32 %v3649_v13, %v3609_v55  ;;  %v8017_v54 = vld [vmem:[%s7178_s8 + $0x540] sm:$0xff]  ;;  %v8020_v38 = vld [vmem:[%s7178_s8 + $0x548] sm:$0xff] }
 0x386   : > { %v3660_v36 = vadd.f32 %v3656_v35, %v3616_v41  ;;  %v3661_v16 = vadd.f32 %v3657_v51, %v3617_v21  ;;  %v3662_v20 = vadd.f32 %v3658_v30, %v3618_v31  ;;  %v3663_v40 = vadd.f32 %v3659_v52, %v3619_v25 }
 0x387   : > { %v3666_v49 = vmul.f32 %v4725_v10, %v3665_v5  ;;  %v3667_v22 = vmul.f32 %v4726_v59, %v3665_v5  ;;  %v3668_v29 = vmul.f32 %v7991_v57, %v3665_v5  ;;  %v3669_v3 = vmul.f32 %v7994_v1, %v3665_v5 }
 0x388   : > { %v3676_v46 = vmul.f32 %v4725_v10, %v3675_v19  ;;  %v3677_v4 = vmul.f32 %v4726_v59, %v3675_v19  ;;  %v3678_v48 = vmul.f32 %v7991_v57, %v3675_v19  ;;  %v3679_v62 = vmul.f32 %v7994_v1, %v3675_v19 }
 0x389   : > { %v3670_v34 = vadd.f32 %v3666_v49, %v3626_v8  ;;  %v3671_v12 = vadd.f32 %v3667_v22, %v3627_v9  ;;  %v3672_v37 = vadd.f32 %v3668_v29, %v3628_v26  ;;  %v3673_v7 = vadd.f32 %v3669_v3, %v3629_v11 }
 0x38a   : > { %v3680_v56 = vadd.f32 %v3676_v46, %v3636_v23  ;;  %v3681_v55 = vadd.f32 %v3677_v4, %v3637_v15  ;;  %v3682_v41 = vadd.f32 %v3678_v48, %v3638_v58  ;;  %v3683_v21 = vadd.f32 %v3679_v62, %v3639_v63 }
 0x38b   : > { %v3691_v31 = vstv %s8000_s16  ;;  %v3701_v25 = vstv %s8002_s17  ;;  %v3711_v39 = vstv %s8006_s18  ;;  %v3721_v0 = vstv %s8008_s19  ;;  %s8197_s18 = scalar_lea.vmem %s8247_s5, %s4816_s12 }
 0x38c   : > { %v3692_v42 = vmul.f32 %v7935_v45, %v3691_v31  ;;  %v3693_v61 = vmul.f32 %v7938_v60, %v3691_v31  ;;  %v3694_v50 = vmul.f32 %v8017_v54, %v3691_v31  ;;  %v3695_v28 = vmul.f32 %v8020_v38, %v3691_v31 }
 0x38d   : > { %v3702_v53 = vmul.f32 %v7935_v45, %v3701_v25  ;;  %v3703_v17 = vmul.f32 %v7938_v60, %v3701_v25  ;;  %v3704_v10 = vmul.f32 %v8017_v54, %v3701_v25  ;;  %v3705_v8 = vmul.f32 %v8020_v38, %v3701_v25 }
 0x38e   : > { %v3696_v9 = vadd.f32 %v3692_v42, %v3650_v33  ;;  %v3697_v26 = vadd.f32 %v3693_v61, %v3651_v18  ;;  %v3698_v11 = vadd.f32 %v3694_v50, %v3652_v32  ;;  %v3699_v59 = vadd.f32 %v3695_v28, %v3653_v14  ;;  %v8051_v33 = vld [vmem:[%s7178_s8 + $0x541] sm:$0xff]  ;;  %v8054_v18 = vld [vmem:[%s7178_s8 + $0x549] sm:$0xff] }
 0x38f   : > { %v3706_v23 = vadd.f32 %v3702_v53, %v3660_v36  ;;  %v3707_v15 = vadd.f32 %v3703_v17, %v3661_v16  ;;  %v3708_v58 = vadd.f32 %v3704_v10, %v3662_v20  ;;  %v3709_v63 = vadd.f32 %v3705_v8, %v3663_v40 }
 0x390   : > { %v3712_v2 = vmul.f32 %v7935_v45, %v3711_v39  ;;  %v3713_v43 = vmul.f32 %v7938_v60, %v3711_v39  ;;  %v3714_v5 = vmul.f32 %v8017_v54, %v3711_v39  ;;  %v3715_v19 = vmul.f32 %v8020_v38, %v3711_v39 }
 0x391   : > { %v3722_v44 = vmul.f32 %v7935_v45, %v3721_v0  ;;  %v3723_v24 = vmul.f32 %v7938_v60, %v3721_v0  ;;  %v3724_v27 = vmul.f32 %v8017_v54, %v3721_v0  ;;  %v3725_v13 = vmul.f32 %v8020_v38, %v3721_v0 }
 0x392   : > { %v3716_v35 = vadd.f32 %v3712_v2, %v3670_v34  ;;  %v3717_v51 = vadd.f32 %v3713_v43, %v3671_v12  ;;  %v3718_v30 = vadd.f32 %v3714_v5, %v3672_v37  ;;  %v3719_v52 = vadd.f32 %v3715_v19, %v3673_v7 }
 0x393   : > { %v3726_v32 = vadd.f32 %v3722_v44, %v3680_v56  ;;  %v3727_v14 = vadd.f32 %v3723_v24, %v3681_v55  ;;  %v3728_v36 = vadd.f32 %v3724_v27, %v3682_v41  ;;  %v3729_v45 = vadd.f32 %v3725_v13, %v3683_v21 }
 0x394   : > { %v3735_v16 = vstv %s8026_s20  ;;  %v3745_v20 = vstv %s8028_s21  ;;  %v3755_v60 = vstv %s8034_s22  ;;  %v3765_v40 = vstv %s8036_s23 }
 0x395   : > { %v3736_v49 = vmul.f32 %v7963_v6, %v3735_v16  ;;  %v3737_v22 = vmul.f32 %v7966_v47, %v3735_v16  ;;  %v3738_v29 = vmul.f32 %v8051_v33, %v3735_v16  ;;  %v3739_v3 = vmul.f32 %v8054_v18, %v3735_v16 }
 0x396   : > { %v3746_v46 = vmul.f32 %v7963_v6, %v3745_v20  ;;  %v3747_v4 = vmul.f32 %v7966_v47, %v3745_v20  ;;  %v3748_v48 = vmul.f32 %v8051_v33, %v3745_v20  ;;  %v3749_v62 = vmul.f32 %v8054_v18, %v3745_v20 }
 0x397   : > { %v3740_v34 = vadd.f32 %v3736_v49, %v3696_v9  ;;  %v3741_v12 = vadd.f32 %v3737_v22, %v3697_v26  ;;  %v3742_v37 = vadd.f32 %v3738_v29, %v3698_v11  ;;  %v3743_v7 = vadd.f32 %v3739_v3, %v3699_v59  ;;  %v8085_v9 = vld [vmem:[%s7178_s8 + $0x542] sm:$0xff]  ;;  %v8088_v26 = vld [vmem:[%s7178_s8 + $0x54a] sm:$0xff] }
 0x398   : > { %v3750_v56 = vadd.f32 %v3746_v46, %v3706_v23  ;;  %v3751_v55 = vadd.f32 %v3747_v4, %v3707_v15  ;;  %v3752_v41 = vadd.f32 %v3748_v48, %v3708_v58  ;;  %v3753_v21 = vadd.f32 %v3749_v62, %v3709_v63 }
 0x399   : > { %v3756_v31 = vmul.f32 %v7963_v6, %v3755_v60  ;;  %v3757_v25 = vmul.f32 %v7966_v47, %v3755_v60  ;;  %v3758_v39 = vmul.f32 %v8051_v33, %v3755_v60  ;;  %v3759_v0 = vmul.f32 %v8054_v18, %v3755_v60 }
 0x39a   : > { %v3766_v42 = vmul.f32 %v7963_v6, %v3765_v40  ;;  %v3767_v61 = vmul.f32 %v7966_v47, %v3765_v40  ;;  %v3768_v50 = vmul.f32 %v8051_v33, %v3765_v40  ;;  %v3769_v28 = vmul.f32 %v8054_v18, %v3765_v40 }
 0x39b   : > { %v3760_v53 = vadd.f32 %v3756_v31, %v3716_v35  ;;  %v3761_v17 = vadd.f32 %v3757_v25, %v3717_v51  ;;  %v3762_v10 = vadd.f32 %v3758_v39, %v3718_v30  ;;  %v3763_v8 = vadd.f32 %v3759_v0, %v3719_v52 }
 0x39c   : > { %v3770_v11 = vadd.f32 %v3766_v42, %v3726_v32  ;;  %v3771_v59 = vadd.f32 %v3767_v61, %v3727_v14  ;;  %v3772_v23 = vadd.f32 %v3768_v50, %v3728_v36  ;;  %v3773_v6 = vadd.f32 %v3769_v28, %v3729_v45 }
 0x39d   : > { %v3779_v15 = vstv %s8060_s24  ;;  %v3789_v58 = vstv %s8062_s14  ;;  %v3799_v47 = vstv %s8068_s25  ;;  %v3809_v63 = vstv %s8070_s26 }
 0x39e   : > { %v3780_v2 = vmul.f32 %v7991_v57, %v3779_v15  ;;  %v3781_v43 = vmul.f32 %v7994_v1, %v3779_v15  ;;  %v3782_v5 = vmul.f32 %v8085_v9, %v3779_v15  ;;  %v3783_v19 = vmul.f32 %v8088_v26, %v3779_v15 }
 0x39f   : > { %v3790_v44 = vmul.f32 %v7991_v57, %v3789_v58  ;;  %v3791_v24 = vmul.f32 %v7994_v1, %v3789_v58  ;;  %v3792_v27 = vmul.f32 %v8085_v9, %v3789_v58  ;;  %v3793_v13 = vmul.f32 %v8088_v26, %v3789_v58 }
 0x3a0   : > { %v3784_v35 = vadd.f32 %v3780_v2, %v3740_v34  ;;  %v3785_v51 = vadd.f32 %v3781_v43, %v3741_v12  ;;  %v3786_v30 = vadd.f32 %v3782_v5, %v3742_v37  ;;  %v3787_v52 = vadd.f32 %v3783_v19, %v3743_v7  ;;  %v4763_v34 = vld [vmem:[%s7178_s8 + $0x558] sm:$0xff]  ;;  %v4764_v12 = vld [vmem:[%s7178_s8 + $0x560] sm:$0xff] }
 0x3a1   : > { %v3794_v32 = vadd.f32 %v3790_v44, %v3750_v56  ;;  %v3795_v14 = vadd.f32 %v3791_v24, %v3751_v55  ;;  %v3796_v36 = vadd.f32 %v3792_v27, %v3752_v41  ;;  %v3797_v45 = vadd.f32 %v3793_v13, %v3753_v21 }
 0x3a2   : > { %v3800_v16 = vmul.f32 %v7991_v57, %v3799_v47  ;;  %v3801_v20 = vmul.f32 %v7994_v1, %v3799_v47  ;;  %v3802_v60 = vmul.f32 %v8085_v9, %v3799_v47  ;;  %v3803_v40 = vmul.f32 %v8088_v26, %v3799_v47 }
 0x3a3   : > { %v3810_v49 = vmul.f32 %v7991_v57, %v3809_v63  ;;  %v3811_v22 = vmul.f32 %v7994_v1, %v3809_v63  ;;  %v3812_v29 = vmul.f32 %v8085_v9, %v3809_v63  ;;  %v3813_v3 = vmul.f32 %v8088_v26, %v3809_v63 }
 0x3a4   : > { %v3804_v46 = vadd.f32 %v3800_v16, %v3760_v53  ;;  %v3805_v4 = vadd.f32 %v3801_v20, %v3761_v17  ;;  %v3806_v48 = vadd.f32 %v3802_v60, %v3762_v10  ;;  %v3807_v62 = vadd.f32 %v3803_v40, %v3763_v8 }
 0x3a5   : > { %v3814_v37 = vadd.f32 %v3810_v49, %v3770_v11  ;;  %v3815_v7 = vadd.f32 %v3811_v22, %v3771_v59  ;;  %v3816_v56 = vadd.f32 %v3812_v29, %v3772_v23  ;;  %v3817_v55 = vadd.f32 %v3813_v3, %v3773_v6 }
 0x3a6   : > { %v3825_v41 = vstv %s8094_s2  ;;  %v3835_v57 = vstv %s8096_s1  ;;  %v3845_v21 = vstv %s8102_s27  ;;  %v3855_v31 = vstv %s8104_s28 }
 0x3a7   : > { %v3826_v1 = vmul.f32 %v8017_v54, %v3825_v41  ;;  %v3827_v25 = vmul.f32 %v8020_v38, %v3825_v41  ;;  %v3828_v39 = vmul.f32 %v4763_v34, %v3825_v41  ;;  %v3829_v0 = vmul.f32 %v4764_v12, %v3825_v41 }
 0x3a8   : > { %v3836_v42 = vmul.f32 %v8017_v54, %v3835_v57  ;;  %v3837_v61 = vmul.f32 %v8020_v38, %v3835_v57  ;;  %v3838_v50 = vmul.f32 %v4763_v34, %v3835_v57  ;;  %v3839_v28 = vmul.f32 %v4764_v12, %v3835_v57 }
 0x3a9   : > { %v3830_v53 = vadd.f32 %v3826_v1, %v3784_v35  ;;  %v3831_v17 = vadd.f32 %v3827_v25, %v3785_v51  ;;  %v3832_v10 = vadd.f32 %v3828_v39, %v3786_v30  ;;  %v3833_v8 = vadd.f32 %v3829_v0, %v3787_v52  ;;  %v4771_v35 = vld [vmem:[%s7178_s8 + $0x559] sm:$0xff]  ;;  %v4772_v51 = vld [vmem:[%s7178_s8 + $0x561] sm:$0xff] }
 0x3aa   : > { %v3840_v11 = vadd.f32 %v3836_v42, %v3794_v32  ;;  %v3841_v59 = vadd.f32 %v3837_v61, %v3795_v14  ;;  %v3842_v23 = vadd.f32 %v3838_v50, %v3796_v36  ;;  %v3843_v6 = vadd.f32 %v3839_v28, %v3797_v45  ;;  %v4779_v50 = vld [vmem:[%s7178_s8 + $0x55a] sm:$0xff]  ;;  %v4780_v28 = vld [vmem:[%s7178_s8 + $0x562] sm:$0xff] }
 0x3ab   : > { %v3846_v15 = vmul.f32 %v8017_v54, %v3845_v21  ;;  %v3847_v58 = vmul.f32 %v8020_v38, %v3845_v21  ;;  %v3848_v47 = vmul.f32 %v4763_v34, %v3845_v21  ;;  %v3849_v63 = vmul.f32 %v4764_v12, %v3845_v21 }
 0x3ac   : > { %v3856_v2 = vmul.f32 %v8017_v54, %v3855_v31  ;;  %v3857_v43 = vmul.f32 %v8020_v38, %v3855_v31  ;;  %v3858_v5 = vmul.f32 %v4763_v34, %v3855_v31  ;;  %v3859_v19 = vmul.f32 %v4764_v12, %v3855_v31 }
 0x3ad   : > { %v3850_v44 = vadd.f32 %v3846_v15, %v3804_v46  ;;  %v3851_v24 = vadd.f32 %v3847_v58, %v3805_v4  ;;  %v3852_v27 = vadd.f32 %v3848_v47, %v3806_v48  ;;  %v3853_v13 = vadd.f32 %v3849_v63, %v3807_v62 }
 0x3ae   : > { %v3860_v30 = vadd.f32 %v3856_v2, %v3814_v37  ;;  %v3861_v52 = vadd.f32 %v3857_v43, %v3815_v7  ;;  %v3862_v32 = vadd.f32 %v3858_v5, %v3816_v56  ;;  %v3863_v14 = vadd.f32 %v3859_v19, %v3817_v55 }
 0x3af   : > { %v3869_v36 = vstv %s8124_s29  ;;  %v3879_v45 = vstv %s8126_s30  ;;  %v3889_v16 = vstv %s8130_s7  ;;  %v3899_v54 = vstv %s8132_s6 }
 0x3b0   : > { %v3870_v38 = vmul.f32 %v8051_v33, %v3869_v36  ;;  %v3871_v20 = vmul.f32 %v8054_v18, %v3869_v36  ;;  %v3872_v60 = vmul.f32 %v4771_v35, %v3869_v36  ;;  %v3873_v40 = vmul.f32 %v4772_v51, %v3869_v36 }
 0x3b1   : > { %v3880_v49 = vmul.f32 %v8051_v33, %v3879_v45  ;;  %v3881_v22 = vmul.f32 %v8054_v18, %v3879_v45  ;;  %v3882_v29 = vmul.f32 %v4771_v35, %v3879_v45  ;;  %v3883_v3 = vmul.f32 %v4772_v51, %v3879_v45 }
 0x3b2   : > { %v3874_v46 = vadd.f32 %v3870_v38, %v3830_v53  ;;  %v3875_v4 = vadd.f32 %v3871_v20, %v3831_v17  ;;  %v3876_v48 = vadd.f32 %v3872_v60, %v3832_v10  ;;  %v3877_v62 = vadd.f32 %v3873_v40, %v3833_v8 }
 0x3b3   : > { %v3884_v34 = vadd.f32 %v3880_v49, %v3840_v11  ;;  %v3885_v12 = vadd.f32 %v3881_v22, %v3841_v59  ;;  %v3886_v37 = vadd.f32 %v3882_v29, %v3842_v23  ;;  %v3887_v7 = vadd.f32 %v3883_v3, %v3843_v6  ;;  %v3958_v49 = vld [vmem:[%s8178_s15] sm:$0xff]  ;;  %v3959_v22 = vld [vmem:[%s8178_s15 + $0x8] sm:$0xff]  ;;  %v3960_v29 = vld [vmem:[%s8178_s15 + $0x10] sm:$0xff] }
 0x3b4   : > { %v3890_v56 = vmul.f32 %v8051_v33, %v3889_v16  ;;  %v3891_v55 = vmul.f32 %v8054_v18, %v3889_v16  ;;  %v3892_v41 = vmul.f32 %v4771_v35, %v3889_v16  ;;  %v3893_v57 = vmul.f32 %v4772_v51, %v3889_v16 }
 0x3b5   : > { %v3900_v21 = vmul.f32 %v8051_v33, %v3899_v54  ;;  %v3901_v31 = vmul.f32 %v8054_v18, %v3899_v54  ;;  %v3902_v1 = vmul.f32 %v4771_v35, %v3899_v54  ;;  %v3903_v25 = vmul.f32 %v4772_v51, %v3899_v54 }
 0x3b6   : > { %v3894_v39 = vadd.f32 %v3890_v56, %v3850_v44  ;;  %v3895_v0 = vadd.f32 %v3891_v55, %v3851_v24  ;;  %v3896_v42 = vadd.f32 %v3892_v41, %v3852_v27  ;;  %v3897_v61 = vadd.f32 %v3893_v57, %v3853_v13  ;;  %v4789_v56 = vld [vmem:[%s8178_s15 + $0x110] sm:$0xff]  ;;  %v4790_v55 = vld [vmem:[%s8178_s15 + $0x118] sm:$0xff] }
 0x3b7   : > { %v3904_v53 = vadd.f32 %v3900_v21, %v3860_v30  ;;  %v3905_v17 = vadd.f32 %v3901_v31, %v3861_v52  ;;  %v3906_v10 = vadd.f32 %v3902_v1, %v3862_v32  ;;  %v3907_v8 = vadd.f32 %v3903_v25, %v3863_v14 }
 0x3b8   : > { %v3913_v11 = vstv %s8146_s9  ;;  %v3923_v59 = vstv %s8148_s3  ;;  %v3933_v33 = vstv %s8152_s10  ;;  %v3943_v23 = vstv %s8154_s11 }
 0x3b9   : > { %v3914_v18 = vmul.f32 %v8085_v9, %v3913_v11  ;;  %v3915_v6 = vmul.f32 %v8088_v26, %v3913_v11  ;;  %v3916_v15 = vmul.f32 %v4779_v50, %v3913_v11  ;;  %v3917_v58 = vmul.f32 %v4780_v28, %v3913_v11  ;;  %v4807_v11 = vld [vmem:[%s8178_s15 + $0x300] sm:$0xff] }
 0x3ba   : > { %v3924_v47 = vmul.f32 %v8085_v9, %v3923_v59  ;;  %v3925_v63 = vmul.f32 %v8088_v26, %v3923_v59  ;;  %v3926_v2 = vmul.f32 %v4779_v50, %v3923_v59  ;;  %v3927_v43 = vmul.f32 %v4780_v28, %v3923_v59  ;;  %v4808_v59 = vld [vmem:[%s8178_s15 + $0x308] sm:$0xff] }
 0x3bb   : > { %v3918_v5 = vadd.f32 %v3914_v18, %v3874_v46  ;;  %v3919_v19 = vadd.f32 %v3915_v6, %v3875_v4  ;;  %v3920_v44 = vadd.f32 %v3916_v15, %v3876_v48  ;;  %v3921_v24 = vadd.f32 %v3917_v58, %v3877_v62  ;;  %v3961_v48 = vld [vmem:[%s8178_s15 + $0x18] sm:$0xff]  ;;  %v4787_v62 = vld [vmem:[%s8178_s15 + $0x100] sm:$0xff]  ;;  %v4809_v15 = vld [vmem:[%s8178_s15 + $0x310] sm:$0xff] }
 0x3bc   : > { %v3928_v27 = vadd.f32 %v3924_v47, %v3884_v34  ;;  %v3929_v13 = vadd.f32 %v3925_v63, %v3885_v12  ;;  %v3930_v35 = vadd.f32 %v3926_v2, %v3886_v37  ;;  %v3931_v51 = vadd.f32 %v3927_v43, %v3887_v7  ;;  %v4810_v58 = vld [vmem:[%s8178_s15 + $0x318] sm:$0xff] }
 0x3bd   : > { %v3934_v30 = vmul.f32 %v8085_v9, %v3933_v33  ;;  %v3935_v52 = vmul.f32 %v8088_v26, %v3933_v33  ;;  %v3936_v32 = vmul.f32 %v4779_v50, %v3933_v33  ;;  %v3937_v14 = vmul.f32 %v4780_v28, %v3933_v33 }
 0x3be   : > { %v3944_v36 = vmul.f32 %v8085_v9, %v3943_v23  ;;  %v3945_v45 = vmul.f32 %v8088_v26, %v3943_v23  ;;  %v3946_v16 = vmul.f32 %v4779_v50, %v3943_v23  ;;  %v3947_v54 = vmul.f32 %v4780_v28, %v3943_v23  ;;  %v4788_v26 = vld [vmem:[%s8178_s15 + $0x108] sm:$0xff]  ;;  %v4799_v50 = vld [vmem:[%s8178_s15 + $0x210] sm:$0xff] }
 0x3bf   : > { %v3938_v38 = vadd.f32 %v3934_v30, %v3894_v39  ;;  %v3939_v20 = vadd.f32 %v3935_v52, %v3895_v0  ;;  %v3940_v60 = vadd.f32 %v3936_v32, %v3896_v42  ;;  %v3941_v40 = vadd.f32 %v3937_v14, %v3897_v61  ;;  %v4797_v42 = vld [vmem:[%s8178_s15 + $0x200] sm:$0xff]  ;;  %v4798_v61 = vld [vmem:[%s8178_s15 + $0x208] sm:$0xff] }
 0x3c0   : > { %v3948_v3 = vadd.f32 %v3944_v36, %v3904_v53  ;;  %v3949_v46 = vadd.f32 %v3945_v45, %v3905_v17  ;;  %v3950_v4 = vadd.f32 %v3946_v16, %v3906_v10  ;;  %v3951_v9 = vadd.f32 %v3947_v54, %v3907_v8  ;;  %v4800_v8 = vld [vmem:[%s8178_s15 + $0x218] sm:$0xff] }
 0x3c1   : > { %v3952_v34 = vmax.f32 %v3918_v5, 0.0  ;;  %v3953_v12 = vmax.f32 %v3919_v19, 0.0  ;;  %v3954_v37 = vmax.f32 %v3920_v44, 0.0  ;;  %v3955_v7 = vmax.f32 %v3921_v24, 0.0 }
 0x3c2   : > { %v3971_v41 = vmax.f32 %v3928_v27, 0.0  ;;  %v3972_v57 = vmax.f32 %v3929_v13, 0.0  ;;  %v3973_v21 = vmax.f32 %v3930_v35, 0.0  ;;  %v3974_v31 = vmax.f32 %v3931_v51, 0.0 }
 0x3c3   : > { %v3962_v1 = vadd.f32 %v3958_v49, %v3952_v34  ;;  %v3963_v25 = vadd.f32 %v3959_v22, %v3953_v12  ;;  %v3964_v39 = vadd.f32 %v3960_v29, %v3954_v37  ;;  %v3965_v0 = vadd.f32 %v3961_v48, %v3955_v7 }
 0x3c4   : > { %v3981_v28 = vadd.f32 %v4787_v62, %v3971_v41  ;;  %v3982_v53 = vadd.f32 %v4788_v26, %v3972_v57  ;;  %v3983_v17 = vadd.f32 %v4789_v56, %v3973_v21  ;;  %v3984_v10 = vadd.f32 %v4790_v55, %v3974_v31 }
 0x3c5   : > { %3967 = vst.msk [vmem:[%s8197_s18] sm:$0xff] %vm68_vm0, %v3962_v1  ;;  %3968 = vst.msk [vmem:[%s8197_s18 + $0x8] sm:$0xff] %vm68_vm0, %v3963_v25  ;;  %v3990_v33 = vmax.f32 %v3938_v38, 0.0  ;;  %v3991_v23 = vmax.f32 %v3939_v20, 0.0  ;;  %v3992_v18 = vmax.f32 %v3940_v60, 0.0  ;;  %v3993_v6 = vmax.f32 %v3941_v40, 0.0 }
 0x3c6   : > { %3969 = vst.msk [vmem:[%s8197_s18 + $0x10] sm:$0xff] %vm68_vm0, %v3964_v39  ;;  %3970 = vst.msk [vmem:[%s8197_s18 + $0x18] sm:$0xff] %vm68_vm0, %v3965_v0  ;;  %v4009_v47 = vmax.f32 %v3948_v3, 0.0  ;;  %v4010_v63 = vmax.f32 %v3949_v46, 0.0  ;;  %v4011_v2 = vmax.f32 %v3950_v4, 0.0  ;;  %v4012_v43 = vmax.f32 %v3951_v9, 0.0 }
 0x3c7   : > { %4792 = vst.msk [vmem:[%s8197_s18 + $0x100] sm:$0xff] %vm68_vm0, %v3981_v28  ;;  %4793 = vst.msk [vmem:[%s8197_s18 + $0x108] sm:$0xff] %vm68_vm0, %v3982_v53  ;;  %v4000_v5 = vadd.f32 %v4797_v42, %v3990_v33  ;;  %v4001_v19 = vadd.f32 %v4798_v61, %v3991_v23  ;;  %v4002_v44 = vadd.f32 %v4799_v50, %v3992_v18  ;;  %2331 = sbr.rel (!%p2329_p7) target bundleno = 628 (0x274), region = 120 }
 0x3c8   : > { %4794 = vst.msk [vmem:[%s8197_s18 + $0x110] sm:$0xff] %vm68_vm0, %v3983_v17  ;;  %4795 = vst.msk [vmem:[%s8197_s18 + $0x118] sm:$0xff] %vm68_vm0, %v3984_v10  ;;  %v4003_v24 = vadd.f32 %v4800_v8, %v3993_v6  ;;  %v4019_v27 = vadd.f32 %v4807_v11, %v4009_v47  ;;  %v4020_v13 = vadd.f32 %v4808_v59, %v4010_v63 }
 0x3c9   : > { %v4021_v35 = vadd.f32 %v4809_v15, %v4011_v2  ;;  %v4022_v51 = vadd.f32 %v4810_v58, %v4012_v43  ;;  %4802 = vst.msk [vmem:[%s8197_s18 + $0x200] sm:$0xff] %vm68_vm0, %v4000_v5  ;;  %4803 = vst.msk [vmem:[%s8197_s18 + $0x208] sm:$0xff] %vm68_vm0, %v4001_v19 }
 0x3ca   : > { %4804 = vst.msk [vmem:[%s8197_s18 + $0x210] sm:$0xff] %vm68_vm0, %v4002_v44  ;;  %4805 = vst.msk [vmem:[%s8197_s18 + $0x218] sm:$0xff] %vm68_vm0, %v4003_v24 }
 0x3cb   : > { %4812 = vst.msk [vmem:[%s8197_s18 + $0x300] sm:$0xff] %vm68_vm0, %v4019_v27  ;;  %4813 = vst.msk [vmem:[%s8197_s18 + $0x308] sm:$0xff] %vm68_vm0, %v4020_v13 }
 0x3cc   : > { %4814 = vst.msk [vmem:[%s8197_s18 + $0x310] sm:$0xff] %vm68_vm0, %v4021_v35  ;;  %4815 = vst.msk [vmem:[%s8197_s18 + $0x318] sm:$0xff] %vm68_vm0, %v4022_v51 }
 0x3ce   :  { %4032 = vsyncpa [#allocation5], 1 }
 0x3cf   :  { %4033 = vsyncpa [#allocation7], 1 }
 0x3d0   :  { %4034 = vsyncpa [#allocation10], 1 }

</bundles_post_ra>
